<compile_context>
chip_gen: v6e
topology: v6e:2x2x1
jax: 0.10.0
libtpu: 0.0.40
codegen_flags: <defaults>
</compile_context>

<pallas_src>
import functools

import numpy as np
import jax
import jax.numpy as jnp
from jax.experimental import pallas as pl
from jax.experimental.pallas import tpu as pltpu


def _conv_out_len(L):
    return (L - 3) // 2 + 1


# -----------------------------------------------------------------------------
# Single fused kernel.
#
# Activation layout: rows = b * P_i + position, lanes = channels, where P_i is
# the (padded, power-of-two-ish) per-batch row stride for stage i.  With that
# layout, a k=3 / stride-2 conv over ALL batches is: out_row m reads input rows
# 2*m + t for taps t in {0,1,2}  ->  3 strided reads + 3 matmuls total.
# The last row of each batch block is "garbage" (window crosses the batch
# boundary); it is finite (pad rows are zeroed) and never consumed downstream.
# -----------------------------------------------------------------------------
def _fused_kernel(x_ref, w1_ref, b1_ref, w2_ref, b2_ref, w3_ref, b3_ref,
                  w4_hbm, b4_ref, w5_ref, b5_ref, w6_ref, b6_ref,
                  o_ref,
                  h1_scr, h2_scr, h3_scr, fc_in_scr, w4_vmem, w4_sem,
                  *, B, P1, P2, P3, L3):
    f32 = jnp.float32

    # --- (1) start the big FC4-weight DMA immediately; wait only before FC4 ---
    w4_copy = pltpu.make_async_copy(w4_hbm, w4_vmem, w4_sem)
    w4_copy.start()

    # Zero the trailing pad rows so batch-boundary ("garbage") conv rows stay finite.
    h1_scr[pl.ds(B * P1, 8), :] = jnp.zeros((8, h1_scr.shape[1]), f32)
    h2_scr[pl.ds(B * P2, 8), :] = jnp.zeros((8, h2_scr.shape[1]), f32)

    def conv_all(src_ref, n_out, w_ref, bias, relu):
        # k=3, stride=2 conv over all batches at once: 3 tap matmuls.
        acc = jnp.dot(src_ref[pl.ds(0, n_out, stride=2), :], w_ref[0],
                      preferred_element_type=f32)
        acc = acc + jnp.dot(src_ref[pl.ds(1, n_out, stride=2), :], w_ref[1],
                            preferred_element_type=f32)
        acc = acc + jnp.dot(src_ref[pl.ds(2, n_out, stride=2), :], w_ref[2],
                            preferred_element_type=f32)
        acc = acc + bias                                  # (1, C_out) broadcast, read once
        if relu:
            acc = jnp.maximum(acc, 0.0)
        return acc

    # --- conv stage: 9 matmuls total, independent of batch size ---
    h1_scr[pl.ds(0, B * P1), :] = conv_all(x_ref, B * P1, w1_ref, b1_ref[...], True)
    h2_scr[pl.ds(0, B * P2), :] = conv_all(h1_scr, B * P2, w2_ref, b2_ref[...], True)
    h3_scr[...] = conv_all(h2_scr, B * P3, w3_ref, b3_ref[...], False)

    # --- flatten: build a lane-dense (B, L3*64) slab (channel-major flatten is
    #     already absorbed into the w4 row permutation done at pack time).
    #     31 small row-copies (vld/vst only, no MXU), overlapping the w4 DMA. ---
    for l in range(L3):
        fc_in_scr[pl.ds(0, B), pl.ds(64 * l, 64)] = h3_scr[pl.ds(l, B, stride=P3), :]

    # --- FC4: ONE (B, 1984) @ (1984, 160) matmul, bf16 operands, f32 accumulate ---
    w4_copy.wait()
    lhs = fc_in_scr[...].astype(jnp.bfloat16)
    h4 = jnp.maximum(jnp.dot(lhs, w4_vmem[...], preferred_element_type=f32)
                     + b4_ref[...], 0.0)                  # (B, 160)
    # TODO(synk): Dropout(p=0.5) after FC4/FC5 is eval-mode identity here.

    # --- FC5 + ReLU, FC6 ---
    h5 = jnp.maximum(jnp.dot(h4, w5_ref[...], preferred_element_type=f32)
                     + b5_ref[...], 0.0)                  # (B, 32)
    o_ref[...] = (jnp.dot(h5, w6_ref[...], preferred_element_type=f32)
                  + b6_ref[...]).astype(o_ref.dtype)      # (B, 1)


# -----------------------------------------------------------------------------
# Parameter init (PyTorch-like uniform(-1/sqrt(fan_in), 1/sqrt(fan_in)))
# in the "math" layout, plus a one-time repack into kernel-friendly layouts.
# -----------------------------------------------------------------------------
def _uniform(key, shape, fan_in):
    bound = 1.0 / jnp.sqrt(jnp.float32(fan_in))
    return jax.random.uniform(key, shape, jnp.float32, -bound, bound)


def init_params(key, chn, mode='1'):
    in_feature = 1984 if mode == '1' else 2304
    ks = jax.random.split(key, 12)
    p = {}
    p['w1'] = _uniform(ks[0], (16, chn, 3), chn * 3)
    p['b1'] = _uniform(ks[1], (16,), chn * 3)
    p['w2'] = _uniform(ks[2], (32, 16, 3), 16 * 3)
    p['b2'] = _uniform(ks[3], (32,), 16 * 3)
    p['w3'] = _uniform(ks[4], (64, 32, 3), 32 * 3)
    p['b3'] = _uniform(ks[5], (64,), 32 * 3)
    p['w4'] = _uniform(ks[6], (in_feature, 160), in_feature)
    p['b4'] = _uniform(ks[7], (160,), in_feature)
    p['w5'] = _uniform(ks[8], (160, 32), 160)
    p['b5'] = _uniform(ks[9], (32,), 160)
    p['w6'] = _uniform(ks[10], (32, 1), 32)
    p['b6'] = _uniform(ks[11], (1,), 32)
    return p


def pack_params(p, L3):
    """One-time repack (done at init time, not per forward)."""
    q = {}
    # Conv weights (C_out, C_in, 3) -> per-tap matrices (3, C_in, C_out), f32.
    q['w1'] = jnp.transpose(p['w1'], (2, 1, 0))
    q['w2'] = jnp.transpose(p['w2'], (2, 1, 0))
    q['w3'] = jnp.transpose(p['w3'], (2, 1, 0))
    # Absorb PyTorch's channel-major Flatten (flat = c*L3 + l) into a row
    # permutation of w4 (new row = l*64 + c) and store it bf16 — it's the only
    # big weight, so this halves the dominant HBM transfer.
    w4 = p['w4'].reshape(64, L3, 160).transpose(1, 0, 2).reshape(L3 * 64, 160)
    q['w4'] = w4.astype(jnp.bfloat16)
    q['w5'] = p['w5']
    q['w6'] = p['w6']
    for name in ('b1', 'b2', 'b3', 'b4', 'b5', 'b6'):
        q[name] = p[name].reshape(1, -1)
    return q


# -----------------------------------------------------------------------------
# Forward pass: one fused pallas_call.
# -----------------------------------------------------------------------------
@jax.jit
def hist_discriminator_cnn_forward(packed, x):
    """x: (B, chn, bins) float32 -> (B, 1) float32 (bins must be divisible by 8)."""
    B, chn, bins = x.shape
    assert bins % 8 == 0, "padded-stride conv layout needs bins % 8 == 0"
    L1 = _conv_out_len(bins)
    L2 = _conv_out_len(L1)
    L3 = _conv_out_len(L2)
    P1, P2, P3 = bins // 2, bins // 4, bins // 8      # padded per-batch row strides
    assert L1 <= P1 and L2 <= P2 and L3 <= P3
    assert packed['w4'].shape[0] == L3 * 64, "w4 packing inconsistent with bins"

    # Layout plumbing in glue (tiny): NCL -> rows = b*bins + pos, lanes = C,
    # plus 8 zero pad rows so boundary conv windows never read out of bounds.
    x2d = jnp.transpose(x, (0, 2, 1)).reshape(B * bins, chn)
    x2d = jnp.pad(x2d, ((0, 8), (0, 0)))

    vmem = pl.BlockSpec(memory_space=pltpu.MemorySpace.VMEM)
    anyspec = pl.BlockSpec(memory_space=pl.ANY)       # w4 stays in HBM; manual DMA
    kernel = functools.partial(_fused_kernel, B=B, P1=P1, P2=P2, P3=P3, L3=L3)

    flops = 2 * (B * P1 * (3 * chn) * 16
                 + B * P2 * (3 * 16) * 32
                 + B * P3 * (3 * 32) * 64
                 + B * (L3 * 64) * 160
                 + B * 160 * 32
                 + B * 32 * 1)
    bytes_accessed = (int(x2d.size) * 4 + B * 4
                      + sum(int(np.prod(v.shape)) * v.dtype.itemsize
                            for v in packed.values()))

    return pl.pallas_call(
        kernel,
        out_shape=jax.ShapeDtypeStruct((B, 1), jnp.float32),
        in_specs=[vmem] * 7 + [anyspec] + [vmem] * 5,
        out_specs=vmem,
        scratch_shapes=[
            pltpu.VMEM((B * P1 + 8, 16), jnp.float32),      # h1
            pltpu.VMEM((B * P2 + 8, 32), jnp.float32),      # h2
            pltpu.VMEM((B * P3, 64), jnp.float32),          # h3
            pltpu.VMEM((B, L3 * 64), jnp.float32),          # lane-dense FC4 input
            pltpu.VMEM((L3 * 64, 160), jnp.bfloat16),       # w4 landing buffer
            pltpu.SemaphoreType.DMA(()),                    # w4 DMA semaphore
        ],
        cost_estimate=pl.CostEstimate(flops=flops, transcendentals=0,
                                      bytes_accessed=bytes_accessed),
    )(x2d,
      packed['w1'], packed['b1'], packed['w2'], packed['b2'],
      packed['w3'], packed['b3'], packed['w4'], packed['b4'],
      packed['w5'], packed['b5'], packed['w6'], packed['b6'])


# -----------------------------------------------------------------------------
# Pure-JAX reference (PyTorch semantics, eval mode, f32) for verification.
# -----------------------------------------------------------------------------
def _reference_forward(params, x):
    def conv(x, w, b, relu):
        L_out = _conv_out_len(x.shape[-1])
        idx = 2 * jnp.arange(L_out)[:, None] + jnp.arange(3)[None, :]
        patches = x[:, :, idx]                               # (B, C_in, L_out, 3)
        y = jnp.einsum('bclt,oct->bol', patches, w) + b[None, :, None]
        return jnp.maximum(y, 0.0) if relu else y
    h = conv(x, params['w1'], params['b1'], True)
    h = conv(h, params['w2'], params['b2'], True)
    h = conv(h, params['w3'], params['b3'], False)           # (B, 64, L3)
    h = h.reshape(x.shape[0], -1)                            # channel-major flatten
    h = jnp.maximum(h @ params['w4'] + params['b4'], 0.0)
    h = jnp.maximum(h @ params['w5'] + params['b5'], 0.0)
    return h @ params['w6'] + params['b6']


if __name__ == "__main__":
    key = jax.random.PRNGKey(0)
    k_param, k_x = jax.random.split(key)

    # mode='1' => in_feature = 1984 = 64*31 => bins = 256 (256 -> 127 -> 63 -> 31).
    # B=8 per the review: amortize weight traffic / fixed overhead over a batch.
    B, chn, bins = 8, 4, 256
    params = init_params(k_param, chn, mode='1')
    L3 = _conv_out_len(_conv_out_len(_conv_out_len(bins)))
    packed = pack_params(params, L3)

    x = jax.random.normal(k_x, (B, chn, bins), jnp.float32)

    y = jax.block_until_ready(hist_discriminator_cnn_forward(packed, x))
    assert y.shape == (B, 1), y.shape
    assert y.dtype == jnp.float32

    y_ref = jax.block_until_ready(_reference_forward(params, x))
    # Tolerance loosened vs. the all-f32 version because w4 / the FC4 LHS are bf16.
    np.testing.assert_allclose(np.asarray(y), np.asarray(y_ref), rtol=2e-2, atol=2e-2)

    print("KERNEL_OK")
</pallas_src>

<mosaic_0001>
module attributes {stable_mosaic.version = 11 : i64} {
  func.func @_fused_kernel(%arg0: memref<2056x4xf32, #tpu.memory_space<vmem>>, %arg1: memref<3x4x16xf32, #tpu.memory_space<vmem>>, %arg2: memref<1x16xf32, #tpu.memory_space<vmem>>, %arg3: memref<3x16x32xf32, #tpu.memory_space<vmem>>, %arg4: memref<1x32xf32, #tpu.memory_space<vmem>>, %arg5: memref<3x32x64xf32, #tpu.memory_space<vmem>>, %arg6: memref<1x64xf32, #tpu.memory_space<vmem>>, %arg7: memref<1984x160xbf16, #tpu.memory_space<any>>, %arg8: memref<1x160xf32, #tpu.memory_space<vmem>>, %arg9: memref<160x32xf32, #tpu.memory_space<vmem>>, %arg10: memref<1x32xf32, #tpu.memory_space<vmem>>, %arg11: memref<32x1xf32, #tpu.memory_space<vmem>>, %arg12: memref<1x1xf32, #tpu.memory_space<vmem>>, %arg13: memref<8x1xf32, #tpu.memory_space<vmem>>, %arg14: memref<1032x16xf32, #tpu.memory_space<vmem>>, %arg15: memref<520x32xf32, #tpu.memory_space<vmem>>, %arg16: memref<256x64xf32, #tpu.memory_space<vmem>>, %arg17: memref<8x1984xf32, #tpu.memory_space<vmem>>, %arg18: memref<1984x160xbf16, #tpu.memory_space<vmem>>, %arg19: memref<!tpu.dma_semaphore, #tpu.memory_space<semaphore_mem>>) attributes {dimension_semantics = [], scalar_prefetch = 0 : i64, scratch_operands = 6 : i64, tpu.core_type = #tpu.core_type<tc>} {
    tpu.enqueue_dma source(%arg7 : memref<1984x160xbf16, #tpu.memory_space<any>>) target(%arg18 : memref<1984x160xbf16, #tpu.memory_space<vmem>>) target_semaphore(%arg19 : memref<!tpu.dma_semaphore, #tpu.memory_space<semaphore_mem>>)
    %cst = arith.constant 0.000000e+00 : f32
    %0 = vector.broadcast %cst : f32 to vector<8x16xf32>
    %c1024 = arith.constant 1024 : index
    %c0 = arith.constant 0 : index
    %1 = vector.load %arg14[%c1024, %c0] : memref<1032x16xf32, #tpu.memory_space<vmem>>, vector<8x16xf32>
    tpu.vector_store %arg14[%c1024, %c0], %0 {strides = array<i32>} : memref<1032x16xf32, #tpu.memory_space<vmem>>, vector<8x16xf32>,
    %cst_0 = arith.constant 0.000000e+00 : f32
    %2 = vector.broadcast %cst_0 : f32 to vector<8x32xf32>
    %c512 = arith.constant 512 : index
    %c0_1 = arith.constant 0 : index
    %3 = vector.load %arg15[%c512, %c0_1] : memref<520x32xf32, #tpu.memory_space<vmem>>, vector<8x32xf32>
    tpu.vector_store %arg15[%c512, %c0_1], %2 {strides = array<i32>} : memref<520x32xf32, #tpu.memory_space<vmem>>, vector<8x32xf32>,
    %c0_2 = arith.constant 0 : index
    %c0_3 = arith.constant 0 : index
    %4 = vector.load %arg2[%c0_2, %c0_3] : memref<1x16xf32, #tpu.memory_space<vmem>>, vector<1x16xf32>
    %c0_4 = arith.constant 0 : index
    %c0_5 = arith.constant 0 : index
    %5 = tpu.strided_load %arg0[%c0_4, %c0_5] {strides = array<i32: 2, 1>} : memref<2056x4xf32, #tpu.memory_space<vmem>>, vector<1024x4xf32>
    %c0_6 = arith.constant 0 : index
    %c0_7 = arith.constant 0 : index
    %c0_8 = arith.constant 0 : index
    %6 = vector.load %arg1[%c0_6, %c0_7, %c0_8] : memref<3x4x16xf32, #tpu.memory_space<vmem>>, vector<1x4x16xf32>
    %7 = vector.shape_cast %6 : vector<1x4x16xf32> to vector<4x16xf32>
    %cst_9 = arith.constant dense<0.000000e+00> : vector<1024x16xf32>
    %8 = tpu.matmul %5, %7, %cst_9 {dimension_numbers = #tpu.dot_dimension_numbers<[1], [0], [0], [1], [0, 0, 1, 1], [], []>} : vector<1024x4xf32>, vector<4x16xf32>, vector<1024x16xf32> -> vector<1024x16xf32>
    %c1 = arith.constant 1 : index
    %c0_10 = arith.constant 0 : index
    %9 = tpu.strided_load %arg0[%c1, %c0_10] {strides = array<i32: 2, 1>} : memref<2056x4xf32, #tpu.memory_space<vmem>>, vector<1024x4xf32>
    %c1_11 = arith.constant 1 : index
    %c0_12 = arith.constant 0 : index
    %c0_13 = arith.constant 0 : index
    %10 = vector.load %arg1[%c1_11, %c0_12, %c0_13] : memref<3x4x16xf32, #tpu.memory_space<vmem>>, vector<1x4x16xf32>
    %11 = vector.shape_cast %10 : vector<1x4x16xf32> to vector<4x16xf32>
    %cst_14 = arith.constant dense<0.000000e+00> : vector<1024x16xf32>
    %12 = tpu.matmul %9, %11, %cst_14 {dimension_numbers = #tpu.dot_dimension_numbers<[1], [0], [0], [1], [0, 0, 1, 1], [], []>} : vector<1024x4xf32>, vector<4x16xf32>, vector<1024x16xf32> -> vector<1024x16xf32>
    %13 = arith.addf %8, %12 : vector<1024x16xf32>
    %c2 = arith.constant 2 : index
    %c0_15 = arith.constant 0 : index
    %14 = tpu.strided_load %arg0[%c2, %c0_15] {strides = array<i32: 2, 1>} : memref<2056x4xf32, #tpu.memory_space<vmem>>, vector<1024x4xf32>
    %c2_16 = arith.constant 2 : index
    %c0_17 = arith.constant 0 : index
    %c0_18 = arith.constant 0 : index
    %15 = vector.load %arg1[%c2_16, %c0_17, %c0_18] : memref<3x4x16xf32, #tpu.memory_space<vmem>>, vector<1x4x16xf32>
    %16 = vector.shape_cast %15 : vector<1x4x16xf32> to vector<4x16xf32>
    %cst_19 = arith.constant dense<0.000000e+00> : vector<1024x16xf32>
    %17 = tpu.matmul %14, %16, %cst_19 {dimension_numbers = #tpu.dot_dimension_numbers<[1], [0], [0], [1], [0, 0, 1, 1], [], []>} : vector<1024x4xf32>, vector<4x16xf32>, vector<1024x16xf32> -> vector<1024x16xf32>
    %18 = arith.addf %13, %17 : vector<1024x16xf32>
    %19 = vector.broadcast %4 : vector<1x16xf32> to vector<1024x16xf32>
    %20 = arith.addf %18, %19 : vector<1024x16xf32>
    %cst_20 = arith.constant 0.000000e+00 : f32
    %21 = vector.broadcast %cst_20 : f32 to vector<1024x16xf32>
    %22 = arith.maximumf %20, %21 : vector<1024x16xf32>
    %c0_21 = arith.constant 0 : index
    %c0_22 = arith.constant 0 : index
    %23 = vector.load %arg14[%c0_21, %c0_22] : memref<1032x16xf32, #tpu.memory_space<vmem>>, vector<1024x16xf32>
    tpu.vector_store %arg14[%c0_21, %c0_22], %22 {strides = array<i32>} : memref<1032x16xf32, #tpu.memory_space<vmem>>, vector<1024x16xf32>,
    %c0_23 = arith.constant 0 : index
    %c0_24 = arith.constant 0 : index
    %24 = vector.load %arg4[%c0_23, %c0_24] : memref<1x32xf32, #tpu.memory_space<vmem>>, vector<1x32xf32>
    %c0_25 = arith.constant 0 : index
    %c0_26 = arith.constant 0 : index
    %25 = tpu.strided_load %arg14[%c0_25, %c0_26] {strides = array<i32: 2, 1>} : memref<1032x16xf32, #tpu.memory_space<vmem>>, vector<512x16xf32>
    %c0_27 = arith.constant 0 : index
    %c0_28 = arith.constant 0 : index
    %c0_29 = arith.constant 0 : index
    %26 = vector.load %arg3[%c0_27, %c0_28, %c0_29] : memref<3x16x32xf32, #tpu.memory_space<vmem>>, vector<1x16x32xf32>
    %27 = vector.shape_cast %26 : vector<1x16x32xf32> to vector<16x32xf32>
    %cst_30 = arith.constant dense<0.000000e+00> : vector<512x32xf32>
    %28 = tpu.matmul %25, %27, %cst_30 {dimension_numbers = #tpu.dot_dimension_numbers<[1], [0], [0], [1], [0, 0, 1, 1], [], []>} : vector<512x16xf32>, vector<16x32xf32>, vector<512x32xf32> -> vector<512x32xf32>
    %c1_31 = arith.constant 1 : index
    %c0_32 = arith.constant 0 : index
    %29 = tpu.strided_load %arg14[%c1_31, %c0_32] {strides = array<i32: 2, 1>} : memref<1032x16xf32, #tpu.memory_space<vmem>>, vector<512x16xf32>
    %c1_33 = arith.constant 1 : index
    %c0_34 = arith.constant 0 : index
    %c0_35 = arith.constant 0 : index
    %30 = vector.load %arg3[%c1_33, %c0_34, %c0_35] : memref<3x16x32xf32, #tpu.memory_space<vmem>>, vector<1x16x32xf32>
    %31 = vector.shape_cast %30 : vector<1x16x32xf32> to vector<16x32xf32>
    %cst_36 = arith.constant dense<0.000000e+00> : vector<512x32xf32>
    %32 = tpu.matmul %29, %31, %cst_36 {dimension_numbers = #tpu.dot_dimension_numbers<[1], [0], [0], [1], [0, 0, 1, 1], [], []>} : vector<512x16xf32>, vector<16x32xf32>, vector<512x32xf32> -> vector<512x32xf32>
    %33 = arith.addf %28, %32 : vector<512x32xf32>
    %c2_37 = arith.constant 2 : index
    %c0_38 = arith.constant 0 : index
    %34 = tpu.strided_load %arg14[%c2_37, %c0_38] {strides = array<i32: 2, 1>} : memref<1032x16xf32, #tpu.memory_space<vmem>>, vector<512x16xf32>
    %c2_39 = arith.constant 2 : index
    %c0_40 = arith.constant 0 : index
    %c0_41 = arith.constant 0 : index
    %35 = vector.load %arg3[%c2_39, %c0_40, %c0_41] : memref<3x16x32xf32, #tpu.memory_space<vmem>>, vector<1x16x32xf32>
    %36 = vector.shape_cast %35 : vector<1x16x32xf32> to vector<16x32xf32>
    %cst_42 = arith.constant dense<0.000000e+00> : vector<512x32xf32>
    %37 = tpu.matmul %34, %36, %cst_42 {dimension_numbers = #tpu.dot_dimension_numbers<[1], [0], [0], [1], [0, 0, 1, 1], [], []>} : vector<512x16xf32>, vector<16x32xf32>, vector<512x32xf32> -> vector<512x32xf32>
    %38 = arith.addf %33, %37 : vector<512x32xf32>
    %39 = vector.broadcast %24 : vector<1x32xf32> to vector<512x32xf32>
    %40 = arith.addf %38, %39 : vector<512x32xf32>
    %cst_43 = arith.constant 0.000000e+00 : f32
    %41 = vector.broadcast %cst_43 : f32 to vector<512x32xf32>
    %42 = arith.maximumf %40, %41 : vector<512x32xf32>
    %c0_44 = arith.constant 0 : index
    %c0_45 = arith.constant 0 : index
    %43 = vector.load %arg15[%c0_44, %c0_45] : memref<520x32xf32, #tpu.memory_space<vmem>>, vector<512x32xf32>
    tpu.vector_store %arg15[%c0_44, %c0_45], %42 {strides = array<i32>} : memref<520x32xf32, #tpu.memory_space<vmem>>, vector<512x32xf32>,
    %c0_46 = arith.constant 0 : index
    %c0_47 = arith.constant 0 : index
    %44 = vector.load %arg6[%c0_46, %c0_47] : memref<1x64xf32, #tpu.memory_space<vmem>>, vector<1x64xf32>
    %c0_48 = arith.constant 0 : index
    %c0_49 = arith.constant 0 : index
    %45 = tpu.strided_load %arg15[%c0_48, %c0_49] {strides = array<i32: 2, 1>} : memref<520x32xf32, #tpu.memory_space<vmem>>, vector<256x32xf32>
    %c0_50 = arith.constant 0 : index
    %c0_51 = arith.constant 0 : index
    %c0_52 = arith.constant 0 : index
    %46 = vector.load %arg5[%c0_50, %c0_51, %c0_52] : memref<3x32x64xf32, #tpu.memory_space<vmem>>, vector<1x32x64xf32>
    %47 = vector.shape_cast %46 : vector<1x32x64xf32> to vector<32x64xf32>
    %cst_53 = arith.constant dense<0.000000e+00> : vector<256x64xf32>
    %48 = tpu.matmul %45, %47, %cst_53 {dimension_numbers = #tpu.dot_dimension_numbers<[1], [0], [0], [1], [0, 0, 1, 1], [], []>} : vector<256x32xf32>, vector<32x64xf32>, vector<256x64xf32> -> vector<256x64xf32>
    %c1_54 = arith.constant 1 : index
    %c0_55 = arith.constant 0 : index
    %49 = tpu.strided_load %arg15[%c1_54, %c0_55] {strides = array<i32: 2, 1>} : memref<520x32xf32, #tpu.memory_space<vmem>>, vector<256x32xf32>
    %c1_56 = arith.constant 1 : index
    %c0_57 = arith.constant 0 : index
    %c0_58 = arith.constant 0 : index
    %50 = vector.load %arg5[%c1_56, %c0_57, %c0_58] : memref<3x32x64xf32, #tpu.memory_space<vmem>>, vector<1x32x64xf32>
    %51 = vector.shape_cast %50 : vector<1x32x64xf32> to vector<32x64xf32>
    %cst_59 = arith.constant dense<0.000000e+00> : vector<256x64xf32>
    %52 = tpu.matmul %49, %51, %cst_59 {dimension_numbers = #tpu.dot_dimension_numbers<[1], [0], [0], [1], [0, 0, 1, 1], [], []>} : vector<256x32xf32>, vector<32x64xf32>, vector<256x64xf32> -> vector<256x64xf32>
    %53 = arith.addf %48, %52 : vector<256x64xf32>
    %c2_60 = arith.constant 2 : index
    %c0_61 = arith.constant 0 : index
    %54 = tpu.strided_load %arg15[%c2_60, %c0_61] {strides = array<i32: 2, 1>} : memref<520x32xf32, #tpu.memory_space<vmem>>, vector<256x32xf32>
    %c2_62 = arith.constant 2 : index
    %c0_63 = arith.constant 0 : index
    %c0_64 = arith.constant 0 : index
    %55 = vector.load %arg5[%c2_62, %c0_63, %c0_64] : memref<3x32x64xf32, #tpu.memory_space<vmem>>, vector<1x32x64xf32>
    %56 = vector.shape_cast %55 : vector<1x32x64xf32> to vector<32x64xf32>
    %cst_65 = arith.constant dense<0.000000e+00> : vector<256x64xf32>
    %57 = tpu.matmul %54, %56, %cst_65 {dimension_numbers = #tpu.dot_dimension_numbers<[1], [0], [0], [1], [0, 0, 1, 1], [], []>} : vector<256x32xf32>, vector<32x64xf32>, vector<256x64xf32> -> vector<256x64xf32>
    %58 = arith.addf %53, %57 : vector<256x64xf32>
    %59 = vector.broadcast %44 : vector<1x64xf32> to vector<256x64xf32>
    %60 = arith.addf %58, %59 : vector<256x64xf32>
    %c0_66 = arith.constant 0 : index
    %c0_67 = arith.constant 0 : index
    %61 = vector.load %arg16[%c0_66, %c0_67] : memref<256x64xf32, #tpu.memory_space<vmem>>, vector<256x64xf32>
    tpu.vector_store %arg16[%c0_66, %c0_67], %60 {strides = array<i32>} : memref<256x64xf32, #tpu.memory_space<vmem>>, vector<256x64xf32>,
    %c0_68 = arith.constant 0 : index
    %c0_69 = arith.constant 0 : index
    %62 = tpu.strided_load %arg16[%c0_68, %c0_69] {strides = array<i32: 32, 1>} : memref<256x64xf32, #tpu.memory_space<vmem>>, vector<8x64xf32>
    %c0_70 = arith.constant 0 : index
    %c0_71 = arith.constant 0 : index
    %63 = vector.load %arg17[%c0_70, %c0_71] : memref<8x1984xf32, #tpu.memory_space<vmem>>, vector<8x64xf32>
    tpu.vector_store %arg17[%c0_70, %c0_71], %62 {strides = array<i32>} : memref<8x1984xf32, #tpu.memory_space<vmem>>, vector<8x64xf32>,
    %c1_72 = arith.constant 1 : index
    %c0_73 = arith.constant 0 : index
    %64 = tpu.strided_load %arg16[%c1_72, %c0_73] {strides = array<i32: 32, 1>} : memref<256x64xf32, #tpu.memory_space<vmem>>, vector<8x64xf32>
    %c0_74 = arith.constant 0 : index
    %c64 = arith.constant 64 : index
    %65 = vector.load %arg17[%c0_74, %c64] : memref<8x1984xf32, #tpu.memory_space<vmem>>, vector<8x64xf32>
    tpu.vector_store %arg17[%c0_74, %c64], %64 {strides = array<i32>} : memref<8x1984xf32, #tpu.memory_space<vmem>>, vector<8x64xf32>,
    %c2_75 = arith.constant 2 : index
    %c0_76 = arith.constant 0 : index
    %66 = tpu.strided_load %arg16[%c2_75, %c0_76] {strides = array<i32: 32, 1>} : memref<256x64xf32, #tpu.memory_space<vmem>>, vector<8x64xf32>
    %c0_77 = arith.constant 0 : index
    %c128 = arith.constant 128 : index
    %67 = vector.load %arg17[%c0_77, %c128] : memref<8x1984xf32, #tpu.memory_space<vmem>>, vector<8x64xf32>
    tpu.vector_store %arg17[%c0_77, %c128], %66 {strides = array<i32>} : memref<8x1984xf32, #tpu.memory_space<vmem>>, vector<8x64xf32>,
    %c3 = arith.constant 3 : index
    %c0_78 = arith.constant 0 : index
    %68 = tpu.strided_load %arg16[%c3, %c0_78] {strides = array<i32: 32, 1>} : memref<256x64xf32, #tpu.memory_space<vmem>>, vector<8x64xf32>
    %c0_79 = arith.constant 0 : index
    %c192 = arith.constant 192 : index
    %69 = vector.load %arg17[%c0_79, %c192] : memref<8x1984xf32, #tpu.memory_space<vmem>>, vector<8x64xf32>
    tpu.vector_store %arg17[%c0_79, %c192], %68 {strides = array<i32>} : memref<8x1984xf32, #tpu.memory_space<vmem>>, vector<8x64xf32>,
    %c4 = arith.constant 4 : index
    %c0_80 = arith.constant 0 : index
    %70 = tpu.strided_load %arg16[%c4, %c0_80] {strides = array<i32: 32, 1>} : memref<256x64xf32, #tpu.memory_space<vmem>>, vector<8x64xf32>
    %c0_81 = arith.constant 0 : index
    %c256 = arith.constant 256 : index
    %71 = vector.load %arg17[%c0_81, %c256] : memref<8x1984xf32, #tpu.memory_space<vmem>>, vector<8x64xf32>
    tpu.vector_store %arg17[%c0_81, %c256], %70 {strides = array<i32>} : memref<8x1984xf32, #tpu.memory_space<vmem>>, vector<8x64xf32>,
    %c5 = arith.constant 5 : index
    %c0_82 = arith.constant 0 : index
    %72 = tpu.strided_load %arg16[%c5, %c0_82] {strides = array<i32: 32, 1>} : memref<256x64xf32, #tpu.memory_space<vmem>>, vector<8x64xf32>
    %c0_83 = arith.constant 0 : index
    %c320 = arith.constant 320 : index
    %73 = vector.load %arg17[%c0_83, %c320] : memref<8x1984xf32, #tpu.memory_space<vmem>>, vector<8x64xf32>
    tpu.vector_store %arg17[%c0_83, %c320], %72 {strides = array<i32>} : memref<8x1984xf32, #tpu.memory_space<vmem>>, vector<8x64xf32>,
    %c6 = arith.constant 6 : index
    %c0_84 = arith.constant 0 : index
    %74 = tpu.strided_load %arg16[%c6, %c0_84] {strides = array<i32: 32, 1>} : memref<256x64xf32, #tpu.memory_space<vmem>>, vector<8x64xf32>
    %c0_85 = arith.constant 0 : index
    %c384 = arith.constant 384 : index
    %75 = vector.load %arg17[%c0_85, %c384] : memref<8x1984xf32, #tpu.memory_space<vmem>>, vector<8x64xf32>
    tpu.vector_store %arg17[%c0_85, %c384], %74 {strides = array<i32>} : memref<8x1984xf32, #tpu.memory_space<vmem>>, vector<8x64xf32>,
    %c7 = arith.constant 7 : index
    %c0_86 = arith.constant 0 : index
    %76 = tpu.strided_load %arg16[%c7, %c0_86] {strides = array<i32: 32, 1>} : memref<256x64xf32, #tpu.memory_space<vmem>>, vector<8x64xf32>
    %c0_87 = arith.constant 0 : index
    %c448 = arith.constant 448 : index
    %77 = vector.load %arg17[%c0_87, %c448] : memref<8x1984xf32, #tpu.memory_space<vmem>>, vector<8x64xf32>
    tpu.vector_store %arg17[%c0_87, %c448], %76 {strides = array<i32>} : memref<8x1984xf32, #tpu.memory_space<vmem>>, vector<8x64xf32>,
    %c8 = arith.constant 8 : index
    %c0_88 = arith.constant 0 : index
    %78 = tpu.strided_load %arg16[%c8, %c0_88] {strides = array<i32: 32, 1>} : memref<256x64xf32, #tpu.memory_space<vmem>>, vector<8x64xf32>
    %c0_89 = arith.constant 0 : index
    %c512_90 = arith.constant 512 : index
    %79 = vector.load %arg17[%c0_89, %c512_90] : memref<8x1984xf32, #tpu.memory_space<vmem>>, vector<8x64xf32>
    tpu.vector_store %arg17[%c0_89, %c512_90], %78 {strides = array<i32>} : memref<8x1984xf32, #tpu.memory_space<vmem>>, vector<8x64xf32>,
    %c9 = arith.constant 9 : index
    %c0_91 = arith.constant 0 : index
    %80 = tpu.strided_load %arg16[%c9, %c0_91] {strides = array<i32: 32, 1>} : memref<256x64xf32, #tpu.memory_space<vmem>>, vector<8x64xf32>
    %c0_92 = arith.constant 0 : index
    %c576 = arith.constant 576 : index
    %81 = vector.load %arg17[%c0_92, %c576] : memref<8x1984xf32, #tpu.memory_space<vmem>>, vector<8x64xf32>
    tpu.vector_store %arg17[%c0_92, %c576], %80 {strides = array<i32>} : memref<8x1984xf32, #tpu.memory_space<vmem>>, vector<8x64xf32>,
    %c10 = arith.constant 10 : index
    %c0_93 = arith.constant 0 : index
    %82 = tpu.strided_load %arg16[%c10, %c0_93] {strides = array<i32: 32, 1>} : memref<256x64xf32, #tpu.memory_space<vmem>>, vector<8x64xf32>
    %c0_94 = arith.constant 0 : index
    %c640 = arith.constant 640 : index
    %83 = vector.load %arg17[%c0_94, %c640] : memref<8x1984xf32, #tpu.memory_space<vmem>>, vector<8x64xf32>
    tpu.vector_store %arg17[%c0_94, %c640], %82 {strides = array<i32>} : memref<8x1984xf32, #tpu.memory_space<vmem>>, vector<8x64xf32>,
    %c11 = arith.constant 11 : index
    %c0_95 = arith.constant 0 : index
    %84 = tpu.strided_load %arg16[%c11, %c0_95] {strides = array<i32: 32, 1>} : memref<256x64xf32, #tpu.memory_space<vmem>>, vector<8x64xf32>
    %c0_96 = arith.constant 0 : index
    %c704 = arith.constant 704 : index
    %85 = vector.load %arg17[%c0_96, %c704] : memref<8x1984xf32, #tpu.memory_space<vmem>>, vector<8x64xf32>
    tpu.vector_store %arg17[%c0_96, %c704], %84 {strides = array<i32>} : memref<8x1984xf32, #tpu.memory_space<vmem>>, vector<8x64xf32>,
    %c12 = arith.constant 12 : index
    %c0_97 = arith.constant 0 : index
    %86 = tpu.strided_load %arg16[%c12, %c0_97] {strides = array<i32: 32, 1>} : memref<256x64xf32, #tpu.memory_space<vmem>>, vector<8x64xf32>
    %c0_98 = arith.constant 0 : index
    %c768 = arith.constant 768 : index
    %87 = vector.load %arg17[%c0_98, %c768] : memref<8x1984xf32, #tpu.memory_space<vmem>>, vector<8x64xf32>
    tpu.vector_store %arg17[%c0_98, %c768], %86 {strides = array<i32>} : memref<8x1984xf32, #tpu.memory_space<vmem>>, vector<8x64xf32>,
    %c13 = arith.constant 13 : index
    %c0_99 = arith.constant 0 : index
    %88 = tpu.strided_load %arg16[%c13, %c0_99] {strides = array<i32: 32, 1>} : memref<256x64xf32, #tpu.memory_space<vmem>>, vector<8x64xf32>
    %c0_100 = arith.constant 0 : index
    %c832 = arith.constant 832 : index
    %89 = vector.load %arg17[%c0_100, %c832] : memref<8x1984xf32, #tpu.memory_space<vmem>>, vector<8x64xf32>
    tpu.vector_store %arg17[%c0_100, %c832], %88 {strides = array<i32>} : memref<8x1984xf32, #tpu.memory_space<vmem>>, vector<8x64xf32>,
    %c14 = arith.constant 14 : index
    %c0_101 = arith.constant 0 : index
    %90 = tpu.strided_load %arg16[%c14, %c0_101] {strides = array<i32: 32, 1>} : memref<256x64xf32, #tpu.memory_space<vmem>>, vector<8x64xf32>
    %c0_102 = arith.constant 0 : index
    %c896 = arith.constant 896 : index
    %91 = vector.load %arg17[%c0_102, %c896] : memref<8x1984xf32, #tpu.memory_space<vmem>>, vector<8x64xf32>
    tpu.vector_store %arg17[%c0_102, %c896], %90 {strides = array<i32>} : memref<8x1984xf32, #tpu.memory_space<vmem>>, vector<8x64xf32>,
    %c15 = arith.constant 15 : index
    %c0_103 = arith.constant 0 : index
    %92 = tpu.strided_load %arg16[%c15, %c0_103] {strides = array<i32: 32, 1>} : memref<256x64xf32, #tpu.memory_space<vmem>>, vector<8x64xf32>
    %c0_104 = arith.constant 0 : index
    %c960 = arith.constant 960 : index
    %93 = vector.load %arg17[%c0_104, %c960] : memref<8x1984xf32, #tpu.memory_space<vmem>>, vector<8x64xf32>
    tpu.vector_store %arg17[%c0_104, %c960], %92 {strides = array<i32>} : memref<8x1984xf32, #tpu.memory_space<vmem>>, vector<8x64xf32>,
    %c16 = arith.constant 16 : index
    %c0_105 = arith.constant 0 : index
    %94 = tpu.strided_load %arg16[%c16, %c0_105] {strides = array<i32: 32, 1>} : memref<256x64xf32, #tpu.memory_space<vmem>>, vector<8x64xf32>
    %c0_106 = arith.constant 0 : index
    %c1024_107 = arith.constant 1024 : index
    %95 = vector.load %arg17[%c0_106, %c1024_107] : memref<8x1984xf32, #tpu.memory_space<vmem>>, vector<8x64xf32>
    tpu.vector_store %arg17[%c0_106, %c1024_107], %94 {strides = array<i32>} : memref<8x1984xf32, #tpu.memory_space<vmem>>, vector<8x64xf32>,
    %c17 = arith.constant 17 : index
    %c0_108 = arith.constant 0 : index
    %96 = tpu.strided_load %arg16[%c17, %c0_108] {strides = array<i32: 32, 1>} : memref<256x64xf32, #tpu.memory_space<vmem>>, vector<8x64xf32>
    %c0_109 = arith.constant 0 : index
    %c1088 = arith.constant 1088 : index
    %97 = vector.load %arg17[%c0_109, %c1088] : memref<8x1984xf32, #tpu.memory_space<vmem>>, vector<8x64xf32>
    tpu.vector_store %arg17[%c0_109, %c1088], %96 {strides = array<i32>} : memref<8x1984xf32, #tpu.memory_space<vmem>>, vector<8x64xf32>,
    %c18 = arith.constant 18 : index
    %c0_110 = arith.constant 0 : index
    %98 = tpu.strided_load %arg16[%c18, %c0_110] {strides = array<i32: 32, 1>} : memref<256x64xf32, #tpu.memory_space<vmem>>, vector<8x64xf32>
    %c0_111 = arith.constant 0 : index
    %c1152 = arith.constant 1152 : index
    %99 = vector.load %arg17[%c0_111, %c1152] : memref<8x1984xf32, #tpu.memory_space<vmem>>, vector<8x64xf32>
    tpu.vector_store %arg17[%c0_111, %c1152], %98 {strides = array<i32>} : memref<8x1984xf32, #tpu.memory_space<vmem>>, vector<8x64xf32>,
    %c19 = arith.constant 19 : index
    %c0_112 = arith.constant 0 : index
    %100 = tpu.strided_load %arg16[%c19, %c0_112] {strides = array<i32: 32, 1>} : memref<256x64xf32, #tpu.memory_space<vmem>>, vector<8x64xf32>
    %c0_113 = arith.constant 0 : index
    %c1216 = arith.constant 1216 : index
    %101 = vector.load %arg17[%c0_113, %c1216] : memref<8x1984xf32, #tpu.memory_space<vmem>>, vector<8x64xf32>
    tpu.vector_store %arg17[%c0_113, %c1216], %100 {strides = array<i32>} : memref<8x1984xf32, #tpu.memory_space<vmem>>, vector<8x64xf32>,
    %c20 = arith.constant 20 : index
    %c0_114 = arith.constant 0 : index
    %102 = tpu.strided_load %arg16[%c20, %c0_114] {strides = array<i32: 32, 1>} : memref<256x64xf32, #tpu.memory_space<vmem>>, vector<8x64xf32>
    %c0_115 = arith.constant 0 : index
    %c1280 = arith.constant 1280 : index
    %103 = vector.load %arg17[%c0_115, %c1280] : memref<8x1984xf32, #tpu.memory_space<vmem>>, vector<8x64xf32>
    tpu.vector_store %arg17[%c0_115, %c1280], %102 {strides = array<i32>} : memref<8x1984xf32, #tpu.memory_space<vmem>>, vector<8x64xf32>,
    %c21 = arith.constant 21 : index
    %c0_116 = arith.constant 0 : index
    %104 = tpu.strided_load %arg16[%c21, %c0_116] {strides = array<i32: 32, 1>} : memref<256x64xf32, #tpu.memory_space<vmem>>, vector<8x64xf32>
    %c0_117 = arith.constant 0 : index
    %c1344 = arith.constant 1344 : index
    %105 = vector.load %arg17[%c0_117, %c1344] : memref<8x1984xf32, #tpu.memory_space<vmem>>, vector<8x64xf32>
    tpu.vector_store %arg17[%c0_117, %c1344], %104 {strides = array<i32>} : memref<8x1984xf32, #tpu.memory_space<vmem>>, vector<8x64xf32>,
    %c22 = arith.constant 22 : index
    %c0_118 = arith.constant 0 : index
    %106 = tpu.strided_load %arg16[%c22, %c0_118] {strides = array<i32: 32, 1>} : memref<256x64xf32, #tpu.memory_space<vmem>>, vector<8x64xf32>
    %c0_119 = arith.constant 0 : index
    %c1408 = arith.constant 1408 : index
    %107 = vector.load %arg17[%c0_119, %c1408] : memref<8x1984xf32, #tpu.memory_space<vmem>>, vector<8x64xf32>
    tpu.vector_store %arg17[%c0_119, %c1408], %106 {strides = array<i32>} : memref<8x1984xf32, #tpu.memory_space<vmem>>, vector<8x64xf32>,
    %c23 = arith.constant 23 : index
    %c0_120 = arith.constant 0 : index
    %108 = tpu.strided_load %arg16[%c23, %c0_120] {strides = array<i32: 32, 1>} : memref<256x64xf32, #tpu.memory_space<vmem>>, vector<8x64xf32>
    %c0_121 = arith.constant 0 : index
    %c1472 = arith.constant 1472 : index
    %109 = vector.load %arg17[%c0_121, %c1472] : memref<8x1984xf32, #tpu.memory_space<vmem>>, vector<8x64xf32>
    tpu.vector_store %arg17[%c0_121, %c1472], %108 {strides = array<i32>} : memref<8x1984xf32, #tpu.memory_space<vmem>>, vector<8x64xf32>,
    %c24 = arith.constant 24 : index
    %c0_122 = arith.constant 0 : index
    %110 = tpu.strided_load %arg16[%c24, %c0_122] {strides = array<i32: 32, 1>} : memref<256x64xf32, #tpu.memory_space<vmem>>, vector<8x64xf32>
    %c0_123 = arith.constant 0 : index
    %c1536 = arith.constant 1536 : index
    %111 = vector.load %arg17[%c0_123, %c1536] : memref<8x1984xf32, #tpu.memory_space<vmem>>, vector<8x64xf32>
    tpu.vector_store %arg17[%c0_123, %c1536], %110 {strides = array<i32>} : memref<8x1984xf32, #tpu.memory_space<vmem>>, vector<8x64xf32>,
    %c25 = arith.constant 25 : index
    %c0_124 = arith.constant 0 : index
    %112 = tpu.strided_load %arg16[%c25, %c0_124] {strides = array<i32: 32, 1>} : memref<256x64xf32, #tpu.memory_space<vmem>>, vector<8x64xf32>
    %c0_125 = arith.constant 0 : index
    %c1600 = arith.constant 1600 : index
    %113 = vector.load %arg17[%c0_125, %c1600] : memref<8x1984xf32, #tpu.memory_space<vmem>>, vector<8x64xf32>
    tpu.vector_store %arg17[%c0_125, %c1600], %112 {strides = array<i32>} : memref<8x1984xf32, #tpu.memory_space<vmem>>, vector<8x64xf32>,
    %c26 = arith.constant 26 : index
    %c0_126 = arith.constant 0 : index
    %114 = tpu.strided_load %arg16[%c26, %c0_126] {strides = array<i32: 32, 1>} : memref<256x64xf32, #tpu.memory_space<vmem>>, vector<8x64xf32>
    %c0_127 = arith.constant 0 : index
    %c1664 = arith.constant 1664 : index
    %115 = vector.load %arg17[%c0_127, %c1664] : memref<8x1984xf32, #tpu.memory_space<vmem>>, vector<8x64xf32>
    tpu.vector_store %arg17[%c0_127, %c1664], %114 {strides = array<i32>} : memref<8x1984xf32, #tpu.memory_space<vmem>>, vector<8x64xf32>,
    %c27 = arith.constant 27 : index
    %c0_128 = arith.constant 0 : index
    %116 = tpu.strided_load %arg16[%c27, %c0_128] {strides = array<i32: 32, 1>} : memref<256x64xf32, #tpu.memory_space<vmem>>, vector<8x64xf32>
    %c0_129 = arith.constant 0 : index
    %c1728 = arith.constant 1728 : index
    %117 = vector.load %arg17[%c0_129, %c1728] : memref<8x1984xf32, #tpu.memory_space<vmem>>, vector<8x64xf32>
    tpu.vector_store %arg17[%c0_129, %c1728], %116 {strides = array<i32>} : memref<8x1984xf32, #tpu.memory_space<vmem>>, vector<8x64xf32>,
    %c28 = arith.constant 28 : index
    %c0_130 = arith.constant 0 : index
    %118 = tpu.strided_load %arg16[%c28, %c0_130] {strides = array<i32: 32, 1>} : memref<256x64xf32, #tpu.memory_space<vmem>>, vector<8x64xf32>
    %c0_131 = arith.constant 0 : index
    %c1792 = arith.constant 1792 : index
    %119 = vector.load %arg17[%c0_131, %c1792] : memref<8x1984xf32, #tpu.memory_space<vmem>>, vector<8x64xf32>
    tpu.vector_store %arg17[%c0_131, %c1792], %118 {strides = array<i32>} : memref<8x1984xf32, #tpu.memory_space<vmem>>, vector<8x64xf32>,
    %c29 = arith.constant 29 : index
    %c0_132 = arith.constant 0 : index
    %120 = tpu.strided_load %arg16[%c29, %c0_132] {strides = array<i32: 32, 1>} : memref<256x64xf32, #tpu.memory_space<vmem>>, vector<8x64xf32>
    %c0_133 = arith.constant 0 : index
    %c1856 = arith.constant 1856 : index
    %121 = vector.load %arg17[%c0_133, %c1856] : memref<8x1984xf32, #tpu.memory_space<vmem>>, vector<8x64xf32>
    tpu.vector_store %arg17[%c0_133, %c1856], %120 {strides = array<i32>} : memref<8x1984xf32, #tpu.memory_space<vmem>>, vector<8x64xf32>,
    %c30 = arith.constant 30 : index
    %c0_134 = arith.constant 0 : index
    %122 = tpu.strided_load %arg16[%c30, %c0_134] {strides = array<i32: 32, 1>} : memref<256x64xf32, #tpu.memory_space<vmem>>, vector<8x64xf32>
    %c0_135 = arith.constant 0 : index
    %c1920 = arith.constant 1920 : index
    %123 = vector.load %arg17[%c0_135, %c1920] : memref<8x1984xf32, #tpu.memory_space<vmem>>, vector<8x64xf32>
    tpu.vector_store %arg17[%c0_135, %c1920], %122 {strides = array<i32>} : memref<8x1984xf32, #tpu.memory_space<vmem>>, vector<8x64xf32>,
    tpu.wait_dma2 semaphore(%arg19 : memref<!tpu.dma_semaphore, #tpu.memory_space<semaphore_mem>>) src(%arg7 : memref<1984x160xbf16, #tpu.memory_space<any>>) dst(%arg18 : memref<1984x160xbf16, #tpu.memory_space<vmem>>)
    %c0_136 = arith.constant 0 : index
    %c0_137 = arith.constant 0 : index
    %124 = vector.load %arg17[%c0_136, %c0_137] : memref<8x1984xf32, #tpu.memory_space<vmem>>, vector<8x1984xf32>
    %125 = arith.truncf %124 : vector<8x1984xf32> to vector<8x1984xbf16>
    %c0_138 = arith.constant 0 : index
    %c0_139 = arith.constant 0 : index
    %126 = vector.load %arg18[%c0_138, %c0_139] : memref<1984x160xbf16, #tpu.memory_space<vmem>>, vector<1984x160xbf16>
    %cst_140 = arith.constant dense<0.000000e+00> : vector<8x160xf32>
    %127 = tpu.matmul %125, %126, %cst_140 {dimension_numbers = #tpu.dot_dimension_numbers<[1], [0], [0], [1], [0, 0, 1, 1], [], []>} : vector<8x1984xbf16>, vector<1984x160xbf16>, vector<8x160xf32> -> vector<8x160xf32>
    %c0_141 = arith.constant 0 : index
    %c0_142 = arith.constant 0 : index
    %128 = vector.load %arg8[%c0_141, %c0_142] : memref<1x160xf32, #tpu.memory_space<vmem>>, vector<1x160xf32>
    %129 = vector.broadcast %128 : vector<1x160xf32> to vector<8x160xf32>
    %130 = arith.addf %127, %129 : vector<8x160xf32>
    %cst_143 = arith.constant 0.000000e+00 : f32
    %131 = vector.broadcast %cst_143 : f32 to vector<8x160xf32>
    %132 = arith.maximumf %130, %131 : vector<8x160xf32>
    %c0_144 = arith.constant 0 : index
    %c0_145 = arith.constant 0 : index
    %133 = vector.load %arg9[%c0_144, %c0_145] : memref<160x32xf32, #tpu.memory_space<vmem>>, vector<160x32xf32>
    %cst_146 = arith.constant dense<0.000000e+00> : vector<8x32xf32>
    %134 = tpu.matmul %132, %133, %cst_146 {dimension_numbers = #tpu.dot_dimension_numbers<[1], [0], [0], [1], [0, 0, 1, 1], [], []>} : vector<8x160xf32>, vector<160x32xf32>, vector<8x32xf32> -> vector<8x32xf32>
    %c0_147 = arith.constant 0 : index
    %c0_148 = arith.constant 0 : index
    %135 = vector.load %arg10[%c0_147, %c0_148] : memref<1x32xf32, #tpu.memory_space<vmem>>, vector<1x32xf32>
    %136 = vector.broadcast %135 : vector<1x32xf32> to vector<8x32xf32>
    %137 = arith.addf %134, %136 : vector<8x32xf32>
    %cst_149 = arith.constant 0.000000e+00 : f32
    %138 = vector.broadcast %cst_149 : f32 to vector<8x32xf32>
    %139 = arith.maximumf %137, %138 : vector<8x32xf32>
    %c0_150 = arith.constant 0 : index
    %c0_151 = arith.constant 0 : index
    %140 = vector.load %arg11[%c0_150, %c0_151] : memref<32x1xf32, #tpu.memory_space<vmem>>, vector<32x1xf32>
    %cst_152 = arith.constant dense<0.000000e+00> : vector<8x1xf32>
    %141 = tpu.matmul %139, %140, %cst_152 {dimension_numbers = #tpu.dot_dimension_numbers<[1], [0], [0], [1], [0, 0, 1, 1], [], []>} : vector<8x32xf32>, vector<32x1xf32>, vector<8x1xf32> -> vector<8x1xf32>
    %c0_153 = arith.constant 0 : index
    %c0_154 = arith.constant 0 : index
    %142 = vector.load %arg12[%c0_153, %c0_154] : memref<1x1xf32, #tpu.memory_space<vmem>>, vector<1x1xf32>
    %143 = vector.broadcast %142 : vector<1x1xf32> to vector<8x1xf32>
    %144 = arith.addf %141, %143 : vector<8x1xf32>
    %c0_155 = arith.constant 0 : index
    %c0_156 = arith.constant 0 : index
    %145 = vector.load %arg13[%c0_155, %c0_156] : memref<8x1xf32, #tpu.memory_space<vmem>>, vector<8x1xf32>
    tpu.vector_store %arg13[%c0_155, %c0_156], %144 {strides = array<i32>} : memref<8x1xf32, #tpu.memory_space<vmem>>, vector<8x1xf32>,
    return
  }
}

</mosaic_0001>

<bundles_post_ra>
// kernel: hist_discriminator_cnn_forward.1
= control target key start
LH: loop header
LB: loop body
LE: loop exit
PB: predicated region body
PF: predicated region fallthrough
CT: control target
= control target key end

     0   :  { %s20199_s0 = inlined_call_operand.vmem [shape: f32[2056,4], index: 0, kind: input, shape index: {}]   ;;  %s20200_s1 = inlined_call_operand.vmem [shape: f32[3,4,16], index: 1, kind: input, shape index: {}]   ;;  %s20201_s2 = inlined_call_operand.vmem [shape: f32[1,16], index: 2, kind: input, shape index: {}]   ;;  %s20202_s3 = inlined_call_operand.vmem [shape: f32[3,16,32], index: 3, kind: input, shape index: {}]   ;;  %s20203_s4 = inlined_call_operand.vmem [shape: f32[1,32], index: 4, kind: input, shape index: {}]   ;;  %s20204_s5 = inlined_call_operand.vmem [shape: f32[3,32,64], index: 5, kind: input, shape index: {}]   ;;  %s20205_s6 = inlined_call_operand.vmem [shape: f32[1,64], index: 6, kind: input, shape index: {}]   ;;  %s20206_s7 = inlined_call_operand.vmem [shape: bf16[1984,160], index: 7, kind: input, shape index: {}]   ;;  %s20207_s8 = inlined_call_operand.vmem [shape: f32[1,160], index: 8, kind: input, shape index: {}]   ;;  %s20208_s9 = inlined_call_operand.vmem [shape: f32[160,32], index: 9, kind: input, shape index: {}]   ;;  %s20209_s10 = inlined_call_operand.vmem [shape: f32[1,32], index: 10, kind: input, shape index: {}]   ;;  %s20210_s11 = inlined_call_operand.vmem [shape: f32[32,1], index: 11, kind: input, shape index: {}]   ;;  %s20211_s12 = inlined_call_operand.<no memory space> [shape: f32[1,1], index: 12, kind: input, shape index: {}]   ;;  %s20212_s13 = inlined_call_operand.vmem [shape: f32[8,1], index: 13, kind: output, shape index: {}]  }
   0x1   :  { %v18_v0 = vstv %s20211_s12  ;;  %v14648_v1 = vld [vmem:[%s20206_s7] sm:$0xff]  ;;  %v14653_v2 = vld [vmem:[%s20206_s7 + $0x8] sm:$0xff]  ;;  %v14658_v3 = vld [vmem:[%s20206_s7 + $0x10] sm:$0xff] }
   0x2   :  { %20463 = vst [vmem:[#allocation11_spill] sm:$0xff] %v14648_v1  ;;  %20464 = vst [vmem:[#allocation12_spill] sm:$0xff] %v14653_v2  ;;  %v14663_v4 = vld [vmem:[%s20206_s7 + $0x18] sm:$0xff]  ;;  %v14668_v5 = vld [vmem:[%s20206_s7 + $0x20] sm:$0xff] }
   0x3   :  { %20465 = vst [vmem:[#allocation13_spill] sm:$0xff] %v14658_v3  ;;  %19 = vst [vmem:[#allocation8] sm:$0x1] %v18_v0  ;;  %v14673_v6 = vld [vmem:[%s20206_s7 + $0x28] sm:$0xff]  ;;  %v14678_v7 = vld [vmem:[%s20206_s7 + $0x30] sm:$0xff] }
   0x4   :  { %20466 = vst [vmem:[#allocation14_spill] sm:$0xff] %v14663_v4  ;;  %20467 = vst [vmem:[#allocation15_spill] sm:$0xff] %v14668_v5  ;;  %v14683_v8 = vld [vmem:[%s20206_s7 + $0x38] sm:$0xff]  ;;  %v14688_v9 = vld [vmem:[%s20206_s7 + $0x40] sm:$0xff] }
   0x5   :  { %20468 = vst [vmem:[#allocation16_spill] sm:$0xff] %v14673_v6  ;;  %20469 = vst [vmem:[#allocation17_spill] sm:$0xff] %v14678_v7  ;;  %v14693_v10 = vld [vmem:[%s20206_s7 + $0x48] sm:$0xff]  ;;  %v14698_v11 = vld [vmem:[%s20206_s7 + $0x50] sm:$0xff] }
   0x6   :  { %20470 = vst [vmem:[#allocation18_spill] sm:$0xff] %v14683_v8  ;;  %20471 = vst [vmem:[#allocation19_spill] sm:$0xff] %v14688_v9  ;;  %v14703_v12 = vld [vmem:[%s20206_s7 + $0x58] sm:$0xff]  ;;  %v14708_v13 = vld [vmem:[%s20206_s7 + $0x60] sm:$0xff] }
   0x7   :  { %20472 = vst [vmem:[#allocation20_spill] sm:$0xff] %v14693_v10  ;;  %20473 = vst [vmem:[#allocation21_spill] sm:$0xff] %v14698_v11  ;;  %v14713_v14 = vld [vmem:[%s20206_s7 + $0x68] sm:$0xff]  ;;  %v14718_v15 = vld [vmem:[%s20206_s7 + $0x70] sm:$0xff] }
   0x8   :  { %20474 = vst [vmem:[#allocation22_spill] sm:$0xff] %v14703_v12  ;;  %20475 = vst [vmem:[#allocation23_spill] sm:$0xff] %v14708_v13  ;;  %v14723_v16 = vld [vmem:[%s20206_s7 + $0x78] sm:$0xff]  ;;  %v14728_v17 = vld [vmem:[%s20206_s7 + $0x80] sm:$0xff] }
   0x9   :  { %20476 = vst [vmem:[#allocation24_spill] sm:$0xff] %v14713_v14  ;;  %20477 = vst [vmem:[#allocation25_spill] sm:$0xff] %v14718_v15  ;;  %v14733_v18 = vld [vmem:[%s20206_s7 + $0x88] sm:$0xff]  ;;  %v14738_v19 = vld [vmem:[%s20206_s7 + $0x90] sm:$0xff] }
   0xa   :  { %20478 = vst [vmem:[#allocation26_spill] sm:$0xff] %v14723_v16  ;;  %20479 = vst [vmem:[#allocation27_spill] sm:$0xff] %v14728_v17  ;;  %v14743_v20 = vld [vmem:[%s20206_s7 + $0x98] sm:$0xff]  ;;  %v14748_v21 = vld [vmem:[%s20206_s7 + $0xa0] sm:$0xff] }
   0xb   :  { %20480 = vst [vmem:[#allocation28_spill] sm:$0xff] %v14733_v18  ;;  %20481 = vst [vmem:[#allocation29_spill] sm:$0xff] %v14738_v19  ;;  %v14753_v22 = vld [vmem:[%s20206_s7 + $0xa8] sm:$0xff]  ;;  %v14758_v23 = vld [vmem:[%s20206_s7 + $0xb0] sm:$0xff] }
   0xc   :  { %20482 = vst [vmem:[#allocation30_spill] sm:$0xff] %v14743_v20  ;;  %20483 = vst [vmem:[#allocation31_spill] sm:$0xff] %v14748_v21  ;;  %v14763_v24 = vld [vmem:[%s20206_s7 + $0xb8] sm:$0xff]  ;;  %v14768_v25 = vld [vmem:[%s20206_s7 + $0xc0] sm:$0xff] }
   0xd   :  { %20484 = vst [vmem:[#allocation32_spill] sm:$0xff] %v14753_v22  ;;  %20485 = vst [vmem:[#allocation33_spill] sm:$0xff] %v14758_v23  ;;  %v14773_v26 = vld [vmem:[%s20206_s7 + $0xc8] sm:$0xff]  ;;  %v14778_v27 = vld [vmem:[%s20206_s7 + $0xd0] sm:$0xff] }
   0xe   :  { %20486 = vst [vmem:[#allocation34_spill] sm:$0xff] %v14763_v24  ;;  %20487 = vst [vmem:[#allocation35_spill] sm:$0xff] %v14768_v25  ;;  %v14783_v28 = vld [vmem:[%s20206_s7 + $0xd8] sm:$0xff]  ;;  %v14788_v29 = vld [vmem:[%s20206_s7 + $0xe0] sm:$0xff] }
   0xf   :  { %20488 = vst [vmem:[#allocation36_spill] sm:$0xff] %v14773_v26  ;;  %20489 = vst [vmem:[#allocation37_spill] sm:$0xff] %v14778_v27  ;;  %v14793_v30 = vld [vmem:[%s20206_s7 + $0xe8] sm:$0xff]  ;;  %v14798_v31 = vld [vmem:[%s20206_s7 + $0xf0] sm:$0xff] }
  0x10   :  { %20490 = vst [vmem:[#allocation38_spill] sm:$0xff] %v14783_v28  ;;  %20491 = vst [vmem:[#allocation39_spill] sm:$0xff] %v14788_v29  ;;  %v14803_v32 = vld [vmem:[%s20206_s7 + $0xf8] sm:$0xff]  ;;  %v14808_v33 = vld [vmem:[%s20206_s7 + $0x100] sm:$0xff] }
  0x11   :  { %20492 = vst [vmem:[#allocation40_spill] sm:$0xff] %v14793_v30  ;;  %20493 = vst [vmem:[#allocation41_spill] sm:$0xff] %v14798_v31  ;;  %v14813_v34 = vld [vmem:[%s20206_s7 + $0x108] sm:$0xff]  ;;  %v14818_v35 = vld [vmem:[%s20206_s7 + $0x110] sm:$0xff] }
  0x12   :  { %20494 = vst [vmem:[#allocation42_spill] sm:$0xff] %v14803_v32  ;;  %20495 = vst [vmem:[#allocation43_spill] sm:$0xff] %v14808_v33  ;;  %v14823_v36 = vld [vmem:[%s20206_s7 + $0x118] sm:$0xff]  ;;  %v14828_v37 = vld [vmem:[%s20206_s7 + $0x120] sm:$0xff] }
  0x13   :  { %20496 = vst [vmem:[#allocation44_spill] sm:$0xff] %v14813_v34  ;;  %20497 = vst [vmem:[#allocation45_spill] sm:$0xff] %v14818_v35  ;;  %v14833_v38 = vld [vmem:[%s20206_s7 + $0x128] sm:$0xff]  ;;  %v14838_v39 = vld [vmem:[%s20206_s7 + $0x130] sm:$0xff] }
  0x14   :  { %20498 = vst [vmem:[#allocation46_spill] sm:$0xff] %v14823_v36  ;;  %20499 = vst [vmem:[#allocation47_spill] sm:$0xff] %v14828_v37  ;;  %v14843_v40 = vld [vmem:[%s20206_s7 + $0x138] sm:$0xff]  ;;  %v14848_v41 = vld [vmem:[%s20206_s7 + $0x140] sm:$0xff] }
  0x15   :  { %20500 = vst [vmem:[#allocation48_spill] sm:$0xff] %v14833_v38  ;;  %20501 = vst [vmem:[#allocation49_spill] sm:$0xff] %v14838_v39  ;;  %v14853_v42 = vld [vmem:[%s20206_s7 + $0x148] sm:$0xff]  ;;  %v14858_v43 = vld [vmem:[%s20206_s7 + $0x150] sm:$0xff] }
  0x16   :  { %20502 = vst [vmem:[#allocation50_spill] sm:$0xff] %v14843_v40  ;;  %20503 = vst [vmem:[#allocation51_spill] sm:$0xff] %v14848_v41  ;;  %v14863_v44 = vld [vmem:[%s20206_s7 + $0x158] sm:$0xff]  ;;  %v14868_v45 = vld [vmem:[%s20206_s7 + $0x160] sm:$0xff] }
  0x17   :  { %20504 = vst [vmem:[#allocation52_spill] sm:$0xff] %v14853_v42  ;;  %20505 = vst [vmem:[#allocation53_spill] sm:$0xff] %v14858_v43  ;;  %v14873_v46 = vld [vmem:[%s20206_s7 + $0x168] sm:$0xff]  ;;  %v14878_v47 = vld [vmem:[%s20206_s7 + $0x170] sm:$0xff] }
  0x18   :  { %20506 = vst [vmem:[#allocation54_spill] sm:$0xff] %v14863_v44  ;;  %20507 = vst [vmem:[#allocation55_spill] sm:$0xff] %v14868_v45  ;;  %v14883_v48 = vld [vmem:[%s20206_s7 + $0x178] sm:$0xff]  ;;  %v14888_v49 = vld [vmem:[%s20206_s7 + $0x180] sm:$0xff] }
  0x19   :  { %20508 = vst [vmem:[#allocation56_spill] sm:$0xff] %v14873_v46  ;;  %20509 = vst [vmem:[#allocation57_spill] sm:$0xff] %v14878_v47  ;;  %v14893_v50 = vld [vmem:[%s20206_s7 + $0x188] sm:$0xff]  ;;  %v14898_v51 = vld [vmem:[%s20206_s7 + $0x190] sm:$0xff] }
  0x1a   :  { %20510 = vst [vmem:[#allocation58_spill] sm:$0xff] %v14883_v48  ;;  %20511 = vst [vmem:[#allocation59_spill] sm:$0xff] %v14888_v49  ;;  %v14903_v52 = vld [vmem:[%s20206_s7 + $0x198] sm:$0xff]  ;;  %v14908_v53 = vld [vmem:[%s20206_s7 + $0x1a0] sm:$0xff] }
  0x1b   :  { %20512 = vst [vmem:[#allocation60_spill] sm:$0xff] %v14893_v50  ;;  %20513 = vst [vmem:[#allocation61_spill] sm:$0xff] %v14898_v51  ;;  %v14913_v54 = vld [vmem:[%s20206_s7 + $0x1a8] sm:$0xff]  ;;  %v14918_v55 = vld [vmem:[%s20206_s7 + $0x1b0] sm:$0xff] }
  0x1c   :  { %20514 = vst [vmem:[#allocation62_spill] sm:$0xff] %v14903_v52  ;;  %20515 = vst [vmem:[#allocation63_spill] sm:$0xff] %v14908_v53  ;;  %v14923_v56 = vld [vmem:[%s20206_s7 + $0x1b8] sm:$0xff]  ;;  %v14928_v57 = vld [vmem:[%s20206_s7 + $0x1c0] sm:$0xff] }
  0x1d   :  { %20516 = vst [vmem:[#allocation64_spill] sm:$0xff] %v14913_v54  ;;  %20517 = vst [vmem:[#allocation65_spill] sm:$0xff] %v14918_v55  ;;  %v14933_v58 = vld [vmem:[%s20206_s7 + $0x1c8] sm:$0xff]  ;;  %v14938_v59 = vld [vmem:[%s20206_s7 + $0x1d0] sm:$0xff] }
  0x1e   :  { %20518 = vst [vmem:[#allocation66_spill] sm:$0xff] %v14923_v56  ;;  %20519 = vst [vmem:[#allocation67_spill] sm:$0xff] %v14928_v57  ;;  %v14943_v60 = vld [vmem:[%s20206_s7 + $0x1d8] sm:$0xff]  ;;  %v14948_v61 = vld [vmem:[%s20206_s7 + $0x1e0] sm:$0xff] }
  0x1f   :  { %20520 = vst [vmem:[#allocation68_spill] sm:$0xff] %v14933_v58  ;;  %20521 = vst [vmem:[#allocation69_spill] sm:$0xff] %v14938_v59  ;;  %v14953_v62 = vld [vmem:[%s20206_s7 + $0x1e8] sm:$0xff]  ;;  %v14958_v63 = vld [vmem:[%s20206_s7 + $0x1f0] sm:$0xff] }
  0x20   :  { %20522 = vst [vmem:[#allocation70_spill] sm:$0xff] %v14943_v60  ;;  %20523 = vst [vmem:[#allocation71_spill] sm:$0xff] %v14948_v61  ;;  %v14963_v0 = vld [vmem:[%s20206_s7 + $0x1f8] sm:$0xff]  ;;  %v14968_v49 = vld [vmem:[%s20206_s7 + $0x200] sm:$0xff] }
  0x21   :  { %20524 = vst [vmem:[#allocation72_spill] sm:$0xff] %v14953_v62  ;;  %20525 = vst [vmem:[#allocation73_spill] sm:$0xff] %v14958_v63  ;;  %v14973_v50 = vld [vmem:[%s20206_s7 + $0x208] sm:$0xff]  ;;  %v14978_v17 = vld [vmem:[%s20206_s7 + $0x210] sm:$0xff] }
  0x22   :  { %20526 = vst [vmem:[#allocation74_spill] sm:$0xff] %v14963_v0  ;;  %20527 = vst [vmem:[#allocation75_spill] sm:$0xff] %v14968_v49  ;;  %v14983_v18 = vld [vmem:[%s20206_s7 + $0x218] sm:$0xff]  ;;  %v14988_v51 = vld [vmem:[%s20206_s7 + $0x220] sm:$0xff] }
  0x23   :  { %20528 = vst [vmem:[#allocation76_spill] sm:$0xff] %v14973_v50  ;;  %20529 = vst [vmem:[#allocation77_spill] sm:$0xff] %v14978_v17  ;;  %v14993_v49 = vld [vmem:[%s20206_s7 + $0x228] sm:$0xff]  ;;  %v14998_v50 = vld [vmem:[%s20206_s7 + $0x230] sm:$0xff] }
  0x24   :  { %20530 = vst [vmem:[#allocation78_spill] sm:$0xff] %v14983_v18  ;;  %20531 = vst [vmem:[#allocation79_spill] sm:$0xff] %v14988_v51  ;;  %v15003_v17 = vld [vmem:[%s20206_s7 + $0x238] sm:$0xff]  ;;  %v15008_v18 = vld [vmem:[%s20206_s7 + $0x240] sm:$0xff] }
  0x25   :  { %20532 = vst [vmem:[#allocation80_spill] sm:$0xff] %v14993_v49  ;;  %20533 = vst [vmem:[#allocation81_spill] sm:$0xff] %v14998_v50  ;;  %v15013_v51 = vld [vmem:[%s20206_s7 + $0x248] sm:$0xff]  ;;  %v15018_v49 = vld [vmem:[%s20206_s7 + $0x250] sm:$0xff] }
  0x26   :  { %20534 = vst [vmem:[#allocation82_spill] sm:$0xff] %v15003_v17  ;;  %20535 = vst [vmem:[#allocation83_spill] sm:$0xff] %v15008_v18  ;;  %v15023_v50 = vld [vmem:[%s20206_s7 + $0x258] sm:$0xff]  ;;  %v15028_v17 = vld [vmem:[%s20206_s7 + $0x260] sm:$0xff] }
  0x27   :  { %20536 = vst [vmem:[#allocation84_spill] sm:$0xff] %v15013_v51  ;;  %20537 = vst [vmem:[#allocation85_spill] sm:$0xff] %v15018_v49  ;;  %v15033_v18 = vld [vmem:[%s20206_s7 + $0x268] sm:$0xff]  ;;  %v15038_v51 = vld [vmem:[%s20206_s7 + $0x270] sm:$0xff] }
  0x28   :  { %20538 = vst [vmem:[#allocation86_spill] sm:$0xff] %v15023_v50  ;;  %20539 = vst [vmem:[#allocation87_spill] sm:$0xff] %v15028_v17  ;;  %v15043_v49 = vld [vmem:[%s20206_s7 + $0x278] sm:$0xff]  ;;  %v15048_v50 = vld [vmem:[%s20206_s7 + $0x280] sm:$0xff] }
  0x29   :  { %20540 = vst [vmem:[#allocation88_spill] sm:$0xff] %v15033_v18  ;;  %20541 = vst [vmem:[#allocation89_spill] sm:$0xff] %v15038_v51  ;;  %v15053_v17 = vld [vmem:[%s20206_s7 + $0x288] sm:$0xff]  ;;  %v15058_v18 = vld [vmem:[%s20206_s7 + $0x290] sm:$0xff] }
  0x2a   :  { %20542 = vst [vmem:[#allocation90_spill] sm:$0xff] %v15043_v49  ;;  %20543 = vst [vmem:[#allocation91_spill] sm:$0xff] %v15048_v50  ;;  %v15063_v51 = vld [vmem:[%s20206_s7 + $0x298] sm:$0xff]  ;;  %v15068_v49 = vld [vmem:[%s20206_s7 + $0x2a0] sm:$0xff] }
  0x2b   :  { %20544 = vst [vmem:[#allocation92_spill] sm:$0xff] %v15053_v17  ;;  %20545 = vst [vmem:[#allocation93_spill] sm:$0xff] %v15058_v18  ;;  %v15073_v50 = vld [vmem:[%s20206_s7 + $0x2a8] sm:$0xff]  ;;  %v15078_v17 = vld [vmem:[%s20206_s7 + $0x2b0] sm:$0xff] }
  0x2c   :  { %20546 = vst [vmem:[#allocation94_spill] sm:$0xff] %v15063_v51  ;;  %20547 = vst [vmem:[#allocation95_spill] sm:$0xff] %v15068_v49  ;;  %v15083_v18 = vld [vmem:[%s20206_s7 + $0x2b8] sm:$0xff]  ;;  %v15088_v51 = vld [vmem:[%s20206_s7 + $0x2c0] sm:$0xff] }
  0x2d   :  { %20548 = vst [vmem:[#allocation96_spill] sm:$0xff] %v15073_v50  ;;  %20549 = vst [vmem:[#allocation97_spill] sm:$0xff] %v15078_v17  ;;  %v15093_v49 = vld [vmem:[%s20206_s7 + $0x2c8] sm:$0xff]  ;;  %v15098_v50 = vld [vmem:[%s20206_s7 + $0x2d0] sm:$0xff] }
  0x2e   :  { %20550 = vst [vmem:[#allocation98_spill] sm:$0xff] %v15083_v18  ;;  %20551 = vst [vmem:[#allocation99_spill] sm:$0xff] %v15088_v51  ;;  %v15103_v17 = vld [vmem:[%s20206_s7 + $0x2d8] sm:$0xff]  ;;  %v15108_v18 = vld [vmem:[%s20206_s7 + $0x2e0] sm:$0xff] }
  0x2f   :  { %20552 = vst [vmem:[#allocation100_spill] sm:$0xff] %v15093_v49  ;;  %20553 = vst [vmem:[#allocation101_spill] sm:$0xff] %v15098_v50  ;;  %v15113_v51 = vld [vmem:[%s20206_s7 + $0x2e8] sm:$0xff]  ;;  %v15118_v49 = vld [vmem:[%s20206_s7 + $0x2f0] sm:$0xff] }
  0x30   :  { %20554 = vst [vmem:[#allocation102_spill] sm:$0xff] %v15103_v17  ;;  %20555 = vst [vmem:[#allocation103_spill] sm:$0xff] %v15108_v18  ;;  %v15123_v50 = vld [vmem:[%s20206_s7 + $0x2f8] sm:$0xff]  ;;  %v15128_v17 = vld [vmem:[%s20206_s7 + $0x300] sm:$0xff] }
  0x31   :  { %20556 = vst [vmem:[#allocation104_spill] sm:$0xff] %v15113_v51  ;;  %20557 = vst [vmem:[#allocation105_spill] sm:$0xff] %v15118_v49  ;;  %v15133_v18 = vld [vmem:[%s20206_s7 + $0x308] sm:$0xff]  ;;  %v15138_v51 = vld [vmem:[%s20206_s7 + $0x310] sm:$0xff] }
  0x32   :  { %20558 = vst [vmem:[#allocation106_spill] sm:$0xff] %v15123_v50  ;;  %20559 = vst [vmem:[#allocation107_spill] sm:$0xff] %v15128_v17  ;;  %v15143_v49 = vld [vmem:[%s20206_s7 + $0x318] sm:$0xff]  ;;  %v15148_v50 = vld [vmem:[%s20206_s7 + $0x320] sm:$0xff] }
  0x33   :  { %20560 = vst [vmem:[#allocation108_spill] sm:$0xff] %v15133_v18  ;;  %20561 = vst [vmem:[#allocation109_spill] sm:$0xff] %v15138_v51  ;;  %v15153_v17 = vld [vmem:[%s20206_s7 + $0x328] sm:$0xff]  ;;  %v15158_v18 = vld [vmem:[%s20206_s7 + $0x330] sm:$0xff] }
  0x34   :  { %20562 = vst [vmem:[#allocation110_spill] sm:$0xff] %v15143_v49  ;;  %20563 = vst [vmem:[#allocation111_spill] sm:$0xff] %v15148_v50  ;;  %v15163_v51 = vld [vmem:[%s20206_s7 + $0x338] sm:$0xff]  ;;  %v15168_v49 = vld [vmem:[%s20206_s7 + $0x340] sm:$0xff] }
  0x35   :  { %20564 = vst [vmem:[#allocation112_spill] sm:$0xff] %v15153_v17  ;;  %20565 = vst [vmem:[#allocation113_spill] sm:$0xff] %v15158_v18  ;;  %v15173_v50 = vld [vmem:[%s20206_s7 + $0x348] sm:$0xff]  ;;  %v15178_v17 = vld [vmem:[%s20206_s7 + $0x350] sm:$0xff] }
  0x36   :  { %20566 = vst [vmem:[#allocation114_spill] sm:$0xff] %v15163_v51  ;;  %20567 = vst [vmem:[#allocation115_spill] sm:$0xff] %v15168_v49  ;;  %v15183_v18 = vld [vmem:[%s20206_s7 + $0x358] sm:$0xff]  ;;  %v15188_v51 = vld [vmem:[%s20206_s7 + $0x360] sm:$0xff] }
  0x37   :  { %20568 = vst [vmem:[#allocation116_spill] sm:$0xff] %v15173_v50  ;;  %20569 = vst [vmem:[#allocation117_spill] sm:$0xff] %v15178_v17  ;;  %v15193_v49 = vld [vmem:[%s20206_s7 + $0x368] sm:$0xff]  ;;  %v15198_v50 = vld [vmem:[%s20206_s7 + $0x370] sm:$0xff] }
  0x38   :  { %20570 = vst [vmem:[#allocation118_spill] sm:$0xff] %v15183_v18  ;;  %20571 = vst [vmem:[#allocation119_spill] sm:$0xff] %v15188_v51  ;;  %v15203_v17 = vld [vmem:[%s20206_s7 + $0x378] sm:$0xff]  ;;  %v15208_v18 = vld [vmem:[%s20206_s7 + $0x380] sm:$0xff] }
  0x39   :  { %20572 = vst [vmem:[#allocation120_spill] sm:$0xff] %v15193_v49  ;;  %20573 = vst [vmem:[#allocation121_spill] sm:$0xff] %v15198_v50  ;;  %v15213_v51 = vld [vmem:[%s20206_s7 + $0x388] sm:$0xff]  ;;  %v15218_v49 = vld [vmem:[%s20206_s7 + $0x390] sm:$0xff] }
  0x3a   :  { %20574 = vst [vmem:[#allocation122_spill] sm:$0xff] %v15203_v17  ;;  %20575 = vst [vmem:[#allocation123_spill] sm:$0xff] %v15208_v18  ;;  %v15223_v50 = vld [vmem:[%s20206_s7 + $0x398] sm:$0xff]  ;;  %v15228_v17 = vld [vmem:[%s20206_s7 + $0x3a0] sm:$0xff] }
  0x3b   :  { %20576 = vst [vmem:[#allocation124_spill] sm:$0xff] %v15213_v51  ;;  %20577 = vst [vmem:[#allocation125_spill] sm:$0xff] %v15218_v49  ;;  %v15233_v18 = vld [vmem:[%s20206_s7 + $0x3a8] sm:$0xff]  ;;  %v15238_v51 = vld [vmem:[%s20206_s7 + $0x3b0] sm:$0xff] }
  0x3c   :  { %20578 = vst [vmem:[#allocation126_spill] sm:$0xff] %v15223_v50  ;;  %20579 = vst [vmem:[#allocation127_spill] sm:$0xff] %v15228_v17  ;;  %v15243_v49 = vld [vmem:[%s20206_s7 + $0x3b8] sm:$0xff]  ;;  %v15248_v50 = vld [vmem:[%s20206_s7 + $0x3c0] sm:$0xff] }
  0x3d   :  { %20580 = vst [vmem:[#allocation128_spill] sm:$0xff] %v15233_v18  ;;  %20581 = vst [vmem:[#allocation129_spill] sm:$0xff] %v15238_v51  ;;  %v15253_v17 = vld [vmem:[%s20206_s7 + $0x3c8] sm:$0xff]  ;;  %v15258_v18 = vld [vmem:[%s20206_s7 + $0x3d0] sm:$0xff] }
  0x3e   :  { %20582 = vst [vmem:[#allocation130_spill] sm:$0xff] %v15243_v49  ;;  %20583 = vst [vmem:[#allocation131_spill] sm:$0xff] %v15248_v50  ;;  %v15263_v51 = vld [vmem:[%s20206_s7 + $0x3d8] sm:$0xff]  ;;  %v15268_v49 = vld [vmem:[%s20206_s7 + $0x3e0] sm:$0xff] }
  0x3f   :  { %20584 = vst [vmem:[#allocation132_spill] sm:$0xff] %v15253_v17  ;;  %20585 = vst [vmem:[#allocation133_spill] sm:$0xff] %v15258_v18  ;;  %v15273_v50 = vld [vmem:[%s20206_s7 + $0x3e8] sm:$0xff]  ;;  %v15278_v17 = vld [vmem:[%s20206_s7 + $0x3f0] sm:$0xff] }
  0x40   :  { %20586 = vst [vmem:[#allocation134_spill] sm:$0xff] %v15263_v51  ;;  %20587 = vst [vmem:[#allocation135_spill] sm:$0xff] %v15268_v49  ;;  %v15283_v18 = vld [vmem:[%s20206_s7 + $0x3f8] sm:$0xff]  ;;  %v15288_v51 = vld [vmem:[%s20206_s7 + $0x400] sm:$0xff] }
  0x41   :  { %20588 = vst [vmem:[#allocation136_spill] sm:$0xff] %v15273_v50  ;;  %20589 = vst [vmem:[#allocation137_spill] sm:$0xff] %v15278_v17  ;;  %v15293_v49 = vld [vmem:[%s20206_s7 + $0x408] sm:$0xff]  ;;  %v15298_v50 = vld [vmem:[%s20206_s7 + $0x410] sm:$0xff] }
  0x42   :  { %20590 = vst [vmem:[#allocation138_spill] sm:$0xff] %v15283_v18  ;;  %20591 = vst [vmem:[#allocation139_spill] sm:$0xff] %v15288_v51  ;;  %v15303_v17 = vld [vmem:[%s20206_s7 + $0x418] sm:$0xff]  ;;  %v15308_v18 = vld [vmem:[%s20206_s7 + $0x420] sm:$0xff] }
  0x43   :  { %20592 = vst [vmem:[#allocation140_spill] sm:$0xff] %v15293_v49  ;;  %20593 = vst [vmem:[#allocation141_spill] sm:$0xff] %v15298_v50  ;;  %v15313_v51 = vld [vmem:[%s20206_s7 + $0x428] sm:$0xff]  ;;  %v15318_v49 = vld [vmem:[%s20206_s7 + $0x430] sm:$0xff] }
  0x44   :  { %20594 = vst [vmem:[#allocation142_spill] sm:$0xff] %v15303_v17  ;;  %20595 = vst [vmem:[#allocation143_spill] sm:$0xff] %v15308_v18  ;;  %v15323_v50 = vld [vmem:[%s20206_s7 + $0x438] sm:$0xff]  ;;  %v15328_v17 = vld [vmem:[%s20206_s7 + $0x440] sm:$0xff] }
  0x45   :  { %20596 = vst [vmem:[#allocation144_spill] sm:$0xff] %v15313_v51  ;;  %20597 = vst [vmem:[#allocation145_spill] sm:$0xff] %v15318_v49  ;;  %v15333_v18 = vld [vmem:[%s20206_s7 + $0x448] sm:$0xff]  ;;  %v15338_v51 = vld [vmem:[%s20206_s7 + $0x450] sm:$0xff] }
  0x46   :  { %20598 = vst [vmem:[#allocation146_spill] sm:$0xff] %v15323_v50  ;;  %20599 = vst [vmem:[#allocation147_spill] sm:$0xff] %v15328_v17  ;;  %v15343_v49 = vld [vmem:[%s20206_s7 + $0x458] sm:$0xff]  ;;  %v15348_v50 = vld [vmem:[%s20206_s7 + $0x460] sm:$0xff] }
  0x47   :  { %20600 = vst [vmem:[#allocation148_spill] sm:$0xff] %v15333_v18  ;;  %20601 = vst [vmem:[#allocation149_spill] sm:$0xff] %v15338_v51  ;;  %v15353_v17 = vld [vmem:[%s20206_s7 + $0x468] sm:$0xff]  ;;  %v15358_v18 = vld [vmem:[%s20206_s7 + $0x470] sm:$0xff] }
  0x48   :  { %20602 = vst [vmem:[#allocation150_spill] sm:$0xff] %v15343_v49  ;;  %20603 = vst [vmem:[#allocation151_spill] sm:$0xff] %v15348_v50  ;;  %v15363_v51 = vld [vmem:[%s20206_s7 + $0x478] sm:$0xff]  ;;  %v15368_v49 = vld [vmem:[%s20206_s7 + $0x480] sm:$0xff] }
  0x49   :  { %20604 = vst [vmem:[#allocation152_spill] sm:$0xff] %v15353_v17  ;;  %20605 = vst [vmem:[#allocation153_spill] sm:$0xff] %v15358_v18  ;;  %v15373_v50 = vld [vmem:[%s20206_s7 + $0x488] sm:$0xff]  ;;  %v15378_v17 = vld [vmem:[%s20206_s7 + $0x490] sm:$0xff] }
  0x4a   :  { %20606 = vst [vmem:[#allocation154_spill] sm:$0xff] %v15363_v51  ;;  %20607 = vst [vmem:[#allocation155_spill] sm:$0xff] %v15368_v49  ;;  %v15383_v18 = vld [vmem:[%s20206_s7 + $0x498] sm:$0xff]  ;;  %v15388_v51 = vld [vmem:[%s20206_s7 + $0x4a0] sm:$0xff] }
  0x4b   :  { %20608 = vst [vmem:[#allocation156_spill] sm:$0xff] %v15373_v50  ;;  %20609 = vst [vmem:[#allocation157_spill] sm:$0xff] %v15378_v17  ;;  %v15393_v49 = vld [vmem:[%s20206_s7 + $0x4a8] sm:$0xff]  ;;  %v15398_v50 = vld [vmem:[%s20206_s7 + $0x4b0] sm:$0xff] }
  0x4c   :  { %20610 = vst [vmem:[#allocation158_spill] sm:$0xff] %v15383_v18  ;;  %20611 = vst [vmem:[#allocation159_spill] sm:$0xff] %v15388_v51  ;;  %v15403_v17 = vld [vmem:[%s20206_s7 + $0x4b8] sm:$0xff]  ;;  %v15408_v18 = vld [vmem:[%s20206_s7 + $0x4c0] sm:$0xff] }
  0x4d   :  { %20612 = vst [vmem:[#allocation160_spill] sm:$0xff] %v15393_v49  ;;  %20613 = vst [vmem:[#allocation161_spill] sm:$0xff] %v15398_v50  ;;  %v15413_v51 = vld [vmem:[%s20206_s7 + $0x4c8] sm:$0xff]  ;;  %v15418_v49 = vld [vmem:[%s20206_s7 + $0x4d0] sm:$0xff] }
  0x4e   :  { %20614 = vst [vmem:[#allocation162_spill] sm:$0xff] %v15403_v17  ;;  %20615 = vst [vmem:[#allocation163_spill] sm:$0xff] %v15408_v18  ;;  %v15423_v50 = vld [vmem:[%s20206_s7 + $0x4d8] sm:$0xff]  ;;  %v15428_v17 = vld [vmem:[%s20206_s7 + $0x4e0] sm:$0xff] }
  0x4f   :  { %20616 = vst [vmem:[#allocation164_spill] sm:$0xff] %v15413_v51  ;;  %20617 = vst [vmem:[#allocation165_spill] sm:$0xff] %v15418_v49  ;;  %v15433_v18 = vld [vmem:[%s20206_s7 + $0x4e8] sm:$0xff]  ;;  %v15438_v51 = vld [vmem:[%s20206_s7 + $0x4f0] sm:$0xff] }
  0x50   :  { %20618 = vst [vmem:[#allocation166_spill] sm:$0xff] %v15423_v50  ;;  %20619 = vst [vmem:[#allocation167_spill] sm:$0xff] %v15428_v17  ;;  %v15443_v49 = vld [vmem:[%s20206_s7 + $0x4f8] sm:$0xff]  ;;  %v15448_v50 = vld [vmem:[%s20206_s7 + $0x500] sm:$0xff] }
  0x51   :  { %20620 = vst [vmem:[#allocation168_spill] sm:$0xff] %v15433_v18  ;;  %20621 = vst [vmem:[#allocation169_spill] sm:$0xff] %v15438_v51  ;;  %v15453_v17 = vld [vmem:[%s20206_s7 + $0x508] sm:$0xff]  ;;  %v15458_v18 = vld [vmem:[%s20206_s7 + $0x510] sm:$0xff] }
  0x52   :  { %20622 = vst [vmem:[#allocation170_spill] sm:$0xff] %v15443_v49  ;;  %20623 = vst [vmem:[#allocation171_spill] sm:$0xff] %v15448_v50  ;;  %v15463_v51 = vld [vmem:[%s20206_s7 + $0x518] sm:$0xff]  ;;  %v15468_v49 = vld [vmem:[%s20206_s7 + $0x520] sm:$0xff] }
  0x53   :  { %20624 = vst [vmem:[#allocation172_spill] sm:$0xff] %v15453_v17  ;;  %20625 = vst [vmem:[#allocation173_spill] sm:$0xff] %v15458_v18  ;;  %v15473_v50 = vld [vmem:[%s20206_s7 + $0x528] sm:$0xff]  ;;  %v15478_v17 = vld [vmem:[%s20206_s7 + $0x530] sm:$0xff] }
  0x54   :  { %20626 = vst [vmem:[#allocation174_spill] sm:$0xff] %v15463_v51  ;;  %20627 = vst [vmem:[#allocation175_spill] sm:$0xff] %v15468_v49  ;;  %v15483_v18 = vld [vmem:[%s20206_s7 + $0x538] sm:$0xff]  ;;  %v15488_v51 = vld [vmem:[%s20206_s7 + $0x540] sm:$0xff] }
  0x55   :  { %20628 = vst [vmem:[#allocation176_spill] sm:$0xff] %v15473_v50  ;;  %20629 = vst [vmem:[#allocation177_spill] sm:$0xff] %v15478_v17  ;;  %v15493_v49 = vld [vmem:[%s20206_s7 + $0x548] sm:$0xff]  ;;  %v15498_v50 = vld [vmem:[%s20206_s7 + $0x550] sm:$0xff] }
  0x56   :  { %20630 = vst [vmem:[#allocation178_spill] sm:$0xff] %v15483_v18  ;;  %20631 = vst [vmem:[#allocation179_spill] sm:$0xff] %v15488_v51  ;;  %v15503_v17 = vld [vmem:[%s20206_s7 + $0x558] sm:$0xff]  ;;  %v15508_v18 = vld [vmem:[%s20206_s7 + $0x560] sm:$0xff] }
  0x57   :  { %20632 = vst [vmem:[#allocation180_spill] sm:$0xff] %v15493_v49  ;;  %20633 = vst [vmem:[#allocation181_spill] sm:$0xff] %v15498_v50  ;;  %v15513_v51 = vld [vmem:[%s20206_s7 + $0x568] sm:$0xff]  ;;  %v15518_v49 = vld [vmem:[%s20206_s7 + $0x570] sm:$0xff] }
  0x58   :  { %20634 = vst [vmem:[#allocation182_spill] sm:$0xff] %v15503_v17  ;;  %20635 = vst [vmem:[#allocation183_spill] sm:$0xff] %v15508_v18  ;;  %v15523_v50 = vld [vmem:[%s20206_s7 + $0x578] sm:$0xff]  ;;  %v15528_v17 = vld [vmem:[%s20206_s7 + $0x580] sm:$0xff] }
  0x59   :  { %20636 = vst [vmem:[#allocation184_spill] sm:$0xff] %v15513_v51  ;;  %20637 = vst [vmem:[#allocation185_spill] sm:$0xff] %v15518_v49  ;;  %v15533_v18 = vld [vmem:[%s20206_s7 + $0x588] sm:$0xff]  ;;  %v15538_v51 = vld [vmem:[%s20206_s7 + $0x590] sm:$0xff] }
  0x5a   :  { %20638 = vst [vmem:[#allocation186_spill] sm:$0xff] %v15523_v50  ;;  %20639 = vst [vmem:[#allocation187_spill] sm:$0xff] %v15528_v17  ;;  %v15543_v49 = vld [vmem:[%s20206_s7 + $0x598] sm:$0xff]  ;;  %v15548_v50 = vld [vmem:[%s20206_s7 + $0x5a0] sm:$0xff] }
  0x5b   :  { %20640 = vst [vmem:[#allocation188_spill] sm:$0xff] %v15533_v18  ;;  %20641 = vst [vmem:[#allocation189_spill] sm:$0xff] %v15538_v51  ;;  %v15553_v17 = vld [vmem:[%s20206_s7 + $0x5a8] sm:$0xff]  ;;  %v15558_v18 = vld [vmem:[%s20206_s7 + $0x5b0] sm:$0xff] }
  0x5c   :  { %20642 = vst [vmem:[#allocation190_spill] sm:$0xff] %v15543_v49  ;;  %20643 = vst [vmem:[#allocation191_spill] sm:$0xff] %v15548_v50  ;;  %v15563_v51 = vld [vmem:[%s20206_s7 + $0x5b8] sm:$0xff]  ;;  %v15568_v49 = vld [vmem:[%s20206_s7 + $0x5c0] sm:$0xff] }
  0x5d   :  { %20644 = vst [vmem:[#allocation192_spill] sm:$0xff] %v15553_v17  ;;  %20645 = vst [vmem:[#allocation193_spill] sm:$0xff] %v15558_v18  ;;  %v15573_v50 = vld [vmem:[%s20206_s7 + $0x5c8] sm:$0xff]  ;;  %v15578_v17 = vld [vmem:[%s20206_s7 + $0x5d0] sm:$0xff] }
  0x5e   :  { %20646 = vst [vmem:[#allocation194_spill] sm:$0xff] %v15563_v51  ;;  %20647 = vst [vmem:[#allocation195_spill] sm:$0xff] %v15568_v49  ;;  %v15583_v18 = vld [vmem:[%s20206_s7 + $0x5d8] sm:$0xff]  ;;  %v15588_v51 = vld [vmem:[%s20206_s7 + $0x5e0] sm:$0xff] }
  0x5f   :  { %20648 = vst [vmem:[#allocation196_spill] sm:$0xff] %v15573_v50  ;;  %20649 = vst [vmem:[#allocation197_spill] sm:$0xff] %v15578_v17  ;;  %v15593_v49 = vld [vmem:[%s20206_s7 + $0x5e8] sm:$0xff]  ;;  %v15598_v50 = vld [vmem:[%s20206_s7 + $0x5f0] sm:$0xff] }
  0x60   :  { %20650 = vst [vmem:[#allocation198_spill] sm:$0xff] %v15583_v18  ;;  %20651 = vst [vmem:[#allocation199_spill] sm:$0xff] %v15588_v51  ;;  %v15603_v17 = vld [vmem:[%s20206_s7 + $0x5f8] sm:$0xff]  ;;  %v15608_v18 = vld [vmem:[%s20206_s7 + $0x600] sm:$0xff] }
  0x61   :  { %20652 = vst [vmem:[#allocation200_spill] sm:$0xff] %v15593_v49  ;;  %20653 = vst [vmem:[#allocation201_spill] sm:$0xff] %v15598_v50  ;;  %v15613_v51 = vld [vmem:[%s20206_s7 + $0x608] sm:$0xff]  ;;  %v15618_v49 = vld [vmem:[%s20206_s7 + $0x610] sm:$0xff] }
  0x62   :  { %20654 = vst [vmem:[#allocation202_spill] sm:$0xff] %v15603_v17  ;;  %20655 = vst [vmem:[#allocation203_spill] sm:$0xff] %v15608_v18  ;;  %v15623_v50 = vld [vmem:[%s20206_s7 + $0x618] sm:$0xff]  ;;  %v15628_v17 = vld [vmem:[%s20206_s7 + $0x620] sm:$0xff] }
  0x63   :  { %20656 = vst [vmem:[#allocation204_spill] sm:$0xff] %v15613_v51  ;;  %20657 = vst [vmem:[#allocation205_spill] sm:$0xff] %v15618_v49  ;;  %v15633_v18 = vld [vmem:[%s20206_s7 + $0x628] sm:$0xff]  ;;  %v15638_v51 = vld [vmem:[%s20206_s7 + $0x630] sm:$0xff] }
  0x64   :  { %20658 = vst [vmem:[#allocation206_spill] sm:$0xff] %v15623_v50  ;;  %20659 = vst [vmem:[#allocation207_spill] sm:$0xff] %v15628_v17  ;;  %v15643_v49 = vld [vmem:[%s20206_s7 + $0x638] sm:$0xff]  ;;  %v15648_v50 = vld [vmem:[%s20206_s7 + $0x640] sm:$0xff] }
  0x65   :  { %20660 = vst [vmem:[#allocation208_spill] sm:$0xff] %v15633_v18  ;;  %20661 = vst [vmem:[#allocation209_spill] sm:$0xff] %v15638_v51  ;;  %v15653_v17 = vld [vmem:[%s20206_s7 + $0x648] sm:$0xff]  ;;  %v15658_v18 = vld [vmem:[%s20206_s7 + $0x650] sm:$0xff] }
  0x66   :  { %20662 = vst [vmem:[#allocation210_spill] sm:$0xff] %v15643_v49  ;;  %20663 = vst [vmem:[#allocation211_spill] sm:$0xff] %v15648_v50  ;;  %v15663_v51 = vld [vmem:[%s20206_s7 + $0x658] sm:$0xff]  ;;  %v15668_v49 = vld [vmem:[%s20206_s7 + $0x660] sm:$0xff] }
  0x67   :  { %20664 = vst [vmem:[#allocation212_spill] sm:$0xff] %v15653_v17  ;;  %20665 = vst [vmem:[#allocation213_spill] sm:$0xff] %v15658_v18  ;;  %v15673_v50 = vld [vmem:[%s20206_s7 + $0x668] sm:$0xff]  ;;  %v15678_v17 = vld [vmem:[%s20206_s7 + $0x670] sm:$0xff] }
  0x68   :  { %20666 = vst [vmem:[#allocation214_spill] sm:$0xff] %v15663_v51  ;;  %20667 = vst [vmem:[#allocation215_spill] sm:$0xff] %v15668_v49  ;;  %v15683_v18 = vld [vmem:[%s20206_s7 + $0x678] sm:$0xff]  ;;  %v15688_v51 = vld [vmem:[%s20206_s7 + $0x680] sm:$0xff] }
  0x69   :  { %20668 = vst [vmem:[#allocation216_spill] sm:$0xff] %v15673_v50  ;;  %20669 = vst [vmem:[#allocation217_spill] sm:$0xff] %v15678_v17  ;;  %v15693_v49 = vld [vmem:[%s20206_s7 + $0x688] sm:$0xff]  ;;  %v15698_v50 = vld [vmem:[%s20206_s7 + $0x690] sm:$0xff] }
  0x6a   :  { %20670 = vst [vmem:[#allocation218_spill] sm:$0xff] %v15683_v18  ;;  %20671 = vst [vmem:[#allocation219_spill] sm:$0xff] %v15688_v51  ;;  %v15703_v17 = vld [vmem:[%s20206_s7 + $0x698] sm:$0xff]  ;;  %v15708_v18 = vld [vmem:[%s20206_s7 + $0x6a0] sm:$0xff] }
  0x6b   :  { %20672 = vst [vmem:[#allocation220_spill] sm:$0xff] %v15693_v49  ;;  %20673 = vst [vmem:[#allocation221_spill] sm:$0xff] %v15698_v50  ;;  %v15713_v51 = vld [vmem:[%s20206_s7 + $0x6a8] sm:$0xff]  ;;  %v15718_v49 = vld [vmem:[%s20206_s7 + $0x6b0] sm:$0xff] }
  0x6c   :  { %20674 = vst [vmem:[#allocation222_spill] sm:$0xff] %v15703_v17  ;;  %20675 = vst [vmem:[#allocation223_spill] sm:$0xff] %v15708_v18  ;;  %v15723_v50 = vld [vmem:[%s20206_s7 + $0x6b8] sm:$0xff]  ;;  %v15728_v17 = vld [vmem:[%s20206_s7 + $0x6c0] sm:$0xff] }
  0x6d   :  { %20676 = vst [vmem:[#allocation224_spill] sm:$0xff] %v15713_v51  ;;  %20677 = vst [vmem:[#allocation225_spill] sm:$0xff] %v15718_v49  ;;  %v15733_v18 = vld [vmem:[%s20206_s7 + $0x6c8] sm:$0xff]  ;;  %v15738_v51 = vld [vmem:[%s20206_s7 + $0x6d0] sm:$0xff] }
  0x6e   :  { %20678 = vst [vmem:[#allocation226_spill] sm:$0xff] %v15723_v50  ;;  %20679 = vst [vmem:[#allocation227_spill] sm:$0xff] %v15728_v17  ;;  %v15743_v49 = vld [vmem:[%s20206_s7 + $0x6d8] sm:$0xff]  ;;  %v15748_v50 = vld [vmem:[%s20206_s7 + $0x6e0] sm:$0xff] }
  0x6f   :  { %20680 = vst [vmem:[#allocation228_spill] sm:$0xff] %v15733_v18  ;;  %20681 = vst [vmem:[#allocation229_spill] sm:$0xff] %v15738_v51  ;;  %v15753_v17 = vld [vmem:[%s20206_s7 + $0x6e8] sm:$0xff]  ;;  %v15758_v18 = vld [vmem:[%s20206_s7 + $0x6f0] sm:$0xff] }
  0x70   :  { %20682 = vst [vmem:[#allocation230_spill] sm:$0xff] %v15743_v49  ;;  %20683 = vst [vmem:[#allocation231_spill] sm:$0xff] %v15748_v50  ;;  %v15763_v51 = vld [vmem:[%s20206_s7 + $0x6f8] sm:$0xff]  ;;  %v15768_v49 = vld [vmem:[%s20206_s7 + $0x700] sm:$0xff] }
  0x71   :  { %20684 = vst [vmem:[#allocation232_spill] sm:$0xff] %v15753_v17  ;;  %20685 = vst [vmem:[#allocation233_spill] sm:$0xff] %v15758_v18  ;;  %v15773_v50 = vld [vmem:[%s20206_s7 + $0x708] sm:$0xff]  ;;  %v15778_v17 = vld [vmem:[%s20206_s7 + $0x710] sm:$0xff] }
  0x72   :  { %20686 = vst [vmem:[#allocation234_spill] sm:$0xff] %v15763_v51  ;;  %20687 = vst [vmem:[#allocation235_spill] sm:$0xff] %v15768_v49  ;;  %v15783_v18 = vld [vmem:[%s20206_s7 + $0x718] sm:$0xff]  ;;  %v15788_v51 = vld [vmem:[%s20206_s7 + $0x720] sm:$0xff] }
  0x73   :  { %20688 = vst [vmem:[#allocation236_spill] sm:$0xff] %v15773_v50  ;;  %20689 = vst [vmem:[#allocation237_spill] sm:$0xff] %v15778_v17  ;;  %v15793_v49 = vld [vmem:[%s20206_s7 + $0x728] sm:$0xff]  ;;  %v15798_v50 = vld [vmem:[%s20206_s7 + $0x730] sm:$0xff] }
  0x74   :  { %20690 = vst [vmem:[#allocation238_spill] sm:$0xff] %v15783_v18  ;;  %20691 = vst [vmem:[#allocation239_spill] sm:$0xff] %v15788_v51  ;;  %v15803_v17 = vld [vmem:[%s20206_s7 + $0x738] sm:$0xff]  ;;  %v15808_v18 = vld [vmem:[%s20206_s7 + $0x740] sm:$0xff] }
  0x75   :  { %20692 = vst [vmem:[#allocation240_spill] sm:$0xff] %v15793_v49  ;;  %20693 = vst [vmem:[#allocation241_spill] sm:$0xff] %v15798_v50  ;;  %v15813_v51 = vld [vmem:[%s20206_s7 + $0x748] sm:$0xff]  ;;  %v15818_v49 = vld [vmem:[%s20206_s7 + $0x750] sm:$0xff] }
  0x76   :  { %20694 = vst [vmem:[#allocation242_spill] sm:$0xff] %v15803_v17  ;;  %20695 = vst [vmem:[#allocation243_spill] sm:$0xff] %v15808_v18  ;;  %v15823_v50 = vld [vmem:[%s20206_s7 + $0x758] sm:$0xff]  ;;  %v15828_v17 = vld [vmem:[%s20206_s7 + $0x760] sm:$0xff] }
  0x77   :  { %20696 = vst [vmem:[#allocation244_spill] sm:$0xff] %v15813_v51  ;;  %20697 = vst [vmem:[#allocation245_spill] sm:$0xff] %v15818_v49  ;;  %v15833_v18 = vld [vmem:[%s20206_s7 + $0x768] sm:$0xff]  ;;  %v15838_v51 = vld [vmem:[%s20206_s7 + $0x770] sm:$0xff] }
  0x78   :  { %20698 = vst [vmem:[#allocation246_spill] sm:$0xff] %v15823_v50  ;;  %20699 = vst [vmem:[#allocation247_spill] sm:$0xff] %v15828_v17  ;;  %v15843_v49 = vld [vmem:[%s20206_s7 + $0x778] sm:$0xff]  ;;  %v15848_v50 = vld [vmem:[%s20206_s7 + $0x780] sm:$0xff] }
  0x79   :  { %20700 = vst [vmem:[#allocation248_spill] sm:$0xff] %v15833_v18  ;;  %20701 = vst [vmem:[#allocation249_spill] sm:$0xff] %v15838_v51  ;;  %v15853_v17 = vld [vmem:[%s20206_s7 + $0x788] sm:$0xff]  ;;  %v15858_v18 = vld [vmem:[%s20206_s7 + $0x790] sm:$0xff] }
  0x7a   :  { %20702 = vst [vmem:[#allocation250_spill] sm:$0xff] %v15843_v49  ;;  %20703 = vst [vmem:[#allocation251_spill] sm:$0xff] %v15848_v50  ;;  %v15863_v51 = vld [vmem:[%s20206_s7 + $0x798] sm:$0xff]  ;;  %v15868_v49 = vld [vmem:[%s20206_s7 + $0x7a0] sm:$0xff] }
  0x7b   :  { %20704 = vst [vmem:[#allocation252_spill] sm:$0xff] %v15853_v17  ;;  %20705 = vst [vmem:[#allocation253_spill] sm:$0xff] %v15858_v18  ;;  %v15873_v50 = vld [vmem:[%s20206_s7 + $0x7a8] sm:$0xff]  ;;  %v15878_v17 = vld [vmem:[%s20206_s7 + $0x7b0] sm:$0xff] }
  0x7c   :  { %20706 = vst [vmem:[#allocation254_spill] sm:$0xff] %v15863_v51  ;;  %20707 = vst [vmem:[#allocation255_spill] sm:$0xff] %v15868_v49  ;;  %v15883_v18 = vld [vmem:[%s20206_s7 + $0x7b8] sm:$0xff] }
  0x7d   :  { %20708 = vst [vmem:[#allocation256_spill] sm:$0xff] %v15873_v50  ;;  %20709 = vst [vmem:[#allocation257_spill] sm:$0xff] %v15878_v17 }
  0x7e   :  { %20710 = vst [vmem:[#allocation258_spill] sm:$0xff] %v15883_v18 }
  0x7f   :  { %581 = vsyncadd [#allocation7], 31744  ;;  %v11728_v51 = vld [vmem:[%s20200_s1 + $0x4] sm:$0xf]  ;;  %vm1486_vm0 = vcmask 1043456   ;;  %vm1101_vm1 = vcmask 31744  }
  0x80   :  { %13500 = vmatprep.subr.msk.mxu0 %vm1486_vm0, %v11728_v51  ;;  %v842_v49 = vld [vmem:[%s20200_s1] sm:$0xf]  ;;  %v11601_v18 = vld [vmem:[%s20199_s0 + $0x11] ss:$2 sm:$0xff]  ;;  %v11473_v52 = vld [vmem:[%s20199_s0 + $0x10] ss:$2 sm:$0xff] }
  0x81   :  { %v11600_v50 = vld [vmem:[%s20199_s0 + $0x1] ss:$2 sm:$0xff]  ;;  %v587_v17 = vld [vmem:[%s20199_s0] ss:$2 sm:$0xff]  ;;  %13694 = vmatprep.subr.msk.mxu1 %vm1486_vm0, %v842_v49  ;;  %13501 = vmatpush3.msk.msra.mxu0 %vm1486_vm0, %v11728_v51  ;;  %v11571_v54 = vld [vmem:[%s20199_s0 + $0x630] ss:$2 sm:$0xff] }
  0x82   :  { %v12115_v19 = vld [vmem:[%s20200_s1 + $0x8] sm:$0xf]  ;;  %13502 = vmatprep.mubr.msk.f32.mxu0 %vm1101_vm1, %v11600_v50  ;;  %13695 = vmatpush3.msk.msra.mxu1 %vm1486_vm0, %v842_v49  ;;  %v11603_v49 = vld [vmem:[%s20199_s0 + $0x31] ss:$2 sm:$0xff]  ;;  %v11589_v62 = vld [vmem:[%s20199_s0 + $0x750] ss:$2 sm:$0xff] }
  0x83   :  { %v11602_v51 = vld [vmem:[%s20199_s0 + $0x21] ss:$2 sm:$0xff]  ;;  %13696 = vmatprep.mubr.msk.f32.mxu1 %vm1101_vm1, %v587_v17  ;;  %13503 = vmatmul.mubr.msk.f32.vlgmr.msra.gmra.mxu0 %vm1101_vm1, %v11601_v18  ;;  %v11474_v20 = vld [vmem:[%s20199_s0 + $0x20] ss:$2 sm:$0xff]  ;;  %v11475_v17 = vld [vmem:[%s20199_s0 + $0x30] ss:$2 sm:$0xff] }
  0x84   :  { %13697 = vmatmul.mubr.msk.f32.vlgmr.msra.gmra.mxu1 %vm1101_vm1, %v11473_v52  ;;  %13888 = vmatprep.subr.msk.mxu0 %vm1486_vm0, %v12115_v19  ;;  %v11604_v18 = vld [vmem:[%s20199_s0 + $0x41] ss:$2 sm:$0xff]  ;;  %v11476_v50 = vld [vmem:[%s20199_s0 + $0x40] ss:$2 sm:$0xff]  ;;  %v11709_v26 = vld [vmem:[%s20199_s0 + $0x6d1] ss:$2 sm:$0xff] }
  0x85   :  { %13889 = vmatpush3.msk.msra.mxu0 %vm1486_vm0, %v12115_v19  ;;  %13505 = vmatprep.mubr.msk.f32.mxu0 %vm1101_vm1, %v11602_v51  ;;  %v11605_v19 = vld [vmem:[%s20199_s0 + $0x51] ss:$2 sm:$0xff]  ;;  %v11606_v52 = vld [vmem:[%s20199_s0 + $0x61] ss:$2 sm:$0xff]  ;;  %v11478_v51 = vld [vmem:[%s20199_s0 + $0x60] ss:$2 sm:$0xff] }
  0x86   :  { %13699 = vmatprep.mubr.msk.f32.mxu1 %vm1101_vm1, %v11474_v20  ;;  %v11477_v20 = vld [vmem:[%s20199_s0 + $0x50] ss:$2 sm:$0xff]  ;;  %vm582_vm2 = vcmask 130048   ;;  %vm584_vm3 = vcmask 261120   ;;  %vm8779_vm4 = vcmask 523264   ;;  %vm8848_vm5 = vcmask 1048064  }
  0x87   :  { %13506 = vmatmul.mubr.msk.f32.gmra.mxu0 %vm1101_vm1, %v11603_v49  ;;  %v11607_v49 = vld [vmem:[%s20199_s0 + $0x71] ss:$2 sm:$0xff]  ;;  %v11591_v30 = vld [vmem:[%s20199_s0 + $0x770] ss:$2 sm:$0xff] }
  0x88   :  { %13700 = vmatmul.mubr.msk.f32.gmra.mxu1 %vm1101_vm1, %v11475_v17  ;;  %13508 = vmatprep.mubr.msk.f32.mxu0 %vm1101_vm1, %v11604_v18  ;;  %v11479_v17 = vld [vmem:[%s20199_s0 + $0x70] ss:$2 sm:$0xff]  ;;  %v11608_v18 = vld [vmem:[%s20199_s0 + $0x81] ss:$2 sm:$0xff] }
  0x89   :  { %13702 = vmatprep.mubr.msk.f32.mxu1 %vm1101_vm1, %v11476_v50  ;;  %v11480_v50 = vld [vmem:[%s20199_s0 + $0x80] ss:$2 sm:$0xff]  ;;  %v11593_v0 = vld [vmem:[%s20199_s0 + $0x790] ss:$2 sm:$0xff] }
  0x8a   :  { %v11595_v32 = vld [vmem:[%s20199_s0 + $0x7b0] ss:$2 sm:$0xff] }
  0x8b   :  { %13509 = vmatmul.mubr.msk.f32.gmra.mxu0 %vm1101_vm1, %v11605_v19  ;;  %v11609_v19 = vld [vmem:[%s20199_s0 + $0x91] ss:$2 sm:$0xff]  ;;  %v11597_v34 = vld [vmem:[%s20199_s0 + $0x7d0] ss:$2 sm:$0xff] }
  0x8c   :  { %13703 = vmatmul.mubr.msk.f32.gmra.mxu1 %vm1101_vm1, %v11477_v20  ;;  %13511 = vmatprep.mubr.msk.f32.mxu0 %vm1101_vm1, %v11606_v52  ;;  %v11481_v20 = vld [vmem:[%s20199_s0 + $0x90] ss:$2 sm:$0xff]  ;;  %v11610_v52 = vld [vmem:[%s20199_s0 + $0xa1] ss:$2 sm:$0xff] }
  0x8d   :  { %13705 = vmatprep.mubr.msk.f32.mxu1 %vm1101_vm1, %v11478_v51  ;;  %v11482_v51 = vld [vmem:[%s20199_s0 + $0xa0] ss:$2 sm:$0xff]  ;;  %v11599_v2 = vld [vmem:[%s20199_s0 + $0x7f0] ss:$2 sm:$0xff] }
  0x8e   :  { %v11989_v36 = vld [vmem:[%s20199_s0 + $0x22] ss:$2 sm:$0xff] }
  0x8f   :  { %13512 = vmatmul.mubr.msk.f32.gmra.mxu0 %vm1101_vm1, %v11607_v49  ;;  %v11611_v49 = vld [vmem:[%s20199_s0 + $0xb1] ss:$2 sm:$0xff]  ;;  %v11991_v4 = vld [vmem:[%s20199_s0 + $0x42] ss:$2 sm:$0xff] }
  0x90   :  { %13706 = vmatmul.mubr.msk.f32.gmra.mxu1 %vm1101_vm1, %v11479_v17  ;;  %13514 = vmatprep.mubr.msk.f32.mxu0 %vm1101_vm1, %v11608_v18  ;;  %v11483_v17 = vld [vmem:[%s20199_s0 + $0xb0] ss:$2 sm:$0xff]  ;;  %v11612_v18 = vld [vmem:[%s20199_s0 + $0xc1] ss:$2 sm:$0xff] }
  0x91   :  { %13708 = vmatprep.mubr.msk.f32.mxu1 %vm1101_vm1, %v11480_v50  ;;  %v11484_v50 = vld [vmem:[%s20199_s0 + $0xc0] ss:$2 sm:$0xff] }
  0x92   :  { %v11993_v5 = vld [vmem:[%s20199_s0 + $0x62] ss:$2 sm:$0xff] }
  0x93   :  { %13515 = vmatmul.mubr.msk.f32.gmra.mxu0 %vm1101_vm1, %v11609_v19  ;;  %v11613_v19 = vld [vmem:[%s20199_s0 + $0xd1] ss:$2 sm:$0xff]  ;;  %v11995_v40 = vld [vmem:[%s20199_s0 + $0x82] ss:$2 sm:$0xff] }
  0x94   :  { %13709 = vmatmul.mubr.msk.f32.gmra.mxu1 %vm1101_vm1, %v11481_v20  ;;  %13517 = vmatprep.mubr.msk.f32.mxu0 %vm1101_vm1, %v11610_v52  ;;  %v11485_v20 = vld [vmem:[%s20199_s0 + $0xd0] ss:$2 sm:$0xff]  ;;  %v11614_v52 = vld [vmem:[%s20199_s0 + $0xe1] ss:$2 sm:$0xff] }
  0x95   :  { %13711 = vmatprep.mubr.msk.f32.mxu1 %vm1101_vm1, %v11482_v51  ;;  %v11486_v51 = vld [vmem:[%s20199_s0 + $0xe0] ss:$2 sm:$0xff] }
  0x96   :  { %v11997_v41 = vld [vmem:[%s20199_s0 + $0xa2] ss:$2 sm:$0xff] }
  0x97   :  { %13518 = vmatmul.mubr.msk.f32.gmra.mxu0 %vm1101_vm1, %v11611_v49  ;;  %v11615_v49 = vld [vmem:[%s20199_s0 + $0xf1] ss:$2 sm:$0xff]  ;;  %v11999_v10 = vld [vmem:[%s20199_s0 + $0xc2] ss:$2 sm:$0xff] }
  0x98   :  { %13712 = vmatmul.mubr.msk.f32.gmra.mxu1 %vm1101_vm1, %v11483_v17  ;;  %13520 = vmatprep.mubr.msk.f32.mxu0 %vm1101_vm1, %v11612_v18  ;;  %v11487_v17 = vld [vmem:[%s20199_s0 + $0xf0] ss:$2 sm:$0xff]  ;;  %v11616_v18 = vld [vmem:[%s20199_s0 + $0x101] ss:$2 sm:$0xff] }
  0x99   :  { %13714 = vmatprep.mubr.msk.f32.mxu1 %vm1101_vm1, %v11484_v50  ;;  %v11488_v50 = vld [vmem:[%s20199_s0 + $0x100] ss:$2 sm:$0xff] }
  0x9a   :  { %v12001_v11 = vld [vmem:[%s20199_s0 + $0xe2] ss:$2 sm:$0xff] }
  0x9b   :  { %13521 = vmatmul.mubr.msk.f32.gmra.mxu0 %vm1101_vm1, %v11613_v19  ;;  %v11617_v19 = vld [vmem:[%s20199_s0 + $0x111] ss:$2 sm:$0xff]  ;;  %v12003_v46 = vld [vmem:[%s20199_s0 + $0x102] ss:$2 sm:$0xff] }
  0x9c   :  { %13715 = vmatmul.mubr.msk.f32.gmra.mxu1 %vm1101_vm1, %v11485_v20  ;;  %13523 = vmatprep.mubr.msk.f32.mxu0 %vm1101_vm1, %v11614_v52  ;;  %v11489_v20 = vld [vmem:[%s20199_s0 + $0x110] ss:$2 sm:$0xff]  ;;  %v11618_v52 = vld [vmem:[%s20199_s0 + $0x121] ss:$2 sm:$0xff] }
  0x9d   :  { %13717 = vmatprep.mubr.msk.f32.mxu1 %vm1101_vm1, %v11486_v51  ;;  %v11490_v51 = vld [vmem:[%s20199_s0 + $0x120] ss:$2 sm:$0xff] }
  0x9e   :  { %v12005_v47 = vld [vmem:[%s20199_s0 + $0x122] ss:$2 sm:$0xff] }
  0x9f   :  { %13524 = vmatmul.mubr.msk.f32.gmra.mxu0 %vm1101_vm1, %v11615_v49  ;;  %v11619_v49 = vld [vmem:[%s20199_s0 + $0x131] ss:$2 sm:$0xff]  ;;  %v12007_v16 = vld [vmem:[%s20199_s0 + $0x142] ss:$2 sm:$0xff] }
  0xa0   :  { %13718 = vmatmul.mubr.msk.f32.gmra.mxu1 %vm1101_vm1, %v11487_v17  ;;  %13526 = vmatprep.mubr.msk.f32.mxu0 %vm1101_vm1, %v11616_v18  ;;  %v11491_v17 = vld [vmem:[%s20199_s0 + $0x130] ss:$2 sm:$0xff]  ;;  %v11620_v18 = vld [vmem:[%s20199_s0 + $0x141] ss:$2 sm:$0xff] }
  0xa1   :  { %13720 = vmatprep.mubr.msk.f32.mxu1 %vm1101_vm1, %v11488_v50  ;;  %v11492_v50 = vld [vmem:[%s20199_s0 + $0x140] ss:$2 sm:$0xff] }
  0xa3   :  { %13527 = vmatmul.mubr.msk.f32.gmra.mxu0 %vm1101_vm1, %v11617_v19  ;;  %v11621_v19 = vld [vmem:[%s20199_s0 + $0x151] ss:$2 sm:$0xff] }
  0xa4   :  { %13721 = vmatmul.mubr.msk.f32.gmra.mxu1 %vm1101_vm1, %v11489_v20  ;;  %13529 = vmatprep.mubr.msk.f32.mxu0 %vm1101_vm1, %v11618_v52  ;;  %v11493_v20 = vld [vmem:[%s20199_s0 + $0x150] ss:$2 sm:$0xff]  ;;  %v11622_v52 = vld [vmem:[%s20199_s0 + $0x161] ss:$2 sm:$0xff] }
  0xa5   :  { %13723 = vmatprep.mubr.msk.f32.mxu1 %vm1101_vm1, %v11490_v51  ;;  %v11494_v51 = vld [vmem:[%s20199_s0 + $0x160] ss:$2 sm:$0xff] }
  0xa7   :  { %13530 = vmatmul.mubr.msk.f32.gmra.mxu0 %vm1101_vm1, %v11619_v49  ;;  %v11623_v49 = vld [vmem:[%s20199_s0 + $0x171] ss:$2 sm:$0xff] }
  0xa8   :  { %13724 = vmatmul.mubr.msk.f32.gmra.mxu1 %vm1101_vm1, %v11491_v17  ;;  %13532 = vmatprep.mubr.msk.f32.mxu0 %vm1101_vm1, %v11620_v18  ;;  %v11495_v17 = vld [vmem:[%s20199_s0 + $0x170] ss:$2 sm:$0xff]  ;;  %v11624_v18 = vld [vmem:[%s20199_s0 + $0x181] ss:$2 sm:$0xff] }
  0xa9   :  { %13726 = vmatprep.mubr.msk.f32.mxu1 %vm1101_vm1, %v11492_v50  ;;  %v11496_v50 = vld [vmem:[%s20199_s0 + $0x180] ss:$2 sm:$0xff] }
  0xab   :  { %13533 = vmatmul.mubr.msk.f32.gmra.mxu0 %vm1101_vm1, %v11621_v19  ;;  %v11625_v19 = vld [vmem:[%s20199_s0 + $0x191] ss:$2 sm:$0xff] }
  0xac   :  { %13727 = vmatmul.mubr.msk.f32.gmra.mxu1 %vm1101_vm1, %v11493_v20  ;;  %13535 = vmatprep.mubr.msk.f32.mxu0 %vm1101_vm1, %v11622_v52  ;;  %v11497_v20 = vld [vmem:[%s20199_s0 + $0x190] ss:$2 sm:$0xff]  ;;  %v11626_v52 = vld [vmem:[%s20199_s0 + $0x1a1] ss:$2 sm:$0xff] }
  0xad   :  { %13729 = vmatprep.mubr.msk.f32.mxu1 %vm1101_vm1, %v11494_v51  ;;  %v11498_v51 = vld [vmem:[%s20199_s0 + $0x1a0] ss:$2 sm:$0xff] }
  0xaf   :  { %13536 = vmatmul.mubr.msk.f32.gmra.mxu0 %vm1101_vm1, %v11623_v49  ;;  %v11627_v49 = vld [vmem:[%s20199_s0 + $0x1b1] ss:$2 sm:$0xff] }
  0xb0   :  { %13730 = vmatmul.mubr.msk.f32.gmra.mxu1 %vm1101_vm1, %v11495_v17  ;;  %13538 = vmatprep.mubr.msk.f32.mxu0 %vm1101_vm1, %v11624_v18  ;;  %v11499_v17 = vld [vmem:[%s20199_s0 + $0x1b0] ss:$2 sm:$0xff]  ;;  %v11628_v18 = vld [vmem:[%s20199_s0 + $0x1c1] ss:$2 sm:$0xff] }
  0xb1   :  { %13732 = vmatprep.mubr.msk.f32.mxu1 %vm1101_vm1, %v11496_v50  ;;  %v11500_v50 = vld [vmem:[%s20199_s0 + $0x1c0] ss:$2 sm:$0xff] }
  0xb3   :  { %13539 = vmatmul.mubr.msk.f32.gmra.mxu0 %vm1101_vm1, %v11625_v19  ;;  %v11629_v19 = vld [vmem:[%s20199_s0 + $0x1d1] ss:$2 sm:$0xff] }
  0xb4   :  { %13733 = vmatmul.mubr.msk.f32.gmra.mxu1 %vm1101_vm1, %v11497_v20  ;;  %13541 = vmatprep.mubr.msk.f32.mxu0 %vm1101_vm1, %v11626_v52  ;;  %v11501_v20 = vld [vmem:[%s20199_s0 + $0x1d0] ss:$2 sm:$0xff]  ;;  %v11630_v52 = vld [vmem:[%s20199_s0 + $0x1e1] ss:$2 sm:$0xff] }
  0xb5   :  { %13735 = vmatprep.mubr.msk.f32.mxu1 %vm1101_vm1, %v11498_v51  ;;  %v11502_v51 = vld [vmem:[%s20199_s0 + $0x1e0] ss:$2 sm:$0xff] }
  0xb7   :  { %13542 = vmatmul.mubr.msk.f32.gmra.mxu0 %vm1101_vm1, %v11627_v49  ;;  %v11631_v49 = vld [vmem:[%s20199_s0 + $0x1f1] ss:$2 sm:$0xff] }
  0xb8   :  { %13736 = vmatmul.mubr.msk.f32.gmra.mxu1 %vm1101_vm1, %v11499_v17  ;;  %13544 = vmatprep.mubr.msk.f32.mxu0 %vm1101_vm1, %v11628_v18  ;;  %v11503_v17 = vld [vmem:[%s20199_s0 + $0x1f0] ss:$2 sm:$0xff]  ;;  %v11632_v18 = vld [vmem:[%s20199_s0 + $0x201] ss:$2 sm:$0xff] }
  0xb9   :  { %13738 = vmatprep.mubr.msk.f32.mxu1 %vm1101_vm1, %v11500_v50  ;;  %v11504_v50 = vld [vmem:[%s20199_s0 + $0x200] ss:$2 sm:$0xff] }
  0xbb   :  { %13545 = vmatmul.mubr.msk.f32.gmra.mxu0 %vm1101_vm1, %v11629_v19  ;;  %v11633_v19 = vld [vmem:[%s20199_s0 + $0x211] ss:$2 sm:$0xff] }
  0xbc   :  { %13739 = vmatmul.mubr.msk.f32.gmra.mxu1 %vm1101_vm1, %v11501_v20  ;;  %13547 = vmatprep.mubr.msk.f32.mxu0 %vm1101_vm1, %v11630_v52  ;;  %v11505_v20 = vld [vmem:[%s20199_s0 + $0x210] ss:$2 sm:$0xff]  ;;  %v11634_v52 = vld [vmem:[%s20199_s0 + $0x221] ss:$2 sm:$0xff] }
  0xbd   :  { %13741 = vmatprep.mubr.msk.f32.mxu1 %vm1101_vm1, %v11502_v51  ;;  %v11506_v51 = vld [vmem:[%s20199_s0 + $0x220] ss:$2 sm:$0xff] }
  0xbf   :  { %13548 = vmatmul.mubr.msk.f32.gmra.mxu0 %vm1101_vm1, %v11631_v49  ;;  %v11635_v49 = vld [vmem:[%s20199_s0 + $0x231] ss:$2 sm:$0xff] }
  0xc0   :  { %13742 = vmatmul.mubr.msk.f32.gmra.mxu1 %vm1101_vm1, %v11503_v17  ;;  %13550 = vmatprep.mubr.msk.f32.mxu0 %vm1101_vm1, %v11632_v18  ;;  %v11507_v17 = vld [vmem:[%s20199_s0 + $0x230] ss:$2 sm:$0xff]  ;;  %v11636_v18 = vld [vmem:[%s20199_s0 + $0x241] ss:$2 sm:$0xff] }
  0xc1   :  { %13744 = vmatprep.mubr.msk.f32.mxu1 %vm1101_vm1, %v11504_v50  ;;  %v11508_v50 = vld [vmem:[%s20199_s0 + $0x240] ss:$2 sm:$0xff] }
  0xc3   :  { %13551 = vmatmul.mubr.msk.f32.gmra.mxu0 %vm1101_vm1, %v11633_v19  ;;  %v11637_v19 = vld [vmem:[%s20199_s0 + $0x251] ss:$2 sm:$0xff] }
  0xc4   :  { %13745 = vmatmul.mubr.msk.f32.gmra.mxu1 %vm1101_vm1, %v11505_v20  ;;  %13553 = vmatprep.mubr.msk.f32.mxu0 %vm1101_vm1, %v11634_v52  ;;  %v11509_v20 = vld [vmem:[%s20199_s0 + $0x250] ss:$2 sm:$0xff]  ;;  %v11638_v52 = vld [vmem:[%s20199_s0 + $0x261] ss:$2 sm:$0xff] }
  0xc5   :  { %13747 = vmatprep.mubr.msk.f32.mxu1 %vm1101_vm1, %v11506_v51  ;;  %v11510_v51 = vld [vmem:[%s20199_s0 + $0x260] ss:$2 sm:$0xff] }
  0xc7   :  { %13554 = vmatmul.mubr.msk.f32.gmra.mxu0 %vm1101_vm1, %v11635_v49  ;;  %v11639_v49 = vld [vmem:[%s20199_s0 + $0x271] ss:$2 sm:$0xff] }
  0xc8   :  { %13748 = vmatmul.mubr.msk.f32.gmra.mxu1 %vm1101_vm1, %v11507_v17  ;;  %13556 = vmatprep.mubr.msk.f32.mxu0 %vm1101_vm1, %v11636_v18  ;;  %v11511_v17 = vld [vmem:[%s20199_s0 + $0x270] ss:$2 sm:$0xff]  ;;  %v11640_v18 = vld [vmem:[%s20199_s0 + $0x281] ss:$2 sm:$0xff] }
  0xc9   :  { %13750 = vmatprep.mubr.msk.f32.mxu1 %vm1101_vm1, %v11508_v50  ;;  %v11512_v50 = vld [vmem:[%s20199_s0 + $0x280] ss:$2 sm:$0xff] }
  0xcb   :  { %13557 = vmatmul.mubr.msk.f32.gmra.mxu0 %vm1101_vm1, %v11637_v19  ;;  %v11641_v19 = vld [vmem:[%s20199_s0 + $0x291] ss:$2 sm:$0xff] }
  0xcc   :  { %13751 = vmatmul.mubr.msk.f32.gmra.mxu1 %vm1101_vm1, %v11509_v20  ;;  %13559 = vmatprep.mubr.msk.f32.mxu0 %vm1101_vm1, %v11638_v52  ;;  %v11513_v20 = vld [vmem:[%s20199_s0 + $0x290] ss:$2 sm:$0xff]  ;;  %v11642_v52 = vld [vmem:[%s20199_s0 + $0x2a1] ss:$2 sm:$0xff] }
  0xcd   :  { %13753 = vmatprep.mubr.msk.f32.mxu1 %vm1101_vm1, %v11510_v51  ;;  %v11514_v51 = vld [vmem:[%s20199_s0 + $0x2a0] ss:$2 sm:$0xff] }
  0xcf   :  { %13560 = vmatmul.mubr.msk.f32.gmra.mxu0 %vm1101_vm1, %v11639_v49  ;;  %v11643_v49 = vld [vmem:[%s20199_s0 + $0x2b1] ss:$2 sm:$0xff] }
  0xd0   :  { %13754 = vmatmul.mubr.msk.f32.gmra.mxu1 %vm1101_vm1, %v11511_v17  ;;  %13562 = vmatprep.mubr.msk.f32.mxu0 %vm1101_vm1, %v11640_v18  ;;  %v11515_v17 = vld [vmem:[%s20199_s0 + $0x2b0] ss:$2 sm:$0xff]  ;;  %v11644_v18 = vld [vmem:[%s20199_s0 + $0x2c1] ss:$2 sm:$0xff] }
  0xd1   :  { %13756 = vmatprep.mubr.msk.f32.mxu1 %vm1101_vm1, %v11512_v50  ;;  %v11516_v50 = vld [vmem:[%s20199_s0 + $0x2c0] ss:$2 sm:$0xff] }
  0xd3   :  { %13563 = vmatmul.mubr.msk.f32.gmra.mxu0 %vm1101_vm1, %v11641_v19  ;;  %v11645_v19 = vld [vmem:[%s20199_s0 + $0x2d1] ss:$2 sm:$0xff] }
  0xd4   :  { %13757 = vmatmul.mubr.msk.f32.gmra.mxu1 %vm1101_vm1, %v11513_v20  ;;  %13565 = vmatprep.mubr.msk.f32.mxu0 %vm1101_vm1, %v11642_v52  ;;  %v11517_v20 = vld [vmem:[%s20199_s0 + $0x2d0] ss:$2 sm:$0xff]  ;;  %v11646_v52 = vld [vmem:[%s20199_s0 + $0x2e1] ss:$2 sm:$0xff] }
  0xd5   :  { %13759 = vmatprep.mubr.msk.f32.mxu1 %vm1101_vm1, %v11514_v51  ;;  %v11518_v51 = vld [vmem:[%s20199_s0 + $0x2e0] ss:$2 sm:$0xff] }
  0xd7   :  { %13566 = vmatmul.mubr.msk.f32.gmra.mxu0 %vm1101_vm1, %v11643_v49  ;;  %v11647_v49 = vld [vmem:[%s20199_s0 + $0x2f1] ss:$2 sm:$0xff] }
  0xd8   :  { %13760 = vmatmul.mubr.msk.f32.gmra.mxu1 %vm1101_vm1, %v11515_v17  ;;  %13568 = vmatprep.mubr.msk.f32.mxu0 %vm1101_vm1, %v11644_v18  ;;  %v11519_v17 = vld [vmem:[%s20199_s0 + $0x2f0] ss:$2 sm:$0xff]  ;;  %v11648_v18 = vld [vmem:[%s20199_s0 + $0x301] ss:$2 sm:$0xff] }
  0xd9   :  { %13762 = vmatprep.mubr.msk.f32.mxu1 %vm1101_vm1, %v11516_v50  ;;  %v11520_v50 = vld [vmem:[%s20199_s0 + $0x300] ss:$2 sm:$0xff] }
  0xdb   :  { %13569 = vmatmul.mubr.msk.f32.gmra.mxu0 %vm1101_vm1, %v11645_v19  ;;  %v11649_v19 = vld [vmem:[%s20199_s0 + $0x311] ss:$2 sm:$0xff] }
  0xdc   :  { %13763 = vmatmul.mubr.msk.f32.gmra.mxu1 %vm1101_vm1, %v11517_v20  ;;  %13571 = vmatprep.mubr.msk.f32.mxu0 %vm1101_vm1, %v11646_v52  ;;  %v11521_v20 = vld [vmem:[%s20199_s0 + $0x310] ss:$2 sm:$0xff]  ;;  %v11650_v52 = vld [vmem:[%s20199_s0 + $0x321] ss:$2 sm:$0xff] }
  0xdd   :  { %13765 = vmatprep.mubr.msk.f32.mxu1 %vm1101_vm1, %v11518_v51  ;;  %v11522_v51 = vld [vmem:[%s20199_s0 + $0x320] ss:$2 sm:$0xff] }
  0xdf   :  { %13572 = vmatmul.mubr.msk.f32.gmra.mxu0 %vm1101_vm1, %v11647_v49  ;;  %v11651_v49 = vld [vmem:[%s20199_s0 + $0x331] ss:$2 sm:$0xff] }
  0xe0   :  { %13766 = vmatmul.mubr.msk.f32.gmra.mxu1 %vm1101_vm1, %v11519_v17  ;;  %13574 = vmatprep.mubr.msk.f32.mxu0 %vm1101_vm1, %v11648_v18  ;;  %v11523_v17 = vld [vmem:[%s20199_s0 + $0x330] ss:$2 sm:$0xff]  ;;  %v11652_v18 = vld [vmem:[%s20199_s0 + $0x341] ss:$2 sm:$0xff] }
  0xe1   :  { %13768 = vmatprep.mubr.msk.f32.mxu1 %vm1101_vm1, %v11520_v50  ;;  %v11524_v50 = vld [vmem:[%s20199_s0 + $0x340] ss:$2 sm:$0xff] }
  0xe3   :  { %13575 = vmatmul.mubr.msk.f32.gmra.mxu0 %vm1101_vm1, %v11649_v19  ;;  %v11653_v19 = vld [vmem:[%s20199_s0 + $0x351] ss:$2 sm:$0xff] }
  0xe4   :  { %13769 = vmatmul.mubr.msk.f32.gmra.mxu1 %vm1101_vm1, %v11521_v20  ;;  %13577 = vmatprep.mubr.msk.f32.mxu0 %vm1101_vm1, %v11650_v52  ;;  %v11525_v20 = vld [vmem:[%s20199_s0 + $0x350] ss:$2 sm:$0xff]  ;;  %v11654_v52 = vld [vmem:[%s20199_s0 + $0x361] ss:$2 sm:$0xff] }
  0xe5   :  { %13771 = vmatprep.mubr.msk.f32.mxu1 %vm1101_vm1, %v11522_v51  ;;  %v11526_v51 = vld [vmem:[%s20199_s0 + $0x360] ss:$2 sm:$0xff] }
  0xe7   :  { %13578 = vmatmul.mubr.msk.f32.gmra.mxu0 %vm1101_vm1, %v11651_v49  ;;  %v11655_v49 = vld [vmem:[%s20199_s0 + $0x371] ss:$2 sm:$0xff] }
  0xe8   :  { %13772 = vmatmul.mubr.msk.f32.gmra.mxu1 %vm1101_vm1, %v11523_v17  ;;  %13580 = vmatprep.mubr.msk.f32.mxu0 %vm1101_vm1, %v11652_v18  ;;  %v11527_v17 = vld [vmem:[%s20199_s0 + $0x370] ss:$2 sm:$0xff]  ;;  %v11656_v18 = vld [vmem:[%s20199_s0 + $0x381] ss:$2 sm:$0xff] }
  0xe9   :  { %13774 = vmatprep.mubr.msk.f32.mxu1 %vm1101_vm1, %v11524_v50  ;;  %v11528_v50 = vld [vmem:[%s20199_s0 + $0x380] ss:$2 sm:$0xff] }
  0xeb   :  { %13581 = vmatmul.mubr.msk.f32.gmra.mxu0 %vm1101_vm1, %v11653_v19  ;;  %v11657_v19 = vld [vmem:[%s20199_s0 + $0x391] ss:$2 sm:$0xff] }
  0xec   :  { %13775 = vmatmul.mubr.msk.f32.gmra.mxu1 %vm1101_vm1, %v11525_v20  ;;  %13583 = vmatprep.mubr.msk.f32.mxu0 %vm1101_vm1, %v11654_v52  ;;  %v11529_v20 = vld [vmem:[%s20199_s0 + $0x390] ss:$2 sm:$0xff]  ;;  %v11658_v52 = vld [vmem:[%s20199_s0 + $0x3a1] ss:$2 sm:$0xff] }
  0xed   :  { %13777 = vmatprep.mubr.msk.f32.mxu1 %vm1101_vm1, %v11526_v51  ;;  %v11530_v51 = vld [vmem:[%s20199_s0 + $0x3a0] ss:$2 sm:$0xff] }
  0xef   :  { %13584 = vmatmul.mubr.msk.f32.gmra.mxu0 %vm1101_vm1, %v11655_v49  ;;  %v11659_v49 = vld [vmem:[%s20199_s0 + $0x3b1] ss:$2 sm:$0xff] }
  0xf0   :  { %13778 = vmatmul.mubr.msk.f32.gmra.mxu1 %vm1101_vm1, %v11527_v17  ;;  %13586 = vmatprep.mubr.msk.f32.mxu0 %vm1101_vm1, %v11656_v18  ;;  %v11531_v17 = vld [vmem:[%s20199_s0 + $0x3b0] ss:$2 sm:$0xff]  ;;  %v11660_v18 = vld [vmem:[%s20199_s0 + $0x3c1] ss:$2 sm:$0xff] }
  0xf1   :  { %13780 = vmatprep.mubr.msk.f32.mxu1 %vm1101_vm1, %v11528_v50  ;;  %v11532_v50 = vld [vmem:[%s20199_s0 + $0x3c0] ss:$2 sm:$0xff] }
  0xf3   :  { %13587 = vmatmul.mubr.msk.f32.gmra.mxu0 %vm1101_vm1, %v11657_v19  ;;  %v11661_v19 = vld [vmem:[%s20199_s0 + $0x3d1] ss:$2 sm:$0xff] }
  0xf4   :  { %13781 = vmatmul.mubr.msk.f32.gmra.mxu1 %vm1101_vm1, %v11529_v20  ;;  %13589 = vmatprep.mubr.msk.f32.mxu0 %vm1101_vm1, %v11658_v52  ;;  %v11533_v20 = vld [vmem:[%s20199_s0 + $0x3d0] ss:$2 sm:$0xff]  ;;  %v11662_v52 = vld [vmem:[%s20199_s0 + $0x3e1] ss:$2 sm:$0xff] }
  0xf5   :  { %13783 = vmatprep.mubr.msk.f32.mxu1 %vm1101_vm1, %v11530_v51  ;;  %v11534_v51 = vld [vmem:[%s20199_s0 + $0x3e0] ss:$2 sm:$0xff] }
  0xf7   :  { %13590 = vmatmul.mubr.msk.f32.gmra.mxu0 %vm1101_vm1, %v11659_v49  ;;  %v11663_v49 = vld [vmem:[%s20199_s0 + $0x3f1] ss:$2 sm:$0xff] }
  0xf8   :  { %13784 = vmatmul.mubr.msk.f32.gmra.mxu1 %vm1101_vm1, %v11531_v17  ;;  %13592 = vmatprep.mubr.msk.f32.mxu0 %vm1101_vm1, %v11660_v18  ;;  %v11535_v17 = vld [vmem:[%s20199_s0 + $0x3f0] ss:$2 sm:$0xff]  ;;  %v11664_v18 = vld [vmem:[%s20199_s0 + $0x401] ss:$2 sm:$0xff] }
  0xf9   :  { %13786 = vmatprep.mubr.msk.f32.mxu1 %vm1101_vm1, %v11532_v50  ;;  %v11536_v50 = vld [vmem:[%s20199_s0 + $0x400] ss:$2 sm:$0xff] }
  0xfb   :  { %13593 = vmatmul.mubr.msk.f32.gmra.mxu0 %vm1101_vm1, %v11661_v19  ;;  %v11665_v19 = vld [vmem:[%s20199_s0 + $0x411] ss:$2 sm:$0xff] }
  0xfc   :  { %13787 = vmatmul.mubr.msk.f32.gmra.mxu1 %vm1101_vm1, %v11533_v20  ;;  %13595 = vmatprep.mubr.msk.f32.mxu0 %vm1101_vm1, %v11662_v52  ;;  %v11537_v20 = vld [vmem:[%s20199_s0 + $0x410] ss:$2 sm:$0xff]  ;;  %v11666_v52 = vld [vmem:[%s20199_s0 + $0x421] ss:$2 sm:$0xff] }
  0xfd   :  { %13789 = vmatprep.mubr.msk.f32.mxu1 %vm1101_vm1, %v11534_v51  ;;  %v11538_v51 = vld [vmem:[%s20199_s0 + $0x420] ss:$2 sm:$0xff] }
  0xff   :  { %13596 = vmatmul.mubr.msk.f32.gmra.mxu0 %vm1101_vm1, %v11663_v49  ;;  %v11667_v49 = vld [vmem:[%s20199_s0 + $0x431] ss:$2 sm:$0xff] }
 0x100   :  { %13790 = vmatmul.mubr.msk.f32.gmra.mxu1 %vm1101_vm1, %v11535_v17  ;;  %13598 = vmatprep.mubr.msk.f32.mxu0 %vm1101_vm1, %v11664_v18  ;;  %v11539_v17 = vld [vmem:[%s20199_s0 + $0x430] ss:$2 sm:$0xff]  ;;  %v11668_v18 = vld [vmem:[%s20199_s0 + $0x441] ss:$2 sm:$0xff] }
 0x101   :  { %13792 = vmatprep.mubr.msk.f32.mxu1 %vm1101_vm1, %v11536_v50  ;;  %v11540_v50 = vld [vmem:[%s20199_s0 + $0x440] ss:$2 sm:$0xff] }
 0x103   :  { %13599 = vmatmul.mubr.msk.f32.gmra.mxu0 %vm1101_vm1, %v11665_v19  ;;  %v11669_v19 = vld [vmem:[%s20199_s0 + $0x451] ss:$2 sm:$0xff] }
 0x104   :  { %13793 = vmatmul.mubr.msk.f32.gmra.mxu1 %vm1101_vm1, %v11537_v20  ;;  %13601 = vmatprep.mubr.msk.f32.mxu0 %vm1101_vm1, %v11666_v52  ;;  %v11541_v20 = vld [vmem:[%s20199_s0 + $0x450] ss:$2 sm:$0xff]  ;;  %v11670_v52 = vld [vmem:[%s20199_s0 + $0x461] ss:$2 sm:$0xff] }
 0x105   :  { %13795 = vmatprep.mubr.msk.f32.mxu1 %vm1101_vm1, %v11538_v51  ;;  %v11542_v51 = vld [vmem:[%s20199_s0 + $0x460] ss:$2 sm:$0xff] }
 0x107   :  { %13602 = vmatmul.mubr.msk.f32.gmra.mxu0 %vm1101_vm1, %v11667_v49  ;;  %v11671_v49 = vld [vmem:[%s20199_s0 + $0x471] ss:$2 sm:$0xff] }
 0x108   :  { %13796 = vmatmul.mubr.msk.f32.gmra.mxu1 %vm1101_vm1, %v11539_v17  ;;  %13604 = vmatprep.mubr.msk.f32.mxu0 %vm1101_vm1, %v11668_v18  ;;  %v11543_v17 = vld [vmem:[%s20199_s0 + $0x470] ss:$2 sm:$0xff]  ;;  %v11672_v18 = vld [vmem:[%s20199_s0 + $0x481] ss:$2 sm:$0xff] }
 0x109   :  { %13798 = vmatprep.mubr.msk.f32.mxu1 %vm1101_vm1, %v11540_v50  ;;  %v11544_v50 = vld [vmem:[%s20199_s0 + $0x480] ss:$2 sm:$0xff] }
 0x10b   :  { %13605 = vmatmul.mubr.msk.f32.gmra.mxu0 %vm1101_vm1, %v11669_v19  ;;  %v11673_v19 = vld [vmem:[%s20199_s0 + $0x491] ss:$2 sm:$0xff] }
 0x10c   :  { %13799 = vmatmul.mubr.msk.f32.gmra.mxu1 %vm1101_vm1, %v11541_v20  ;;  %13607 = vmatprep.mubr.msk.f32.mxu0 %vm1101_vm1, %v11670_v52  ;;  %v11545_v20 = vld [vmem:[%s20199_s0 + $0x490] ss:$2 sm:$0xff]  ;;  %v11674_v52 = vld [vmem:[%s20199_s0 + $0x4a1] ss:$2 sm:$0xff] }
 0x10d   :  { %13801 = vmatprep.mubr.msk.f32.mxu1 %vm1101_vm1, %v11542_v51  ;;  %v11546_v51 = vld [vmem:[%s20199_s0 + $0x4a0] ss:$2 sm:$0xff] }
 0x10f   :  { %13608 = vmatmul.mubr.msk.f32.gmra.mxu0 %vm1101_vm1, %v11671_v49  ;;  %v11675_v49 = vld [vmem:[%s20199_s0 + $0x4b1] ss:$2 sm:$0xff] }
 0x110   :  { %13802 = vmatmul.mubr.msk.f32.gmra.mxu1 %vm1101_vm1, %v11543_v17  ;;  %13610 = vmatprep.mubr.msk.f32.mxu0 %vm1101_vm1, %v11672_v18  ;;  %v11547_v17 = vld [vmem:[%s20199_s0 + $0x4b0] ss:$2 sm:$0xff]  ;;  %v11676_v18 = vld [vmem:[%s20199_s0 + $0x4c1] ss:$2 sm:$0xff] }
 0x111   :  { %13804 = vmatprep.mubr.msk.f32.mxu1 %vm1101_vm1, %v11544_v50  ;;  %v11548_v50 = vld [vmem:[%s20199_s0 + $0x4c0] ss:$2 sm:$0xff] }
 0x113   :  { %13611 = vmatmul.mubr.msk.f32.gmra.mxu0 %vm1101_vm1, %v11673_v19  ;;  %v11677_v19 = vld [vmem:[%s20199_s0 + $0x4d1] ss:$2 sm:$0xff] }
 0x114   :  { %13805 = vmatmul.mubr.msk.f32.gmra.mxu1 %vm1101_vm1, %v11545_v20  ;;  %13613 = vmatprep.mubr.msk.f32.mxu0 %vm1101_vm1, %v11674_v52  ;;  %v11549_v20 = vld [vmem:[%s20199_s0 + $0x4d0] ss:$2 sm:$0xff]  ;;  %v11678_v52 = vld [vmem:[%s20199_s0 + $0x4e1] ss:$2 sm:$0xff] }
 0x115   :  { %13807 = vmatprep.mubr.msk.f32.mxu1 %vm1101_vm1, %v11546_v51  ;;  %v11550_v51 = vld [vmem:[%s20199_s0 + $0x4e0] ss:$2 sm:$0xff] }
 0x117   :  { %13614 = vmatmul.mubr.msk.f32.gmra.mxu0 %vm1101_vm1, %v11675_v49  ;;  %v11679_v49 = vld [vmem:[%s20199_s0 + $0x4f1] ss:$2 sm:$0xff] }
 0x118   :  { %13808 = vmatmul.mubr.msk.f32.gmra.mxu1 %vm1101_vm1, %v11547_v17  ;;  %13616 = vmatprep.mubr.msk.f32.mxu0 %vm1101_vm1, %v11676_v18  ;;  %v11551_v17 = vld [vmem:[%s20199_s0 + $0x4f0] ss:$2 sm:$0xff]  ;;  %v11680_v18 = vld [vmem:[%s20199_s0 + $0x501] ss:$2 sm:$0xff] }
 0x119   :  { %13810 = vmatprep.mubr.msk.f32.mxu1 %vm1101_vm1, %v11548_v50  ;;  %v11552_v50 = vld [vmem:[%s20199_s0 + $0x500] ss:$2 sm:$0xff] }
 0x11b   :  { %13617 = vmatmul.mubr.msk.f32.gmra.mxu0 %vm1101_vm1, %v11677_v19  ;;  %v11681_v19 = vld [vmem:[%s20199_s0 + $0x511] ss:$2 sm:$0xff] }
 0x11c   :  { %13811 = vmatmul.mubr.msk.f32.gmra.mxu1 %vm1101_vm1, %v11549_v20  ;;  %13619 = vmatprep.mubr.msk.f32.mxu0 %vm1101_vm1, %v11678_v52  ;;  %v11553_v20 = vld [vmem:[%s20199_s0 + $0x510] ss:$2 sm:$0xff]  ;;  %v11682_v52 = vld [vmem:[%s20199_s0 + $0x521] ss:$2 sm:$0xff] }
 0x11d   :  { %13813 = vmatprep.mubr.msk.f32.mxu1 %vm1101_vm1, %v11550_v51  ;;  %v11554_v51 = vld [vmem:[%s20199_s0 + $0x520] ss:$2 sm:$0xff] }
 0x11f   :  { %13620 = vmatmul.mubr.msk.f32.gmra.mxu0 %vm1101_vm1, %v11679_v49  ;;  %v11683_v49 = vld [vmem:[%s20199_s0 + $0x531] ss:$2 sm:$0xff] }
 0x120   :  { %13814 = vmatmul.mubr.msk.f32.gmra.mxu1 %vm1101_vm1, %v11551_v17  ;;  %13622 = vmatprep.mubr.msk.f32.mxu0 %vm1101_vm1, %v11680_v18  ;;  %v11555_v17 = vld [vmem:[%s20199_s0 + $0x530] ss:$2 sm:$0xff]  ;;  %v11684_v18 = vld [vmem:[%s20199_s0 + $0x541] ss:$2 sm:$0xff] }
 0x121   :  { %13816 = vmatprep.mubr.msk.f32.mxu1 %vm1101_vm1, %v11552_v50  ;;  %v11556_v50 = vld [vmem:[%s20199_s0 + $0x540] ss:$2 sm:$0xff] }
 0x123   :  { %13623 = vmatmul.mubr.msk.f32.gmra.mxu0 %vm1101_vm1, %v11681_v19  ;;  %v11685_v19 = vld [vmem:[%s20199_s0 + $0x551] ss:$2 sm:$0xff] }
 0x124   :  { %13817 = vmatmul.mubr.msk.f32.gmra.mxu1 %vm1101_vm1, %v11553_v20  ;;  %13625 = vmatprep.mubr.msk.f32.mxu0 %vm1101_vm1, %v11682_v52  ;;  %v11557_v20 = vld [vmem:[%s20199_s0 + $0x550] ss:$2 sm:$0xff]  ;;  %v11686_v52 = vld [vmem:[%s20199_s0 + $0x561] ss:$2 sm:$0xff] }
 0x125   :  { %13819 = vmatprep.mubr.msk.f32.mxu1 %vm1101_vm1, %v11554_v51  ;;  %v11558_v51 = vld [vmem:[%s20199_s0 + $0x560] ss:$2 sm:$0xff] }
 0x127   :  { %13626 = vmatmul.mubr.msk.f32.gmra.mxu0 %vm1101_vm1, %v11683_v49  ;;  %v11687_v49 = vld [vmem:[%s20199_s0 + $0x571] ss:$2 sm:$0xff] }
 0x128   :  { %13820 = vmatmul.mubr.msk.f32.gmra.mxu1 %vm1101_vm1, %v11555_v17  ;;  %13628 = vmatprep.mubr.msk.f32.mxu0 %vm1101_vm1, %v11684_v18  ;;  %v11559_v17 = vld [vmem:[%s20199_s0 + $0x570] ss:$2 sm:$0xff]  ;;  %v11688_v18 = vld [vmem:[%s20199_s0 + $0x581] ss:$2 sm:$0xff] }
 0x129   :  { %13822 = vmatprep.mubr.msk.f32.mxu1 %vm1101_vm1, %v11556_v50  ;;  %v11560_v50 = vld [vmem:[%s20199_s0 + $0x580] ss:$2 sm:$0xff] }
 0x12b   :  { %13629 = vmatmul.mubr.msk.f32.gmra.mxu0 %vm1101_vm1, %v11685_v19  ;;  %v11689_v19 = vld [vmem:[%s20199_s0 + $0x591] ss:$2 sm:$0xff] }
 0x12c   :  { %13823 = vmatmul.mubr.msk.f32.gmra.mxu1 %vm1101_vm1, %v11557_v20  ;;  %13631 = vmatprep.mubr.msk.f32.mxu0 %vm1101_vm1, %v11686_v52  ;;  %v11561_v20 = vld [vmem:[%s20199_s0 + $0x590] ss:$2 sm:$0xff]  ;;  %v11690_v52 = vld [vmem:[%s20199_s0 + $0x5a1] ss:$2 sm:$0xff] }
 0x12d   :  { %13825 = vmatprep.mubr.msk.f32.mxu1 %vm1101_vm1, %v11558_v51  ;;  %v11562_v51 = vld [vmem:[%s20199_s0 + $0x5a0] ss:$2 sm:$0xff] }
 0x12f   :  { %13632 = vmatmul.mubr.msk.f32.gmra.mxu0 %vm1101_vm1, %v11687_v49  ;;  %v11691_v49 = vld [vmem:[%s20199_s0 + $0x5b1] ss:$2 sm:$0xff] }
 0x130   :  { %13826 = vmatmul.mubr.msk.f32.gmra.mxu1 %vm1101_vm1, %v11559_v17  ;;  %13634 = vmatprep.mubr.msk.f32.mxu0 %vm1101_vm1, %v11688_v18  ;;  %v11563_v17 = vld [vmem:[%s20199_s0 + $0x5b0] ss:$2 sm:$0xff]  ;;  %v11692_v18 = vld [vmem:[%s20199_s0 + $0x5c1] ss:$2 sm:$0xff] }
 0x131   :  { %13828 = vmatprep.mubr.msk.f32.mxu1 %vm1101_vm1, %v11560_v50  ;;  %v11564_v50 = vld [vmem:[%s20199_s0 + $0x5c0] ss:$2 sm:$0xff] }
 0x133   :  { %13635 = vmatmul.mubr.msk.f32.gmra.mxu0 %vm1101_vm1, %v11689_v19  ;;  %v11693_v19 = vld [vmem:[%s20199_s0 + $0x5d1] ss:$2 sm:$0xff] }
 0x134   :  { %13829 = vmatmul.mubr.msk.f32.gmra.mxu1 %vm1101_vm1, %v11561_v20  ;;  %13637 = vmatprep.mubr.msk.f32.mxu0 %vm1101_vm1, %v11690_v52  ;;  %v11565_v20 = vld [vmem:[%s20199_s0 + $0x5d0] ss:$2 sm:$0xff]  ;;  %v11694_v52 = vld [vmem:[%s20199_s0 + $0x5e1] ss:$2 sm:$0xff] }
 0x135   :  { %13831 = vmatprep.mubr.msk.f32.mxu1 %vm1101_vm1, %v11562_v51  ;;  %v11566_v51 = vld [vmem:[%s20199_s0 + $0x5e0] ss:$2 sm:$0xff] }
 0x137   :  { %13638 = vmatmul.mubr.msk.f32.gmra.mxu0 %vm1101_vm1, %v11691_v49  ;;  %v11695_v49 = vld [vmem:[%s20199_s0 + $0x5f1] ss:$2 sm:$0xff] }
 0x138   :  { %13832 = vmatmul.mubr.msk.f32.gmra.mxu1 %vm1101_vm1, %v11563_v17  ;;  %13640 = vmatprep.mubr.msk.f32.mxu0 %vm1101_vm1, %v11692_v18  ;;  %v11567_v17 = vld [vmem:[%s20199_s0 + $0x5f0] ss:$2 sm:$0xff]  ;;  %v11696_v18 = vld [vmem:[%s20199_s0 + $0x601] ss:$2 sm:$0xff] }
 0x139   :  { %13834 = vmatprep.mubr.msk.f32.mxu1 %vm1101_vm1, %v11564_v50  ;;  %v11568_v50 = vld [vmem:[%s20199_s0 + $0x600] ss:$2 sm:$0xff] }
 0x13b   :  { %13641 = vmatmul.mubr.msk.f32.gmra.mxu0 %vm1101_vm1, %v11693_v19  ;;  %v11697_v19 = vld [vmem:[%s20199_s0 + $0x611] ss:$2 sm:$0xff] }
 0x13c   :  { %13835 = vmatmul.mubr.msk.f32.gmra.mxu1 %vm1101_vm1, %v11565_v20  ;;  %13643 = vmatprep.mubr.msk.f32.mxu0 %vm1101_vm1, %v11694_v52  ;;  %v11569_v20 = vld [vmem:[%s20199_s0 + $0x610] ss:$2 sm:$0xff]  ;;  %v11698_v52 = vld [vmem:[%s20199_s0 + $0x621] ss:$2 sm:$0xff] }
 0x13d   :  { %13837 = vmatprep.mubr.msk.f32.mxu1 %vm1101_vm1, %v11566_v51  ;;  %v11570_v51 = vld [vmem:[%s20199_s0 + $0x620] ss:$2 sm:$0xff] }
 0x13f   :  { %13644 = vmatmul.mubr.msk.f32.gmra.mxu0 %vm1101_vm1, %v11695_v49 }
 0x140   :  { %13838 = vmatmul.mubr.msk.f32.gmra.mxu1 %vm1101_vm1, %v11567_v17  ;;  %13646 = vmatprep.mubr.msk.f32.mxu0 %vm1101_vm1, %v11696_v18  ;;  %v11699_v18 = vld [vmem:[%s20199_s0 + $0x631] ss:$2 sm:$0xff] }
 0x141   :  { %13840 = vmatprep.mubr.msk.f32.mxu1 %vm1101_vm1, %v11568_v50 }
 0x143   :  { %v13504_v49 = vpop.f32.mrf.mxu0  ;;  %13647 = vmatmul.mubr.msk.f32.gmra.mxu0 %vm1101_vm1, %v11697_v19  ;;  %v11700_v19 = vld [vmem:[%s20199_s0 + $0x641] ss:$2 sm:$0xff] }
 0x144   :  { %v13698_v17 = vpop.f32.mrf.mxu1  ;;  %13841 = vmatmul.mubr.msk.f32.gmra.mxu1 %vm1101_vm1, %v11569_v20  ;;  %13649 = vmatprep.mubr.msk.f32.mxu0 %vm1101_vm1, %v11698_v52  ;;  %v11572_v52 = vld [vmem:[%s20199_s0 + $0x640] ss:$2 sm:$0xff] }
 0x145   :  { %v16694_v50 = vadd.f32 %v13698_v17, %v13504_v49  ;;  %v1556_v53 = vpop.f32.mrf.mxu0  ;;  %13843 = vmatprep.mubr.msk.f32.mxu1 %vm1101_vm1, %v11570_v51  ;;  %v11701_v51 = vld [vmem:[%s20199_s0 + $0x651] ss:$2 sm:$0xff] }
 0x146   :  { %v2648_v20 = vpop.f32.mrf.mxu1 }
 0x147   :  { %v16706_v21 = vadd.f32 %v2648_v20, %v1556_v53  ;;  %v13507_v49 = vpop.f32.mrf.mxu0  ;;  %13650 = vmatmul.mubr.msk.f32.gmra.mxu0 %vm1101_vm1, %v11699_v18  ;;  %v11573_v53 = vld [vmem:[%s20199_s0 + $0x650] ss:$2 sm:$0xff]  ;;  %v11702_v18 = vld [vmem:[%s20199_s0 + $0x661] ss:$2 sm:$0xff] }
 0x148   :  { %v13701_v17 = vpop.f32.mrf.mxu1  ;;  %13844 = vmatmul.mubr.msk.f32.gmra.mxu1 %vm1101_vm1, %v11571_v54  ;;  %13652 = vmatprep.mubr.msk.f32.mxu0 %vm1101_vm1, %v11700_v19  ;;  %v11574_v19 = vld [vmem:[%s20199_s0 + $0x660] ss:$2 sm:$0xff] }
 0x149   :  { %v16714_v22 = vadd.f32 %v13701_v17, %v13507_v49  ;;  %v1566_v55 = vpop.f32.mrf.mxu0  ;;  %13846 = vmatprep.mubr.msk.f32.mxu1 %vm1101_vm1, %v11572_v52  ;;  %v11703_v52 = vld [vmem:[%s20199_s0 + $0x671] ss:$2 sm:$0xff] }
 0x14a   :  { %v2658_v54 = vpop.f32.mrf.mxu1 }
 0x14b   :  { %v16726_v20 = vadd.f32 %v2658_v54, %v1566_v55  ;;  %v13510_v49 = vpop.f32.mrf.mxu0  ;;  %13653 = vmatmul.mubr.msk.f32.gmra.mxu0 %vm1101_vm1, %v11701_v51  ;;  %v11575_v55 = vld [vmem:[%s20199_s0 + $0x670] ss:$2 sm:$0xff]  ;;  %v11704_v51 = vld [vmem:[%s20199_s0 + $0x681] ss:$2 sm:$0xff] }
 0x14c   :  { %v13704_v17 = vpop.f32.mrf.mxu1  ;;  %13847 = vmatmul.mubr.msk.f32.gmra.mxu1 %vm1101_vm1, %v11573_v53  ;;  %13655 = vmatprep.mubr.msk.f32.mxu0 %vm1101_vm1, %v11702_v18  ;;  %v11576_v18 = vld [vmem:[%s20199_s0 + $0x680] ss:$2 sm:$0xff] }
 0x14d   :  { %v16734_v56 = vadd.f32 %v13704_v17, %v13510_v49  ;;  %v1576_v23 = vpop.f32.mrf.mxu0  ;;  %13849 = vmatprep.mubr.msk.f32.mxu1 %vm1101_vm1, %v11574_v19  ;;  %v11705_v19 = vld [vmem:[%s20199_s0 + $0x691] ss:$2 sm:$0xff] }
 0x14e   :  { %v2668_v53 = vpop.f32.mrf.mxu1 }
 0x14f   :  { %v16746_v54 = vadd.f32 %v2668_v53, %v1576_v23  ;;  %v13513_v49 = vpop.f32.mrf.mxu0  ;;  %13656 = vmatmul.mubr.msk.f32.gmra.mxu0 %vm1101_vm1, %v11703_v52  ;;  %v11577_v23 = vld [vmem:[%s20199_s0 + $0x690] ss:$2 sm:$0xff]  ;;  %v11706_v52 = vld [vmem:[%s20199_s0 + $0x6a1] ss:$2 sm:$0xff] }
 0x150   :  { %v13707_v17 = vpop.f32.mrf.mxu1  ;;  %13850 = vmatmul.mubr.msk.f32.gmra.mxu1 %vm1101_vm1, %v11575_v55  ;;  %13658 = vmatprep.mubr.msk.f32.mxu0 %vm1101_vm1, %v11704_v51  ;;  %v11578_v51 = vld [vmem:[%s20199_s0 + $0x6a0] ss:$2 sm:$0xff] }
 0x151   :  { %v16754_v24 = vadd.f32 %v13707_v17, %v13513_v49  ;;  %v1586_v57 = vpop.f32.mrf.mxu0  ;;  %13852 = vmatprep.mubr.msk.f32.mxu1 %vm1101_vm1, %v11576_v18  ;;  %v11707_v18 = vld [vmem:[%s20199_s0 + $0x6b1] ss:$2 sm:$0xff] }
 0x152   :  { %v2678_v55 = vpop.f32.mrf.mxu1 }
 0x153   :  { %v16766_v53 = vadd.f32 %v2678_v55, %v1586_v57  ;;  %v13516_v49 = vpop.f32.mrf.mxu0  ;;  %13659 = vmatmul.mubr.msk.f32.gmra.mxu0 %vm1101_vm1, %v11705_v19  ;;  %v11579_v57 = vld [vmem:[%s20199_s0 + $0x6b0] ss:$2 sm:$0xff]  ;;  %v11708_v19 = vld [vmem:[%s20199_s0 + $0x6c1] ss:$2 sm:$0xff]  ;;  %v11580_v55 = vld [vmem:[%s20199_s0 + $0x6c0] ss:$2 sm:$0xff] }
 0x154   :  { %v13710_v17 = vpop.f32.mrf.mxu1  ;;  %13853 = vmatmul.mubr.msk.f32.gmra.mxu1 %vm1101_vm1, %v11577_v23  ;;  %13661 = vmatprep.mubr.msk.f32.mxu0 %vm1101_vm1, %v11706_v52  ;;  %v12247_v23 = vld [vmem:[%s20202_s3 + $0x18] sm:$0xff] }
 0x155   :  { %v16774_v58 = vadd.f32 %v13710_v17, %v13516_v49  ;;  %v1596_v25 = vpop.f32.mrf.mxu0  ;;  %13855 = vmatprep.mubr.msk.f32.mxu1 %vm1101_vm1, %v11578_v51  ;;  %14082 = vmatprep.subr.mxu1 %v12247_v23 }
 0x156   :  { %v2688_v52 = vpop.f32.mrf.mxu1  ;;  %14083 = vmatpush3.msra.mxu1 %v12247_v23 }
 0x157   :  { %v16789_v49 = vadd.f32 %v2688_v52, %v1596_v25  ;;  %v13519_v51 = vpop.f32.mrf.mxu0  ;;  %13662 = vmatmul.mubr.msk.f32.gmra.mxu0 %vm1101_vm1, %v11707_v18  ;;  %v11581_v25 = vld [vmem:[%s20199_s0 + $0x6d0] ss:$2 sm:$0xff]  ;;  %v11710_v18 = vld [vmem:[%s20199_s0 + $0x6e1] ss:$2 sm:$0xff] }
 0x158   :  { %v13713_v17 = vpop.f32.mrf.mxu1  ;;  %13856 = vmatmul.mubr.msk.f32.gmra.mxu1 %vm1101_vm1, %v11579_v57  ;;  %13664 = vmatprep.mubr.msk.f32.mxu0 %vm1101_vm1, %v11708_v19  ;;  %v11582_v19 = vld [vmem:[%s20199_s0 + $0x6e0] ss:$2 sm:$0xff] }
 0x159   :  { %v16797_v59 = vadd.f32 %v13713_v17, %v13519_v51  ;;  %v1606_v60 = vpop.f32.mrf.mxu0  ;;  %13858 = vmatprep.mubr.msk.f32.mxu1 %vm1101_vm1, %v11580_v55  ;;  %v11711_v55 = vld [vmem:[%s20199_s0 + $0x6f1] ss:$2 sm:$0xff] }
 0x15a   :  { %v2698_v57 = vpop.f32.mrf.mxu1 }
 0x15b   :  { %v16809_v23 = vadd.f32 %v2698_v57, %v1606_v60  ;;  %v13522_v52 = vpop.f32.mrf.mxu0  ;;  %13665 = vmatmul.mubr.msk.f32.gmra.mxu0 %vm1101_vm1, %v11709_v26  ;;  %v11583_v60 = vld [vmem:[%s20199_s0 + $0x6f0] ss:$2 sm:$0xff]  ;;  %v11712_v26 = vld [vmem:[%s20199_s0 + $0x701] ss:$2 sm:$0xff] }
 0x15c   :  { %v13716_v51 = vpop.f32.mrf.mxu1  ;;  %13859 = vmatmul.mubr.msk.f32.gmra.mxu1 %vm1101_vm1, %v11581_v25  ;;  %13667 = vmatprep.mubr.msk.f32.mxu0 %vm1101_vm1, %v11710_v18  ;;  %v11584_v18 = vld [vmem:[%s20199_s0 + $0x700] ss:$2 sm:$0xff] }
 0x15d   :  { %v16817_v17 = vadd.f32 %v13716_v51, %v13522_v52  ;;  %v1616_v27 = vpop.f32.mrf.mxu0  ;;  %13861 = vmatprep.mubr.msk.f32.mxu1 %vm1101_vm1, %v11582_v19  ;;  %v11713_v19 = vld [vmem:[%s20199_s0 + $0x711] ss:$2 sm:$0xff] }
 0x15e   :  { %v2708_v25 = vpop.f32.mrf.mxu1 }
 0x15f   :  { %v16829_v57 = vadd.f32 %v2708_v25, %v1616_v27  ;;  %v13525_v52 = vpop.f32.mrf.mxu0  ;;  %13668 = vmatmul.mubr.msk.f32.gmra.mxu0 %vm1101_vm1, %v11711_v55  ;;  %v11585_v27 = vld [vmem:[%s20199_s0 + $0x710] ss:$2 sm:$0xff]  ;;  %v11714_v55 = vld [vmem:[%s20199_s0 + $0x721] ss:$2 sm:$0xff] }
 0x160   :  { %v13719_v51 = vpop.f32.mrf.mxu1  ;;  %13862 = vmatmul.mubr.msk.f32.gmra.mxu1 %vm1101_vm1, %v11583_v60  ;;  %13670 = vmatprep.mubr.msk.f32.mxu0 %vm1101_vm1, %v11712_v26  ;;  %v11586_v26 = vld [vmem:[%s20199_s0 + $0x720] ss:$2 sm:$0xff] }
 0x161   :  { %v16837_v28 = vadd.f32 %v13719_v51, %v13525_v52  ;;  %v1626_v61 = vpop.f32.mrf.mxu0  ;;  %13864 = vmatprep.mubr.msk.f32.mxu1 %vm1101_vm1, %v11584_v18  ;;  %v11715_v18 = vld [vmem:[%s20199_s0 + $0x731] ss:$2 sm:$0xff] }
 0x162   :  { %v2718_v60 = vpop.f32.mrf.mxu1 }
 0x163   :  { %v16849_v25 = vadd.f32 %v2718_v60, %v1626_v61  ;;  %v16851_v52 = vpop.f32.mrf.mxu0  ;;  %13671 = vmatmul.mubr.msk.f32.gmra.mxu0 %vm1101_vm1, %v11713_v19  ;;  %v11587_v61 = vld [vmem:[%s20199_s0 + $0x730] ss:$2 sm:$0xff]  ;;  %v11716_v19 = vld [vmem:[%s20199_s0 + $0x741] ss:$2 sm:$0xff]  ;;  %v11717_v60 = vld [vmem:[%s20199_s0 + $0x751] ss:$2 sm:$0xff] }
 0x164   :  { %13865 = vmatmul.mubr.msk.f32.gmra.mxu1 %vm1101_vm1, %v11585_v27  ;;  %13673 = vmatprep.mubr.msk.f32.mxu0 %vm1101_vm1, %v11714_v55  ;;  %v11588_v27 = vld [vmem:[%s20199_s0 + $0x740] ss:$2 sm:$0xff] }
 0x165   :  { %v16859_v51 = vpop.f32.mrf.mxu0  ;;  %13867 = vmatprep.mubr.msk.f32.mxu1 %vm1101_vm1, %v11586_v26 }
 0x167   :  { %v16871_v55 = vpop.f32.mrf.mxu0  ;;  %13674 = vmatmul.mubr.msk.f32.gmra.mxu0 %vm1101_vm1, %v11715_v18  ;;  %v11718_v18 = vld [vmem:[%s20199_s0 + $0x761] ss:$2 sm:$0xff] }
 0x168   :  { %13868 = vmatmul.mubr.msk.f32.gmra.mxu1 %vm1101_vm1, %v11587_v61  ;;  %13676 = vmatprep.mubr.msk.f32.mxu0 %vm1101_vm1, %v11716_v19  ;;  %v11590_v61 = vld [vmem:[%s20199_s0 + $0x760] ss:$2 sm:$0xff] }
 0x169   :  { %v16879_v26 = vpop.f32.mrf.mxu0  ;;  %13870 = vmatprep.mubr.msk.f32.mxu1 %vm1101_vm1, %v11588_v27  ;;  %v11719_v27 = vld [vmem:[%s20199_s0 + $0x771] ss:$2 sm:$0xff] }
 0x16b   :  { %v16891_v19 = vpop.f32.mrf.mxu0  ;;  %13677 = vmatmul.mubr.msk.f32.gmra.mxu0 %vm1101_vm1, %v11717_v60  ;;  %v11720_v60 = vld [vmem:[%s20199_s0 + $0x781] ss:$2 sm:$0xff] }
 0x16c   :  { %13871 = vmatmul.mubr.msk.f32.gmra.mxu1 %vm1101_vm1, %v11589_v62  ;;  %13679 = vmatprep.mubr.msk.f32.mxu0 %vm1101_vm1, %v11718_v18  ;;  %v11592_v62 = vld [vmem:[%s20199_s0 + $0x780] ss:$2 sm:$0xff] }
 0x16d   :  { %v16899_v29 = vpop.f32.mrf.mxu0  ;;  %13873 = vmatprep.mubr.msk.f32.mxu1 %vm1101_vm1, %v11590_v61  ;;  %v11721_v61 = vld [vmem:[%s20199_s0 + $0x791] ss:$2 sm:$0xff] }
 0x16f   :  { %v16911_v18 = vpop.f32.mrf.mxu0  ;;  %13680 = vmatmul.mubr.msk.f32.gmra.mxu0 %vm1101_vm1, %v11719_v27  ;;  %v11722_v27 = vld [vmem:[%s20199_s0 + $0x7a1] ss:$2 sm:$0xff] }
 0x170   :  { %13874 = vmatmul.mubr.msk.f32.gmra.mxu1 %vm1101_vm1, %v11591_v30  ;;  %13682 = vmatprep.mubr.msk.f32.mxu0 %vm1101_vm1, %v11720_v60  ;;  %v11594_v30 = vld [vmem:[%s20199_s0 + $0x7a0] ss:$2 sm:$0xff] }
 0x171   :  { %v16919_v63 = vpop.f32.mrf.mxu0  ;;  %13876 = vmatprep.mubr.msk.f32.mxu1 %vm1101_vm1, %v11592_v62  ;;  %v11723_v62 = vld [vmem:[%s20199_s0 + $0x7b1] ss:$2 sm:$0xff] }
 0x173   :  { %v16931_v60 = vpop.f32.mrf.mxu0  ;;  %13683 = vmatmul.mubr.msk.f32.gmra.mxu0 %vm1101_vm1, %v11721_v61  ;;  %v11724_v61 = vld [vmem:[%s20199_s0 + $0x7c1] ss:$2 sm:$0xff] }
 0x174   :  { %13877 = vmatmul.mubr.msk.f32.gmra.mxu1 %vm1101_vm1, %v11593_v0  ;;  %13685 = vmatprep.mubr.msk.f32.mxu0 %vm1101_vm1, %v11722_v27  ;;  %v11596_v0 = vld [vmem:[%s20199_s0 + $0x7c0] ss:$2 sm:$0xff] }
 0x175   :  { %v16939_v31 = vpop.f32.mrf.mxu0  ;;  %13879 = vmatprep.mubr.msk.f32.mxu1 %vm1101_vm1, %v11594_v30  ;;  %v11725_v30 = vld [vmem:[%s20199_s0 + $0x7d1] ss:$2 sm:$0xff] }
 0x177   :  { %v16951_v27 = vpop.f32.mrf.mxu0  ;;  %13686 = vmatmul.mubr.msk.f32.gmra.mxu0 %vm1101_vm1, %v11723_v62  ;;  %v11726_v62 = vld [vmem:[%s20199_s0 + $0x7e1] ss:$2 sm:$0xff] }
 0x178   :  { %13880 = vmatmul.mubr.msk.f32.gmra.mxu1 %vm1101_vm1, %v11595_v32  ;;  %13688 = vmatprep.mubr.msk.f32.mxu0 %vm1101_vm1, %v11724_v61  ;;  %v11598_v32 = vld [vmem:[%s20199_s0 + $0x7e0] ss:$2 sm:$0xff] }
 0x179   :  { %v16959_v33 = vpop.f32.mrf.mxu0  ;;  %13882 = vmatprep.mubr.msk.f32.mxu1 %vm1101_vm1, %v11596_v0  ;;  %v11727_v0 = vld [vmem:[%s20199_s0 + $0x7f1] ss:$2 sm:$0xff] }
 0x17b   :  { %v16971_v61 = vpop.f32.mrf.mxu0  ;;  %13689 = vmatmul.mubr.msk.f32.gmra.mxu0 %vm1101_vm1, %v11725_v30  ;;  %v11987_v30 = vld [vmem:[%s20199_s0 + $0x2] ss:$2 sm:$0xff] }
 0x17c   :  { %13883 = vmatmul.mubr.msk.f32.gmra.mxu1 %vm1101_vm1, %v11597_v34  ;;  %13691 = vmatprep.mubr.msk.f32.mxu0 %vm1101_vm1, %v11726_v62  ;;  %v11988_v34 = vld [vmem:[%s20199_s0 + $0x12] ss:$2 sm:$0xff]  ;;  %v16996_v62 = vpop.f32.mrf.mxu1 }
 0x17d   :  { %v16979_v1 = vpop.f32.mrf.mxu0  ;;  %13885 = vmatprep.mubr.msk.f32.mxu1 %vm1101_vm1, %v11598_v32 }
 0x17f   :  { %v16988_v35 = vpop.f32.mrf.mxu0  ;;  %13692 = vmatmul.mubr.msk.f32.gmra.mxu0 %vm1101_vm1, %v11727_v0  ;;  %v17010_v0 = vpop.f32.mrf.mxu1 }
 0x180   :  { %13886 = vmatmul.mubr.msk.f32.gmra.mxu1 %vm1101_vm1, %v11599_v2  ;;  %13890 = vmatprep.mubr.msk.f32.mxu0 %vm1101_vm1, %v11987_v30  ;;  %v11990_v2 = vld [vmem:[%s20199_s0 + $0x32] ss:$2 sm:$0xff] }
 0x181   :  { %v16998_v32 = vpop.f32.mrf.mxu0 }
 0x183   :  { %v17003_v3 = vpop.f32.mrf.mxu0  ;;  %13891 = vmatmul.mubr.msk.f32.vlgmr.msra.gmra.mxu0 %vm1101_vm1, %v11988_v34  ;;  %v17024_v34 = vpop.f32.mrf.mxu1 }
 0x184   :  { %13893 = vmatprep.mubr.msk.f32.mxu0 %vm1101_vm1, %v11989_v36  ;;  %v11992_v36 = vld [vmem:[%s20199_s0 + $0x52] ss:$2 sm:$0xff] }
 0x185   :  { %v17012_v30 = vpop.f32.mrf.mxu0 }
 0x187   :  { %v17017_v37 = vpop.f32.mrf.mxu0  ;;  %13894 = vmatmul.mubr.msk.f32.gmra.mxu0 %vm1101_vm1, %v11990_v2  ;;  %v17038_v2 = vpop.f32.mrf.mxu1 }
 0x188   :  { %20711 = vst [vmem:[#allocation259_spill] sm:$0xff] %v17017_v37  ;;  %13896 = vmatprep.mubr.msk.f32.mxu0 %vm1101_vm1, %v11991_v4  ;;  %v11994_v4 = vld [vmem:[%s20199_s0 + $0x72] ss:$2 sm:$0xff] }
 0x189   :  { %v17026_v38 = vpop.f32.mrf.mxu0 }
 0x18a   :  { %20712 = vst [vmem:[#allocation260_spill] sm:$0xff] %v17026_v38 }
 0x18b   :  { %v17031_v6 = vpop.f32.mrf.mxu0  ;;  %13897 = vmatmul.mubr.msk.f32.gmra.mxu0 %vm1101_vm1, %v11992_v36  ;;  %v17052_v36 = vpop.f32.mrf.mxu1 }
 0x18c   :  { %20713 = vst [vmem:[#allocation261_spill] sm:$0xff] %v17031_v6  ;;  %13899 = vmatprep.mubr.msk.f32.mxu0 %vm1101_vm1, %v11993_v5  ;;  %v11996_v5 = vld [vmem:[%s20199_s0 + $0x92] ss:$2 sm:$0xff] }
 0x18d   :  { %v17040_v39 = vpop.f32.mrf.mxu0 }
 0x18e   :  { %20714 = vst [vmem:[#allocation262_spill] sm:$0xff] %v17040_v39 }
 0x18f   :  { %v17045_v7 = vpop.f32.mrf.mxu0  ;;  %13900 = vmatmul.mubr.msk.f32.gmra.mxu0 %vm1101_vm1, %v11994_v4  ;;  %v17066_v4 = vpop.f32.mrf.mxu1 }
 0x190   :  { %20715 = vst [vmem:[#allocation263_spill] sm:$0xff] %v17045_v7  ;;  %13902 = vmatprep.mubr.msk.f32.mxu0 %vm1101_vm1, %v11995_v40  ;;  %v11998_v40 = vld [vmem:[%s20199_s0 + $0xb2] ss:$2 sm:$0xff] }
 0x191   :  { %v17054_v8 = vpop.f32.mrf.mxu0 }
 0x192   :  { %20716 = vst [vmem:[#allocation264_spill] sm:$0xff] %v17054_v8 }
 0x193   :  { %v17059_v42 = vpop.f32.mrf.mxu0  ;;  %13903 = vmatmul.mubr.msk.f32.gmra.mxu0 %vm1101_vm1, %v11996_v5  ;;  %v17080_v5 = vpop.f32.mrf.mxu1 }
 0x194   :  { %20717 = vst [vmem:[#allocation265_spill] sm:$0xff] %v17059_v42  ;;  %13905 = vmatprep.mubr.msk.f32.mxu0 %vm1101_vm1, %v11997_v41  ;;  %v12000_v41 = vld [vmem:[%s20199_s0 + $0xd2] ss:$2 sm:$0xff] }
 0x195   :  { %v17068_v9 = vpop.f32.mrf.mxu0 }
 0x196   :  { %20718 = vst [vmem:[#allocation266_spill] sm:$0xff] %v17068_v9 }
 0x197   :  { %v17073_v43 = vpop.f32.mrf.mxu0  ;;  %13906 = vmatmul.mubr.msk.f32.gmra.mxu0 %vm1101_vm1, %v11998_v40  ;;  %v17094_v40 = vpop.f32.mrf.mxu1 }
 0x198   :  { %20719 = vst [vmem:[#allocation267_spill] sm:$0xff] %v17073_v43  ;;  %13908 = vmatprep.mubr.msk.f32.mxu0 %vm1101_vm1, %v11999_v10  ;;  %v12002_v10 = vld [vmem:[%s20199_s0 + $0xf2] ss:$2 sm:$0xff] }
 0x199   :  { %v17082_v44 = vpop.f32.mrf.mxu0 }
 0x19a   :  { %20720 = vst [vmem:[#allocation268_spill] sm:$0xff] %v17082_v44 }
 0x19b   :  { %v17087_v12 = vpop.f32.mrf.mxu0  ;;  %13909 = vmatmul.mubr.msk.f32.gmra.mxu0 %vm1101_vm1, %v12000_v41  ;;  %v17108_v41 = vpop.f32.mrf.mxu1 }
 0x19c   :  { %20721 = vst [vmem:[#allocation269_spill] sm:$0xff] %v17087_v12  ;;  %13911 = vmatprep.mubr.msk.f32.mxu0 %vm1101_vm1, %v12001_v11  ;;  %v12004_v11 = vld [vmem:[%s20199_s0 + $0x112] ss:$2 sm:$0xff] }
 0x19d   :  { %v17096_v45 = vpop.f32.mrf.mxu0 }
 0x19e   :  { %20722 = vst [vmem:[#allocation270_spill] sm:$0xff] %v17096_v45 }
 0x19f   :  { %v17101_v13 = vpop.f32.mrf.mxu0  ;;  %13912 = vmatmul.mubr.msk.f32.gmra.mxu0 %vm1101_vm1, %v12002_v10  ;;  %v17122_v10 = vpop.f32.mrf.mxu1 }
 0x1a0   :  { %20723 = vst [vmem:[#allocation271_spill] sm:$0xff] %v17101_v13  ;;  %13914 = vmatprep.mubr.msk.f32.mxu0 %vm1101_vm1, %v12003_v46  ;;  %v12006_v46 = vld [vmem:[%s20199_s0 + $0x132] ss:$2 sm:$0xff] }
 0x1a1   :  { %v17110_v14 = vpop.f32.mrf.mxu0 }
 0x1a2   :  { %20724 = vst [vmem:[#allocation272_spill] sm:$0xff] %v17110_v14 }
 0x1a3   :  { %v17115_v48 = vpop.f32.mrf.mxu0  ;;  %13915 = vmatmul.mubr.msk.f32.gmra.mxu0 %vm1101_vm1, %v12004_v11  ;;  %v17136_v11 = vpop.f32.mrf.mxu1 }
 0x1a4   :  { %20725 = vst [vmem:[#allocation273_spill] sm:$0xff] %v17115_v48  ;;  %13917 = vmatprep.mubr.msk.f32.mxu0 %vm1101_vm1, %v12005_v47  ;;  %v12008_v47 = vld [vmem:[%s20199_s0 + $0x152] ss:$2 sm:$0xff] }
 0x1a5   :  { %v17124_v15 = vpop.f32.mrf.mxu0 }
 0x1a6   :  { %20726 = vst [vmem:[#allocation274_spill] sm:$0xff] %v17124_v15  ;;  %v12009_v15 = vld [vmem:[%s20199_s0 + $0x162] ss:$2 sm:$0xff] }
 0x1a7   :  { %v17129_v14 = vpop.f32.mrf.mxu0  ;;  %13918 = vmatmul.mubr.msk.f32.gmra.mxu0 %vm1101_vm1, %v12006_v46  ;;  %v17150_v46 = vpop.f32.mrf.mxu1 }
 0x1a8   :  { %20727 = vst [vmem:[#allocation275_spill] sm:$0xff] %v17129_v14  ;;  %13920 = vmatprep.mubr.msk.f32.mxu0 %vm1101_vm1, %v12007_v16  ;;  %v12010_v16 = vld [vmem:[%s20199_s0 + $0x172] ss:$2 sm:$0xff] }
 0x1a9   :  { %v17138_v48 = vpop.f32.mrf.mxu0 }
 0x1aa   :  { %20728 = vst [vmem:[#allocation276_spill] sm:$0xff] %v17138_v48  ;;  %v12011_v48 = vld [vmem:[%s20199_s0 + $0x182] ss:$2 sm:$0xff] }
 0x1ab   :  { %v17143_v13 = vpop.f32.mrf.mxu0  ;;  %13921 = vmatmul.mubr.msk.f32.gmra.mxu0 %vm1101_vm1, %v12008_v47  ;;  %v17164_v47 = vpop.f32.mrf.mxu1 }
 0x1ac   :  { %20729 = vst [vmem:[#allocation277_spill] sm:$0xff] %v17143_v13  ;;  %13923 = vmatprep.mubr.msk.f32.mxu0 %vm1101_vm1, %v12009_v15  ;;  %v12012_v15 = vld [vmem:[%s20199_s0 + $0x192] ss:$2 sm:$0xff] }
 0x1ad   :  { %v17152_v14 = vpop.f32.mrf.mxu0 }
 0x1ae   :  { %20730 = vst [vmem:[#allocation278_spill] sm:$0xff] %v17152_v14  ;;  %v12013_v14 = vld [vmem:[%s20199_s0 + $0x1a2] ss:$2 sm:$0xff] }
 0x1af   :  { %v17157_v45 = vpop.f32.mrf.mxu0  ;;  %13924 = vmatmul.mubr.msk.f32.gmra.mxu0 %vm1101_vm1, %v12010_v16  ;;  %v17178_v16 = vpop.f32.mrf.mxu1 }
 0x1b0   :  { %20731 = vst [vmem:[#allocation279_spill] sm:$0xff] %v17157_v45  ;;  %13926 = vmatprep.mubr.msk.f32.mxu0 %vm1101_vm1, %v12011_v48  ;;  %v12014_v48 = vld [vmem:[%s20199_s0 + $0x1b2] ss:$2 sm:$0xff] }
 0x1b1   :  { %v17166_v13 = vpop.f32.mrf.mxu0 }
 0x1b2   :  { %20732 = vst [vmem:[#allocation280_spill] sm:$0xff] %v17166_v13  ;;  %v12015_v13 = vld [vmem:[%s20199_s0 + $0x1c2] ss:$2 sm:$0xff] }
 0x1b3   :  { %v17171_v12 = vpop.f32.mrf.mxu0  ;;  %13927 = vmatmul.mubr.msk.f32.gmra.mxu0 %vm1101_vm1, %v12012_v15  ;;  %v17192_v15 = vpop.f32.mrf.mxu1 }
 0x1b4   :  { %20733 = vst [vmem:[#allocation281_spill] sm:$0xff] %v17171_v12  ;;  %13929 = vmatprep.mubr.msk.f32.mxu0 %vm1101_vm1, %v12013_v14  ;;  %v12016_v14 = vld [vmem:[%s20199_s0 + $0x1d2] ss:$2 sm:$0xff] }
 0x1b5   :  { %v17180_v45 = vpop.f32.mrf.mxu0 }
 0x1b6   :  { %20734 = vst [vmem:[#allocation282_spill] sm:$0xff] %v17180_v45  ;;  %v12017_v45 = vld [vmem:[%s20199_s0 + $0x1e2] ss:$2 sm:$0xff] }
 0x1b7   :  { %v17185_v44 = vpop.f32.mrf.mxu0  ;;  %13930 = vmatmul.mubr.msk.f32.gmra.mxu0 %vm1101_vm1, %v12014_v48  ;;  %v17206_v48 = vpop.f32.mrf.mxu1 }
 0x1b8   :  { %20735 = vst [vmem:[#allocation283_spill] sm:$0xff] %v17185_v44  ;;  %13932 = vmatprep.mubr.msk.f32.mxu0 %vm1101_vm1, %v12015_v13  ;;  %v12018_v13 = vld [vmem:[%s20199_s0 + $0x1f2] ss:$2 sm:$0xff] }
 0x1b9   :  { %v17194_v12 = vpop.f32.mrf.mxu0 }
 0x1ba   :  { %20736 = vst [vmem:[#allocation284_spill] sm:$0xff] %v17194_v12  ;;  %v12019_v12 = vld [vmem:[%s20199_s0 + $0x202] ss:$2 sm:$0xff] }
 0x1bb   :  { %v17199_v43 = vpop.f32.mrf.mxu0  ;;  %13933 = vmatmul.mubr.msk.f32.gmra.mxu0 %vm1101_vm1, %v12016_v14  ;;  %v17220_v14 = vpop.f32.mrf.mxu1 }
 0x1bc   :  { %20737 = vst [vmem:[#allocation285_spill] sm:$0xff] %v17199_v43  ;;  %13935 = vmatprep.mubr.msk.f32.mxu0 %vm1101_vm1, %v12017_v45  ;;  %v12020_v45 = vld [vmem:[%s20199_s0 + $0x212] ss:$2 sm:$0xff] }
 0x1bd   :  { %v17208_v44 = vpop.f32.mrf.mxu0 }
 0x1be   :  { %20738 = vst [vmem:[#allocation286_spill] sm:$0xff] %v17208_v44  ;;  %v12021_v44 = vld [vmem:[%s20199_s0 + $0x222] ss:$2 sm:$0xff] }
 0x1bf   :  { %v17213_v9 = vpop.f32.mrf.mxu0  ;;  %13936 = vmatmul.mubr.msk.f32.gmra.mxu0 %vm1101_vm1, %v12018_v13  ;;  %v17234_v13 = vpop.f32.mrf.mxu1 }
 0x1c0   :  { %20739 = vst [vmem:[#allocation287_spill] sm:$0xff] %v17213_v9  ;;  %13938 = vmatprep.mubr.msk.f32.mxu0 %vm1101_vm1, %v12019_v12  ;;  %v12022_v12 = vld [vmem:[%s20199_s0 + $0x232] ss:$2 sm:$0xff] }
 0x1c1   :  { %v17222_v43 = vpop.f32.mrf.mxu0 }
 0x1c2   :  { %20740 = vst [vmem:[#allocation288_spill] sm:$0xff] %v17222_v43  ;;  %v12023_v43 = vld [vmem:[%s20199_s0 + $0x242] ss:$2 sm:$0xff] }
 0x1c3   :  { %v17227_v42 = vpop.f32.mrf.mxu0  ;;  %13939 = vmatmul.mubr.msk.f32.gmra.mxu0 %vm1101_vm1, %v12020_v45  ;;  %v17248_v45 = vpop.f32.mrf.mxu1 }
 0x1c4   :  { %20741 = vst [vmem:[#allocation289_spill] sm:$0xff] %v17227_v42  ;;  %13941 = vmatprep.mubr.msk.f32.mxu0 %vm1101_vm1, %v12021_v44  ;;  %v12024_v44 = vld [vmem:[%s20199_s0 + $0x252] ss:$2 sm:$0xff]  ;;  %20744 = vst [vmem:[#allocation292_spill] sm:$0xff] %v17248_v45 }
 0x1c5   :  { %v17236_v9 = vpop.f32.mrf.mxu0 }
 0x1c6   :  { %20742 = vst [vmem:[#allocation290_spill] sm:$0xff] %v17236_v9  ;;  %v12025_v9 = vld [vmem:[%s20199_s0 + $0x262] ss:$2 sm:$0xff] }
 0x1c7   :  { %v17241_v8 = vpop.f32.mrf.mxu0  ;;  %13942 = vmatmul.mubr.msk.f32.gmra.mxu0 %vm1101_vm1, %v12022_v12  ;;  %v17262_v12 = vpop.f32.mrf.mxu1 }
 0x1c8   :  { %20743 = vst [vmem:[#allocation291_spill] sm:$0xff] %v17241_v8  ;;  %13944 = vmatprep.mubr.msk.f32.mxu0 %vm1101_vm1, %v12023_v43  ;;  %v12026_v43 = vld [vmem:[%s20199_s0 + $0x272] ss:$2 sm:$0xff]  ;;  %20747 = vst [vmem:[#allocation295_spill] sm:$0xff] %v17262_v12 }
 0x1c9   :  { %v17250_v42 = vpop.f32.mrf.mxu0 }
 0x1ca   :  { %20745 = vst [vmem:[#allocation293_spill] sm:$0xff] %v17250_v42  ;;  %v12027_v42 = vld [vmem:[%s20199_s0 + $0x282] ss:$2 sm:$0xff] }
 0x1cb   :  { %v17255_v7 = vpop.f32.mrf.mxu0  ;;  %13945 = vmatmul.mubr.msk.f32.gmra.mxu0 %vm1101_vm1, %v12024_v44  ;;  %v17276_v44 = vpop.f32.mrf.mxu1 }
 0x1cc   :  { %20746 = vst [vmem:[#allocation294_spill] sm:$0xff] %v17255_v7  ;;  %13947 = vmatprep.mubr.msk.f32.mxu0 %vm1101_vm1, %v12025_v9  ;;  %v12028_v9 = vld [vmem:[%s20199_s0 + $0x292] ss:$2 sm:$0xff]  ;;  %20750 = vst [vmem:[#allocation298_spill] sm:$0xff] %v17276_v44 }
 0x1cd   :  { %v17264_v8 = vpop.f32.mrf.mxu0 }
 0x1ce   :  { %20748 = vst [vmem:[#allocation296_spill] sm:$0xff] %v17264_v8  ;;  %v12029_v8 = vld [vmem:[%s20199_s0 + $0x2a2] ss:$2 sm:$0xff] }
 0x1cf   :  { %v17269_v39 = vpop.f32.mrf.mxu0  ;;  %13948 = vmatmul.mubr.msk.f32.gmra.mxu0 %vm1101_vm1, %v12026_v43  ;;  %v17290_v43 = vpop.f32.mrf.mxu1 }
 0x1d0   :  { %20749 = vst [vmem:[#allocation297_spill] sm:$0xff] %v17269_v39  ;;  %13950 = vmatprep.mubr.msk.f32.mxu0 %vm1101_vm1, %v12027_v42  ;;  %v12030_v42 = vld [vmem:[%s20199_s0 + $0x2b2] ss:$2 sm:$0xff]  ;;  %20753 = vst [vmem:[#allocation301_spill] sm:$0xff] %v17290_v43  ;;  %v12033_v43 = vld [vmem:[%s20199_s0 + $0x2e2] ss:$2 sm:$0xff] }
 0x1d1   :  { %v17278_v7 = vpop.f32.mrf.mxu0 }
 0x1d2   :  { %20751 = vst [vmem:[#allocation299_spill] sm:$0xff] %v17278_v7  ;;  %v12031_v7 = vld [vmem:[%s20199_s0 + $0x2c2] ss:$2 sm:$0xff] }
 0x1d3   :  { %v17283_v6 = vpop.f32.mrf.mxu0  ;;  %13951 = vmatmul.mubr.msk.f32.gmra.mxu0 %vm1101_vm1, %v12028_v9  ;;  %v17307_v9 = vpop.f32.mrf.mxu1 }
 0x1d4   :  { %20752 = vst [vmem:[#allocation300_spill] sm:$0xff] %v17283_v6  ;;  %13953 = vmatprep.mubr.msk.f32.mxu0 %vm1101_vm1, %v12029_v8  ;;  %v12246_v6 = vld [vmem:[%s20202_s3 + $0x10] sm:$0xff]  ;;  %20756 = vst [vmem:[#allocation304_spill] sm:$0xff] %v17307_v9 }
 0x1d5   :  { %v17292_v39 = vpop.f32.mrf.mxu0  ;;  %14084 = vmatprep.subr.mxu1 %v12246_v6  ;;  %v12032_v8 = vld [vmem:[%s20199_s0 + $0x2d2] ss:$2 sm:$0xff] }
 0x1d6   :  { %20754 = vst [vmem:[#allocation302_spill] sm:$0xff] %v17292_v39  ;;  %14085 = vmatpush3.msra.mxu1 %v12246_v6  ;;  %v12377_v6 = vld [vmem:[%s20202_s3 + $0x28] sm:$0xff] }
 0x1d7   :  { %v17300_v44 = vpop.f32.mrf.mxu0  ;;  %13954 = vmatmul.mubr.msk.f32.gmra.mxu0 %vm1101_vm1, %v12030_v42  ;;  %v17324_v42 = vpop.f32.mrf.mxu1  ;;  %14282 = vmatprep.subr.mxu0 %v12377_v6 }
 0x1d8   :  { %20755 = vst [vmem:[#allocation303_spill] sm:$0xff] %v17300_v44  ;;  %13956 = vmatprep.mubr.msk.f32.mxu0 %vm1101_vm1, %v12031_v7  ;;  %v12034_v7 = vld [vmem:[%s20199_s0 + $0x2f2] ss:$2 sm:$0xff]  ;;  %20759 = vst [vmem:[#allocation307_spill] sm:$0xff] %v17324_v42  ;;  %14283 = vmatpush3.msra.mxu0 %v12377_v6 }
 0x1d9   :  { %v17309_v39 = vpop.f32.mrf.mxu0  ;;  %v17338_v44 = vpop.f32.mrf.mxu1 }
 0x1da   :  { %20757 = vst [vmem:[#allocation305_spill] sm:$0xff] %v17309_v39  ;;  %20762 = vst [vmem:[#allocation310_spill] sm:$0xff] %v17338_v44 }
 0x1db   :  { %v17314_v12 = vpop.f32.mrf.mxu0  ;;  %13957 = vmatmul.mubr.msk.f32.gmra.mxu0 %vm1101_vm1, %v12032_v8 }
 0x1dc   :  { %20758 = vst [vmem:[#allocation306_spill] sm:$0xff] %v17314_v12  ;;  %13959 = vmatprep.mubr.msk.f32.mxu0 %vm1101_vm1, %v12033_v43  ;;  %v12035_v12 = vld [vmem:[%s20199_s0 + $0x302] ss:$2 sm:$0xff]  ;;  %v12036_v43 = vld [vmem:[%s20199_s0 + $0x312] ss:$2 sm:$0xff] }
 0x1dd   :  { %v17326_v39 = vpop.f32.mrf.mxu0 }
 0x1de   :  { %20760 = vst [vmem:[#allocation308_spill] sm:$0xff] %v17326_v39  ;;  %v12037_v39 = vld [vmem:[%s20199_s0 + $0x322] ss:$2 sm:$0xff] }
 0x1df   :  { %v17331_v8 = vpop.f32.mrf.mxu0  ;;  %13960 = vmatmul.mubr.msk.f32.gmra.mxu0 %vm1101_vm1, %v12034_v7  ;;  %v17352_v7 = vpop.f32.mrf.mxu1 }
 0x1e0   :  { %20761 = vst [vmem:[#allocation309_spill] sm:$0xff] %v17331_v8  ;;  %13962 = vmatprep.mubr.msk.f32.mxu0 %vm1101_vm1, %v12035_v12  ;;  %v12038_v12 = vld [vmem:[%s20199_s0 + $0x332] ss:$2 sm:$0xff]  ;;  %20765 = vst [vmem:[#allocation313_spill] sm:$0xff] %v17352_v7 }
 0x1e1   :  { %v17340_v42 = vpop.f32.mrf.mxu0 }
 0x1e2   :  { %20763 = vst [vmem:[#allocation311_spill] sm:$0xff] %v17340_v42  ;;  %v12039_v42 = vld [vmem:[%s20199_s0 + $0x342] ss:$2 sm:$0xff] }
 0x1e3   :  { %v17345_v9 = vpop.f32.mrf.mxu0  ;;  %13963 = vmatmul.mubr.msk.f32.gmra.mxu0 %vm1101_vm1, %v12036_v43  ;;  %v17366_v43 = vpop.f32.mrf.mxu1 }
 0x1e4   :  { %20764 = vst [vmem:[#allocation312_spill] sm:$0xff] %v17345_v9  ;;  %13965 = vmatprep.mubr.msk.f32.mxu0 %vm1101_vm1, %v12037_v39  ;;  %v12040_v39 = vld [vmem:[%s20199_s0 + $0x352] ss:$2 sm:$0xff]  ;;  %20768 = vst [vmem:[#allocation316_spill] sm:$0xff] %v17366_v43 }
 0x1e5   :  { %v17354_v6 = vpop.f32.mrf.mxu0 }
 0x1e6   :  { %20766 = vst [vmem:[#allocation314_spill] sm:$0xff] %v17354_v6  ;;  %v12041_v6 = vld [vmem:[%s20199_s0 + $0x362] ss:$2 sm:$0xff] }
 0x1e7   :  { %v17359_v8 = vpop.f32.mrf.mxu0  ;;  %13966 = vmatmul.mubr.msk.f32.gmra.mxu0 %vm1101_vm1, %v12038_v12  ;;  %v17380_v12 = vpop.f32.mrf.mxu1 }
 0x1e8   :  { %20767 = vst [vmem:[#allocation315_spill] sm:$0xff] %v17359_v8  ;;  %13968 = vmatprep.mubr.msk.f32.mxu0 %vm1101_vm1, %v12039_v42  ;;  %v12042_v42 = vld [vmem:[%s20199_s0 + $0x372] ss:$2 sm:$0xff]  ;;  %20771 = vst [vmem:[#allocation319_spill] sm:$0xff] %v17380_v12 }
 0x1e9   :  { %v17368_v9 = vpop.f32.mrf.mxu0 }
 0x1ea   :  { %20769 = vst [vmem:[#allocation317_spill] sm:$0xff] %v17368_v9  ;;  %v12043_v9 = vld [vmem:[%s20199_s0 + $0x382] ss:$2 sm:$0xff] }
 0x1eb   :  { %v17373_v7 = vpop.f32.mrf.mxu0  ;;  %13969 = vmatmul.mubr.msk.f32.gmra.mxu0 %vm1101_vm1, %v12040_v39  ;;  %v17394_v39 = vpop.f32.mrf.mxu1 }
 0x1ec   :  { %20770 = vst [vmem:[#allocation318_spill] sm:$0xff] %v17373_v7  ;;  %13971 = vmatprep.mubr.msk.f32.mxu0 %vm1101_vm1, %v12041_v6  ;;  %v12044_v6 = vld [vmem:[%s20199_s0 + $0x392] ss:$2 sm:$0xff]  ;;  %20774 = vst [vmem:[#allocation322_spill] sm:$0xff] %v17394_v39 }
 0x1ed   :  { %v17382_v8 = vpop.f32.mrf.mxu0 }
 0x1ee   :  { %20772 = vst [vmem:[#allocation320_spill] sm:$0xff] %v17382_v8  ;;  %v12045_v8 = vld [vmem:[%s20199_s0 + $0x3a2] ss:$2 sm:$0xff] }
 0x1ef   :  { %v17387_v43 = vpop.f32.mrf.mxu0  ;;  %13972 = vmatmul.mubr.msk.f32.gmra.mxu0 %vm1101_vm1, %v12042_v42  ;;  %v17408_v42 = vpop.f32.mrf.mxu1 }
 0x1f0   :  { %20773 = vst [vmem:[#allocation321_spill] sm:$0xff] %v17387_v43  ;;  %13974 = vmatprep.mubr.msk.f32.mxu0 %vm1101_vm1, %v12043_v9  ;;  %v12046_v9 = vld [vmem:[%s20199_s0 + $0x3b2] ss:$2 sm:$0xff]  ;;  %20777 = vst [vmem:[#allocation325_spill] sm:$0xff] %v17408_v42 }
 0x1f1   :  { %v17396_v7 = vpop.f32.mrf.mxu0 }
 0x1f2   :  { %20775 = vst [vmem:[#allocation323_spill] sm:$0xff] %v17396_v7  ;;  %v12047_v7 = vld [vmem:[%s20199_s0 + $0x3c2] ss:$2 sm:$0xff] }
 0x1f3   :  { %v17401_v12 = vpop.f32.mrf.mxu0  ;;  %13975 = vmatmul.mubr.msk.f32.gmra.mxu0 %vm1101_vm1, %v12044_v6  ;;  %v17422_v6 = vpop.f32.mrf.mxu1 }
 0x1f4   :  { %20776 = vst [vmem:[#allocation324_spill] sm:$0xff] %v17401_v12  ;;  %13977 = vmatprep.mubr.msk.f32.mxu0 %vm1101_vm1, %v12045_v8  ;;  %v12048_v8 = vld [vmem:[%s20199_s0 + $0x3d2] ss:$2 sm:$0xff]  ;;  %20780 = vst [vmem:[#allocation328_spill] sm:$0xff] %v17422_v6 }
 0x1f5   :  { %v17410_v43 = vpop.f32.mrf.mxu0 }
 0x1f6   :  { %20778 = vst [vmem:[#allocation326_spill] sm:$0xff] %v17410_v43  ;;  %v12049_v43 = vld [vmem:[%s20199_s0 + $0x3e2] ss:$2 sm:$0xff] }
 0x1f7   :  { %v17415_v39 = vpop.f32.mrf.mxu0  ;;  %13978 = vmatmul.mubr.msk.f32.gmra.mxu0 %vm1101_vm1, %v12046_v9  ;;  %v17436_v9 = vpop.f32.mrf.mxu1 }
 0x1f8   :  { %20779 = vst [vmem:[#allocation327_spill] sm:$0xff] %v17415_v39  ;;  %13980 = vmatprep.mubr.msk.f32.mxu0 %vm1101_vm1, %v12047_v7  ;;  %v12050_v7 = vld [vmem:[%s20199_s0 + $0x3f2] ss:$2 sm:$0xff]  ;;  %20783 = vst [vmem:[#allocation331_spill] sm:$0xff] %v17436_v9  ;;  %v12055_v9 = vld [vmem:[%s20199_s0 + $0x442] ss:$2 sm:$0xff] }
 0x1f9   :  { %v17424_v12 = vpop.f32.mrf.mxu0 }
 0x1fa   :  { %20781 = vst [vmem:[#allocation329_spill] sm:$0xff] %v17424_v12  ;;  %v12051_v12 = vld [vmem:[%s20199_s0 + $0x402] ss:$2 sm:$0xff] }
 0x1fb   :  { %v17429_v42 = vpop.f32.mrf.mxu0  ;;  %13981 = vmatmul.mubr.msk.f32.gmra.mxu0 %vm1101_vm1, %v12048_v8  ;;  %v17450_v8 = vpop.f32.mrf.mxu1 }
 0x1fc   :  { %20782 = vst [vmem:[#allocation330_spill] sm:$0xff] %v17429_v42  ;;  %13983 = vmatprep.mubr.msk.f32.mxu0 %vm1101_vm1, %v12049_v43  ;;  %v12052_v43 = vld [vmem:[%s20199_s0 + $0x412] ss:$2 sm:$0xff]  ;;  %20786 = vst [vmem:[#allocation334_spill] sm:$0xff] %v17450_v8 }
 0x1fd   :  { %v17438_v39 = vpop.f32.mrf.mxu0 }
 0x1fe   :  { %20784 = vst [vmem:[#allocation332_spill] sm:$0xff] %v17438_v39  ;;  %v12053_v39 = vld [vmem:[%s20199_s0 + $0x422] ss:$2 sm:$0xff] }
 0x1ff   :  { %v17443_v6 = vpop.f32.mrf.mxu0  ;;  %13984 = vmatmul.mubr.msk.f32.gmra.mxu0 %vm1101_vm1, %v12050_v7 }
 0x200   :  { %20785 = vst [vmem:[#allocation333_spill] sm:$0xff] %v17443_v6  ;;  %13986 = vmatprep.mubr.msk.f32.mxu0 %vm1101_vm1, %v12051_v12  ;;  %v12376_v6 = vld [vmem:[%s20202_s3 + $0x20] sm:$0xff] }
 0x201   :  { %v17452_v42 = vpop.f32.mrf.mxu0  ;;  %14284 = vmatprep.subr.mxu0 %v12376_v6  ;;  %v12054_v12 = vld [vmem:[%s20199_s0 + $0x432] ss:$2 sm:$0xff] }
 0x202   :  { %20787 = vst [vmem:[#allocation335_spill] sm:$0xff] %v17452_v42  ;;  %14285 = vmatpush3.msra.mxu0 %v12376_v6  ;;  %v17467_v42 = vpop.f32.mrf.mxu1 }
 0x203   :  { %v17460_v7 = vpop.f32.mrf.mxu0  ;;  %13987 = vmatmul.mubr.msk.f32.gmra.mxu0 %vm1101_vm1, %v12052_v43  ;;  %20789 = vst [vmem:[#allocation337_spill] sm:$0xff] %v17467_v42  ;;  %v12087_v42 = vld [vmem:[%s20199_s0 + $0x642] ss:$2 sm:$0xff] }
 0x204   :  { %20788 = vst [vmem:[#allocation336_spill] sm:$0xff] %v17460_v7  ;;  %13989 = vmatprep.mubr.msk.f32.mxu0 %vm1101_vm1, %v12053_v39  ;;  %v12056_v39 = vld [vmem:[%s20199_s0 + $0x452] ss:$2 sm:$0xff]  ;;  %v17481_v43 = vpop.f32.mrf.mxu1 }
 0x205   :  { %v17469_v8 = vpop.f32.mrf.mxu0  ;;  %20792 = vst [vmem:[#allocation340_spill] sm:$0xff] %v17481_v43 }
 0x206   :  { %20790 = vst [vmem:[#allocation338_spill] sm:$0xff] %v17469_v8  ;;  %v12057_v8 = vld [vmem:[%s20199_s0 + $0x462] ss:$2 sm:$0xff] }
 0x207   :  { %v17474_v44 = vpop.f32.mrf.mxu0  ;;  %13990 = vmatmul.mubr.msk.f32.gmra.mxu0 %vm1101_vm1, %v12054_v12  ;;  %v17495_v12 = vpop.f32.mrf.mxu1 }
 0x208   :  { %20791 = vst [vmem:[#allocation339_spill] sm:$0xff] %v17474_v44  ;;  %13992 = vmatprep.mubr.msk.f32.mxu0 %vm1101_vm1, %v12055_v9  ;;  %v12058_v9 = vld [vmem:[%s20199_s0 + $0x472] ss:$2 sm:$0xff]  ;;  %20795 = vst [vmem:[#allocation343_spill] sm:$0xff] %v17495_v12 }
 0x209   :  { %v17483_v6 = vpop.f32.mrf.mxu0 }
 0x20a   :  { %20793 = vst [vmem:[#allocation341_spill] sm:$0xff] %v17483_v6  ;;  %v12059_v6 = vld [vmem:[%s20199_s0 + $0x482] ss:$2 sm:$0xff] }
 0x20b   :  { %v17488_v7 = vpop.f32.mrf.mxu0  ;;  %13993 = vmatmul.mubr.msk.f32.gmra.mxu0 %vm1101_vm1, %v12056_v39  ;;  %v17509_v39 = vpop.f32.mrf.mxu1 }
 0x20c   :  { %20794 = vst [vmem:[#allocation342_spill] sm:$0xff] %v17488_v7  ;;  %13995 = vmatprep.mubr.msk.f32.mxu0 %vm1101_vm1, %v12057_v8  ;;  %v12060_v8 = vld [vmem:[%s20199_s0 + $0x492] ss:$2 sm:$0xff]  ;;  %20798 = vst [vmem:[#allocation346_spill] sm:$0xff] %v17509_v39 }
 0x20d   :  { %v17497_v44 = vpop.f32.mrf.mxu0 }
 0x20e   :  { %20796 = vst [vmem:[#allocation344_spill] sm:$0xff] %v17497_v44  ;;  %v12061_v44 = vld [vmem:[%s20199_s0 + $0x4a2] ss:$2 sm:$0xff] }
 0x20f   :  { %v17502_v43 = vpop.f32.mrf.mxu0  ;;  %13996 = vmatmul.mubr.msk.f32.gmra.mxu0 %vm1101_vm1, %v12058_v9  ;;  %v17523_v9 = vpop.f32.mrf.mxu1 }
 0x210   :  { %20797 = vst [vmem:[#allocation345_spill] sm:$0xff] %v17502_v43  ;;  %13998 = vmatprep.mubr.msk.f32.mxu0 %vm1101_vm1, %v12059_v6  ;;  %v12062_v6 = vld [vmem:[%s20199_s0 + $0x4b2] ss:$2 sm:$0xff]  ;;  %20801 = vst [vmem:[#allocation349_spill] sm:$0xff] %v17523_v9 }
 0x211   :  { %v17511_v7 = vpop.f32.mrf.mxu0 }
 0x212   :  { %20799 = vst [vmem:[#allocation347_spill] sm:$0xff] %v17511_v7  ;;  %v12063_v7 = vld [vmem:[%s20199_s0 + $0x4c2] ss:$2 sm:$0xff] }
 0x213   :  { %v17516_v12 = vpop.f32.mrf.mxu0  ;;  %13999 = vmatmul.mubr.msk.f32.gmra.mxu0 %vm1101_vm1, %v12060_v8  ;;  %v17537_v8 = vpop.f32.mrf.mxu1 }
 0x214   :  { %20800 = vst [vmem:[#allocation348_spill] sm:$0xff] %v17516_v12  ;;  %14001 = vmatprep.mubr.msk.f32.mxu0 %vm1101_vm1, %v12061_v44  ;;  %v12064_v44 = vld [vmem:[%s20199_s0 + $0x4d2] ss:$2 sm:$0xff]  ;;  %20804 = vst [vmem:[#allocation352_spill] sm:$0xff] %v17537_v8 }
 0x215   :  { %v17525_v43 = vpop.f32.mrf.mxu0 }
 0x216   :  { %20802 = vst [vmem:[#allocation350_spill] sm:$0xff] %v17525_v43  ;;  %v12065_v43 = vld [vmem:[%s20199_s0 + $0x4e2] ss:$2 sm:$0xff] }
 0x217   :  { %v17530_v39 = vpop.f32.mrf.mxu0  ;;  %14002 = vmatmul.mubr.msk.f32.gmra.mxu0 %vm1101_vm1, %v12062_v6  ;;  %v17551_v6 = vpop.f32.mrf.mxu1 }
 0x218   :  { %20803 = vst [vmem:[#allocation351_spill] sm:$0xff] %v17530_v39  ;;  %14004 = vmatprep.mubr.msk.f32.mxu0 %vm1101_vm1, %v12063_v7  ;;  %v12066_v7 = vld [vmem:[%s20199_s0 + $0x4f2] ss:$2 sm:$0xff]  ;;  %20807 = vst [vmem:[#allocation355_spill] sm:$0xff] %v17551_v6 }
 0x219   :  { %v17539_v12 = vpop.f32.mrf.mxu0 }
 0x21a   :  { %20805 = vst [vmem:[#allocation353_spill] sm:$0xff] %v17539_v12  ;;  %v12067_v12 = vld [vmem:[%s20199_s0 + $0x502] ss:$2 sm:$0xff] }
 0x21b   :  { %v17544_v9 = vpop.f32.mrf.mxu0  ;;  %14005 = vmatmul.mubr.msk.f32.gmra.mxu0 %vm1101_vm1, %v12064_v44  ;;  %v17565_v44 = vpop.f32.mrf.mxu1 }
 0x21c   :  { %20806 = vst [vmem:[#allocation354_spill] sm:$0xff] %v17544_v9  ;;  %14007 = vmatprep.mubr.msk.f32.mxu0 %vm1101_vm1, %v12065_v43  ;;  %v12068_v43 = vld [vmem:[%s20199_s0 + $0x512] ss:$2 sm:$0xff]  ;;  %20810 = vst [vmem:[#allocation358_spill] sm:$0xff] %v17565_v44 }
 0x21d   :  { %v17553_v39 = vpop.f32.mrf.mxu0 }
 0x21e   :  { %20808 = vst [vmem:[#allocation356_spill] sm:$0xff] %v17553_v39  ;;  %v12069_v39 = vld [vmem:[%s20199_s0 + $0x522] ss:$2 sm:$0xff] }
 0x21f   :  { %v17558_v8 = vpop.f32.mrf.mxu0  ;;  %14008 = vmatmul.mubr.msk.f32.gmra.mxu0 %vm1101_vm1, %v12066_v7  ;;  %v17579_v7 = vpop.f32.mrf.mxu1 }
 0x220   :  { %20809 = vst [vmem:[#allocation357_spill] sm:$0xff] %v17558_v8  ;;  %14010 = vmatprep.mubr.msk.f32.mxu0 %vm1101_vm1, %v12067_v12  ;;  %v12070_v12 = vld [vmem:[%s20199_s0 + $0x532] ss:$2 sm:$0xff]  ;;  %20813 = vst [vmem:[#allocation361_spill] sm:$0xff] %v17579_v7 }
 0x221   :  { %v17567_v9 = vpop.f32.mrf.mxu0 }
 0x222   :  { %20811 = vst [vmem:[#allocation359_spill] sm:$0xff] %v17567_v9  ;;  %v12071_v9 = vld [vmem:[%s20199_s0 + $0x542] ss:$2 sm:$0xff] }
 0x223   :  { %v17572_v6 = vpop.f32.mrf.mxu0  ;;  %14011 = vmatmul.mubr.msk.f32.gmra.mxu0 %vm1101_vm1, %v12068_v43  ;;  %v17593_v43 = vpop.f32.mrf.mxu1 }
 0x224   :  { %20812 = vst [vmem:[#allocation360_spill] sm:$0xff] %v17572_v6  ;;  %14013 = vmatprep.mubr.msk.f32.mxu0 %vm1101_vm1, %v12069_v39  ;;  %v12072_v39 = vld [vmem:[%s20199_s0 + $0x552] ss:$2 sm:$0xff]  ;;  %20816 = vst [vmem:[#allocation364_spill] sm:$0xff] %v17593_v43 }
 0x225   :  { %v17581_v8 = vpop.f32.mrf.mxu0 }
 0x226   :  { %20814 = vst [vmem:[#allocation362_spill] sm:$0xff] %v17581_v8  ;;  %v12073_v8 = vld [vmem:[%s20199_s0 + $0x562] ss:$2 sm:$0xff] }
 0x227   :  { %v17586_v44 = vpop.f32.mrf.mxu0  ;;  %14014 = vmatmul.mubr.msk.f32.gmra.mxu0 %vm1101_vm1, %v12070_v12  ;;  %v17607_v12 = vpop.f32.mrf.mxu1 }
 0x228   :  { %20815 = vst [vmem:[#allocation363_spill] sm:$0xff] %v17586_v44  ;;  %14016 = vmatprep.mubr.msk.f32.mxu0 %vm1101_vm1, %v12071_v9  ;;  %v12074_v9 = vld [vmem:[%s20199_s0 + $0x572] ss:$2 sm:$0xff]  ;;  %20819 = vst [vmem:[#allocation367_spill] sm:$0xff] %v17607_v12 }
 0x229   :  { %v17595_v6 = vpop.f32.mrf.mxu0 }
 0x22a   :  { %20817 = vst [vmem:[#allocation365_spill] sm:$0xff] %v17595_v6  ;;  %v12075_v6 = vld [vmem:[%s20199_s0 + $0x582] ss:$2 sm:$0xff] }
 0x22b   :  { %v17600_v7 = vpop.f32.mrf.mxu0  ;;  %14017 = vmatmul.mubr.msk.f32.gmra.mxu0 %vm1101_vm1, %v12072_v39  ;;  %v17621_v39 = vpop.f32.mrf.mxu1 }
 0x22c   :  { %20818 = vst [vmem:[#allocation366_spill] sm:$0xff] %v17600_v7  ;;  %14019 = vmatprep.mubr.msk.f32.mxu0 %vm1101_vm1, %v12073_v8  ;;  %v12076_v8 = vld [vmem:[%s20199_s0 + $0x592] ss:$2 sm:$0xff]  ;;  %20822 = vst [vmem:[#allocation370_spill] sm:$0xff] %v17621_v39 }
 0x22d   :  { %v17609_v44 = vpop.f32.mrf.mxu0 }
 0x22e   :  { %20820 = vst [vmem:[#allocation368_spill] sm:$0xff] %v17609_v44  ;;  %v12077_v44 = vld [vmem:[%s20199_s0 + $0x5a2] ss:$2 sm:$0xff] }
 0x22f   :  { %v17614_v43 = vpop.f32.mrf.mxu0  ;;  %14020 = vmatmul.mubr.msk.f32.gmra.mxu0 %vm1101_vm1, %v12074_v9  ;;  %v17635_v9 = vpop.f32.mrf.mxu1 }
 0x230   :  { %20821 = vst [vmem:[#allocation369_spill] sm:$0xff] %v17614_v43  ;;  %14022 = vmatprep.mubr.msk.f32.mxu0 %vm1101_vm1, %v12075_v6  ;;  %v12078_v6 = vld [vmem:[%s20199_s0 + $0x5b2] ss:$2 sm:$0xff]  ;;  %20825 = vst [vmem:[#allocation373_spill] sm:$0xff] %v17635_v9 }
 0x231   :  { %v17623_v7 = vpop.f32.mrf.mxu0 }
 0x232   :  { %20823 = vst [vmem:[#allocation371_spill] sm:$0xff] %v17623_v7  ;;  %v12079_v7 = vld [vmem:[%s20199_s0 + $0x5c2] ss:$2 sm:$0xff] }
 0x233   :  { %v17628_v12 = vpop.f32.mrf.mxu0  ;;  %14023 = vmatmul.mubr.msk.f32.gmra.mxu0 %vm1101_vm1, %v12076_v8  ;;  %v17649_v8 = vpop.f32.mrf.mxu1 }
 0x234   :  { %20824 = vst [vmem:[#allocation372_spill] sm:$0xff] %v17628_v12  ;;  %14025 = vmatprep.mubr.msk.f32.mxu0 %vm1101_vm1, %v12077_v44  ;;  %v12080_v44 = vld [vmem:[%s20199_s0 + $0x5d2] ss:$2 sm:$0xff]  ;;  %20828 = vst [vmem:[#allocation376_spill] sm:$0xff] %v17649_v8 }
 0x235   :  { %v17637_v43 = vpop.f32.mrf.mxu0 }
 0x236   :  { %20826 = vst [vmem:[#allocation374_spill] sm:$0xff] %v17637_v43  ;;  %v12081_v43 = vld [vmem:[%s20199_s0 + $0x5e2] ss:$2 sm:$0xff] }
 0x237   :  { %v17642_v39 = vpop.f32.mrf.mxu0  ;;  %14026 = vmatmul.mubr.msk.f32.gmra.mxu0 %vm1101_vm1, %v12078_v6  ;;  %v17663_v6 = vpop.f32.mrf.mxu1 }
 0x238   :  { %20827 = vst [vmem:[#allocation375_spill] sm:$0xff] %v17642_v39  ;;  %14028 = vmatprep.mubr.msk.f32.mxu0 %vm1101_vm1, %v12079_v7  ;;  %v12082_v7 = vld [vmem:[%s20199_s0 + $0x5f2] ss:$2 sm:$0xff]  ;;  %20831 = vst [vmem:[#allocation379_spill] sm:$0xff] %v17663_v6 }
 0x239   :  { %v17651_v12 = vpop.f32.mrf.mxu0 }
 0x23a   :  { %20829 = vst [vmem:[#allocation377_spill] sm:$0xff] %v17651_v12  ;;  %v12083_v12 = vld [vmem:[%s20199_s0 + $0x602] ss:$2 sm:$0xff] }
 0x23b   :  { %v17656_v9 = vpop.f32.mrf.mxu0  ;;  %14029 = vmatmul.mubr.msk.f32.gmra.mxu0 %vm1101_vm1, %v12080_v44  ;;  %v17677_v44 = vpop.f32.mrf.mxu1 }
 0x23c   :  { %20830 = vst [vmem:[#allocation378_spill] sm:$0xff] %v17656_v9  ;;  %14031 = vmatprep.mubr.msk.f32.mxu0 %vm1101_vm1, %v12081_v43  ;;  %v12084_v43 = vld [vmem:[%s20199_s0 + $0x612] ss:$2 sm:$0xff]  ;;  %20834 = vst [vmem:[#allocation382_spill] sm:$0xff] %v17677_v44 }
 0x23d   :  { %v17665_v39 = vpop.f32.mrf.mxu0  ;;  %v17695_v44 = vpop.f32.mrf.mxu1 }
 0x23e   :  { %20832 = vst [vmem:[#allocation380_spill] sm:$0xff] %v17665_v39  ;;  %v12085_v39 = vld [vmem:[%s20199_s0 + $0x622] ss:$2 sm:$0xff]  ;;  %20836 = vst [vmem:[#allocation384_spill] sm:$0xff] %v17695_v44  ;;  %v12088_v44 = vld [vmem:[%s20199_s0 + $0x652] ss:$2 sm:$0xff] }
 0x23f   :  { %v17670_v8 = vpop.f32.mrf.mxu0  ;;  %14032 = vmatmul.mubr.msk.f32.gmra.mxu0 %vm1101_vm1, %v12082_v7  ;;  %v17709_v37 = vpop.f32.mrf.mxu1 }
 0x240   :  { %20833 = vst [vmem:[#allocation381_spill] sm:$0xff] %v17670_v8  ;;  %14034 = vmatprep.mubr.msk.f32.mxu0 %vm1101_vm1, %v12083_v12  ;;  %v17687_v8 = vld [vmem:[%s20201_s2] ss:$0 sm:$0xff] }
 0x241   :  { %v17679_v9 = vpop.f32.mrf.mxu0 }
 0x242   :  { %20835 = vst [vmem:[#allocation383_spill] sm:$0xff] %v17679_v9  ;;  %v12086_v9 = vld [vmem:[%s20199_s0 + $0x632] ss:$2 sm:$0xff] }
 0x243   :  { %v13892_v7 = vpop.f32.mrf.mxu0  ;;  %14035 = vmatmul.mubr.msk.f32.gmra.mxu0 %vm1101_vm1, %v12084_v43 }
 0x244   :  { %v4638_v12 = vadd.f32 %v13892_v7, %v16694_v50  ;;  %14037 = vmatprep.mubr.msk.f32.mxu0 %vm1101_vm1, %v12085_v39 }
 0x245   :  { %v3998_v6 = vpop.f32.mrf.mxu0 }
 0x246   :  { %v4772_v38 = vadd.f32 %v17687_v8, %v4638_v12  ;;  %v4637_v45 = vadd.f32 %v3998_v6, %v16706_v21  ;;  %v12089_v21 = vld [vmem:[%s20199_s0 + $0x662] ss:$2 sm:$0xff] }
 0x247   :  { %v13895_v43 = vpop.f32.mrf.mxu0  ;;  %14038 = vmatmul.mubr.msk.f32.gmra.mxu0 %vm1101_vm1, %v12086_v9 }
 0x248   :  { %v4900_v50 = vmax.f32 %v4772_v38, 0.0  ;;  %v4771_v39 = vadd.f32 %v17687_v8, %v4637_v45  ;;  %v4640_v7 = vadd.f32 %v13895_v43, %v16714_v22  ;;  %14040 = vmatprep.mubr.msk.f32.mxu0 %vm1101_vm1, %v12087_v42 }
 0x249   :  { %v4008_v12 = vpop.f32.mrf.mxu0 }
 0x24a   :  { %5028 = vst.msk [vmem:[#allocation2 + $0x8] sm:$0xff] %vm582_vm2, %v4900_v50  ;;  %v4899_v38 = vmax.f32 %v4771_v39, 0.0  ;;  %v4774_v45 = vadd.f32 %v17687_v8, %v4640_v7  ;;  %v4639_v22 = vadd.f32 %v4008_v12, %v16726_v20  ;;  %v12090_v50 = vld [vmem:[%s20199_s0 + $0x672] ss:$2 sm:$0xff]  ;;  %v17725_v39 = vpop.f32.mrf.mxu1  ;;  %v12091_v20 = vld [vmem:[%s20199_s0 + $0x682] ss:$2 sm:$0xff] }
 0x24b   :  { %v13898_v9 = vpop.f32.mrf.mxu0  ;;  %14041 = vmatmul.mubr.msk.f32.gmra.mxu0 %vm1101_vm1, %v12088_v44 }
 0x24c   :  { %5027 = vst.msk [vmem:[#allocation2] sm:$0xff] %vm582_vm2, %v4899_v38  ;;  %v4902_v42 = vmax.f32 %v4774_v45, 0.0  ;;  %v4773_v6 = vadd.f32 %v17687_v8, %v4639_v22  ;;  %v4642_v43 = vadd.f32 %v13898_v9, %v16734_v56  ;;  %14043 = vmatprep.mubr.msk.f32.mxu0 %vm1101_vm1, %v12089_v21  ;;  %v12092_v9 = vld [vmem:[%s20199_s0 + $0x692] ss:$2 sm:$0xff] }
 0x24d   :  { %v4018_v7 = vpop.f32.mrf.mxu0 }
 0x24e   :  { %5030 = vst.msk [vmem:[#allocation2 + $0x18] sm:$0xff] %vm582_vm2, %v4902_v42  ;;  %v4901_v44 = vmax.f32 %v4773_v6, 0.0  ;;  %v4776_v12 = vadd.f32 %v17687_v8, %v4642_v43  ;;  %v4641_v56 = vadd.f32 %v4018_v7, %v16746_v54  ;;  %v17741_v42 = vpop.f32.mrf.mxu1  ;;  %v12093_v54 = vld [vmem:[%s20199_s0 + $0x6a2] ss:$2 sm:$0xff] }
 0x24f   :  { %v13901_v38 = vpop.f32.mrf.mxu0  ;;  %14044 = vmatmul.mubr.msk.f32.gmra.mxu0 %vm1101_vm1, %v12090_v50 }
 0x250   :  { %5029 = vst.msk [vmem:[#allocation2 + $0x10] sm:$0xff] %vm582_vm2, %v4901_v44  ;;  %v4904_v21 = vmax.f32 %v4776_v12, 0.0  ;;  %v4775_v45 = vadd.f32 %v17687_v8, %v4641_v56  ;;  %v4644_v22 = vadd.f32 %v13901_v38, %v16754_v24  ;;  %14046 = vmatprep.mubr.msk.f32.mxu0 %vm1101_vm1, %v12091_v20  ;;  %v12094_v38 = vld [vmem:[%s20199_s0 + $0x6b2] ss:$2 sm:$0xff] }
 0x251   :  { %v4028_v6 = vpop.f32.mrf.mxu0 }
 0x252   :  { %5032 = vst.msk [vmem:[#allocation2 + $0x28] sm:$0xff] %vm582_vm2, %v4904_v21  ;;  %v4903_v43 = vmax.f32 %v4775_v45, 0.0  ;;  %v4778_v50 = vadd.f32 %v17687_v8, %v4644_v22  ;;  %v4643_v24 = vadd.f32 %v4028_v6, %v16766_v53  ;;  %v17758_v53 = vpop.f32.mrf.mxu1  ;;  %v12095_v45 = vld [vmem:[%s20199_s0 + $0x6c2] ss:$2 sm:$0xff] }
 0x253   :  { %v13904_v7 = vpop.f32.mrf.mxu0  ;;  %14047 = vmatmul.mubr.msk.f32.gmra.mxu0 %vm1101_vm1, %v12092_v9  ;;  %v5286_v20 = vld [vmem:[#allocation2 + $0x1] ss:$2 sm:$0xff] }
 0x254   :  { %5031 = vst.msk [vmem:[#allocation2 + $0x20] sm:$0xff] %vm582_vm2, %v4903_v43  ;;  %v4906_v44 = vmax.f32 %v4778_v50, 0.0  ;;  %v4777_v12 = vadd.f32 %v17687_v8, %v4643_v24  ;;  %v4646_v56 = vadd.f32 %v13904_v7, %v16774_v58  ;;  %14086 = vmatprep.mubr.msk.f32.mxu1 %vm582_vm2, %v5286_v20  ;;  %14049 = vmatprep.mubr.msk.f32.mxu0 %vm1101_vm1, %v12093_v54  ;;  %v12096_v7 = vld [vmem:[%s20199_s0 + $0x6d2] ss:$2 sm:$0xff] }
 0x255   :  { %v4038_v21 = vpop.f32.mrf.mxu0 }
 0x256   :  { %5034 = vst.msk [vmem:[#allocation2 + $0x38] sm:$0xff] %vm582_vm2, %v4906_v44  ;;  %v4905_v22 = vmax.f32 %v4777_v12, 0.0  ;;  %v4780_v58 = vadd.f32 %v17687_v8, %v4646_v56  ;;  %v4645_v9 = vadd.f32 %v4038_v21, %v16789_v49  ;;  %v17775_v49 = vpop.f32.mrf.mxu1  ;;  %v12097_v44 = vld [vmem:[%s20199_s0 + $0x6e2] ss:$2 sm:$0xff] }
 0x257   :  { %v13907_v6 = vpop.f32.mrf.mxu0  ;;  %14050 = vmatmul.mubr.msk.f32.gmra.mxu0 %vm1101_vm1, %v12094_v38  ;;  %v5288_v54 = vld [vmem:[#allocation2 + $0x11] ss:$2 sm:$0xff]  ;;  %v5284_v38 = vld [vmem:[%s20202_s3 + $0x8] sm:$0xff] }
 0x258   :  { %5033 = vst.msk [vmem:[#allocation2 + $0x30] sm:$0xff] %vm582_vm2, %v4905_v22  ;;  %v4908_v43 = vmax.f32 %v4780_v58, 0.0  ;;  %v4779_v50 = vadd.f32 %v17687_v8, %v4645_v9  ;;  %v4648_v24 = vadd.f32 %v13907_v6, %v16797_v59  ;;  %14087 = vmatmul.mubr.msk.f32.vlgmr.msra.gmra.mxu1 %vm582_vm2, %v5288_v54  ;;  %14052 = vmatprep.mubr.msk.f32.mxu0 %vm1101_vm1, %v12095_v45  ;;  %v17795_v6 = vpop.f32.mrf.mxu1 }
 0x259   :  { %v4048_v20 = vpop.f32.mrf.mxu0  ;;  %14182 = vmatprep.subr.mxu1 %v5284_v38 }
 0x25a   :  { %5036 = vst.msk [vmem:[#allocation2 + $0x48] sm:$0xff] %vm582_vm2, %v4908_v43  ;;  %v4907_v12 = vmax.f32 %v4779_v50, 0.0  ;;  %v4782_v59 = vadd.f32 %v17687_v8, %v4648_v24  ;;  %v4647_v56 = vadd.f32 %v4048_v20, %v16809_v23  ;;  %v12098_v23 = vld [vmem:[%s20199_s0 + $0x6f2] ss:$2 sm:$0xff]  ;;  %v12099_v43 = vld [vmem:[%s20199_s0 + $0x702] ss:$2 sm:$0xff]  ;;  %14183 = vmatpush3.msra.mxu1 %v5284_v38 }
 0x25b   :  { %v13910_v21 = vpop.f32.mrf.mxu0  ;;  %14053 = vmatmul.mubr.msk.f32.gmra.mxu0 %vm1101_vm1, %v12096_v7  ;;  %v5290_v45 = vld [vmem:[#allocation2 + $0x21] ss:$2 sm:$0xff] }
 0x25c   :  { %5035 = vst.msk [vmem:[#allocation2 + $0x40] sm:$0xff] %vm582_vm2, %v4907_v12  ;;  %v4910_v22 = vmax.f32 %v4782_v59, 0.0  ;;  %v4781_v58 = vadd.f32 %v17687_v8, %v4647_v56  ;;  %v4650_v9 = vadd.f32 %v13910_v21, %v16817_v17  ;;  %14089 = vmatprep.mubr.msk.f32.mxu1 %vm582_vm2, %v5290_v45  ;;  %14055 = vmatprep.mubr.msk.f32.mxu0 %vm1101_vm1, %v12097_v44  ;;  %v12100_v56 = vld [vmem:[%s20199_s0 + $0x712] ss:$2 sm:$0xff]  ;;  %v12101_v21 = vld [vmem:[%s20199_s0 + $0x722] ss:$2 sm:$0xff] }
 0x25d   :  { %v4058_v54 = vpop.f32.mrf.mxu0  ;;  %v2734_v45 = vadd.f32 %v16996_v62, %v16851_v52 }
 0x25e   :  { %5038 = vst.msk [vmem:[#allocation2 + $0x58] sm:$0xff] %vm582_vm2, %v4910_v22  ;;  %v4909_v50 = vmax.f32 %v4781_v58, 0.0  ;;  %v4784_v17 = vadd.f32 %v17687_v8, %v4650_v9  ;;  %v4649_v24 = vadd.f32 %v4058_v54, %v16829_v57  ;;  %v17812_v57 = vpop.f32.mrf.mxu1  ;;  %v2729_v54 = vadd.f32 %v17010_v0, %v16859_v51  ;;  %v12103_v51 = vld [vmem:[%s20199_s0 + $0x742] ss:$2 sm:$0xff] }
 0x25f   :  { %v13913_v7 = vpop.f32.mrf.mxu0  ;;  %14056 = vmatmul.mubr.msk.f32.gmra.mxu0 %vm1101_vm1, %v12098_v23  ;;  %v5292_v20 = vld [vmem:[#allocation2 + $0x31] ss:$2 sm:$0xff]  ;;  %v2744_v0 = vadd.f32 %v17024_v34, %v16871_v55  ;;  %v12104_v55 = vld [vmem:[%s20199_s0 + $0x752] ss:$2 sm:$0xff] }
 0x260   :  { %5037 = vst.msk [vmem:[#allocation2 + $0x50] sm:$0xff] %vm582_vm2, %v4909_v50  ;;  %v4912_v44 = vmax.f32 %v4784_v17, 0.0  ;;  %v4783_v12 = vadd.f32 %v17687_v8, %v4649_v24  ;;  %v4652_v59 = vadd.f32 %v13913_v7, %v16837_v28  ;;  %14090 = vmatmul.mubr.msk.f32.gmra.mxu1 %vm582_vm2, %v5292_v20  ;;  %14058 = vmatprep.mubr.msk.f32.mxu0 %vm1101_vm1, %v12099_v43  ;;  %v17832_v62 = vpop.f32.mrf.mxu1 }
 0x261   :  { %v4068_v38 = vpop.f32.mrf.mxu0 }
 0x262   :  { %5040 = vst.msk [vmem:[#allocation2 + $0x68] sm:$0xff] %vm582_vm2, %v4912_v44  ;;  %v4911_v28 = vmax.f32 %v4783_v12, 0.0  ;;  %v4786_v22 = vadd.f32 %v17687_v8, %v4652_v59  ;;  %v4651_v58 = vadd.f32 %v4068_v38, %v16849_v25  ;;  %v12102_v25 = vld [vmem:[%s20199_s0 + $0x732] ss:$2 sm:$0xff]  ;;  %v2739_v59 = vadd.f32 %v17038_v2, %v16879_v26  ;;  %v17851_v34 = vpop.f32.mrf.mxu1  ;;  %v12105_v26 = vld [vmem:[%s20199_s0 + $0x762] ss:$2 sm:$0xff] }
 0x263   :  { %v13916_v9 = vpop.f32.mrf.mxu0  ;;  %14059 = vmatmul.mubr.msk.f32.gmra.mxu0 %vm1101_vm1, %v12100_v56  ;;  %v5294_v23 = vld [vmem:[#allocation2 + $0x41] ss:$2 sm:$0xff]  ;;  %v2754_v2 = vadd.f32 %v17052_v36, %v16891_v19  ;;  %v12106_v19 = vld [vmem:[%s20199_s0 + $0x772] ss:$2 sm:$0xff] }
 0x264   :  { %5039 = vst.msk [vmem:[#allocation2 + $0x60] sm:$0xff] %vm582_vm2, %v4911_v28  ;;  %v4914_v43 = vmax.f32 %v4786_v22, 0.0  ;;  %v4785_v50 = vadd.f32 %v17687_v8, %v4651_v58  ;;  %v4654_v52 = vadd.f32 %v13916_v9, %v2734_v45  ;;  %14092 = vmatprep.mubr.msk.f32.mxu1 %vm582_vm2, %v5294_v23  ;;  %14061 = vmatprep.mubr.msk.f32.mxu0 %vm1101_vm1, %v12101_v21  ;;  %v17870_v36 = vpop.f32.mrf.mxu1 }
 0x265   :  { %v4078_v17 = vpop.f32.mrf.mxu0 }
 0x266   :  { %5042 = vst.msk [vmem:[#allocation2 + $0x78] sm:$0xff] %vm582_vm2, %v4914_v43  ;;  %v4913_v24 = vmax.f32 %v4785_v50, 0.0  ;;  %v4788_v7 = vadd.f32 %v17687_v8, %v4654_v52  ;;  %v4653_v20 = vadd.f32 %v4078_v17, %v2729_v54  ;;  %v2749_v54 = vadd.f32 %v17066_v4, %v16899_v29  ;;  %v12107_v29 = vld [vmem:[%s20199_s0 + $0x782] ss:$2 sm:$0xff] }
 0x267   :  { %v13919_v44 = vpop.f32.mrf.mxu0  ;;  %14062 = vmatmul.mubr.msk.f32.gmra.mxu0 %vm1101_vm1, %v12102_v25  ;;  %v5296_v12 = vld [vmem:[#allocation2 + $0x51] ss:$2 sm:$0xff]  ;;  %v2764_v4 = vadd.f32 %v17080_v5, %v16911_v18  ;;  %v12108_v18 = vld [vmem:[%s20199_s0 + $0x792] ss:$2 sm:$0xff]  ;;  %v17889_v5 = vpop.f32.mrf.mxu1 }
 0x268   :  { %5041 = vst.msk [vmem:[#allocation2 + $0x70] sm:$0xff] %vm582_vm2, %v4913_v24  ;;  %v4916_v56 = vmax.f32 %v4788_v7, 0.0  ;;  %v4787_v38 = vadd.f32 %v17687_v8, %v4653_v20  ;;  %v4656_v21 = vadd.f32 %v13919_v44, %v2744_v0  ;;  %14093 = vmatmul.mubr.msk.f32.gmra.mxu1 %vm582_vm2, %v5296_v12  ;;  %14064 = vmatprep.mubr.msk.f32.mxu0 %vm1101_vm1, %v12103_v51 }
 0x269   :  { %v4088_v45 = vpop.f32.mrf.mxu0  ;;  %v2759_v20 = vadd.f32 %v17094_v40, %v16919_v63  ;;  %v12109_v63 = vld [vmem:[%s20199_s0 + $0x7a2] ss:$2 sm:$0xff]  ;;  %v2774_v40 = vadd.f32 %v17108_v41, %v16931_v60  ;;  %v12110_v60 = vld [vmem:[%s20199_s0 + $0x7b2] ss:$2 sm:$0xff]  ;;  %v17908_v41 = vpop.f32.mrf.mxu1 }
 0x26a   :  { %5044 = vst.msk [vmem:[#allocation2 + $0x88] sm:$0xff] %vm582_vm2, %v4916_v56  ;;  %v4915_v28 = vmax.f32 %v4787_v38, 0.0  ;;  %v4790_v22 = vadd.f32 %v17687_v8, %v4656_v21  ;;  %v4655_v58 = vadd.f32 %v4088_v45, %v2739_v59 }
 0x26b   :  { %v13922_v9 = vpop.f32.mrf.mxu0  ;;  %14065 = vmatmul.mubr.msk.f32.gmra.mxu0 %vm1101_vm1, %v12104_v55  ;;  %v5298_v23 = vld [vmem:[#allocation2 + $0x61] ss:$2 sm:$0xff] }
 0x26c   :  { %5043 = vst.msk [vmem:[#allocation2 + $0x80] sm:$0xff] %vm582_vm2, %v4915_v28  ;;  %v4918_v43 = vmax.f32 %v4790_v22, 0.0  ;;  %v4789_v50 = vadd.f32 %v17687_v8, %v4655_v58  ;;  %v4658_v52 = vadd.f32 %v13922_v9, %v2754_v2  ;;  %14095 = vmatprep.mubr.msk.f32.mxu1 %vm582_vm2, %v5298_v23  ;;  %14067 = vmatprep.mubr.msk.f32.mxu0 %vm1101_vm1, %v12105_v26 }
 0x26d   :  { %v4098_v25 = vpop.f32.mrf.mxu0  ;;  %v2769_v2 = vadd.f32 %v17122_v10, %v16939_v31  ;;  %v12111_v31 = vld [vmem:[%s20199_s0 + $0x7c2] ss:$2 sm:$0xff]  ;;  %v2784_v10 = vadd.f32 %v17136_v11, %v16951_v27  ;;  %v12112_v27 = vld [vmem:[%s20199_s0 + $0x7d2] ss:$2 sm:$0xff]  ;;  %v17927_v11 = vpop.f32.mrf.mxu1 }
 0x26e   :  { %5046 = vst.msk [vmem:[#allocation2 + $0x98] sm:$0xff] %vm582_vm2, %v4918_v43  ;;  %v4917_v17 = vmax.f32 %v4789_v50, 0.0  ;;  %v4792_v51 = vadd.f32 %v17687_v8, %v4658_v52  ;;  %v4657_v0 = vadd.f32 %v4098_v25, %v2749_v54 }
 0x26f   :  { %v13925_v24 = vpop.f32.mrf.mxu0  ;;  %14068 = vmatmul.mubr.msk.f32.gmra.mxu0 %vm1101_vm1, %v12106_v19  ;;  %v5300_v7 = vld [vmem:[#allocation2 + $0x71] ss:$2 sm:$0xff]  ;;  %v2779_v19 = vadd.f32 %v17150_v46, %v16959_v33  ;;  %v12113_v33 = vld [vmem:[%s20199_s0 + $0x7e2] ss:$2 sm:$0xff]  ;;  %v2794_v46 = vadd.f32 %v17164_v47, %v16971_v61  ;;  %v12114_v61 = vld [vmem:[%s20199_s0 + $0x7f2] ss:$2 sm:$0xff]  ;;  %v17946_v47 = vpop.f32.mrf.mxu1 }
 0x270   :  { %5045 = vst.msk [vmem:[#allocation2 + $0x90] sm:$0xff] %vm582_vm2, %v4917_v17  ;;  %v4920_v44 = vmax.f32 %v4792_v51, 0.0  ;;  %v4791_v12 = vadd.f32 %v17687_v8, %v4657_v0  ;;  %v4660_v59 = vadd.f32 %v13925_v24, %v2764_v4  ;;  %14096 = vmatmul.mubr.msk.f32.gmra.mxu1 %vm582_vm2, %v5300_v7  ;;  %14070 = vmatprep.mubr.msk.f32.mxu0 %vm1101_vm1, %v12107_v29 }
 0x271   :  { %v4108_v56 = vpop.f32.mrf.mxu0 }
 0x272   :  { %5048 = vst.msk [vmem:[#allocation2 + $0xa8] sm:$0xff] %vm582_vm2, %v4920_v44  ;;  %v4919_v38 = vmax.f32 %v4791_v12, 0.0  ;;  %v4794_v21 = vadd.f32 %v17687_v8, %v4660_v59  ;;  %v4659_v55 = vadd.f32 %v4108_v56, %v2759_v20  ;;  %v2789_v44 = vadd.f32 %v17178_v16, %v16979_v1 }
 0x273   :  { %v13928_v45 = vpop.f32.mrf.mxu0  ;;  %14071 = vmatmul.mubr.msk.f32.gmra.mxu0 %vm1101_vm1, %v12108_v18  ;;  %v5302_v26 = vld [vmem:[#allocation2 + $0x81] ss:$2 sm:$0xff]  ;;  %v2804_v1 = vadd.f32 %v17192_v15, %v16988_v35  ;;  %v17959_v15 = vpop.f32.mrf.mxu1 }
 0x274   :  { %5047 = vst.msk [vmem:[#allocation2 + $0xa0] sm:$0xff] %vm582_vm2, %v4919_v38  ;;  %v4922_v28 = vmax.f32 %v4794_v21, 0.0  ;;  %v4793_v22 = vadd.f32 %v17687_v8, %v4659_v55  ;;  %v4662_v58 = vadd.f32 %v13928_v45, %v2774_v40  ;;  %14098 = vmatprep.mubr.msk.f32.mxu1 %vm582_vm2, %v5302_v26  ;;  %14073 = vmatprep.mubr.msk.f32.mxu0 %vm1101_vm1, %v12109_v63  ;;  %v6571_v55 = vld [vmem:[#allocation2 + $0x2] ss:$2 sm:$0xff] }
 0x275   :  { %v4118_v9 = vpop.f32.mrf.mxu0  ;;  %v2799_v45 = vadd.f32 %v17206_v48, %v16998_v32 }
 0x276   :  { %5050 = vst.msk [vmem:[#allocation2 + $0xb8] sm:$0xff] %vm582_vm2, %v4922_v28  ;;  %v4921_v23 = vmax.f32 %v4793_v22, 0.0  ;;  %v4796_v54 = vadd.f32 %v17687_v8, %v4662_v58  ;;  %v4661_v43 = vadd.f32 %v4118_v9, %v2769_v2  ;;  %v2814_v22 = vadd.f32 %v17220_v14, %v17003_v3 }
 0x277   :  { %v13931_v50 = vpop.f32.mrf.mxu0  ;;  %14074 = vmatmul.mubr.msk.f32.gmra.mxu0 %vm1101_vm1, %v12110_v60  ;;  %v5304_v52 = vld [vmem:[#allocation2 + $0x91] ss:$2 sm:$0xff]  ;;  %v6573_v60 = vld [vmem:[#allocation2 + $0x12] ss:$2 sm:$0xff] }
 0x278   :  { %5049 = vst.msk [vmem:[#allocation2 + $0xb0] sm:$0xff] %vm582_vm2, %v4921_v23  ;;  %v4924_v25 = vmax.f32 %v4796_v54, 0.0  ;;  %v4795_v29 = vadd.f32 %v17687_v8, %v4661_v43  ;;  %v4664_v4 = vadd.f32 %v13931_v50, %v2784_v10  ;;  %14099 = vmatmul.mubr.msk.f32.gmra.mxu1 %vm582_vm2, %v5304_v52  ;;  %14076 = vmatprep.mubr.msk.f32.mxu0 %vm1101_vm1, %v12111_v31  ;;  %v6575_v10 = vld [vmem:[#allocation2 + $0x22] ss:$2 sm:$0xff]  ;;  %v17972_v43 = vpop.f32.mrf.mxu1  ;;  %v20837_v52 = vld [vmem:[#allocation259_spill] sm:$0xff] }
 0x279   :  { %v4128_v17 = vpop.f32.mrf.mxu0  ;;  %v2809_v23 = vadd.f32 %v17234_v13, %v17012_v30 }
 0x27a   :  { %5052 = vst.msk [vmem:[#allocation2 + $0xc8] sm:$0xff] %vm582_vm2, %v4924_v25  ;;  %v4923_v51 = vmax.f32 %v4795_v29, 0.0  ;;  %v4798_v0 = vadd.f32 %v17687_v8, %v4664_v4  ;;  %v4663_v24 = vadd.f32 %v4128_v17, %v2779_v19  ;;  %v20838_v19 = vld [vmem:[#allocation292_spill] sm:$0xff] }
 0x27b   :  { %v13934_v7 = vpop.f32.mrf.mxu0  ;;  %14077 = vmatmul.mubr.msk.f32.gmra.mxu0 %vm1101_vm1, %v12112_v27  ;;  %v5306_v20 = vld [vmem:[#allocation2 + $0xa1] ss:$2 sm:$0xff]  ;;  %v2824_v25 = vadd.f32 %v20838_v19, %v20837_v52  ;;  %v6577_v4 = vld [vmem:[#allocation2 + $0x32] ss:$2 sm:$0xff] }
 0x27c   :  { %5051 = vst.msk [vmem:[#allocation2 + $0xc0] sm:$0xff] %vm582_vm2, %v4923_v51  ;;  %v4926_v12 = vmax.f32 %v4798_v0, 0.0  ;;  %v4797_v59 = vadd.f32 %v17687_v8, %v4663_v24  ;;  %v4666_v18 = vadd.f32 %v13934_v7, %v2794_v46  ;;  %14101 = vmatprep.mubr.msk.f32.mxu1 %vm582_vm2, %v5306_v20  ;;  %14079 = vmatprep.mubr.msk.f32.mxu0 %vm1101_vm1, %v12113_v33  ;;  %v6579_v33 = vld [vmem:[#allocation2 + $0x42] ss:$2 sm:$0xff]  ;;  %v20839_v46 = vld [vmem:[#allocation260_spill] sm:$0xff]  ;;  %v20840_v51 = vld [vmem:[#allocation295_spill] sm:$0xff] }
 0x27d   :  { %v4138_v56 = vpop.f32.mrf.mxu0  ;;  %v2819_v0 = vadd.f32 %v20840_v51, %v20839_v46  ;;  %v20848_v52 = vld [vmem:[#allocation307_spill] sm:$0xff] }
 0x27e   :  { %5054 = vst.msk [vmem:[#allocation2 + $0xd8] sm:$0xff] %vm582_vm2, %v4926_v12  ;;  %v4925_v16 = vmax.f32 %v4797_v59, 0.0  ;;  %v4800_v63 = vadd.f32 %v17687_v8, %v4666_v18  ;;  %v4665_v40 = vadd.f32 %v4138_v56, %v2789_v44  ;;  %v17985_v44 = vpop.f32.mrf.mxu1  ;;  %v20841_v59 = vld [vmem:[#allocation261_spill] sm:$0xff]  ;;  %v20842_v18 = vld [vmem:[#allocation298_spill] sm:$0xff] }
 0x27f   :  { %v13937_v38 = vpop.f32.mrf.mxu0  ;;  %14080 = vmatmul.mubr.msk.f32.gmra.mxu0 %vm1101_vm1, %v12114_v61  ;;  %v5308_v21 = vld [vmem:[#allocation2 + $0xb1] ss:$2 sm:$0xff]  ;;  %v2834_v61 = vadd.f32 %v20842_v18, %v20841_v59  ;;  %v20851_v59 = vld [vmem:[#allocation266_spill] sm:$0xff]  ;;  %v20852_v18 = vld [vmem:[#allocation313_spill] sm:$0xff] }
 0x280   :  { %5053 = vst.msk [vmem:[#allocation2 + $0xd0] sm:$0xff] %vm582_vm2, %v4925_v16  ;;  %v4928_v26 = vmax.f32 %v4800_v63, 0.0  ;;  %v4799_v2 = vadd.f32 %v17687_v8, %v4665_v40  ;;  %v4668_v35 = vadd.f32 %v13937_v38, %v2804_v1  ;;  %14102 = vmatmul.mubr.msk.f32.gmra.mxu1 %vm582_vm2, %v5308_v21  ;;  %14286 = vmatprep.mubr.msk.f32.mxu0 %vm582_vm2, %v6571_v55  ;;  %v6581_v63 = vld [vmem:[#allocation2 + $0x52] ss:$2 sm:$0xff]  ;;  %v6583_v21 = vld [vmem:[#allocation2 + $0x62] ss:$2 sm:$0xff] }
 0x281   :  { %v4148_v28 = vpop.f32.mrf.mxu0  ;;  %v20843_v55 = vld [vmem:[#allocation262_spill] sm:$0xff] }
 0x282   :  { %5056 = vst.msk [vmem:[#allocation2 + $0xe8] sm:$0xff] %vm582_vm2, %v4928_v26  ;;  %v4927_v58 = vmax.f32 %v4799_v2, 0.0  ;;  %v4802_v32 = vadd.f32 %v17687_v8, %v4668_v35  ;;  %v4667_v48 = vadd.f32 %v4148_v28, %v2799_v45  ;;  %v20844_v45 = vld [vmem:[#allocation301_spill] sm:$0xff] }
 0x283   :  { %v13940_v9 = vpop.f32.mrf.mxu0  ;;  %14287 = vmatmul.mubr.msk.f32.vlgmr.msra.gmra.mxu0 %vm582_vm2, %v6573_v60  ;;  %v5310_v31 = vld [vmem:[#allocation2 + $0xc1] ss:$2 sm:$0xff]  ;;  %v2829_v26 = vadd.f32 %v20844_v45, %v20843_v55 }
 0x284   :  { %5055 = vst.msk [vmem:[#allocation2 + $0xe0] sm:$0xff] %vm582_vm2, %v4927_v58  ;;  %v4930_v54 = vmax.f32 %v4802_v32, 0.0  ;;  %v4801_v3 = vadd.f32 %v17687_v8, %v4667_v48  ;;  %v4670_v14 = vadd.f32 %v13940_v9, %v2814_v22  ;;  %14104 = vmatprep.mubr.msk.f32.mxu1 %vm582_vm2, %v5310_v31  ;;  %14289 = vmatprep.mubr.msk.f32.mxu0 %vm582_vm2, %v6575_v10  ;;  %v17998_v22 = vpop.f32.mrf.mxu1  ;;  %v20845_v32 = vld [vmem:[#allocation263_spill] sm:$0xff]  ;;  %v20846_v48 = vld [vmem:[#allocation304_spill] sm:$0xff] }
 0x285   :  { %v4158_v50 = vpop.f32.mrf.mxu0  ;;  %v2844_v60 = vadd.f32 %v20846_v48, %v20845_v32  ;;  %v20855_v48 = vld [vmem:[#allocation268_spill] sm:$0xff] }
 0x286   :  { %5058 = vst.msk [vmem:[#allocation2 + $0xf8] sm:$0xff] %vm582_vm2, %v4930_v54  ;;  %v4929_v29 = vmax.f32 %v4801_v3, 0.0  ;;  %v4804_v30 = vadd.f32 %v17687_v8, %v4670_v14  ;;  %v4669_v13 = vadd.f32 %v4158_v50, %v2809_v23  ;;  %v6585_v23 = vld [vmem:[#allocation2 + $0x72] ss:$2 sm:$0xff]  ;;  %v6587_v14 = vld [vmem:[#allocation2 + $0x82] ss:$2 sm:$0xff] }
 0x287   :  { %v13943_v27 = vpop.f32.mrf.mxu0  ;;  %14290 = vmatmul.mubr.msk.f32.gmra.mxu0 %vm582_vm2, %v6577_v4  ;;  %v5312_v17 = vld [vmem:[#allocation2 + $0xd1] ss:$2 sm:$0xff]  ;;  %v6595_v32 = vld [vmem:[#allocation2 + $0xc2] ss:$2 sm:$0xff] }
 0x288   :  { %5057 = vst.msk [vmem:[#allocation2 + $0xf0] sm:$0xff] %vm582_vm2, %v4929_v29  ;;  %v4932_v24 = vmax.f32 %v4804_v30, 0.0  ;;  %v4803_v7 = vadd.f32 %v17687_v8, %v4669_v13  ;;  %v4672_v20 = vadd.f32 %v13943_v27, %v2824_v25  ;;  %14105 = vmatmul.mubr.msk.f32.gmra.mxu1 %vm582_vm2, %v5312_v17  ;;  %14292 = vmatprep.mubr.msk.f32.mxu0 %vm582_vm2, %v6579_v33  ;;  %v20847_v50 = vld [vmem:[#allocation264_spill] sm:$0xff]  ;;  %v18011_v13 = vpop.f32.mrf.mxu1  ;;  %v20849_v27 = vld [vmem:[#allocation265_spill] sm:$0xff]  ;;  %v20850_v17 = vld [vmem:[#allocation310_spill] sm:$0xff] }
 0x289   :  { %v4168_v12 = vpop.f32.mrf.mxu0  ;;  %v2839_v19 = vadd.f32 %v20848_v52, %v20847_v50  ;;  %v2854_v33 = vadd.f32 %v20850_v17, %v20849_v27  ;;  %v20858_v50 = vld [vmem:[#allocation322_spill] sm:$0xff] }
 0x28a   :  { %5060 = vst.msk [vmem:[#allocation2 + $0x108] sm:$0xff] %vm582_vm2, %v4932_v24  ;;  %v4931_v56 = vmax.f32 %v4803_v7, 0.0  ;;  %v4806_v1 = vadd.f32 %v17687_v8, %v4672_v20  ;;  %v4671_v16 = vadd.f32 %v4168_v12, %v2819_v0  ;;  %v6589_v24 = vld [vmem:[#allocation2 + $0x92] ss:$2 sm:$0xff]  ;;  %v6591_v12 = vld [vmem:[#allocation2 + $0xa2] ss:$2 sm:$0xff] }
 0x28b   :  { %v13946_v40 = vpop.f32.mrf.mxu0  ;;  %14293 = vmatmul.mubr.msk.f32.gmra.mxu0 %vm582_vm2, %v6581_v63  ;;  %v5314_v38 = vld [vmem:[#allocation2 + $0xe1] ss:$2 sm:$0xff]  ;;  %v18024_v63 = vpop.f32.mrf.mxu1 }
 0x28c   :  { %5059 = vst.msk [vmem:[#allocation2 + $0x100] sm:$0xff] %vm582_vm2, %v4931_v56  ;;  %v4934_v2 = vmax.f32 %v4806_v1, 0.0  ;;  %v4805_v35 = vadd.f32 %v17687_v8, %v4671_v16  ;;  %v4674_v28 = vadd.f32 %v13946_v40, %v2834_v61  ;;  %14107 = vmatprep.mubr.msk.f32.mxu1 %vm582_vm2, %v5314_v38  ;;  %14295 = vmatprep.mubr.msk.f32.mxu0 %vm582_vm2, %v6583_v21  ;;  %v20853_v38 = vld [vmem:[#allocation267_spill] sm:$0xff]  ;;  %v20854_v21 = vld [vmem:[#allocation316_spill] sm:$0xff] }
 0x28d   :  { %v4178_v58 = vpop.f32.mrf.mxu0  ;;  %v2849_v61 = vadd.f32 %v20852_v18, %v20851_v59  ;;  %v2864_v55 = vadd.f32 %v20854_v21, %v20853_v38  ;;  %v20861_v18 = vld [vmem:[#allocation271_spill] sm:$0xff] }
 0x28e   :  { %5062 = vst.msk [vmem:[#allocation2 + $0x118] sm:$0xff] %vm582_vm2, %v4934_v2  ;;  %v4933_v9 = vmax.f32 %v4805_v35, 0.0  ;;  %v4808_v31 = vadd.f32 %v17687_v8, %v4674_v28  ;;  %v4673_v10 = vadd.f32 %v4178_v58, %v2829_v26  ;;  %v6593_v35 = vld [vmem:[#allocation2 + $0xb2] ss:$2 sm:$0xff] }
 0x28f   :  { %v13949_v54 = vpop.f32.mrf.mxu0  ;;  %14296 = vmatmul.mubr.msk.f32.gmra.mxu0 %vm582_vm2, %v6585_v23  ;;  %v5316_v3 = vld [vmem:[#allocation2 + $0xf1] ss:$2 sm:$0xff] }
 0x290   :  { %5061 = vst.msk [vmem:[#allocation2 + $0x110] sm:$0xff] %vm582_vm2, %v4933_v9  ;;  %v4936_v25 = vmax.f32 %v4808_v31, 0.0  ;;  %v4807_v29 = vadd.f32 %v17687_v8, %v4673_v10  ;;  %v4676_v30 = vadd.f32 %v13949_v54, %v2844_v60  ;;  %14108 = vmatmul.mubr.msk.f32.gmra.mxu1 %vm582_vm2, %v5316_v3  ;;  %14298 = vmatprep.mubr.msk.f32.mxu0 %vm582_vm2, %v6587_v14  ;;  %v20856_v60 = vld [vmem:[#allocation319_spill] sm:$0xff]  ;;  %v18037_v54 = vpop.f32.mrf.mxu1  ;;  %v20857_v14 = vld [vmem:[#allocation269_spill] sm:$0xff] }
 0x291   :  { %v4188_v4 = vpop.f32.mrf.mxu0  ;;  %v2859_v9 = vadd.f32 %v20856_v60, %v20855_v48  ;;  %v2874_v52 = vadd.f32 %v20858_v50, %v20857_v14 }
 0x292   :  { %5064 = vst.msk [vmem:[#allocation2 + $0x128] sm:$0xff] %vm582_vm2, %v4936_v25  ;;  %v4935_v46 = vmax.f32 %v4807_v29, 0.0  ;;  %v4810_v51 = vadd.f32 %v17687_v8, %v4676_v30  ;;  %v4675_v0 = vadd.f32 %v4188_v4, %v2839_v19  ;;  %v6597_v30 = vld [vmem:[#allocation2 + $0xd2] ss:$2 sm:$0xff] }
 0x293   :  { %v13952_v7 = vpop.f32.mrf.mxu0  ;;  %14299 = vmatmul.mubr.msk.f32.gmra.mxu0 %vm582_vm2, %v6589_v24  ;;  %v5318_v20 = vld [vmem:[#allocation2 + $0x101] ss:$2 sm:$0xff]  ;;  %v6601_v38 = vld [vmem:[#allocation2 + $0xf2] ss:$2 sm:$0xff] }
 0x294   :  { %5063 = vst.msk [vmem:[#allocation2 + $0x120] sm:$0xff] %vm582_vm2, %v4935_v46  ;;  %v4938_v56 = vmax.f32 %v4810_v51, 0.0  ;;  %v4809_v1 = vadd.f32 %v17687_v8, %v4675_v0  ;;  %v4678_v16 = vadd.f32 %v13952_v7, %v2854_v33  ;;  %14110 = vmatprep.mubr.msk.f32.mxu1 %vm582_vm2, %v5318_v20  ;;  %14301 = vmatprep.mubr.msk.f32.mxu0 %vm582_vm2, %v6591_v12  ;;  %v5283_v4 = vld [vmem:[%s20202_s3] sm:$0xff]  ;;  %v20859_v46 = vld [vmem:[#allocation270_spill] sm:$0xff]  ;;  %v18053_v12 = vpop.f32.mrf.mxu1 }
 0x295   :  { %v4198_v40 = vpop.f32.mrf.mxu0  ;;  %v6599_v33 = vld [vmem:[#allocation2 + $0xe2] ss:$2 sm:$0xff]  ;;  %14184 = vmatprep.subr.mxu1 %v5283_v4 }
 0x296   :  { %5066 = vst.msk [vmem:[#allocation2 + $0x138] sm:$0xff] %vm582_vm2, %v4938_v56  ;;  %v4937_v45 = vmax.f32 %v4809_v1, 0.0  ;;  %v4812_v26 = vadd.f32 %v17687_v8, %v4678_v16  ;;  %v4677_v2 = vadd.f32 %v4198_v40, %v2849_v61  ;;  %v20860_v51 = vld [vmem:[#allocation325_spill] sm:$0xff]  ;;  %14185 = vmatpush3.msra.mxu1 %v5283_v4  ;;  %v20862_v61 = vld [vmem:[#allocation328_spill] sm:$0xff]  ;;  %v18066_v48 = vpop.f32.mrf.mxu1 }
 0x297   :  { %v13955_v28 = vpop.f32.mrf.mxu0  ;;  %14302 = vmatmul.mubr.msk.f32.gmra.mxu0 %vm582_vm2, %v6593_v35  ;;  %v5320_v58 = vld [vmem:[#allocation2 + $0x111] ss:$2 sm:$0xff]  ;;  %v2869_v0 = vadd.f32 %v20860_v51, %v20859_v46  ;;  %v2884_v56 = vadd.f32 %v20862_v61, %v20861_v18 }
 0x298   :  { %5065 = vst.msk [vmem:[#allocation2 + $0x130] sm:$0xff] %vm582_vm2, %v4937_v45  ;;  %v4940_v31 = vmax.f32 %v4812_v26, 0.0  ;;  %v4811_v10 = vadd.f32 %v17687_v8, %v4677_v2  ;;  %v4680_v23 = vadd.f32 %v13955_v28, %v2864_v55  ;;  %14111 = vmatmul.mubr.msk.f32.gmra.mxu1 %vm582_vm2, %v5320_v58  ;;  %14304 = vmatprep.mubr.msk.f32.mxu0 %vm582_vm2, %v6595_v32  ;;  %v6603_v45 = vld [vmem:[#allocation2 + $0x102] ss:$2 sm:$0xff]  ;;  %v20863_v26 = vld [vmem:[#allocation272_spill] sm:$0xff]  ;;  %v20864_v2 = vld [vmem:[#allocation331_spill] sm:$0xff]  ;;  %v18079_v46 = vpop.f32.mrf.mxu1 }
 0x299   :  { %v4208_v3 = vpop.f32.mrf.mxu0  ;;  %v2879_v35 = vadd.f32 %v20864_v2, %v20863_v26 }
 0x29a   :  { %5068 = vst.msk [vmem:[#allocation2 + $0x148] sm:$0xff] %vm582_vm2, %v4940_v31  ;;  %v4939_v19 = vmax.f32 %v4811_v10, 0.0  ;;  %v4814_v25 = vadd.f32 %v17687_v8, %v4680_v23  ;;  %v4679_v29 = vadd.f32 %v4208_v3, %v2859_v9  ;;  %v20865_v9 = vld [vmem:[#allocation273_spill] sm:$0xff]  ;;  %v20866_v31 = vld [vmem:[#allocation334_spill] sm:$0xff]  ;;  %v18092_v2 = vpop.f32.mrf.mxu1 }
 0x29b   :  { %v13958_v27 = vpop.f32.mrf.mxu0  ;;  %14305 = vmatmul.mubr.msk.f32.gmra.mxu0 %vm582_vm2, %v6597_v30  ;;  %v5322_v17 = vld [vmem:[#allocation2 + $0x121] ss:$2 sm:$0xff]  ;;  %v2894_v10 = vadd.f32 %v20866_v31, %v20865_v9  ;;  %v6605_v50 = vld [vmem:[#allocation2 + $0x112] ss:$2 sm:$0xff] }
 0x29c   :  { %5067 = vst.msk [vmem:[#allocation2 + $0x140] sm:$0xff] %vm582_vm2, %v4939_v19  ;;  %v4942_v24 = vmax.f32 %v4814_v25, 0.0  ;;  %v4813_v7 = vadd.f32 %v17687_v8, %v4679_v29  ;;  %v4682_v20 = vadd.f32 %v13958_v27, %v2874_v52  ;;  %14113 = vmatprep.mubr.msk.f32.mxu1 %vm582_vm2, %v5322_v17  ;;  %14307 = vmatprep.mubr.msk.f32.mxu0 %vm582_vm2, %v6599_v33  ;;  %v20867_v29 = vld [vmem:[#allocation274_spill] sm:$0xff]  ;;  %v20868_v30 = vld [vmem:[#allocation337_spill] sm:$0xff] }
 0x29d   :  { %v4218_v59 = vpop.f32.mrf.mxu0  ;;  %v2889_v4 = vadd.f32 %v20868_v30, %v20867_v29  ;;  %v18104_v30 = vpop.f32.mrf.mxu1 }
 0x29e   :  { %5070 = vst.msk [vmem:[#allocation2 + $0x158] sm:$0xff] %vm582_vm2, %v4942_v24  ;;  %v4941_v1 = vmax.f32 %v4813_v7, 0.0  ;;  %v4816_v16 = vadd.f32 %v17687_v8, %v4682_v20  ;;  %v4681_v40 = vadd.f32 %v4218_v59, %v2869_v0  ;;  %v20869_v0 = vld [vmem:[#allocation275_spill] sm:$0xff]  ;;  %v20870_v24 = vld [vmem:[#allocation340_spill] sm:$0xff] }
 0x29f   :  { %v13961_v21 = vpop.f32.mrf.mxu0  ;;  %14308 = vmatmul.mubr.msk.f32.gmra.mxu0 %vm582_vm2, %v6601_v38  ;;  %v5324_v55 = vld [vmem:[#allocation2 + $0x131] ss:$2 sm:$0xff]  ;;  %v6607_v25 = vld [vmem:[#allocation2 + $0x122] ss:$2 sm:$0xff]  ;;  %v2904_v7 = vadd.f32 %v20870_v24, %v20869_v0 }
 0x2a0   :  { %5069 = vst.msk [vmem:[#allocation2 + $0x150] sm:$0xff] %vm582_vm2, %v4941_v1  ;;  %v4944_v28 = vmax.f32 %v4816_v16, 0.0  ;;  %v4815_v58 = vadd.f32 %v17687_v8, %v4681_v40  ;;  %v4684_v32 = vadd.f32 %v13961_v21, %v2884_v56  ;;  %14114 = vmatmul.mubr.msk.f32.gmra.mxu1 %vm582_vm2, %v5324_v55  ;;  %14310 = vmatprep.mubr.msk.f32.mxu0 %vm582_vm2, %v6603_v45  ;;  %v20871_v40 = vld [vmem:[#allocation276_spill] sm:$0xff]  ;;  %v20872_v38 = vld [vmem:[#allocation343_spill] sm:$0xff] }
 0x2a1   :  { %v4228_v60 = vpop.f32.mrf.mxu0  ;;  %v2899_v21 = vadd.f32 %v20872_v38, %v20871_v40  ;;  %v18116_v38 = vpop.f32.mrf.mxu1 }
 0x2a2   :  { %5072 = vst.msk [vmem:[#allocation2 + $0x168] sm:$0xff] %vm582_vm2, %v4944_v28  ;;  %v4943_v23 = vmax.f32 %v4815_v58, 0.0  ;;  %v4818_v3 = vadd.f32 %v17687_v8, %v4684_v32  ;;  %v4683_v14 = vadd.f32 %v4228_v60, %v2879_v35  ;;  %v20873_v28 = vld [vmem:[#allocation277_spill] sm:$0xff]  ;;  %v20874_v58 = vld [vmem:[#allocation346_spill] sm:$0xff] }
 0x2a3   :  { %v13964_v52 = vpop.f32.mrf.mxu0  ;;  %14311 = vmatmul.mubr.msk.f32.gmra.mxu0 %vm582_vm2, %v6605_v50  ;;  %v5326_v19 = vld [vmem:[#allocation2 + $0x141] ss:$2 sm:$0xff]  ;;  %v6609_v61 = vld [vmem:[#allocation2 + $0x132] ss:$2 sm:$0xff]  ;;  %v2914_v32 = vadd.f32 %v20874_v58, %v20873_v28 }
 0x2a4   :  { %5071 = vst.msk [vmem:[#allocation2 + $0x160] sm:$0xff] %vm582_vm2, %v4943_v23  ;;  %v4946_v27 = vmax.f32 %v4818_v3, 0.0  ;;  %v4817_v17 = vadd.f32 %v17687_v8, %v4683_v14  ;;  %v4686_v33 = vadd.f32 %v13964_v52, %v2894_v10  ;;  %14116 = vmatprep.mubr.msk.f32.mxu1 %vm582_vm2, %v5326_v19  ;;  %14313 = vmatprep.mubr.msk.f32.mxu0 %vm582_vm2, %v6607_v25  ;;  %v20875_v14 = vld [vmem:[#allocation278_spill] sm:$0xff]  ;;  %v20876_v50 = vld [vmem:[#allocation349_spill] sm:$0xff] }
 0x2a5   :  { %v4238_v51 = vpop.f32.mrf.mxu0  ;;  %v2909_v52 = vadd.f32 %v20876_v50, %v20875_v14 }
 0x2a6   :  { %5074 = vst.msk [vmem:[#allocation2 + $0x178] sm:$0xff] %vm582_vm2, %v4946_v27  ;;  %v4945_v20 = vmax.f32 %v4817_v17, 0.0  ;;  %v4820_v59 = vadd.f32 %v17687_v8, %v4686_v33  ;;  %v4685_v18 = vadd.f32 %v4238_v51, %v2889_v4  ;;  %v20877_v27 = vld [vmem:[#allocation279_spill] sm:$0xff]  ;;  %v20878_v17 = vld [vmem:[#allocation352_spill] sm:$0xff] }
 0x2a7   :  { %v13967_v56 = vpop.f32.mrf.mxu0  ;;  %14314 = vmatmul.mubr.msk.f32.gmra.mxu0 %vm582_vm2, %v6609_v61  ;;  %v5328_v1 = vld [vmem:[#allocation2 + $0x151] ss:$2 sm:$0xff]  ;;  %v6611_v16 = vld [vmem:[#allocation2 + $0x142] ss:$2 sm:$0xff]  ;;  %v2924_v33 = vadd.f32 %v20878_v17, %v20877_v27  ;;  %v18136_v17 = vld [vmem:[%s20201_s2] ss:$0 sm:$0xff] }
 0x2a8   :  { %5073 = vst.msk [vmem:[#allocation2 + $0x170] sm:$0xff] %vm582_vm2, %v4945_v20  ;;  %v4948_v55 = vmax.f32 %v4820_v59, 0.0  ;;  %v4819_v45 = vadd.f32 %v17687_v8, %v4685_v18  ;;  %v4688_v26 = vadd.f32 %v13967_v56, %v2904_v7  ;;  %14117 = vmatmul.mubr.msk.f32.gmra.mxu1 %vm582_vm2, %v5328_v1  ;;  %14316 = vmatprep.mubr.msk.f32.mxu0 %vm582_vm2, %v6611_v16  ;;  %v20879_v18 = vld [vmem:[#allocation280_spill] sm:$0xff]  ;;  %v20880_v61 = vld [vmem:[#allocation355_spill] sm:$0xff] }
 0x2a9   :  { %v4248_v35 = vpop.f32.mrf.mxu0  ;;  %v2919_v56 = vadd.f32 %v20880_v61, %v20879_v18 }
 0x2aa   :  { %5076 = vst.msk [vmem:[#allocation2 + $0x188] sm:$0xff] %vm582_vm2, %v4948_v55  ;;  %v4947_v60 = vmax.f32 %v4819_v45, 0.0  ;;  %v4822_v9 = vadd.f32 %v17687_v8, %v4688_v26  ;;  %v4687_v31 = vadd.f32 %v4248_v35, %v2899_v21  ;;  %v20881_v55 = vld [vmem:[#allocation281_spill] sm:$0xff]  ;;  %v20882_v45 = vld [vmem:[#allocation358_spill] sm:$0xff] }
 0x2ab   :  { %v13970_v10 = vpop.f32.mrf.mxu0  ;;  %v5330_v23 = vld [vmem:[#allocation2 + $0x161] ss:$2 sm:$0xff]  ;;  %v6613_v3 = vld [vmem:[#allocation2 + $0x152] ss:$2 sm:$0xff]  ;;  %v2934_v26 = vadd.f32 %v20882_v45, %v20881_v55 }
 0x2ac   :  { %5075 = vst.msk [vmem:[#allocation2 + $0x180] sm:$0xff] %vm582_vm2, %v4947_v60  ;;  %v4950_v19 = vmax.f32 %v4822_v9, 0.0  ;;  %v4821_v25 = vadd.f32 %v17687_v8, %v4687_v31  ;;  %v4690_v29 = vadd.f32 %v13970_v10, %v2914_v32  ;;  %14119 = vmatprep.mubr.msk.f32.mxu1 %vm582_vm2, %v5330_v23  ;;  %14317 = vmatmul.mubr.msk.f32.gmra.mxu0 %vm582_vm2, %v6613_v3  ;;  %v20883_v31 = vld [vmem:[#allocation282_spill] sm:$0xff]  ;;  %v20884_v10 = vld [vmem:[#allocation361_spill] sm:$0xff] }
 0x2ad   :  { %v4258_v4 = vpop.f32.mrf.mxu0  ;;  %v2929_v23 = vadd.f32 %v20884_v10, %v20883_v31 }
 0x2ae   :  { %5078 = vst.msk [vmem:[#allocation2 + $0x198] sm:$0xff] %vm582_vm2, %v4950_v19  ;;  %v4949_v51 = vmax.f32 %v4821_v25, 0.0  ;;  %v4824_v0 = vadd.f32 %v17687_v8, %v4690_v29  ;;  %v4689_v24 = vadd.f32 %v4258_v4, %v2909_v52  ;;  %v18128_v52 = vpop.f32.mrf.mxu1  ;;  %v20885_v25 = vld [vmem:[#allocation283_spill] sm:$0xff]  ;;  %v20886_v29 = vld [vmem:[#allocation364_spill] sm:$0xff] }
 0x2af   :  { %v13973_v7 = vpop.f32.mrf.mxu0  ;;  %v5332_v20 = vld [vmem:[#allocation2 + $0x171] ss:$2 sm:$0xff]  ;;  %v6615_v59 = vld [vmem:[#allocation2 + $0x162] ss:$2 sm:$0xff]  ;;  %v2944_v4 = vadd.f32 %v20886_v29, %v20885_v25 }
 0x2b0   :  { %5077 = vst.msk [vmem:[#allocation2 + $0x190] sm:$0xff] %vm582_vm2, %v4949_v51  ;;  %v4952_v1 = vmax.f32 %v4824_v0, 0.0  ;;  %v4823_v16 = vadd.f32 %v17687_v8, %v4689_v24  ;;  %v4692_v40 = vadd.f32 %v13973_v7, %v2924_v33  ;;  %14120 = vmatmul.mubr.msk.f32.gmra.mxu1 %vm582_vm2, %v5332_v20  ;;  %14319 = vmatprep.mubr.msk.f32.mxu0 %vm582_vm2, %v6615_v59  ;;  %v20887_v7 = vld [vmem:[#allocation284_spill] sm:$0xff]  ;;  %v20888_v20 = vld [vmem:[#allocation367_spill] sm:$0xff] }
 0x2b1   :  { %v4268_v21 = vpop.f32.mrf.mxu0  ;;  %v2939_v59 = vadd.f32 %v20888_v20, %v20887_v7  ;;  %v20894_v25 = vld [vmem:[#allocation376_spill] sm:$0xff]  ;;  %v20896_v7 = vld [vmem:[#allocation379_spill] sm:$0xff] }
 0x2b2   :  { %5080 = vst.msk [vmem:[#allocation2 + $0x1a8] sm:$0xff] %vm582_vm2, %v4952_v1  ;;  %v4951_v35 = vmax.f32 %v4823_v16, 0.0  ;;  %v4826_v28 = vadd.f32 %v17687_v8, %v4692_v40  ;;  %v4691_v58 = vadd.f32 %v4268_v21, %v2919_v56  ;;  %v18145_v1 = vpop.f32.mrf.mxu1  ;;  %v20889_v40 = vld [vmem:[#allocation285_spill] sm:$0xff]  ;;  %v20890_v21 = vld [vmem:[#allocation370_spill] sm:$0xff] }
 0x2b3   :  { %v13976_v32 = vpop.f32.mrf.mxu0  ;;  %v5334_v60 = vld [vmem:[#allocation2 + $0x181] ss:$2 sm:$0xff]  ;;  %v6617_v9 = vld [vmem:[#allocation2 + $0x172] ss:$2 sm:$0xff]  ;;  %v2954_v55 = vadd.f32 %v20890_v21, %v20889_v40 }
 0x2b4   :  { %5079 = vst.msk [vmem:[#allocation2 + $0x1a0] sm:$0xff] %vm582_vm2, %v4951_v35  ;;  %v4954_v3 = vmax.f32 %v4826_v28, 0.0  ;;  %v4825_v14 = vadd.f32 %v17687_v8, %v4691_v58  ;;  %v4694_v50 = vadd.f32 %v13976_v32, %v2934_v26  ;;  %14122 = vmatprep.mubr.msk.f32.mxu1 %vm582_vm2, %v5334_v60  ;;  %14320 = vmatmul.mubr.msk.f32.gmra.mxu0 %vm582_vm2, %v6617_v9  ;;  %v20891_v60 = vld [vmem:[#allocation286_spill] sm:$0xff]  ;;  %v20892_v9 = vld [vmem:[#allocation373_spill] sm:$0xff] }
 0x2b5   :  { %v4278_v19 = vpop.f32.mrf.mxu0  ;;  %v2949_v31 = vadd.f32 %v20892_v9, %v20891_v60  ;;  %v20897_v40 = vld [vmem:[#allocation289_spill] sm:$0xff]  ;;  %v20898_v21 = vld [vmem:[#allocation382_spill] sm:$0xff]  ;;  %v20900_v9 = vld [vmem:[#allocation384_spill] sm:$0xff] }
 0x2b6   :  { %5082 = vst.msk [vmem:[#allocation2 + $0x1b8] sm:$0xff] %vm582_vm2, %v4954_v3  ;;  %v4953_v27 = vmax.f32 %v4825_v14, 0.0  ;;  %v4828_v8 = vadd.f32 %v18136_v17, %v4694_v50  ;;  %v4693_v33 = vadd.f32 %v4278_v19, %v2929_v23  ;;  %v18157_v14 = vpop.f32.mrf.mxu1  ;;  %v20893_v19 = vld [vmem:[#allocation287_spill] sm:$0xff]  ;;  %v20899_v60 = vld [vmem:[#allocation290_spill] sm:$0xff] }
 0x2b7   :  { %v13979_v51 = vpop.f32.mrf.mxu0  ;;  %v5336_v0 = vld [vmem:[#allocation2 + $0x191] ss:$2 sm:$0xff]  ;;  %v6619_v24 = vld [vmem:[#allocation2 + $0x182] ss:$2 sm:$0xff]  ;;  %v2964_v29 = vadd.f32 %v20894_v25, %v20893_v19 }
 0x2b8   :  { %5081 = vst.msk [vmem:[#allocation2 + $0x1b0] sm:$0xff] %vm582_vm2, %v4953_v27  ;;  %v4956_v18 = vmax.f32 %v4828_v8, 0.0  ;;  %v4827_v61 = vadd.f32 %v18136_v17, %v4693_v33  ;;  %v4696_v56 = vadd.f32 %v13979_v51, %v2944_v4  ;;  %14123 = vmatmul.mubr.msk.f32.gmra.mxu1 %vm582_vm2, %v5336_v0  ;;  %14322 = vmatprep.mubr.msk.f32.mxu0 %vm582_vm2, %v6619_v24  ;;  %v20895_v24 = vld [vmem:[#allocation288_spill] sm:$0xff]  ;;  %v20901_v25 = vld [vmem:[#allocation291_spill] sm:$0xff] }
 0x2b9   :  { %v4288_v16 = vpop.f32.mrf.mxu0  ;;  %v2959_v20 = vadd.f32 %v20896_v7, %v20895_v24 }
 0x2ba   :  { %5084 = vst.msk [vmem:[#allocation2 + $0x1c8] sm:$0xff] %vm582_vm2, %v4956_v18  ;;  %v4955_v45 = vmax.f32 %v4827_v61, 0.0  ;;  %v4830_v26 = vadd.f32 %v18136_v17, %v4696_v56  ;;  %v4695_v35 = vadd.f32 %v4288_v16, %v2939_v59  ;;  %v18169_v56 = vpop.f32.mrf.mxu1 }
 0x2bb   :  { %v13982_v28 = vpop.f32.mrf.mxu0  ;;  %v5338_v58 = vld [vmem:[#allocation2 + $0x1a1] ss:$2 sm:$0xff]  ;;  %v6621_v32 = vld [vmem:[#allocation2 + $0x192] ss:$2 sm:$0xff] }
 0x2bc   :  { %5083 = vst.msk [vmem:[#allocation2 + $0x1c0] sm:$0xff] %vm582_vm2, %v4955_v45  ;;  %v4958_v10 = vmax.f32 %v4830_v26, 0.0  ;;  %v4829_v23 = vadd.f32 %v18136_v17, %v4695_v35  ;;  %v4698_v3 = vadd.f32 %v13982_v28, %v2954_v55  ;;  %14125 = vmatprep.mubr.msk.f32.mxu1 %vm582_vm2, %v5338_v58  ;;  %14323 = vmatmul.mubr.msk.f32.gmra.mxu0 %vm582_vm2, %v6621_v32 }
 0x2bd   :  { %v4298_v50 = vpop.f32.mrf.mxu0  ;;  %v2974_v55 = vadd.f32 %v20898_v21, %v20897_v40 }
 0x2be   :  { %5086 = vst.msk [vmem:[#allocation2 + $0x1d8] sm:$0xff] %vm582_vm2, %v4958_v10  ;;  %v4957_v4 = vmax.f32 %v4829_v23, 0.0  ;;  %v4832_v27 = vadd.f32 %v18136_v17, %v4698_v3  ;;  %v4697_v8 = vadd.f32 %v4298_v50, %v2949_v31  ;;  %v2969_v31 = vadd.f32 %v20900_v9, %v20899_v60  ;;  %v18181_v50 = vpop.f32.mrf.mxu1 }
 0x2bf   :  { %v13985_v33 = vpop.f32.mrf.mxu0  ;;  %v5340_v51 = vld [vmem:[#allocation2 + $0x1b1] ss:$2 sm:$0xff]  ;;  %v6623_v0 = vld [vmem:[#allocation2 + $0x1a2] ss:$2 sm:$0xff] }
 0x2c0   :  { %5085 = vst.msk [vmem:[#allocation2 + $0x1d0] sm:$0xff] %vm582_vm2, %v4957_v4  ;;  %v4960_v59 = vmax.f32 %v4832_v27, 0.0  ;;  %v4831_v18 = vadd.f32 %v18136_v17, %v4697_v8  ;;  %v4700_v61 = vadd.f32 %v13985_v33, %v2964_v29  ;;  %14126 = vmatmul.mubr.msk.f32.gmra.mxu1 %vm582_vm2, %v5340_v51  ;;  %14325 = vmatprep.mubr.msk.f32.mxu0 %vm582_vm2, %v6623_v0  ;;  %v20902_v33 = vld [vmem:[#allocation293_spill] sm:$0xff] }
 0x2c1   :  { %v4308_v16 = vpop.f32.mrf.mxu0  ;;  %v2984_v29 = vadd.f32 %v17709_v37, %v20901_v25  ;;  %v2979_v51 = vadd.f32 %v17725_v39, %v20902_v33  ;;  %v18193_v37 = vpop.f32.mrf.mxu1  ;;  %v20903_v39 = vld [vmem:[#allocation294_spill] sm:$0xff] }
 0x2c2   :  { %5088 = vst.msk [vmem:[#allocation2 + $0x1e8] sm:$0xff] %vm582_vm2, %v4960_v59  ;;  %v4959_v45 = vmax.f32 %v4831_v18, 0.0  ;;  %v4834_v26 = vadd.f32 %v18136_v17, %v4700_v61  ;;  %v4699_v35 = vadd.f32 %v4308_v16, %v2959_v20  ;;  %v20461_v16 = vmov 0.0  }
 0x2c3   :  { %v13988_v28 = vpop.f32.mrf.mxu0  ;;  %v5342_v58 = vld [vmem:[#allocation2 + $0x1c1] ss:$2 sm:$0xff]  ;;  %v6625_v32 = vld [vmem:[#allocation2 + $0x1b2] ss:$2 sm:$0xff]  ;;  %583 = vst.msk [vmem:[#allocation2 + $0x400] sm:$0xff] %vm582_vm2, %v20461_v16  ;;  %v2994_v40 = vadd.f32 %v17741_v42, %v20903_v39  ;;  %v18207_v42 = vpop.f32.mrf.mxu1 }
 0x2c4   :  { %5087 = vst.msk [vmem:[#allocation2 + $0x1e0] sm:$0xff] %vm582_vm2, %v4959_v45  ;;  %v4962_v10 = vmax.f32 %v4834_v26, 0.0  ;;  %v4833_v23 = vadd.f32 %v18136_v17, %v4699_v35  ;;  %v4702_v3 = vadd.f32 %v13988_v28, %v2974_v55  ;;  %14128 = vmatprep.mubr.msk.f32.mxu1 %vm582_vm2, %v5342_v58  ;;  %14326 = vmatmul.mubr.msk.f32.gmra.mxu0 %vm582_vm2, %v6625_v32  ;;  %v20904_v58 = vld [vmem:[#allocation296_spill] sm:$0xff] }
 0x2c5   :  { %v4318_v19 = vpop.f32.mrf.mxu0  ;;  %v2989_v32 = vadd.f32 %v17758_v53, %v20904_v58  ;;  %585 = vst.msk [vmem:[#allocation3 + $0x200] sm:$0xff] %vm584_vm3, %v20461_v16  ;;  %v18773_v16 = vld [vmem:[%s20204_s5 + $0x18] sm:$0xff] }
 0x2c6   :  { %5090 = vst.msk [vmem:[#allocation2 + $0x1f8] sm:$0xff] %vm582_vm2, %v4962_v10  ;;  %v4961_v4 = vmax.f32 %v4833_v23, 0.0  ;;  %v4836_v27 = vadd.f32 %v18136_v17, %v4702_v3  ;;  %v4701_v8 = vadd.f32 %v4318_v19, %v2969_v31  ;;  %v20905_v23 = vld [vmem:[#allocation297_spill] sm:$0xff] }
 0x2c7   :  { %v13991_v0 = vpop.f32.mrf.mxu0  ;;  %v5344_v24 = vld [vmem:[#allocation2 + $0x1d1] ss:$2 sm:$0xff]  ;;  %v6627_v7 = vld [vmem:[#allocation2 + $0x1c2] ss:$2 sm:$0xff]  ;;  %v3004_v3 = vadd.f32 %v17775_v49, %v20905_v23  ;;  %v18219_v49 = vpop.f32.mrf.mxu1 }
 0x2c8   :  { %5089 = vst.msk [vmem:[#allocation2 + $0x1f0] sm:$0xff] %vm582_vm2, %v4961_v4  ;;  %v4964_v20 = vmax.f32 %v4836_v27, 0.0  ;;  %v4835_v59 = vadd.f32 %v18136_v17, %v4701_v8  ;;  %v4704_v18 = vadd.f32 %v13991_v0, %v2984_v29  ;;  %14129 = vmatmul.mubr.msk.f32.gmra.mxu1 %vm582_vm2, %v5344_v24  ;;  %14328 = vmatprep.mubr.msk.f32.mxu0 %vm582_vm2, %v6627_v7  ;;  %v20906_v8 = vld [vmem:[#allocation299_spill] sm:$0xff] }
 0x2c9   :  { %v4328_v61 = vpop.f32.mrf.mxu0  ;;  %v2999_v33 = vadd.f32 %v17795_v6, %v20906_v8  ;;  %v20911_v8 = vld [vmem:[#allocation306_spill] sm:$0xff] }
 0x2ca   :  { %5092 = vst.msk [vmem:[#allocation2 + $0x208] sm:$0xff] %vm582_vm2, %v4964_v20  ;;  %v4963_v21 = vmax.f32 %v4835_v59, 0.0  ;;  %v4838_v55 = vadd.f32 %v18136_v17, %v4704_v18  ;;  %v4703_v45 = vadd.f32 %v4328_v61, %v2979_v51  ;;  %v20907_v20 = vld [vmem:[#allocation300_spill] sm:$0xff] }
 0x2cb   :  { %v13994_v26 = vpop.f32.mrf.mxu0  ;;  %v5346_v35 = vld [vmem:[#allocation2 + $0x1e1] ss:$2 sm:$0xff]  ;;  %v6629_v28 = vld [vmem:[#allocation2 + $0x1d2] ss:$2 sm:$0xff]  ;;  %v3014_v59 = vadd.f32 %v17812_v57, %v20907_v20  ;;  %v18231_v57 = vpop.f32.mrf.mxu1 }
 0x2cc   :  { %5091 = vst.msk [vmem:[#allocation2 + $0x200] sm:$0xff] %vm582_vm2, %v4963_v21  ;;  %v4966_v60 = vmax.f32 %v4838_v55, 0.0  ;;  %v4837_v9 = vadd.f32 %v18136_v17, %v4703_v45  ;;  %v4706_v31 = vadd.f32 %v13994_v26, %v2994_v40  ;;  %14131 = vmatprep.mubr.msk.f32.mxu1 %vm582_vm2, %v5346_v35  ;;  %14329 = vmatmul.mubr.msk.f32.gmra.mxu0 %vm582_vm2, %v6629_v28  ;;  %v20908_v55 = vld [vmem:[#allocation302_spill] sm:$0xff] }
 0x2cd   :  { %v4338_v10 = vpop.f32.mrf.mxu0  ;;  %v3009_v45 = vadd.f32 %v17832_v62, %v20908_v55 }
 0x2ce   :  { %5094 = vst.msk [vmem:[#allocation2 + $0x218] sm:$0xff] %vm582_vm2, %v4966_v60  ;;  %v4965_v19 = vmax.f32 %v4837_v9, 0.0  ;;  %v4840_v53 = vadd.f32 %v18136_v17, %v4706_v31  ;;  %v4705_v25 = vadd.f32 %v4338_v10, %v2989_v32  ;;  %v20909_v32 = vld [vmem:[#allocation303_spill] sm:$0xff] }
 0x2cf   :  { %v13997_v29 = vpop.f32.mrf.mxu0  ;;  %v5348_v4 = vld [vmem:[#allocation2 + $0x1f1] ss:$2 sm:$0xff]  ;;  %v6631_v27 = vld [vmem:[#allocation2 + $0x1e2] ss:$2 sm:$0xff]  ;;  %v3024_v60 = vadd.f32 %v17851_v34, %v20909_v32  ;;  %v18243_v34 = vpop.f32.mrf.mxu1 }
 0x2d0   :  { %5093 = vst.msk [vmem:[#allocation2 + $0x210] sm:$0xff] %vm582_vm2, %v4965_v19  ;;  %v4968_v51 = vmax.f32 %v4840_v53, 0.0  ;;  %v4839_v0 = vadd.f32 %v18136_v17, %v4705_v25  ;;  %v4708_v24 = vadd.f32 %v13997_v29, %v3004_v3  ;;  %14132 = vmatmul.mubr.msk.f32.gmra.mxu1 %vm582_vm2, %v5348_v4  ;;  %14331 = vmatprep.mubr.msk.f32.mxu0 %vm582_vm2, %v6631_v27  ;;  %v20910_v19 = vld [vmem:[#allocation305_spill] sm:$0xff]  ;;  %v20914_v32 = vld [vmem:[#allocation311_spill] sm:$0xff] }
 0x2d1   :  { %v4348_v7 = vpop.f32.mrf.mxu0  ;;  %v3019_v53 = vadd.f32 %v17870_v36, %v20910_v19 }
 0x2d2   :  { %5096 = vst.msk [vmem:[#allocation2 + $0x228] sm:$0xff] %vm582_vm2, %v4968_v51  ;;  %v4967_v18 = vmax.f32 %v4839_v0, 0.0  ;;  %v4842_v6 = vadd.f32 %v18136_v17, %v4708_v24  ;;  %v4707_v61 = vadd.f32 %v4348_v7, %v2999_v33  ;;  %v3034_v33 = vadd.f32 %v17889_v5, %v20911_v8  ;;  %v18255_v5 = vpop.f32.mrf.mxu1 }
 0x2d3   :  { %v14000_v39 = vpop.f32.mrf.mxu0  ;;  %v5350_v40 = vld [vmem:[#allocation2 + $0x201] ss:$2 sm:$0xff]  ;;  %v6633_v21 = vld [vmem:[#allocation2 + $0x1f2] ss:$2 sm:$0xff] }
 0x2d4   :  { %5095 = vst.msk [vmem:[#allocation2 + $0x220] sm:$0xff] %vm582_vm2, %v4967_v18  ;;  %v4970_v26 = vmax.f32 %v4842_v6, 0.0  ;;  %v4841_v35 = vadd.f32 %v18136_v17, %v4707_v61  ;;  %v4710_v28 = vadd.f32 %v14000_v39, %v3014_v59  ;;  %14134 = vmatprep.mubr.msk.f32.mxu1 %vm582_vm2, %v5350_v40  ;;  %14332 = vmatmul.mubr.msk.f32.gmra.mxu0 %vm582_vm2, %v6633_v21  ;;  %v20912_v59 = vld [vmem:[#allocation308_spill] sm:$0xff]  ;;  %v20913_v21 = vld [vmem:[#allocation309_spill] sm:$0xff] }
 0x2d5   :  { %v4358_v58 = vpop.f32.mrf.mxu0  ;;  %v3029_v18 = vadd.f32 %v17908_v41, %v20912_v59  ;;  %v3044_v55 = vadd.f32 %v17927_v11, %v20913_v21  ;;  %v18267_v11 = vpop.f32.mrf.mxu1 }
 0x2d6   :  { %5098 = vst.msk [vmem:[#allocation2 + $0x238] sm:$0xff] %vm582_vm2, %v4970_v26  ;;  %v4969_v9 = vmax.f32 %v4841_v35, 0.0  ;;  %v4844_v62 = vadd.f32 %v18136_v17, %v4710_v28  ;;  %v4709_v31 = vadd.f32 %v4358_v58, %v3009_v45 }
 0x2d7   :  { %v14003_v10 = vpop.f32.mrf.mxu0  ;;  %v5352_v23 = vld [vmem:[#allocation2 + $0x211] ss:$2 sm:$0xff]  ;;  %v6635_v3 = vld [vmem:[#allocation2 + $0x202] ss:$2 sm:$0xff] }
 0x2d8   :  { %5097 = vst.msk [vmem:[#allocation2 + $0x230] sm:$0xff] %vm582_vm2, %v4969_v9  ;;  %v4972_v25 = vmax.f32 %v4844_v62, 0.0  ;;  %v4843_v29 = vadd.f32 %v18136_v17, %v4709_v31  ;;  %v4712_v4 = vadd.f32 %v14003_v10, %v3024_v60  ;;  %14135 = vmatmul.mubr.msk.f32.gmra.mxu1 %vm582_vm2, %v5352_v23  ;;  %14334 = vmatprep.mubr.msk.f32.mxu0 %vm582_vm2, %v6635_v3  ;;  %v20915_v23 = vld [vmem:[#allocation312_spill] sm:$0xff] }
 0x2d9   :  { %v4368_v27 = vpop.f32.mrf.mxu0  ;;  %v3039_v60 = vadd.f32 %v17946_v47, %v20914_v32  ;;  %v3054_v3 = vadd.f32 %v17959_v15, %v20915_v23  ;;  %v18279_v15 = vpop.f32.mrf.mxu1 }
 0x2da   :  { %5100 = vst.msk [vmem:[#allocation2 + $0x248] sm:$0xff] %vm582_vm2, %v4972_v25  ;;  %v4971_v51 = vmax.f32 %v4843_v29, 0.0  ;;  %v4846_v36 = vadd.f32 %v18136_v17, %v4712_v4  ;;  %v4711_v0 = vadd.f32 %v4368_v27, %v3019_v53  ;;  %v20916_v27 = vld [vmem:[#allocation314_spill] sm:$0xff] }
 0x2db   :  { %v14006_v24 = vpop.f32.mrf.mxu0  ;;  %v5354_v7 = vld [vmem:[#allocation2 + $0x221] ss:$2 sm:$0xff]  ;;  %v6637_v20 = vld [vmem:[#allocation2 + $0x212] ss:$2 sm:$0xff]  ;;  %v3049_v8 = vadd.f32 %v17972_v43, %v20916_v27 }
 0x2dc   :  { %5099 = vst.msk [vmem:[#allocation2 + $0x240] sm:$0xff] %vm582_vm2, %v4971_v51  ;;  %v4974_v6 = vmax.f32 %v4846_v36, 0.0  ;;  %v4845_v61 = vadd.f32 %v18136_v17, %v4711_v0  ;;  %v4714_v39 = vadd.f32 %v14006_v24, %v3034_v33  ;;  %14137 = vmatprep.mubr.msk.f32.mxu1 %vm582_vm2, %v5354_v7  ;;  %14335 = vmatmul.mubr.msk.f32.gmra.mxu0 %vm582_vm2, %v6637_v20  ;;  %v20917_v24 = vld [vmem:[#allocation315_spill] sm:$0xff] }
 0x2dd   :  { %v4378_v40 = vpop.f32.mrf.mxu0  ;;  %v3064_v7 = vadd.f32 %v17985_v44, %v20917_v24  ;;  %v18291_v44 = vpop.f32.mrf.mxu1 }
 0x2de   :  { %5102 = vst.msk [vmem:[#allocation2 + $0x258] sm:$0xff] %vm582_vm2, %v4974_v6  ;;  %v4973_v45 = vmax.f32 %v4845_v61, 0.0  ;;  %v4848_v41 = vadd.f32 %v18136_v17, %v4714_v39  ;;  %v4713_v26 = vadd.f32 %v4378_v40, %v3029_v18  ;;  %v20918_v39 = vld [vmem:[#allocation317_spill] sm:$0xff] }
 0x2df   :  { %v14009_v35 = vpop.f32.mrf.mxu0  ;;  %v5356_v28 = vld [vmem:[#allocation2 + $0x231] ss:$2 sm:$0xff]  ;;  %v6639_v58 = vld [vmem:[#allocation2 + $0x222] ss:$2 sm:$0xff]  ;;  %v3059_v40 = vadd.f32 %v17998_v22, %v20918_v39 }
 0x2e0   :  { %5101 = vst.msk [vmem:[#allocation2 + $0x250] sm:$0xff] %vm582_vm2, %v4973_v45  ;;  %v4976_v9 = vmax.f32 %v4848_v41, 0.0  ;;  %v4847_v62 = vadd.f32 %v18136_v17, %v4713_v26  ;;  %v4716_v31 = vadd.f32 %v14009_v35, %v3044_v55  ;;  %14138 = vmatmul.mubr.msk.f32.gmra.mxu1 %vm582_vm2, %v5356_v28  ;;  %14337 = vmatprep.mubr.msk.f32.mxu0 %vm582_vm2, %v6639_v58  ;;  %v20919_v26 = vld [vmem:[#allocation318_spill] sm:$0xff] }
 0x2e1   :  { %v4388_v10 = vpop.f32.mrf.mxu0  ;;  %v3074_v35 = vadd.f32 %v18011_v13, %v20919_v26  ;;  %v18303_v13 = vpop.f32.mrf.mxu1 }
 0x2e2   :  { %5104 = vst.msk [vmem:[#allocation2 + $0x268] sm:$0xff] %vm582_vm2, %v4976_v9  ;;  %v4975_v19 = vmax.f32 %v4847_v62, 0.0  ;;  %v4850_v47 = vadd.f32 %v18136_v17, %v4716_v31  ;;  %v4715_v53 = vadd.f32 %v4388_v10, %v3039_v60  ;;  %v20920_v62 = vld [vmem:[#allocation320_spill] sm:$0xff] }
 0x2e3   :  { %v14012_v25 = vpop.f32.mrf.mxu0  ;;  %v5358_v29 = vld [vmem:[#allocation2 + $0x241] ss:$2 sm:$0xff]  ;;  %v6641_v4 = vld [vmem:[#allocation2 + $0x232] ss:$2 sm:$0xff]  ;;  %v3069_v31 = vadd.f32 %v18024_v63, %v20920_v62 }
 0x2e4   :  { %5103 = vst.msk [vmem:[#allocation2 + $0x260] sm:$0xff] %vm582_vm2, %v4975_v19  ;;  %v4978_v33 = vmax.f32 %v4850_v47, 0.0  ;;  %v4849_v51 = vadd.f32 %v18136_v17, %v4715_v53  ;;  %v4718_v36 = vadd.f32 %v14012_v25, %v3054_v3  ;;  %14140 = vmatprep.mubr.msk.f32.mxu1 %vm582_vm2, %v5358_v29  ;;  %14338 = vmatmul.mubr.msk.f32.gmra.mxu0 %vm582_vm2, %v6641_v4  ;;  %v20921_v47 = vld [vmem:[#allocation321_spill] sm:$0xff] }
 0x2e5   :  { %v4398_v0 = vpop.f32.mrf.mxu0  ;;  %v3084_v53 = vadd.f32 %v18037_v54, %v20921_v47  ;;  %v18315_v54 = vpop.f32.mrf.mxu1  ;;  %v20926_v62 = vld [vmem:[#allocation329_spill] sm:$0xff]  ;;  %v20927_v47 = vld [vmem:[#allocation330_spill] sm:$0xff] }
 0x2e6   :  { %5106 = vst.msk [vmem:[#allocation2 + $0x278] sm:$0xff] %vm582_vm2, %v4978_v33  ;;  %v4977_v20 = vmax.f32 %v4849_v51, 0.0  ;;  %v4852_v43 = vadd.f32 %v18136_v17, %v4718_v36  ;;  %v4717_v59 = vadd.f32 %v4398_v0, %v3049_v8  ;;  %v20922_v33 = vld [vmem:[#allocation323_spill] sm:$0xff] }
 0x2e7   :  { %v14015_v18 = vpop.f32.mrf.mxu0  ;;  %v5360_v6 = vld [vmem:[#allocation2 + $0x251] ss:$2 sm:$0xff]  ;;  %v6643_v61 = vld [vmem:[#allocation2 + $0x242] ss:$2 sm:$0xff]  ;;  %v3079_v51 = vadd.f32 %v18053_v12, %v20922_v33 }
 0x2e8   :  { %5105 = vst.msk [vmem:[#allocation2 + $0x270] sm:$0xff] %vm582_vm2, %v4977_v20  ;;  %v4980_v21 = vmax.f32 %v4852_v43, 0.0  ;;  %v4851_v55 = vadd.f32 %v18136_v17, %v4717_v59  ;;  %v4720_v45 = vadd.f32 %v14015_v18, %v3064_v7  ;;  %14141 = vmatmul.mubr.msk.f32.gmra.mxu1 %vm582_vm2, %v5360_v6  ;;  %14340 = vmatprep.mubr.msk.f32.mxu0 %vm582_vm2, %v6643_v61  ;;  %v20923_v20 = vld [vmem:[#allocation324_spill] sm:$0xff] }
 0x2e9   :  { %v4408_v41 = vpop.f32.mrf.mxu0  ;;  %v3094_v43 = vadd.f32 %v18066_v48, %v20923_v20  ;;  %v18327_v48 = vpop.f32.mrf.mxu1 }
 0x2ea   :  { %5108 = vst.msk [vmem:[#allocation2 + $0x288] sm:$0xff] %vm582_vm2, %v4980_v21  ;;  %v4979_v28 = vmax.f32 %v4851_v55, 0.0  ;;  %v4854_v22 = vadd.f32 %v18136_v17, %v4720_v45  ;;  %v4719_v58 = vadd.f32 %v4408_v41, %v3059_v40  ;;  %v20924_v40 = vld [vmem:[#allocation326_spill] sm:$0xff] }
 0x2eb   :  { %v14018_v32 = vpop.f32.mrf.mxu0  ;;  %v5362_v60 = vld [vmem:[#allocation2 + $0x261] ss:$2 sm:$0xff]  ;;  %v6645_v9 = vld [vmem:[#allocation2 + $0x252] ss:$2 sm:$0xff]  ;;  %v3089_v21 = vadd.f32 %v18079_v46, %v20924_v40 }
 0x2ec   :  { %5107 = vst.msk [vmem:[#allocation2 + $0x280] sm:$0xff] %vm582_vm2, %v4979_v28  ;;  %v4982_v10 = vmax.f32 %v4854_v22, 0.0  ;;  %v4853_v23 = vadd.f32 %v18136_v17, %v4719_v58  ;;  %v4722_v3 = vadd.f32 %v14018_v32, %v3074_v35  ;;  %14143 = vmatprep.mubr.msk.f32.mxu1 %vm582_vm2, %v5362_v60  ;;  %14341 = vmatmul.mubr.msk.f32.gmra.mxu0 %vm582_vm2, %v6645_v9  ;;  %v20925_v35 = vld [vmem:[#allocation327_spill] sm:$0xff] }
 0x2ed   :  { %v4418_v19 = vpop.f32.mrf.mxu0  ;;  %v3104_v28 = vadd.f32 %v18092_v2, %v20925_v35  ;;  %v18339_v2 = vpop.f32.mrf.mxu1 }
 0x2ee   :  { %5110 = vst.msk [vmem:[#allocation2 + $0x298] sm:$0xff] %vm582_vm2, %v4982_v10  ;;  %v4981_v25 = vmax.f32 %v4853_v23, 0.0  ;;  %v4856_v63 = vadd.f32 %v18136_v17, %v4722_v3  ;;  %v4721_v29 = vadd.f32 %v4418_v19, %v3069_v31  ;;  %v3099_v31 = vadd.f32 %v18104_v30, %v20926_v62 }
 0x2ef   :  { %v14021_v4 = vpop.f32.mrf.mxu0  ;;  %v5364_v27 = vld [vmem:[#allocation2 + $0x271] ss:$2 sm:$0xff]  ;;  %v6647_v8 = vld [vmem:[#allocation2 + $0x262] ss:$2 sm:$0xff] }
 0x2f0   :  { %5109 = vst.msk [vmem:[#allocation2 + $0x290] sm:$0xff] %vm582_vm2, %v4981_v25  ;;  %v4984_v36 = vmax.f32 %v4856_v63, 0.0  ;;  %v4855_v0 = vadd.f32 %v18136_v17, %v4721_v29  ;;  %v4724_v24 = vadd.f32 %v14021_v4, %v3084_v53  ;;  %14144 = vmatmul.mubr.msk.f32.gmra.mxu1 %vm582_vm2, %v5364_v27  ;;  %14343 = vmatprep.mubr.msk.f32.mxu0 %vm582_vm2, %v6647_v8  ;;  %v20928_v8 = vld [vmem:[#allocation332_spill] sm:$0xff] }
 0x2f1   :  { %v4428_v7 = vpop.f32.mrf.mxu0  ;;  %v3114_v53 = vadd.f32 %v18116_v38, %v20927_v47  ;;  %v3109_v33 = vadd.f32 %v18128_v52, %v20928_v8  ;;  %v18351_v38 = vpop.f32.mrf.mxu1 }
 0x2f2   :  { %5112 = vst.msk [vmem:[#allocation2 + $0x2a8] sm:$0xff] %vm582_vm2, %v4984_v36  ;;  %v4983_v59 = vmax.f32 %v4855_v0, 0.0  ;;  %v4858_v12 = vadd.f32 %v18136_v17, %v4724_v24  ;;  %v4723_v18 = vadd.f32 %v4428_v7, %v3079_v51  ;;  %v20929_v7 = vld [vmem:[#allocation333_spill] sm:$0xff] }
 0x2f3   :  { %v14024_v6 = vpop.f32.mrf.mxu0  ;;  %v5366_v61 = vld [vmem:[#allocation2 + $0x281] ss:$2 sm:$0xff]  ;;  %v6649_v39 = vld [vmem:[#allocation2 + $0x272] ss:$2 sm:$0xff]  ;;  %v3124_v20 = vadd.f32 %v18145_v1, %v20929_v7  ;;  %v18363_v1 = vpop.f32.mrf.mxu1 }
 0x2f4   :  { %5111 = vst.msk [vmem:[#allocation2 + $0x2a0] sm:$0xff] %vm582_vm2, %v4983_v59  ;;  %v4986_v55 = vmax.f32 %v4858_v12, 0.0  ;;  %v4857_v45 = vadd.f32 %v18136_v17, %v4723_v18  ;;  %v4726_v41 = vadd.f32 %v14024_v6, %v3094_v43  ;;  %14146 = vmatprep.mubr.msk.f32.mxu1 %vm582_vm2, %v5366_v61  ;;  %14344 = vmatmul.mubr.msk.f32.gmra.mxu0 %vm582_vm2, %v6649_v39  ;;  %v20930_v61 = vld [vmem:[#allocation335_spill] sm:$0xff] }
 0x2f5   :  { %v4438_v26 = vpop.f32.mrf.mxu0  ;;  %v3119_v39 = vadd.f32 %v18157_v14, %v20930_v61 }
 0x2f6   :  { %5114 = vst.msk [vmem:[#allocation2 + $0x2b8] sm:$0xff] %vm582_vm2, %v4986_v55  ;;  %v4985_v22 = vmax.f32 %v4857_v45, 0.0  ;;  %v4860_v46 = vadd.f32 %v18136_v17, %v4726_v41  ;;  %v4725_v58 = vadd.f32 %v4438_v26, %v3089_v21  ;;  %v20931_v41 = vld [vmem:[#allocation336_spill] sm:$0xff] }
 0x2f7   :  { %v14027_v32 = vpop.f32.mrf.mxu0  ;;  %v5368_v60 = vld [vmem:[#allocation2 + $0x291] ss:$2 sm:$0xff]  ;;  %v6651_v9 = vld [vmem:[#allocation2 + $0x282] ss:$2 sm:$0xff]  ;;  %v3134_v26 = vadd.f32 %v18169_v56, %v20931_v41  ;;  %v18375_v56 = vpop.f32.mrf.mxu1 }
 0x2f8   :  { %5113 = vst.msk [vmem:[#allocation2 + $0x2b0] sm:$0xff] %vm582_vm2, %v4985_v22  ;;  %v4988_v10 = vmax.f32 %v4860_v46, 0.0  ;;  %v4859_v23 = vadd.f32 %v18136_v17, %v4725_v58  ;;  %v4728_v3 = vadd.f32 %v14027_v32, %v3104_v28  ;;  %14147 = vmatmul.mubr.msk.f32.gmra.mxu1 %vm582_vm2, %v5368_v60  ;;  %14346 = vmatprep.mubr.msk.f32.mxu0 %vm582_vm2, %v6651_v9  ;;  %v20932_v32 = vld [vmem:[#allocation338_spill] sm:$0xff] }
 0x2f9   :  { %v4448_v19 = vpop.f32.mrf.mxu0  ;;  %v3129_v60 = vadd.f32 %v18181_v50, %v20932_v32  ;;  %v20939_v32 = vld [vmem:[#allocation348_spill] sm:$0xff] }
 0x2fa   :  { %5116 = vst.msk [vmem:[#allocation2 + $0x2c8] sm:$0xff] %vm582_vm2, %v4988_v10  ;;  %v4987_v25 = vmax.f32 %v4859_v23, 0.0  ;;  %v4862_v30 = vadd.f32 %v18136_v17, %v4728_v3  ;;  %v4727_v63 = vadd.f32 %v4448_v19, %v3099_v31  ;;  %v20933_v23 = vld [vmem:[#allocation339_spill] sm:$0xff] }
 0x2fb   :  { %v14030_v29 = vpop.f32.mrf.mxu0  ;;  %v5370_v4 = vld [vmem:[#allocation2 + $0x2a1] ss:$2 sm:$0xff]  ;;  %v6653_v27 = vld [vmem:[#allocation2 + $0x292] ss:$2 sm:$0xff]  ;;  %v3144_v3 = vadd.f32 %v18193_v37, %v20933_v23  ;;  %v18387_v37 = vpop.f32.mrf.mxu1 }
 0x2fc   :  { %5115 = vst.msk [vmem:[#allocation2 + $0x2c0] sm:$0xff] %vm582_vm2, %v4987_v25  ;;  %v4990_v51 = vmax.f32 %v4862_v30, 0.0  ;;  %v4861_v36 = vadd.f32 %v18136_v17, %v4727_v63  ;;  %v4730_v0 = vadd.f32 %v14030_v29, %v3114_v53  ;;  %14149 = vmatprep.mubr.msk.f32.mxu1 %vm582_vm2, %v5370_v4  ;;  %14347 = vmatmul.mubr.msk.f32.gmra.mxu0 %vm582_vm2, %v6653_v27  ;;  %v20934_v63 = vld [vmem:[#allocation341_spill] sm:$0xff] }
 0x2fd   :  { %v4458_v24 = vpop.f32.mrf.mxu0  ;;  %v3139_v29 = vadd.f32 %v18207_v42, %v20934_v63 }
 0x2fe   :  { %5118 = vst.msk [vmem:[#allocation2 + $0x2d8] sm:$0xff] %vm582_vm2, %v4990_v51  ;;  %v4989_v43 = vmax.f32 %v4861_v36, 0.0  ;;  %v4864_v52 = vadd.f32 %v18136_v17, %v4730_v0  ;;  %v4729_v59 = vadd.f32 %v4458_v24, %v3109_v33  ;;  %v20935_v51 = vld [vmem:[#allocation342_spill] sm:$0xff] }
 0x2ff   :  { %v14033_v12 = vpop.f32.mrf.mxu0  ;;  %v5372_v18 = vld [vmem:[#allocation2 + $0x2b1] ss:$2 sm:$0xff]  ;;  %v6655_v6 = vld [vmem:[#allocation2 + $0x2a2] ss:$2 sm:$0xff]  ;;  %v3154_v36 = vadd.f32 %v18219_v49, %v20935_v51  ;;  %v18399_v49 = vpop.f32.mrf.mxu1 }
 0x300   :  { %5117 = vst.msk [vmem:[#allocation2 + $0x2d0] sm:$0xff] %vm582_vm2, %v4989_v43  ;;  %v4992_v40 = vmax.f32 %v4864_v52, 0.0  ;;  %v4863_v21 = vadd.f32 %v18136_v17, %v4729_v59  ;;  %v4732_v55 = vadd.f32 %v14033_v12, %v3124_v20  ;;  %14150 = vmatmul.mubr.msk.f32.gmra.mxu1 %vm582_vm2, %v5372_v18  ;;  %14349 = vmatprep.mubr.msk.f32.mxu0 %vm582_vm2, %v6655_v6  ;;  %v20936_v52 = vld [vmem:[#allocation344_spill] sm:$0xff]  ;;  %v20942_v51 = vld [vmem:[#allocation353_spill] sm:$0xff] }
 0x301   :  { %v4468_v45 = vpop.f32.mrf.mxu0  ;;  %v3149_v59 = vadd.f32 %v18231_v57, %v20936_v52 }
 0x302   :  { %5120 = vst.msk [vmem:[#allocation2 + $0x2e8] sm:$0xff] %vm582_vm2, %v4992_v40  ;;  %v4991_v35 = vmax.f32 %v4863_v21, 0.0  ;;  %v4866_v14 = vadd.f32 %v18136_v17, %v4732_v55  ;;  %v4731_v28 = vadd.f32 %v4468_v45, %v3119_v39  ;;  %v20937_v39 = vld [vmem:[#allocation345_spill] sm:$0xff] }
 0x303   :  { %v14036_v22 = vpop.f32.mrf.mxu0  ;;  %v5374_v46 = vld [vmem:[#allocation2 + $0x2c1] ss:$2 sm:$0xff]  ;;  %v6657_v58 = vld [vmem:[#allocation2 + $0x2b2] ss:$2 sm:$0xff]  ;;  %v3164_v40 = vadd.f32 %v18243_v34, %v20937_v39  ;;  %v18411_v34 = vpop.f32.mrf.mxu1 }
 0x304   :  { %5119 = vst.msk [vmem:[#allocation2 + $0x2e0] sm:$0xff] %vm582_vm2, %v4991_v35  ;;  %v4994_v9 = vmax.f32 %v4866_v14, 0.0  ;;  %v4865_v62 = vadd.f32 %v18136_v17, %v4731_v28  ;;  %v4734_v31 = vadd.f32 %v14036_v22, %v3134_v26  ;;  %14152 = vmatprep.mubr.msk.f32.mxu1 %vm582_vm2, %v5374_v46  ;;  %14350 = vmatmul.mubr.msk.f32.gmra.mxu0 %vm582_vm2, %v6657_v58  ;;  %v20938_v35 = vld [vmem:[#allocation347_spill] sm:$0xff] }
 0x305   :  { %v4478_v10 = vpop.f32.mrf.mxu0  ;;  %v3159_v14 = vadd.f32 %v18255_v5, %v20938_v35 }
 0x306   :  { %5122 = vst.msk [vmem:[#allocation2 + $0x2f8] sm:$0xff] %vm582_vm2, %v4994_v9  ;;  %v4993_v19 = vmax.f32 %v4865_v62, 0.0  ;;  %v4868_v50 = vadd.f32 %v18136_v17, %v4734_v31  ;;  %v4733_v47 = vadd.f32 %v4478_v10, %v3129_v60  ;;  %v3174_v60 = vadd.f32 %v18267_v11, %v20939_v32  ;;  %v18423_v11 = vpop.f32.mrf.mxu1 }
 0x307   :  { %v14039_v53 = vpop.f32.mrf.mxu0  ;;  %v5376_v25 = vld [vmem:[#allocation2 + $0x2d1] ss:$2 sm:$0xff]  ;;  %v6659_v30 = vld [vmem:[#allocation2 + $0x2c2] ss:$2 sm:$0xff] }
 0x308   :  { %5121 = vst.msk [vmem:[#allocation2 + $0x2f0] sm:$0xff] %vm582_vm2, %v4993_v19  ;;  %v4996_v4 = vmax.f32 %v4868_v50, 0.0  ;;  %v4867_v27 = vadd.f32 %v18136_v17, %v4733_v47  ;;  %v4736_v8 = vadd.f32 %v14039_v53, %v3144_v3  ;;  %14153 = vmatmul.mubr.msk.f32.gmra.mxu1 %vm582_vm2, %v5376_v25  ;;  %14352 = vmatprep.mubr.msk.f32.mxu0 %vm582_vm2, %v6659_v30  ;;  %v20940_v3 = vld [vmem:[#allocation350_spill] sm:$0xff]  ;;  %v20941_v30 = vld [vmem:[#allocation351_spill] sm:$0xff] }
 0x309   :  { %v4488_v33 = vpop.f32.mrf.mxu0  ;;  %v3169_v19 = vadd.f32 %v18279_v15, %v20940_v3  ;;  %v3184_v63 = vadd.f32 %v18291_v44, %v20941_v30  ;;  %v18435_v44 = vpop.f32.mrf.mxu1 }
 0x30a   :  { %5124 = vst.msk [vmem:[#allocation2 + $0x308] sm:$0xff] %vm582_vm2, %v4996_v4  ;;  %v4995_v0 = vmax.f32 %v4867_v27, 0.0  ;;  %v4870_v42 = vadd.f32 %v18136_v17, %v4736_v8  ;;  %v4735_v24 = vadd.f32 %v4488_v33, %v3139_v29 }
 0x30b   :  { %v14042_v7 = vpop.f32.mrf.mxu0  ;;  %v5378_v20 = vld [vmem:[#allocation2 + $0x2e1] ss:$2 sm:$0xff]  ;;  %v6661_v43 = vld [vmem:[#allocation2 + $0x2d2] ss:$2 sm:$0xff] }
 0x30c   :  { %5123 = vst.msk [vmem:[#allocation2 + $0x300] sm:$0xff] %vm582_vm2, %v4995_v0  ;;  %v4998_v12 = vmax.f32 %v4870_v42, 0.0  ;;  %v4869_v18 = vadd.f32 %v18136_v17, %v4735_v24  ;;  %v4738_v6 = vadd.f32 %v14042_v7, %v3154_v36  ;;  %14155 = vmatprep.mubr.msk.f32.mxu1 %vm582_vm2, %v5378_v20  ;;  %14353 = vmatmul.mubr.msk.f32.gmra.mxu0 %vm582_vm2, %v6661_v43  ;;  %v20943_v20 = vld [vmem:[#allocation354_spill] sm:$0xff] }
 0x30d   :  { %v4498_v61 = vpop.f32.mrf.mxu0  ;;  %v3179_v36 = vadd.f32 %v18303_v13, %v20942_v51  ;;  %v3194_v43 = vadd.f32 %v18315_v54, %v20943_v20  ;;  %v18447_v54 = vpop.f32.mrf.mxu1 }
 0x30e   :  { %5126 = vst.msk [vmem:[#allocation2 + $0x318] sm:$0xff] %vm582_vm2, %v4998_v12  ;;  %v4997_v21 = vmax.f32 %v4869_v18, 0.0  ;;  %v4872_v57 = vadd.f32 %v18136_v17, %v4738_v6  ;;  %v4737_v55 = vadd.f32 %v4498_v61, %v3149_v59  ;;  %v20944_v61 = vld [vmem:[#allocation356_spill] sm:$0xff] }
 0x30f   :  { %v14045_v45 = vpop.f32.mrf.mxu0  ;;  %v5380_v41 = vld [vmem:[#allocation2 + $0x2f1] ss:$2 sm:$0xff]  ;;  %v6663_v26 = vld [vmem:[#allocation2 + $0x2e2] ss:$2 sm:$0xff]  ;;  %v3189_v39 = vadd.f32 %v18327_v48, %v20944_v61 }
 0x310   :  { %5125 = vst.msk [vmem:[#allocation2 + $0x310] sm:$0xff] %vm582_vm2, %v4997_v21  ;;  %v5000_v28 = vmax.f32 %v4872_v57, 0.0  ;;  %v4871_v22 = vadd.f32 %v18136_v17, %v4737_v55  ;;  %v4740_v46 = vadd.f32 %v14045_v45, %v3164_v40  ;;  %14156 = vmatmul.mubr.msk.f32.gmra.mxu1 %vm582_vm2, %v5380_v41  ;;  %14355 = vmatprep.mubr.msk.f32.mxu0 %vm582_vm2, %v6663_v26  ;;  %v20945_v45 = vld [vmem:[#allocation357_spill] sm:$0xff] }
 0x311   :  { %v4508_v58 = vpop.f32.mrf.mxu0  ;;  %v3204_v41 = vadd.f32 %v18339_v2, %v20945_v45  ;;  %v18459_v2 = vpop.f32.mrf.mxu1 }
 0x312   :  { %5128 = vst.msk [vmem:[#allocation2 + $0x328] sm:$0xff] %vm582_vm2, %v5000_v28  ;;  %v4999_v9 = vmax.f32 %v4871_v22, 0.0  ;;  %v4874_v5 = vadd.f32 %v18136_v17, %v4740_v46  ;;  %v4739_v62 = vadd.f32 %v4508_v58, %v3159_v14  ;;  %v20946_v46 = vld [vmem:[#allocation359_spill] sm:$0xff] }
 0x313   :  { %v14048_v31 = vpop.f32.mrf.mxu0  ;;  %v5382_v10 = vld [vmem:[#allocation2 + $0x301] ss:$2 sm:$0xff]  ;;  %v6665_v23 = vld [vmem:[#allocation2 + $0x2f2] ss:$2 sm:$0xff]  ;;  %v3199_v58 = vadd.f32 %v18351_v38, %v20946_v46 }
 0x314   :  { %5127 = vst.msk [vmem:[#allocation2 + $0x320] sm:$0xff] %vm582_vm2, %v4999_v9  ;;  %v5002_v50 = vmax.f32 %v4874_v5, 0.0  ;;  %v4873_v47 = vadd.f32 %v18136_v17, %v4739_v62  ;;  %v4742_v53 = vadd.f32 %v14048_v31, %v3174_v60  ;;  %14158 = vmatprep.mubr.msk.f32.mxu1 %vm582_vm2, %v5382_v10  ;;  %14356 = vmatmul.mubr.msk.f32.gmra.mxu0 %vm582_vm2, %v6665_v23  ;;  %v20947_v62 = vld [vmem:[#allocation360_spill] sm:$0xff]  ;;  %v20954_v46 = vld [vmem:[#allocation371_spill] sm:$0xff] }
 0x315   :  { %v4518_v25 = vpop.f32.mrf.mxu0  ;;  %v3214_v31 = vadd.f32 %v18363_v1, %v20947_v62  ;;  %v3248_v1 = vpop.f32.mrf.mxu1  ;;  %v20955_v62 = vld [vmem:[#allocation372_spill] sm:$0xff] }
 0x316   :  { %5130 = vst.msk [vmem:[#allocation2 + $0x338] sm:$0xff] %vm582_vm2, %v5002_v50  ;;  %v5001_v29 = vmax.f32 %v4873_v47, 0.0  ;;  %v4876_v15 = vadd.f32 %v18136_v17, %v4742_v53  ;;  %v4741_v4 = vadd.f32 %v4518_v25, %v3169_v19  ;;  %v20948_v47 = vld [vmem:[#allocation362_spill] sm:$0xff] }
 0x317   :  { %v14051_v27 = vpop.f32.mrf.mxu0  ;;  %v5384_v8 = vld [vmem:[#allocation2 + $0x311] ss:$2 sm:$0xff]  ;;  %v6667_v33 = vld [vmem:[#allocation2 + $0x302] ss:$2 sm:$0xff]  ;;  %v3209_v53 = vadd.f32 %v18375_v56, %v20948_v47 }
 0x318   :  { %5129 = vst.msk [vmem:[#allocation2 + $0x330] sm:$0xff] %vm582_vm2, %v5001_v29  ;;  %v5004_v0 = vmax.f32 %v4876_v15, 0.0  ;;  %v4875_v42 = vadd.f32 %v18136_v17, %v4741_v4  ;;  %v4744_v24 = vadd.f32 %v14051_v27, %v3184_v63  ;;  %14159 = vmatmul.mubr.msk.f32.gmra.mxu1 %vm582_vm2, %v5384_v8  ;;  %14358 = vmatprep.mubr.msk.f32.mxu0 %vm582_vm2, %v6667_v33  ;;  %v20949_v15 = vld [vmem:[#allocation363_spill] sm:$0xff] }
 0x319   :  { %v4528_v7 = vpop.f32.mrf.mxu0  ;;  %v3224_v4 = vadd.f32 %v18387_v37, %v20949_v15  ;;  %v13881_v37 = vpop.f32.mrf.mxu1 }
 0x31a   :  { %5132 = vst.msk [vmem:[#allocation2 + $0x348] sm:$0xff] %vm582_vm2, %v5004_v0  ;;  %v5003_v52 = vmax.f32 %v4875_v42, 0.0  ;;  %v4878_v13 = vadd.f32 %v18136_v17, %v4744_v24  ;;  %v4743_v59 = vadd.f32 %v4528_v7, %v3179_v36  ;;  %v20950_v0 = vld [vmem:[#allocation365_spill] sm:$0xff] }
 0x31b   :  { %v14054_v12 = vpop.f32.mrf.mxu0  ;;  %v5386_v18 = vld [vmem:[#allocation2 + $0x321] ss:$2 sm:$0xff]  ;;  %v6669_v6 = vld [vmem:[#allocation2 + $0x312] ss:$2 sm:$0xff]  ;;  %v3219_v42 = vadd.f32 %v18399_v49, %v20950_v0 }
 0x31c   :  { %5131 = vst.msk [vmem:[#allocation2 + $0x340] sm:$0xff] %vm582_vm2, %v5003_v52  ;;  %v5006_v40 = vmax.f32 %v4878_v13, 0.0  ;;  %v4877_v21 = vadd.f32 %v18136_v17, %v4743_v59  ;;  %v4746_v57 = vadd.f32 %v14054_v12, %v3194_v43  ;;  %14161 = vmatprep.mubr.msk.f32.mxu1 %vm582_vm2, %v5386_v18  ;;  %14359 = vmatmul.mubr.msk.f32.gmra.mxu0 %vm582_vm2, %v6669_v6  ;;  %v20951_v52 = vld [vmem:[#allocation366_spill] sm:$0xff] }
 0x31d   :  { %v4538_v55 = vpop.f32.mrf.mxu0  ;;  %v3234_v13 = vadd.f32 %v18411_v34, %v20951_v52  ;;  %v3258_v34 = vpop.f32.mrf.mxu1 }
 0x31e   :  { %5134 = vst.msk [vmem:[#allocation2 + $0x358] sm:$0xff] %vm582_vm2, %v5006_v40  ;;  %v5005_v26 = vmax.f32 %v4877_v21, 0.0  ;;  %v4880_v48 = vadd.f32 %v18136_v17, %v4746_v57  ;;  %v4745_v35 = vadd.f32 %v4538_v55, %v3189_v39  ;;  %v20952_v39 = vld [vmem:[#allocation368_spill] sm:$0xff] }
 0x31f   :  { %v14057_v14 = vpop.f32.mrf.mxu0  ;;  %v5388_v28 = vld [vmem:[#allocation2 + $0x331] ss:$2 sm:$0xff]  ;;  %v6671_v22 = vld [vmem:[#allocation2 + $0x322] ss:$2 sm:$0xff]  ;;  %v3229_v40 = vadd.f32 %v18423_v11, %v20952_v39  ;;  %v18497_v11 = vld [vmem:[%s20201_s2] ss:$0 sm:$0xff] }
 0x320   :  { %5133 = vst.msk [vmem:[#allocation2 + $0x350] sm:$0xff] %vm582_vm2, %v5005_v26  ;;  %v5008_v32 = vmax.f32 %v4880_v48, 0.0  ;;  %v4879_v60 = vadd.f32 %v18136_v17, %v4745_v35  ;;  %v4748_v9 = vadd.f32 %v14057_v14, %v3204_v41  ;;  %14162 = vmatmul.mubr.msk.f32.gmra.mxu1 %vm582_vm2, %v5388_v28  ;;  %14361 = vmatprep.mubr.msk.f32.mxu0 %vm582_vm2, %v6671_v22  ;;  %v20953_v41 = vld [vmem:[#allocation369_spill] sm:$0xff] }
 0x321   :  { %v4548_v5 = vpop.f32.mrf.mxu0  ;;  %v3244_v26 = vadd.f32 %v18435_v44, %v20953_v41 }
 0x322   :  { %5136 = vst.msk [vmem:[#allocation2 + $0x368] sm:$0xff] %vm582_vm2, %v5008_v32  ;;  %v5007_v10 = vmax.f32 %v4879_v60, 0.0  ;;  %v4882_v38 = vadd.f32 %v18136_v17, %v4748_v9  ;;  %v4747_v23 = vadd.f32 %v4548_v5, %v3199_v58  ;;  %v3239_v58 = vadd.f32 %v18447_v54, %v20954_v46  ;;  %v13884_v9 = vpop.f32.mrf.mxu1 }
 0x323   :  { %v14060_v3 = vpop.f32.mrf.mxu0  ;;  %v5390_v19 = vld [vmem:[#allocation2 + $0x341] ss:$2 sm:$0xff]  ;;  %v6673_v50 = vld [vmem:[#allocation2 + $0x332] ss:$2 sm:$0xff] }
 0x324   :  { %5135 = vst.msk [vmem:[#allocation2 + $0x360] sm:$0xff] %vm582_vm2, %v5007_v10  ;;  %v5010_v25 = vmax.f32 %v4882_v38, 0.0  ;;  %v4881_v30 = vadd.f32 %v18136_v17, %v4747_v23  ;;  %v4750_v63 = vadd.f32 %v14060_v3, %v3214_v31  ;;  %14164 = vmatprep.mubr.msk.f32.mxu1 %vm582_vm2, %v5390_v19  ;;  %14362 = vmatmul.mubr.msk.f32.gmra.mxu0 %vm582_vm2, %v6673_v50  ;;  %v20956_v50 = vld [vmem:[#allocation374_spill] sm:$0xff] }
 0x325   :  { %v4558_v29 = vpop.f32.mrf.mxu0  ;;  %v3254_v31 = vadd.f32 %v18459_v2, %v20955_v62  ;;  %v3249_v47 = vadd.f32 %v3248_v1, %v20956_v50  ;;  %v3268_v2 = vpop.f32.mrf.mxu1 }
 0x326   :  { %5138 = vst.msk [vmem:[#allocation2 + $0x378] sm:$0xff] %vm582_vm2, %v5010_v25  ;;  %v5009_v27 = vmax.f32 %v4881_v30, 0.0  ;;  %v4884_v56 = vadd.f32 %v18136_v17, %v4750_v63  ;;  %v4749_v8 = vadd.f32 %v4558_v29, %v3209_v53  ;;  %v20957_v29 = vld [vmem:[#allocation375_spill] sm:$0xff] }
 0x327   :  { %v14063_v33 = vpop.f32.mrf.mxu0  ;;  %v5392_v51 = vld [vmem:[#allocation2 + $0x351] ss:$2 sm:$0xff]  ;;  %v6675_v36 = vld [vmem:[#allocation2 + $0x342] ss:$2 sm:$0xff]  ;;  %v3264_v15 = vadd.f32 %v13881_v37, %v20957_v29 }
 0x328   :  { %5137 = vst.msk [vmem:[#allocation2 + $0x370] sm:$0xff] %vm582_vm2, %v5009_v27  ;;  %v5012_v24 = vmax.f32 %v4884_v56, 0.0  ;;  %v4883_v7 = vadd.f32 %v18136_v17, %v4749_v8  ;;  %v4752_v20 = vadd.f32 %v14063_v33, %v3224_v4  ;;  %14165 = vmatmul.mubr.msk.f32.gmra.mxu1 %vm582_vm2, %v5392_v51  ;;  %14364 = vmatprep.mubr.msk.f32.mxu0 %vm582_vm2, %v6675_v36  ;;  %v20958_v51 = vld [vmem:[#allocation377_spill] sm:$0xff]  ;;  %v20959_v37 = vld [vmem:[#allocation378_spill] sm:$0xff] }
 0x329   :  { %v4568_v43 = vpop.f32.mrf.mxu0  ;;  %v3259_v36 = vadd.f32 %v3258_v34, %v20958_v51  ;;  %v20961_v34 = vld [vmem:[#allocation381_spill] sm:$0xff]  ;;  %v5162_v29 = vld [vmem:[#allocation2 + $0x30] ss:$2 sm:$0xff] }
 0x32a   :  { %5140 = vst.msk [vmem:[#allocation2 + $0x388] sm:$0xff] %vm582_vm2, %v5012_v24  ;;  %v5011_v59 = vmax.f32 %v4883_v7, 0.0  ;;  %v4886_v49 = vadd.f32 %v18136_v17, %v4752_v20  ;;  %v4751_v12 = vadd.f32 %v4568_v43, %v3219_v42  ;;  %v13887_v7 = vpop.f32.mrf.mxu1  ;;  %v3274_v43 = vadd.f32 %v13884_v9, %v20959_v37  ;;  %v5172_v51 = vld [vmem:[#allocation2 + $0x80] ss:$2 sm:$0xff] }
 0x32b   :  { %v14066_v18 = vpop.f32.mrf.mxu0  ;;  %v5394_v6 = vld [vmem:[#allocation2 + $0x361] ss:$2 sm:$0xff]  ;;  %v6677_v61 = vld [vmem:[#allocation2 + $0x352] ss:$2 sm:$0xff] }
 0x32c   :  { %5139 = vst.msk [vmem:[#allocation2 + $0x380] sm:$0xff] %vm582_vm2, %v5011_v59  ;;  %v5014_v21 = vmax.f32 %v4886_v49, 0.0  ;;  %v4885_v57 = vadd.f32 %v18136_v17, %v4751_v12  ;;  %v4754_v55 = vadd.f32 %v14066_v18, %v3234_v13  ;;  %14167 = vmatprep.mubr.msk.f32.mxu1 %vm582_vm2, %v5394_v6  ;;  %14365 = vmatmul.mubr.msk.f32.gmra.mxu0 %vm582_vm2, %v6677_v61  ;;  %v20960_v6 = vld [vmem:[#allocation380_spill] sm:$0xff] }
 0x32d   :  { %v4578_v45 = vpop.f32.mrf.mxu0  ;;  %v3269_v61 = vadd.f32 %v3268_v2, %v20960_v6  ;;  %v5160_v2 = vld [vmem:[#allocation2 + $0x20] ss:$2 sm:$0xff] }
 0x32e   :  { %5142 = vst.msk [vmem:[#allocation2 + $0x398] sm:$0xff] %vm582_vm2, %v5014_v21  ;;  %v5013_v48 = vmax.f32 %v4885_v57, 0.0  ;;  %v4888_v17 = vadd.f32 %v18497_v11, %v4754_v55  ;;  %v4753_v35 = vadd.f32 %v4578_v45, %v3229_v40  ;;  %v3278_v57 = vpop.f32.mrf.mxu1  ;;  %v3284_v45 = vadd.f32 %v13887_v7, %v20961_v34  ;;  %v12446_v7 = vld [vmem:[%s20204_s5 + $0x38] sm:$0xff] }
 0x32f   :  { %v14069_v14 = vpop.f32.mrf.mxu0  ;;  %v5396_v28 = vld [vmem:[#allocation2 + $0x371] ss:$2 sm:$0xff]  ;;  %v6679_v22 = vld [vmem:[#allocation2 + $0x362] ss:$2 sm:$0xff]  ;;  %14382 = vmatprep.subr.mxu1 %v12446_v7 }
 0x330   :  { %5141 = vst.msk [vmem:[#allocation2 + $0x390] sm:$0xff] %vm582_vm2, %v5013_v48  ;;  %v5016_v44 = vmax.f32 %v4888_v17, 0.0  ;;  %v4887_v32 = vadd.f32 %v18497_v11, %v4753_v35  ;;  %v4756_v60 = vadd.f32 %v14069_v14, %v3244_v26  ;;  %14168 = vmatmul.mubr.msk.f32.gmra.mxu1 %vm582_vm2, %v5396_v28  ;;  %14367 = vmatprep.mubr.msk.f32.mxu0 %vm582_vm2, %v6679_v22  ;;  %v20962_v28 = vld [vmem:[#allocation383_spill] sm:$0xff] }
 0x331   :  { %v4588_v5 = vpop.f32.mrf.mxu0  ;;  %v3279_v22 = vadd.f32 %v3278_v57, %v20962_v28 }
 0x332   :  { %5144 = vst.msk [vmem:[#allocation2 + $0x3a8] sm:$0xff] %vm582_vm2, %v5016_v44  ;;  %v5015_v10 = vmax.f32 %v4887_v32, 0.0  ;;  %v4890_v54 = vadd.f32 %v18497_v11, %v4756_v60  ;;  %v4755_v38 = vadd.f32 %v4588_v5, %v3239_v58 }
 0x333   :  { %v14072_v23 = vpop.f32.mrf.mxu0  ;;  %v5398_v3 = vld [vmem:[#allocation2 + $0x381] ss:$2 sm:$0xff]  ;;  %v6681_v19 = vld [vmem:[#allocation2 + $0x372] ss:$2 sm:$0xff] }
 0x334   :  { %5143 = vst.msk [vmem:[#allocation2 + $0x3a0] sm:$0xff] %vm582_vm2, %v5015_v10  ;;  %v5018_v53 = vmax.f32 %v4890_v54, 0.0  ;;  %v4889_v25 = vadd.f32 %v18497_v11, %v4755_v38  ;;  %v4758_v30 = vadd.f32 %v14072_v23, %v3254_v31  ;;  %14170 = vmatprep.mubr.msk.f32.mxu1 %vm582_vm2, %v5398_v3  ;;  %14368 = vmatmul.mubr.msk.f32.gmra.mxu0 %vm582_vm2, %v6681_v19 }
 0x335   :  { %v4598_v63 = vpop.f32.mrf.mxu0 }
 0x336   :  { %5146 = vst.msk [vmem:[#allocation2 + $0x3b8] sm:$0xff] %vm582_vm2, %v5018_v53  ;;  %v5017_v4 = vmax.f32 %v4889_v25, 0.0  ;;  %v4892_v27 = vadd.f32 %v18497_v11, %v4758_v30  ;;  %v4757_v1 = vadd.f32 %v4598_v63, %v3249_v47  ;;  %v5156_v25 = vld [vmem:[#allocation2] ss:$2 sm:$0xff]  ;;  %v5158_v30 = vld [vmem:[#allocation2 + $0x10] ss:$2 sm:$0xff]  ;;  %v18557_v63 = vpop.f32.mrf.mxu1 }
 0x337   :  { %v14075_v56 = vpop.f32.mrf.mxu0  ;;  %v5400_v8 = vld [vmem:[#allocation2 + $0x391] ss:$2 sm:$0xff]  ;;  %v6683_v33 = vld [vmem:[#allocation2 + $0x382] ss:$2 sm:$0xff] }
 0x338   :  { %5145 = vst.msk [vmem:[#allocation2 + $0x3b0] sm:$0xff] %vm582_vm2, %v5017_v4  ;;  %v5020_v0 = vmax.f32 %v4892_v27, 0.0  ;;  %v4891_v42 = vadd.f32 %v18497_v11, %v4757_v1  ;;  %v4760_v24 = vadd.f32 %v14075_v56, %v3264_v15  ;;  %14171 = vmatmul.mubr.msk.f32.gmra.mxu1 %vm582_vm2, %v5400_v8  ;;  %14370 = vmatprep.mubr.msk.f32.mxu0 %vm582_vm2, %v6683_v33  ;;  %v5164_v15 = vld [vmem:[#allocation2 + $0x40] ss:$2 sm:$0xff]  ;;  %v18561_v4 = vpop.f32.mrf.mxu1  ;;  %v5166_v27 = vld [vmem:[#allocation2 + $0x50] ss:$2 sm:$0xff] }
 0x339   :  { %v4608_v20 = vpop.f32.mrf.mxu0  ;;  %v5168_v56 = vld [vmem:[#allocation2 + $0x60] ss:$2 sm:$0xff]  ;;  %v5170_v8 = vld [vmem:[#allocation2 + $0x70] ss:$2 sm:$0xff] }
 0x33a   :  { %5148 = vst.msk [vmem:[#allocation2 + $0x3c8] sm:$0xff] %vm582_vm2, %v5020_v0  ;;  %v5019_v52 = vmax.f32 %v4891_v42, 0.0  ;;  %v4894_v13 = vadd.f32 %v18497_v11, %v4760_v24  ;;  %v4759_v59 = vadd.f32 %v4608_v20, %v3259_v36  ;;  %v18563_v1 = vpop.f32.mrf.mxu1  ;;  %v5174_v0 = vld [vmem:[#allocation2 + $0x90] ss:$2 sm:$0xff]  ;;  %v5176_v42 = vld [vmem:[#allocation2 + $0xa0] ss:$2 sm:$0xff] }
 0x33b   :  { %v14078_v49 = vpop.f32.mrf.mxu0  ;;  %v5402_v12 = vld [vmem:[#allocation2 + $0x3a1] ss:$2 sm:$0xff]  ;;  %v6685_v18 = vld [vmem:[#allocation2 + $0x392] ss:$2 sm:$0xff] }
 0x33c   :  { %5147 = vst.msk [vmem:[#allocation2 + $0x3c0] sm:$0xff] %vm582_vm2, %v5019_v52  ;;  %v5022_v39 = vmax.f32 %v4894_v13, 0.0  ;;  %v4893_v40 = vadd.f32 %v18497_v11, %v4759_v59  ;;  %v4762_v21 = vadd.f32 %v14078_v49, %v3274_v43  ;;  %14173 = vmatprep.mubr.msk.f32.mxu1 %vm582_vm2, %v5402_v12  ;;  %14371 = vmatmul.mubr.msk.f32.gmra.mxu0 %vm582_vm2, %v6685_v18  ;;  %v18567_v33 = vpop.f32.mrf.mxu1  ;;  %v5178_v20 = vld [vmem:[#allocation2 + $0xb0] ss:$2 sm:$0xff]  ;;  %v5180_v43 = vld [vmem:[#allocation2 + $0xc0] ss:$2 sm:$0xff] }
 0x33d   :  { %v4618_v55 = vpop.f32.mrf.mxu0  ;;  %v5182_v52 = vld [vmem:[#allocation2 + $0xd0] ss:$2 sm:$0xff]  ;;  %v5184_v59 = vld [vmem:[#allocation2 + $0xe0] ss:$2 sm:$0xff] }
 0x33e   :  { %5150 = vst.msk [vmem:[#allocation2 + $0x3d8] sm:$0xff] %vm582_vm2, %v5022_v39  ;;  %v5021_v41 = vmax.f32 %v4893_v40, 0.0  ;;  %v4896_v26 = vadd.f32 %v18497_v11, %v4762_v21  ;;  %v4761_v48 = vadd.f32 %v4618_v55, %v3269_v61  ;;  %v18571_v36 = vpop.f32.mrf.mxu1  ;;  %v5186_v12 = vld [vmem:[#allocation2 + $0xf0] ss:$2 sm:$0xff]  ;;  %v5188_v18 = vld [vmem:[#allocation2 + $0x100] ss:$2 sm:$0xff] }
 0x33f   :  { %v14081_v17 = vpop.f32.mrf.mxu0  ;;  %v5404_v35 = vld [vmem:[#allocation2 + $0x3b1] ss:$2 sm:$0xff]  ;;  %v6687_v14 = vld [vmem:[#allocation2 + $0x3a2] ss:$2 sm:$0xff] }
 0x340   :  { %5149 = vst.msk [vmem:[#allocation2 + $0x3d0] sm:$0xff] %vm582_vm2, %v5021_v41  ;;  %v5024_v46 = vmax.f32 %v4896_v26, 0.0  ;;  %v4895_v58 = vadd.f32 %v18497_v11, %v4761_v48  ;;  %v4764_v44 = vadd.f32 %v14081_v17, %v3284_v45  ;;  %14174 = vmatmul.mubr.msk.f32.gmra.mxu1 %vm582_vm2, %v5404_v35  ;;  %14373 = vmatprep.mubr.msk.f32.mxu0 %vm582_vm2, %v6687_v14  ;;  %v18575_v24 = vpop.f32.mrf.mxu1  ;;  %v5190_v61 = vld [vmem:[#allocation2 + $0x110] ss:$2 sm:$0xff]  ;;  %v5192_v40 = vld [vmem:[#allocation2 + $0x120] ss:$2 sm:$0xff] }
 0x341   :  { %v4628_v32 = vpop.f32.mrf.mxu0  ;;  %v5194_v21 = vld [vmem:[#allocation2 + $0x130] ss:$2 sm:$0xff]  ;;  %v5196_v55 = vld [vmem:[#allocation2 + $0x140] ss:$2 sm:$0xff] }
 0x342   :  { %5152 = vst.msk [vmem:[#allocation2 + $0x3e8] sm:$0xff] %vm582_vm2, %v5024_v46  ;;  %v5023_v60 = vmax.f32 %v4895_v58, 0.0  ;;  %v4898_v9 = vadd.f32 %v18497_v11, %v4764_v44  ;;  %v4763_v5 = vadd.f32 %v4628_v32, %v3279_v22  ;;  %v18580_v37 = vpop.f32.mrf.mxu1  ;;  %v5198_v45 = vld [vmem:[#allocation2 + $0x150] ss:$2 sm:$0xff]  ;;  %v5200_v41 = vld [vmem:[#allocation2 + $0x160] ss:$2 sm:$0xff] }
 0x343   :  { %v5406_v62 = vld [vmem:[#allocation2 + $0x3c1] ss:$2 sm:$0xff]  ;;  %v6689_v31 = vld [vmem:[#allocation2 + $0x3b2] ss:$2 sm:$0xff] }
 0x344   :  { %5151 = vst.msk [vmem:[#allocation2 + $0x3e0] sm:$0xff] %vm582_vm2, %v5023_v60  ;;  %v5026_v10 = vmax.f32 %v4898_v9, 0.0  ;;  %v4897_v54 = vadd.f32 %v18497_v11, %v4763_v5  ;;  %14176 = vmatprep.mubr.msk.f32.mxu1 %vm582_vm2, %v5406_v62  ;;  %14374 = vmatmul.mubr.msk.f32.gmra.mxu0 %vm582_vm2, %v6689_v31  ;;  %v18584_v13 = vpop.f32.mrf.mxu1  ;;  %v5202_v48 = vld [vmem:[#allocation2 + $0x170] ss:$2 sm:$0xff]  ;;  %v5204_v35 = vld [vmem:[#allocation2 + $0x180] ss:$2 sm:$0xff] }
 0x345   :  { %v5206_v14 = vld [vmem:[#allocation2 + $0x190] ss:$2 sm:$0xff]  ;;  %v5208_v22 = vld [vmem:[#allocation2 + $0x1a0] ss:$2 sm:$0xff] }
 0x346   :  { %5154 = vst.msk [vmem:[#allocation2 + $0x3f8] sm:$0xff] %vm582_vm2, %v5026_v10  ;;  %v5025_v38 = vmax.f32 %v4897_v54, 0.0  ;;  %v18588_v49 = vpop.f32.mrf.mxu1  ;;  %v12445_v58 = vld [vmem:[%s20204_s5 + $0x30] sm:$0xff]  ;;  %v5212_v32 = vld [vmem:[#allocation2 + $0x1c0] ss:$2 sm:$0xff] }
 0x347   :  { %v5408_v23 = vld [vmem:[#allocation2 + $0x3d1] ss:$2 sm:$0xff]  ;;  %v6691_v3 = vld [vmem:[#allocation2 + $0x3c2] ss:$2 sm:$0xff] }
 0x348   :  { %5153 = vst.msk [vmem:[#allocation2 + $0x3f0] sm:$0xff] %vm582_vm2, %v5025_v38  ;;  %14177 = vmatmul.mubr.msk.f32.gmra.mxu1 %vm582_vm2, %v5408_v23  ;;  %14376 = vmatprep.mubr.msk.f32.mxu0 %vm582_vm2, %v6691_v3  ;;  %v18592_v6 = vpop.f32.mrf.mxu1  ;;  %v5210_v44 = vld [vmem:[#allocation2 + $0x1b0] ss:$2 sm:$0xff]  ;;  %v5216_v62 = vld [vmem:[#allocation2 + $0x1e0] ss:$2 sm:$0xff] }
 0x349   :  { %v5214_v9 = vld [vmem:[#allocation2 + $0x1d0] ss:$2 sm:$0xff]  ;;  %v5220_v54 = vld [vmem:[#allocation2 + $0x200] ss:$2 sm:$0xff] }
 0x34a   :  { %v18594_v39 = vpop.f32.mrf.mxu1  ;;  %v5218_v31 = vld [vmem:[#allocation2 + $0x1f0] ss:$2 sm:$0xff]  ;;  %v5224_v3 = vld [vmem:[#allocation2 + $0x220] ss:$2 sm:$0xff] }
 0x34b   :  { %v5410_v19 = vld [vmem:[#allocation2 + $0x3e1] ss:$2 sm:$0xff]  ;;  %v6693_v50 = vld [vmem:[#allocation2 + $0x3d2] ss:$2 sm:$0xff] }
 0x34c   :  { %14179 = vmatprep.mubr.msk.f32.mxu1 %vm582_vm2, %v5410_v19  ;;  %14377 = vmatmul.mubr.msk.f32.gmra.mxu0 %vm582_vm2, %v6693_v50  ;;  %v18598_v57 = vpop.f32.mrf.mxu1  ;;  %v5222_v23 = vld [vmem:[#allocation2 + $0x210] ss:$2 sm:$0xff] }
 0x34d   :  { %v5226_v50 = vld [vmem:[#allocation2 + $0x230] ss:$2 sm:$0xff] }
 0x34e   :  { %v18602_v34 = vpop.f32.mrf.mxu1 }
 0x34f   :  { %v5412_v11 = vld [vmem:[#allocation2 + $0x3f1] ss:$2 sm:$0xff]  ;;  %v6695_v47 = vld [vmem:[#allocation2 + $0x3e2] ss:$2 sm:$0xff]  ;;  %v6697_v53 = vld [vmem:[#allocation2 + $0x3f2] ss:$2 sm:$0xff] }
 0x350   :  { %14180 = vmatmul.mubr.msk.f32.gmra.mxu1 %vm582_vm2, %v5412_v11  ;;  %14379 = vmatprep.mubr.msk.f32.mxu0 %vm582_vm2, %v6695_v47  ;;  %v18606_v26 = vpop.f32.mrf.mxu1  ;;  %v5228_v47 = vld [vmem:[#allocation2 + $0x240] ss:$2 sm:$0xff] }
 0x351   :  { %14186 = vmatprep.mubr.msk.f32.mxu1 %vm582_vm2, %v5156_v25  ;;  %14380 = vmatmul.mubr.msk.f32.gmra.mxu0 %vm582_vm2, %v6697_v53  ;;  %v5230_v53 = vld [vmem:[#allocation2 + $0x250] ss:$2 sm:$0xff] }
 0x352   :  { %v18608_v17 = vpop.f32.mrf.mxu1 }
 0x354   :  { %14187 = vmatmul.mubr.msk.f32.vlgmr.msra.gmra.mxu1 %vm582_vm2, %v5158_v30  ;;  %v18612_v28 = vpop.f32.mrf.mxu1  ;;  %v5232_v30 = vld [vmem:[#allocation2 + $0x260] ss:$2 sm:$0xff] }
 0x355   :  { %14189 = vmatprep.mubr.msk.f32.mxu1 %vm582_vm2, %v5160_v2  ;;  %14383 = vmatpush3.msra.mxu1 %v12446_v7  ;;  %v12514_v7 = vld [vmem:[%s20204_s5 + $0x58] sm:$0xff] }
 0x356   :  { %14384 = vmatprep.subr.mxu1 %v12445_v58  ;;  %14494 = vmatprep.subr.mxu0 %v12514_v7 }
 0x357   :  { %14385 = vmatpush3.msra.mxu1 %v12445_v58  ;;  %14495 = vmatpush3.msra.mxu0 %v12514_v7  ;;  %v5276_v7 = vld [vmem:[#allocation2 + $0x3c0] ss:$2 sm:$0xff] }
 0x358   :  { %14190 = vmatmul.mubr.msk.f32.gmra.mxu1 %vm582_vm2, %v5162_v29  ;;  %v18616_v46 = vpop.f32.mrf.mxu1  ;;  %v5234_v29 = vld [vmem:[#allocation2 + $0x270] ss:$2 sm:$0xff] }
 0x359   :  { %14192 = vmatprep.mubr.msk.f32.mxu1 %vm582_vm2, %v5164_v15  ;;  %v5236_v15 = vld [vmem:[#allocation2 + $0x280] ss:$2 sm:$0xff] }
 0x35a   :  { %v18623_v60 = vpop.f32.mrf.mxu1 }
 0x35c   :  { %14193 = vmatmul.mubr.msk.f32.gmra.mxu1 %vm582_vm2, %v5166_v27 }
 0x35d   :  { %14195 = vmatprep.mubr.msk.f32.mxu1 %vm582_vm2, %v5168_v56  ;;  %v5238_v56 = vld [vmem:[#allocation2 + $0x290] ss:$2 sm:$0xff] }
 0x360   :  { %14196 = vmatmul.mubr.msk.f32.gmra.mxu1 %vm582_vm2, %v5170_v8  ;;  %v18625_v5 = vpop.f32.mrf.mxu1 }
 0x361   :  { %14198 = vmatprep.mubr.msk.f32.mxu1 %vm582_vm2, %v5172_v51  ;;  %v5240_v51 = vld [vmem:[#allocation2 + $0x2a0] ss:$2 sm:$0xff] }
 0x362   :  { %v18629_v10 = vpop.f32.mrf.mxu1 }
 0x364   :  { %14199 = vmatmul.mubr.msk.f32.gmra.mxu1 %vm582_vm2, %v5174_v0  ;;  %v5242_v0 = vld [vmem:[#allocation2 + $0x2b0] ss:$2 sm:$0xff] }
 0x365   :  { %14201 = vmatprep.mubr.msk.f32.mxu1 %vm582_vm2, %v5176_v42  ;;  %v12444_v42 = vld [vmem:[%s20204_s5 + $0x28] sm:$0xff] }
 0x366   :  { %14386 = vmatprep.subr.mxu1 %v12444_v42 }
 0x367   :  { %14387 = vmatpush3.msra.mxu1 %v12444_v42 }
 0x368   :  { %14202 = vmatmul.mubr.msk.f32.gmra.mxu1 %vm582_vm2, %v5178_v20  ;;  %v18633_v38 = vpop.f32.mrf.mxu1 }
 0x369   :  { %14204 = vmatprep.mubr.msk.f32.mxu1 %vm582_vm2, %v5180_v43  ;;  %v5244_v43 = vld [vmem:[#allocation2 + $0x2c0] ss:$2 sm:$0xff] }
 0x36a   :  { %v18639_v19 = vpop.f32.mrf.mxu1 }
 0x36c   :  { %14205 = vmatmul.mubr.msk.f32.gmra.mxu1 %vm582_vm2, %v5182_v52  ;;  %v12443_v52 = vld [vmem:[%s20204_s5 + $0x20] sm:$0xff] }
 0x36d   :  { %14207 = vmatprep.mubr.msk.f32.mxu1 %vm582_vm2, %v5184_v59  ;;  %v12513_v59 = vld [vmem:[%s20204_s5 + $0x50] sm:$0xff]  ;;  %14388 = vmatprep.subr.mxu1 %v12443_v52 }
 0x36e   :  { %14496 = vmatprep.subr.mxu0 %v12513_v59  ;;  %14389 = vmatpush3.msra.mxu1 %v12443_v52 }
 0x36f   :  { %14497 = vmatpush3.msra.mxu0 %v12513_v59  ;;  %14438 = vmatprep.subr.mxu1 %v18773_v16 }
 0x370   :  { %14208 = vmatmul.mubr.msk.f32.gmra.mxu1 %vm582_vm2, %v5186_v12  ;;  %v18641_v11 = vpop.f32.mrf.mxu1 }
 0x371   :  { %14210 = vmatprep.mubr.msk.f32.mxu1 %vm582_vm2, %v5188_v18  ;;  %v5246_v18 = vld [vmem:[#allocation2 + $0x2d0] ss:$2 sm:$0xff] }
 0x372   :  { %v18645_v25 = vpop.f32.mrf.mxu1 }
 0x374   :  { %14211 = vmatmul.mubr.msk.f32.gmra.mxu1 %vm582_vm2, %v5190_v61  ;;  %v12512_v61 = vld [vmem:[%s20204_s5 + $0x48] sm:$0xff] }
 0x375   :  { %14213 = vmatprep.mubr.msk.f32.mxu1 %vm582_vm2, %v5192_v40  ;;  %v5248_v40 = vld [vmem:[#allocation2 + $0x2e0] ss:$2 sm:$0xff]  ;;  %14498 = vmatprep.subr.mxu0 %v12512_v61 }
 0x376   :  { %14499 = vmatpush3.msra.mxu0 %v12512_v61 }
 0x378   :  { %14214 = vmatmul.mubr.msk.f32.gmra.mxu1 %vm582_vm2, %v5194_v21  ;;  %v18649_v2 = vpop.f32.mrf.mxu1  ;;  %v12511_v21 = vld [vmem:[%s20204_s5 + $0x40] sm:$0xff] }
 0x379   :  { %14216 = vmatprep.mubr.msk.f32.mxu1 %vm582_vm2, %v5196_v55  ;;  %14500 = vmatprep.subr.mxu0 %v12511_v21 }
 0x37a   :  { %v18653_v27 = vpop.f32.mrf.mxu1  ;;  %14501 = vmatpush3.msra.mxu0 %v12511_v21 }
 0x37c   :  { %14217 = vmatmul.mubr.msk.f32.gmra.mxu1 %vm582_vm2, %v5198_v45  ;;  %v5250_v45 = vld [vmem:[#allocation2 + $0x2f0] ss:$2 sm:$0xff] }
 0x37d   :  { %14219 = vmatprep.mubr.msk.f32.mxu1 %vm582_vm2, %v5200_v41 }
 0x380   :  { %14220 = vmatmul.mubr.msk.f32.gmra.mxu1 %vm582_vm2, %v5202_v48  ;;  %v18655_v8 = vpop.f32.mrf.mxu1  ;;  %v5252_v48 = vld [vmem:[#allocation2 + $0x300] ss:$2 sm:$0xff] }
 0x381   :  { %14222 = vmatprep.mubr.msk.f32.mxu1 %vm582_vm2, %v5204_v35  ;;  %20963 = vst [vmem:[#allocation259_spill] sm:$0xff] %v18655_v8  ;;  %v5254_v35 = vld [vmem:[#allocation2 + $0x310] ss:$2 sm:$0xff] }
 0x382   :  { %v18665_v20 = vpop.f32.mrf.mxu1 }
 0x383   :  { %20964 = vst [vmem:[#allocation292_spill] sm:$0xff] %v18665_v20 }
 0x384   :  { %14223 = vmatmul.mubr.msk.f32.gmra.mxu1 %vm582_vm2, %v5206_v14 }
 0x385   :  { %14225 = vmatprep.mubr.msk.f32.mxu1 %vm582_vm2, %v5208_v22  ;;  %v5256_v22 = vld [vmem:[#allocation2 + $0x320] ss:$2 sm:$0xff] }
 0x388   :  { %14226 = vmatmul.mubr.msk.f32.gmra.mxu1 %vm582_vm2, %v5210_v44  ;;  %v18675_v12 = vpop.f32.mrf.mxu1  ;;  %v5258_v44 = vld [vmem:[#allocation2 + $0x330] ss:$2 sm:$0xff] }
 0x389   :  { %14228 = vmatprep.mubr.msk.f32.mxu1 %vm582_vm2, %v5212_v32  ;;  %20965 = vst [vmem:[#allocation260_spill] sm:$0xff] %v18675_v12  ;;  %v5260_v32 = vld [vmem:[#allocation2 + $0x340] ss:$2 sm:$0xff] }
 0x38a   :  { %v18685_v55 = vpop.f32.mrf.mxu1 }
 0x38b   :  { %20966 = vst [vmem:[#allocation295_spill] sm:$0xff] %v18685_v55 }
 0x38c   :  { %14229 = vmatmul.mubr.msk.f32.gmra.mxu1 %vm582_vm2, %v5214_v9 }
 0x38d   :  { %14231 = vmatprep.mubr.msk.f32.mxu1 %vm582_vm2, %v5216_v62  ;;  %v5262_v62 = vld [vmem:[#allocation2 + $0x350] ss:$2 sm:$0xff] }
 0x390   :  { %14232 = vmatmul.mubr.msk.f32.gmra.mxu1 %vm582_vm2, %v5218_v31  ;;  %v18687_v41 = vpop.f32.mrf.mxu1 }
 0x391   :  { %14234 = vmatprep.mubr.msk.f32.mxu1 %vm582_vm2, %v5220_v54  ;;  %20967 = vst [vmem:[#allocation261_spill] sm:$0xff] %v18687_v41  ;;  %v5264_v54 = vld [vmem:[#allocation2 + $0x360] ss:$2 sm:$0xff] }
 0x392   :  { %v18691_v14 = vpop.f32.mrf.mxu1 }
 0x393   :  { %20968 = vst [vmem:[#allocation298_spill] sm:$0xff] %v18691_v14 }
 0x394   :  { %14235 = vmatmul.mubr.msk.f32.gmra.mxu1 %vm582_vm2, %v5222_v23  ;;  %v5266_v23 = vld [vmem:[#allocation2 + $0x370] ss:$2 sm:$0xff] }
 0x395   :  { %14237 = vmatprep.mubr.msk.f32.mxu1 %vm582_vm2, %v5224_v3  ;;  %v18705_v3 = vpop.f32.mrf.mxu0 }
 0x398   :  { %14238 = vmatmul.mubr.msk.f32.gmra.mxu1 %vm582_vm2, %v5226_v50  ;;  %v18695_v58 = vpop.f32.mrf.mxu1 }
 0x399   :  { %14240 = vmatprep.mubr.msk.f32.mxu1 %vm582_vm2, %v5228_v47  ;;  %20969 = vst [vmem:[#allocation262_spill] sm:$0xff] %v18695_v58  ;;  %v5268_v47 = vld [vmem:[#allocation2 + $0x380] ss:$2 sm:$0xff] }
 0x39a   :  { %v18699_v9 = vpop.f32.mrf.mxu1 }
 0x39b   :  { %20970 = vst [vmem:[#allocation301_spill] sm:$0xff] %v18699_v9 }
 0x39c   :  { %14241 = vmatmul.mubr.msk.f32.gmra.mxu1 %vm582_vm2, %v5230_v53 }
 0x39d   :  { %14243 = vmatprep.mubr.msk.f32.mxu1 %vm582_vm2, %v5232_v30  ;;  %v5270_v30 = vld [vmem:[#allocation2 + $0x390] ss:$2 sm:$0xff] }
 0x3a0   :  { %14244 = vmatmul.mubr.msk.f32.gmra.mxu1 %vm582_vm2, %v5234_v29  ;;  %v18701_v31 = vpop.f32.mrf.mxu1  ;;  %v18713_v29 = vpop.f32.mrf.mxu0 }
 0x3a1   :  { %14246 = vmatprep.mubr.msk.f32.mxu1 %vm582_vm2, %v5236_v15  ;;  %20971 = vst [vmem:[#allocation263_spill] sm:$0xff] %v18701_v31  ;;  %v5272_v15 = vld [vmem:[#allocation2 + $0x3a0] ss:$2 sm:$0xff] }
 0x3a2   :  { %v18707_v50 = vpop.f32.mrf.mxu1 }
 0x3a3   :  { %20972 = vst [vmem:[#allocation304_spill] sm:$0xff] %v18707_v50 }
 0x3a4   :  { %14247 = vmatmul.mubr.msk.f32.gmra.mxu1 %vm582_vm2, %v5238_v56 }
 0x3a5   :  { %14249 = vmatprep.mubr.msk.f32.mxu1 %vm582_vm2, %v5240_v51  ;;  %v5274_v51 = vld [vmem:[#allocation2 + $0x3b0] ss:$2 sm:$0xff] }
 0x3a8   :  { %14250 = vmatmul.mubr.msk.f32.gmra.mxu1 %vm582_vm2, %v5242_v0  ;;  %v18711_v53 = vpop.f32.mrf.mxu1  ;;  %v18719_v0 = vpop.f32.mrf.mxu0 }
 0x3a9   :  { %14252 = vmatprep.mubr.msk.f32.mxu1 %vm582_vm2, %v5244_v43  ;;  %20973 = vst [vmem:[#allocation264_spill] sm:$0xff] %v18711_v53  ;;  %v5278_v43 = vld [vmem:[#allocation2 + $0x3d0] ss:$2 sm:$0xff] }
 0x3aa   :  { %v18717_v56 = vpop.f32.mrf.mxu1  ;;  %v18725_v52 = vpop.f32.mrf.mxu0 }
 0x3ab   :  { %20974 = vst [vmem:[#allocation307_spill] sm:$0xff] %v18717_v56 }
 0x3ac   :  { %14253 = vmatmul.mubr.msk.f32.gmra.mxu1 %vm582_vm2, %v5246_v18  ;;  %v5280_v18 = vld [vmem:[#allocation2 + $0x3e0] ss:$2 sm:$0xff]  ;;  %v18733_v21 = vpop.f32.mrf.mxu0 }
 0x3ad   :  { %14255 = vmatprep.mubr.msk.f32.mxu1 %vm582_vm2, %v5248_v40  ;;  %v5282_v40 = vld [vmem:[#allocation2 + $0x3f0] ss:$2 sm:$0xff] }
 0x3b0   :  { %14256 = vmatmul.mubr.msk.f32.gmra.mxu1 %vm582_vm2, %v5250_v45  ;;  %v18721_v42 = vpop.f32.mrf.mxu1 }
 0x3b1   :  { %14258 = vmatprep.mubr.msk.f32.mxu1 %vm582_vm2, %v5252_v48  ;;  %20975 = vst [vmem:[#allocation265_spill] sm:$0xff] %v18721_v42  ;;  %v18738_v48 = vpop.f32.mrf.mxu0 }
 0x3b2   :  { %v18727_v59 = vpop.f32.mrf.mxu1 }
 0x3b3   :  { %20976 = vst [vmem:[#allocation310_spill] sm:$0xff] %v18727_v59 }
 0x3b4   :  { %14259 = vmatmul.mubr.msk.f32.gmra.mxu1 %vm582_vm2, %v5254_v35 }
 0x3b5   :  { %14261 = vmatprep.mubr.msk.f32.mxu1 %vm582_vm2, %v5256_v22  ;;  %v18742_v22 = vpop.f32.mrf.mxu0 }
 0x3b8   :  { %14262 = vmatmul.mubr.msk.f32.gmra.mxu1 %vm582_vm2, %v5258_v44  ;;  %v18731_v61 = vpop.f32.mrf.mxu1 }
 0x3b9   :  { %14264 = vmatprep.mubr.msk.f32.mxu1 %vm582_vm2, %v5260_v32  ;;  %20977 = vst [vmem:[#allocation266_spill] sm:$0xff] %v18731_v61 }
 0x3ba   :  { %v18736_v45 = vpop.f32.mrf.mxu1 }
 0x3bb   :  { %20978 = vst [vmem:[#allocation313_spill] sm:$0xff] %v18736_v45 }
 0x3bc   :  { %14265 = vmatmul.mubr.msk.f32.gmra.mxu1 %vm582_vm2, %v5262_v62  ;;  %v18748_v62 = vpop.f32.mrf.mxu0 }
 0x3bd   :  { %14267 = vmatprep.mubr.msk.f32.mxu1 %vm582_vm2, %v5264_v54 }
 0x3c0   :  { %14268 = vmatmul.mubr.msk.f32.gmra.mxu1 %vm582_vm2, %v5266_v23  ;;  %v18740_v35 = vpop.f32.mrf.mxu1  ;;  %v18752_v23 = vpop.f32.mrf.mxu0 }
 0x3c1   :  { %14270 = vmatprep.mubr.msk.f32.mxu1 %vm582_vm2, %v5268_v47  ;;  %20979 = vst [vmem:[#allocation267_spill] sm:$0xff] %v18740_v35 }
 0x3c2   :  { %v18744_v44 = vpop.f32.mrf.mxu1 }
 0x3c3   :  { %20980 = vst [vmem:[#allocation316_spill] sm:$0xff] %v18744_v44 }
 0x3c4   :  { %14271 = vmatmul.mubr.msk.f32.gmra.mxu1 %vm582_vm2, %v5270_v30  ;;  %v18756_v30 = vpop.f32.mrf.mxu0 }
 0x3c5   :  { %14273 = vmatprep.mubr.msk.f32.mxu1 %vm582_vm2, %v5272_v15 }
 0x3c8   :  { %14274 = vmatmul.mubr.msk.f32.gmra.mxu1 %vm582_vm2, %v5274_v51  ;;  %v18746_v32 = vpop.f32.mrf.mxu1 }
 0x3c9   :  { %14276 = vmatprep.mubr.msk.f32.mxu1 %vm582_vm2, %v5276_v7  ;;  %20981 = vst [vmem:[#allocation268_spill] sm:$0xff] %v18746_v32  ;;  %v18762_v7 = vpop.f32.mrf.mxu0 }
 0x3ca   :  { %v18750_v54 = vpop.f32.mrf.mxu1 }
 0x3cb   :  { %20982 = vst [vmem:[#allocation319_spill] sm:$0xff] %v18750_v54 }
 0x3cc   :  { %14277 = vmatmul.mubr.msk.f32.gmra.mxu1 %vm582_vm2, %v5278_v43 }
 0x3cd   :  { %14279 = vmatprep.mubr.msk.f32.mxu1 %vm582_vm2, %v5280_v18  ;;  %v18766_v18 = vpop.f32.mrf.mxu0 }
 0x3d0   :  { %14280 = vmatmul.mubr.msk.f32.gmra.mxu1 %vm582_vm2, %v5282_v40  ;;  %v18754_v47 = vpop.f32.mrf.mxu1 }
 0x3d1   :  { %20983 = vst [vmem:[#allocation269_spill] sm:$0xff] %v18754_v47  ;;  %v18775_v47 = vpop.f32.mrf.mxu0 }
 0x3d2   :  { %v18758_v15 = vpop.f32.mrf.mxu1 }
 0x3d3   :  { %20984 = vst [vmem:[#allocation322_spill] sm:$0xff] %v18758_v15  ;;  %v18782_v15 = vpop.f32.mrf.mxu0 }
 0x3d5   :  { %v18786_v32 = vpop.f32.mrf.mxu0 }
 0x3d7   :  { %v18790_v44 = vpop.f32.mrf.mxu0 }
 0x3d8   :  { %v18760_v51 = vpop.f32.mrf.mxu1 }
 0x3d9   :  { %20985 = vst [vmem:[#allocation270_spill] sm:$0xff] %v18760_v51  ;;  %v18796_v61 = vpop.f32.mrf.mxu0 }
 0x3da   :  { %v18764_v43 = vpop.f32.mrf.mxu1 }
 0x3db   :  { %20986 = vst [vmem:[#allocation325_spill] sm:$0xff] %v18764_v43  ;;  %v18800_v59 = vpop.f32.mrf.mxu0 }
 0x3dd   :  { %v18804_v42 = vpop.f32.mrf.mxu0 }
 0x3e0   :  { %v18768_v40 = vpop.f32.mrf.mxu1 }
 0x3e1   :  { %20987 = vst [vmem:[#allocation271_spill] sm:$0xff] %v18768_v40 }
 0x3e2   :  { %v18777_v54 = vpop.f32.mrf.mxu1 }
 0x3e3   :  { %20988 = vst [vmem:[#allocation328_spill] sm:$0xff] %v18777_v54 }
 0x3e8   :  { %v18780_v51 = vpop.f32.mrf.mxu1 }
 0x3e9   :  { %20989 = vst [vmem:[#allocation272_spill] sm:$0xff] %v18780_v51 }
 0x3ea   :  { %v18784_v43 = vpop.f32.mrf.mxu1 }
 0x3eb   :  { %20990 = vst [vmem:[#allocation331_spill] sm:$0xff] %v18784_v43 }
 0x3f0   :  { %v18788_v40 = vpop.f32.mrf.mxu1 }
 0x3f1   :  { %20991 = vst [vmem:[#allocation273_spill] sm:$0xff] %v18788_v40  ;;  %v18810_v40 = vpop.f32.mrf.mxu0 }
 0x3f2   :  { %v18792_v35 = vpop.f32.mrf.mxu1 }
 0x3f3   :  { %20992 = vst [vmem:[#allocation334_spill] sm:$0xff] %v18792_v35  ;;  %v18814_v35 = vpop.f32.mrf.mxu0 }
 0x3f8   :  { %v18794_v45 = vpop.f32.mrf.mxu1 }
 0x3f9   :  { %20993 = vst [vmem:[#allocation274_spill] sm:$0xff] %v18794_v45 }
 0x3fa   :  { %v18798_v54 = vpop.f32.mrf.mxu1 }
 0x3fb   :  { %20994 = vst [vmem:[#allocation337_spill] sm:$0xff] %v18798_v54  ;;  %v18820_v54 = vpop.f32.mrf.mxu0 }
 0x3fd   :  { %v18823_v9 = vpop.f32.mrf.mxu0 }
 0x400   :  { %v18802_v51 = vpop.f32.mrf.mxu1 }
 0x401   :  { %20995 = vst [vmem:[#allocation275_spill] sm:$0xff] %v18802_v51 }
 0x402   :  { %v18806_v43 = vpop.f32.mrf.mxu1 }
 0x403   :  { %20996 = vst [vmem:[#allocation340_spill] sm:$0xff] %v18806_v43 }
 0x408   :  { %v18808_v56 = vpop.f32.mrf.mxu1 }
 0x409   :  { %20997 = vst [vmem:[#allocation276_spill] sm:$0xff] %v18808_v56  ;;  %v18828_v56 = vld [vmem:[%s20203_s4] ss:$0 sm:$0xff] }
 0x40a   :  { %v18812_v53 = vpop.f32.mrf.mxu1 }
 0x40b   :  { %20998 = vst [vmem:[#allocation343_spill] sm:$0xff] %v18812_v53 }
 0x410   :  { %v18816_v45 = vpop.f32.mrf.mxu1 }
 0x411   :  { %20999 = vst [vmem:[#allocation277_spill] sm:$0xff] %v18816_v45 }
 0x412   :  { %v18818_v50 = vpop.f32.mrf.mxu1 }
 0x413   :  { %21000 = vst [vmem:[#allocation346_spill] sm:$0xff] %v18818_v50 }
 0x414   :  { %v14188_v31 = vpop.f32.mrf.mxu1 }
 0x415   :  { %v6257_v51 = vadd.f32 %v14188_v31, %v18557_v63  ;;  %v18835_v63 = vpop.f32.mrf.mxu0 }
 0x416   :  { %v6251_v43 = vpop.f32.mrf.mxu1 }
 0x417   :  { %v7279_v53 = vadd.f32 %v18705_v3, %v6257_v51  ;;  %v6252_v58 = vadd.f32 %v6251_v43, %v18561_v4  ;;  %v18840_v3 = vpop.f32.mrf.mxu0 }
 0x418   :  { %v14191_v45 = vpop.f32.mrf.mxu1 }
 0x419   :  { %v7349_v50 = vadd.f32 %v18828_v56, %v7279_v53  ;;  %v7278_v14 = vadd.f32 %v18713_v29, %v6252_v58  ;;  %v6267_v41 = vadd.f32 %v14191_v45, %v18563_v1 }
 0x41a   :  { %v6261_v31 = vpop.f32.mrf.mxu1 }
 0x41b   :  { %v7413_v55 = vmax.f32 %v7349_v50, 0.0  ;;  %v7348_v12 = vadd.f32 %v18828_v56, %v7278_v14  ;;  %v7281_v20 = vadd.f32 %v18719_v0, %v6267_v41  ;;  %v6262_v8 = vadd.f32 %v6261_v31, %v18567_v33  ;;  %v18850_v0 = vpop.f32.mrf.mxu0 }
 0x41c   :  { %v14194_v4 = vpop.f32.mrf.mxu1 }
 0x41d   :  { %7477 = vst.msk [vmem:[#allocation3 + $0x8] sm:$0xff] %vm584_vm3, %v7413_v55  ;;  %v7412_v53 = vmax.f32 %v7348_v12, 0.0  ;;  %v7351_v58 = vadd.f32 %v18828_v56, %v7281_v20  ;;  %v7280_v1 = vadd.f32 %v18725_v52, %v6262_v8  ;;  %v6277_v29 = vadd.f32 %v14194_v4, %v18571_v36  ;;  %v18856_v52 = vpop.f32.mrf.mxu0 }
 0x41e   :  { %v6271_v45 = vpop.f32.mrf.mxu1 }
 0x41f   :  { %7476 = vst.msk [vmem:[#allocation3] sm:$0xff] %vm584_vm3, %v7412_v53  ;;  %v7415_v14 = vmax.f32 %v7351_v58, 0.0  ;;  %v7350_v41 = vadd.f32 %v18828_v56, %v7280_v1  ;;  %v7283_v33 = vadd.f32 %v18733_v21, %v6277_v29  ;;  %v6272_v50 = vadd.f32 %v6271_v45, %v18575_v24  ;;  %v18866_v1 = vpop.f32.mrf.mxu0 }
 0x420   :  { %v14197_v55 = vpop.f32.mrf.mxu1 }
 0x421   :  { %7479 = vst.msk [vmem:[#allocation3 + $0x18] sm:$0xff] %vm584_vm3, %v7415_v14  ;;  %v7414_v20 = vmax.f32 %v7350_v41, 0.0  ;;  %v7353_v8 = vadd.f32 %v18828_v56, %v7283_v33  ;;  %v7282_v36 = vadd.f32 %v18738_v48, %v6272_v50  ;;  %v6287_v12 = vadd.f32 %v14197_v55, %v18580_v37  ;;  %v18873_v33 = vpop.f32.mrf.mxu0 }
 0x422   :  { %v6281_v51 = vpop.f32.mrf.mxu1 }
 0x423   :  { %7478 = vst.msk [vmem:[#allocation3 + $0x10] sm:$0xff] %vm584_vm3, %v7414_v20  ;;  %v7417_v21 = vmax.f32 %v7353_v8, 0.0  ;;  %v7352_v24 = vadd.f32 %v18828_v56, %v7282_v36  ;;  %v7285_v43 = vadd.f32 %v18742_v22, %v6287_v12  ;;  %v6282_v31 = vadd.f32 %v6281_v51, %v18584_v13 }
 0x424   :  { %v14200_v4 = vpop.f32.mrf.mxu1 }
 0x425   :  { %7481 = vst.msk [vmem:[#allocation3 + $0x28] sm:$0xff] %vm584_vm3, %v7417_v21  ;;  %v7416_v53 = vmax.f32 %v7352_v24, 0.0  ;;  %v7355_v48 = vadd.f32 %v18828_v56, %v7285_v43  ;;  %v7284_v37 = vadd.f32 %v18748_v62, %v6282_v31  ;;  %v6297_v58 = vadd.f32 %v14200_v4, %v18588_v49 }
 0x426   :  { %v6291_v29 = vpop.f32.mrf.mxu1  ;;  %v7609_v45 = vld [vmem:[#allocation3 + $0x1] ss:$2 sm:$0xff] }
 0x427   :  { %7480 = vst.msk [vmem:[#allocation3 + $0x20] sm:$0xff] %vm584_vm3, %v7416_v53  ;;  %v7419_v14 = vmax.f32 %v7355_v48, 0.0  ;;  %v7354_v22 = vadd.f32 %v18828_v56, %v7284_v37  ;;  %v7287_v13 = vadd.f32 %v18752_v23, %v6297_v58  ;;  %v6292_v41 = vadd.f32 %v6291_v29, %v18592_v6  ;;  %14390 = vmatprep.mubr.msk.f32.mxu1 %vm584_vm3, %v7609_v45  ;;  %v7606_v6 = vld [vmem:[%s20204_s5 + $0x10] sm:$0xff]  ;;  %v7604_v45 = vld [vmem:[%s20204_s5] sm:$0xff] }
 0x428   :  { %v14203_v62 = vpop.f32.mrf.mxu1 }
 0x429   :  { %7483 = vst.msk [vmem:[#allocation3 + $0x38] sm:$0xff] %vm584_vm3, %v7419_v14  ;;  %v7418_v49 = vmax.f32 %v7354_v22, 0.0  ;;  %v7357_v50 = vadd.f32 %v18828_v56, %v7287_v13  ;;  %v7286_v55 = vadd.f32 %v18756_v30, %v6292_v41  ;;  %v6307_v20 = vadd.f32 %v14203_v62, %v18594_v39  ;;  %v18888_v39 = vpop.f32.mrf.mxu0 }
 0x42a   :  { %v6301_v8 = vpop.f32.mrf.mxu1  ;;  %v7611_v36 = vld [vmem:[#allocation3 + $0x11] ss:$2 sm:$0xff]  ;;  %v8320_v12 = vld [vmem:[#allocation3 + $0x2] ss:$2 sm:$0xff] }
 0x42b   :  { %7482 = vst.msk [vmem:[#allocation3 + $0x30] sm:$0xff] %vm584_vm3, %v7418_v49  ;;  %v7421_v23 = vmax.f32 %v7357_v50, 0.0  ;;  %v7356_v51 = vadd.f32 %v18828_v56, %v7286_v55  ;;  %v7289_v21 = vadd.f32 %v18762_v7, %v6307_v20  ;;  %v6302_v24 = vadd.f32 %v6301_v8, %v18598_v57  ;;  %14391 = vmatmul.mubr.msk.f32.vlgmr.msra.gmra.mxu1 %vm584_vm3, %v7611_v36  ;;  %v7605_v57 = vld [vmem:[%s20204_s5 + $0x8] sm:$0xff]  ;;  %v18898_v53 = vpop.f32.mrf.mxu0 }
 0x42c   :  { %14502 = vmatprep.mubr.msk.f32.mxu0 %vm584_vm3, %v8320_v12  ;;  %v14206_v30 = vpop.f32.mrf.mxu1  ;;  %14439 = vmatpush3.msra.mxu1 %v18773_v16 }
 0x42d   :  { %7485 = vst.msk [vmem:[#allocation3 + $0x48] sm:$0xff] %vm584_vm3, %v7421_v23  ;;  %v7420_v43 = vmax.f32 %v7356_v51, 0.0  ;;  %v7359_v31 = vadd.f32 %v18828_v56, %v7289_v21  ;;  %v7288_v4 = vadd.f32 %v18766_v18, %v6302_v24  ;;  %v6317_v7 = vadd.f32 %v14206_v30, %v18602_v34  ;;  %14440 = vmatprep.subr.mxu1 %v7606_v6 }
 0x42e   :  { %v6311_v48 = vpop.f32.mrf.mxu1  ;;  %v7613_v37 = vld [vmem:[#allocation3 + $0x21] ss:$2 sm:$0xff]  ;;  %v8322_v58 = vld [vmem:[#allocation3 + $0x12] ss:$2 sm:$0xff]  ;;  %14441 = vmatpush3.msra.mxu1 %v7606_v6 }
 0x42f   :  { %7484 = vst.msk [vmem:[#allocation3 + $0x40] sm:$0xff] %vm584_vm3, %v7420_v43  ;;  %v7423_v16 = vmax.f32 %v7359_v31, 0.0  ;;  %v7358_v29 = vadd.f32 %v18828_v56, %v7288_v4  ;;  %v7291_v18 = vadd.f32 %v18775_v47, %v6317_v7  ;;  %v6312_v34 = vadd.f32 %v6311_v48, %v18606_v26  ;;  %14393 = vmatprep.mubr.msk.f32.mxu1 %vm584_vm3, %v7613_v37  ;;  %v18913_v26 = vpop.f32.mrf.mxu0 }
 0x430   :  { %14503 = vmatmul.mubr.msk.f32.vlgmr.msra.gmra.mxu0 %vm584_vm3, %v8322_v58  ;;  %v14209_v14 = vpop.f32.mrf.mxu1  ;;  %14442 = vmatprep.subr.mxu1 %v7605_v57 }
 0x431   :  { %7487 = vst.msk [vmem:[#allocation3 + $0x58] sm:$0xff] %vm584_vm3, %v7423_v16  ;;  %v7422_v22 = vmax.f32 %v7358_v29, 0.0  ;;  %v7361_v13 = vadd.f32 %v18828_v56, %v7291_v18  ;;  %v7290_v41 = vadd.f32 %v18782_v15, %v6312_v34  ;;  %v6327_v47 = vadd.f32 %v14209_v14, %v18608_v17  ;;  %14443 = vmatpush3.msra.mxu1 %v7605_v57  ;;  %v18921_v17 = vpop.f32.mrf.mxu0 }
 0x432   :  { %v6321_v62 = vpop.f32.mrf.mxu1  ;;  %v7615_v49 = vld [vmem:[#allocation3 + $0x31] ss:$2 sm:$0xff]  ;;  %v8324_v50 = vld [vmem:[#allocation3 + $0x22] ss:$2 sm:$0xff]  ;;  %14444 = vmatprep.subr.mxu1 %v7604_v45 }
 0x433   :  { %7486 = vst.msk [vmem:[#allocation3 + $0x50] sm:$0xff] %vm584_vm3, %v7422_v22  ;;  %v7425_v55 = vmax.f32 %v7361_v13, 0.0  ;;  %v7360_v20 = vadd.f32 %v18828_v56, %v7290_v41  ;;  %v7293_v8 = vadd.f32 %v18786_v32, %v6327_v47  ;;  %v6322_v36 = vadd.f32 %v6321_v62, %v18612_v28  ;;  %14394 = vmatmul.mubr.msk.f32.gmra.mxu1 %vm584_vm3, %v7615_v49  ;;  %v18933_v4 = vpop.f32.mrf.mxu0 }
 0x434   :  { %14505 = vmatprep.mubr.msk.f32.mxu0 %vm584_vm3, %v8324_v50  ;;  %v14212_v15 = vpop.f32.mrf.mxu1  ;;  %14445 = vmatpush3.msra.mxu1 %v7604_v45 }
 0x435   :  { %7489 = vst.msk [vmem:[#allocation3 + $0x68] sm:$0xff] %vm584_vm3, %v7425_v55  ;;  %v7424_v12 = vmax.f32 %v7360_v20, 0.0  ;;  %v7363_v6 = vadd.f32 %v18828_v56, %v7293_v8  ;;  %v7292_v23 = vadd.f32 %v18790_v44, %v6322_v36  ;;  %v6337_v51 = vadd.f32 %v14212_v15, %v18616_v46  ;;  %v18939_v37 = vpop.f32.mrf.mxu0 }
 0x436   :  { %v6331_v32 = vpop.f32.mrf.mxu1  ;;  %v7617_v21 = vld [vmem:[#allocation3 + $0x41] ss:$2 sm:$0xff]  ;;  %v8326_v28 = vld [vmem:[#allocation3 + $0x32] ss:$2 sm:$0xff] }
 0x437   :  { %7488 = vst.msk [vmem:[#allocation3 + $0x60] sm:$0xff] %vm584_vm3, %v7424_v12  ;;  %v7427_v24 = vmax.f32 %v7363_v6, 0.0  ;;  %v7362_v30 = vadd.f32 %v18828_v56, %v7292_v23  ;;  %v7295_v43 = vadd.f32 %v18796_v61, %v6337_v51  ;;  %v6332_v31 = vadd.f32 %v6331_v32, %v18623_v60  ;;  %14396 = vmatprep.mubr.msk.f32.mxu1 %vm584_vm3, %v7617_v21  ;;  %v18951_v13 = vpop.f32.mrf.mxu0 }
 0x438   :  { %14506 = vmatmul.mubr.msk.f32.gmra.mxu0 %vm584_vm3, %v8326_v28  ;;  %v14215_v44 = vpop.f32.mrf.mxu1 }
 0x439   :  { %7491 = vst.msk [vmem:[#allocation3 + $0x78] sm:$0xff] %vm584_vm3, %v7427_v24  ;;  %v7426_v46 = vmax.f32 %v7362_v30, 0.0  ;;  %v7365_v7 = vadd.f32 %v18828_v56, %v7295_v43  ;;  %v7294_v57 = vadd.f32 %v18800_v59, %v6332_v31  ;;  %v6347_v48 = vadd.f32 %v14215_v44, %v18625_v5 }
 0x43a   :  { %v6341_v61 = vpop.f32.mrf.mxu1  ;;  %v7619_v60 = vld [vmem:[#allocation3 + $0x51] ss:$2 sm:$0xff]  ;;  %v8328_v58 = vld [vmem:[#allocation3 + $0x42] ss:$2 sm:$0xff] }
 0x43b   :  { %7490 = vst.msk [vmem:[#allocation3 + $0x70] sm:$0xff] %vm584_vm3, %v7426_v46  ;;  %v7429_v16 = vmax.f32 %v7365_v7, 0.0  ;;  %v7364_v29 = vadd.f32 %v18828_v56, %v7294_v57  ;;  %v7297_v18 = vadd.f32 %v18804_v42, %v6347_v48  ;;  %v6342_v34 = vadd.f32 %v6341_v61, %v18629_v10  ;;  %14397 = vmatmul.mubr.msk.f32.gmra.mxu1 %vm584_vm3, %v7619_v60  ;;  %v21001_v61 = vld [vmem:[#allocation259_spill] sm:$0xff] }
 0x43c   :  { %14508 = vmatprep.mubr.msk.f32.mxu0 %vm584_vm3, %v8328_v58  ;;  %v14218_v59 = vpop.f32.mrf.mxu1 }
 0x43d   :  { %7493 = vst.msk [vmem:[#allocation3 + $0x88] sm:$0xff] %vm584_vm3, %v7429_v16  ;;  %v7428_v5 = vmax.f32 %v7364_v29, 0.0  ;;  %v7367_v45 = vadd.f32 %v18828_v56, %v7297_v18  ;;  %v7296_v14 = vadd.f32 %v18810_v40, %v6342_v34  ;;  %v6357_v22 = vadd.f32 %v14218_v59, %v18633_v38  ;;  %v18959_v40 = vpop.f32.mrf.mxu0  ;;  %v21002_v59 = vld [vmem:[#allocation292_spill] sm:$0xff] }
 0x43e   :  { %v6351_v41 = vpop.f32.mrf.mxu1  ;;  %v7621_v42 = vld [vmem:[#allocation3 + $0x61] ss:$2 sm:$0xff]  ;;  %v8330_v47 = vld [vmem:[#allocation3 + $0x52] ss:$2 sm:$0xff] }
 0x43f   :  { %7492 = vst.msk [vmem:[#allocation3 + $0x80] sm:$0xff] %vm584_vm3, %v7428_v5  ;;  %v7431_v10 = vmax.f32 %v7367_v45, 0.0  ;;  %v7366_v62 = vadd.f32 %v18828_v56, %v7296_v14  ;;  %v7299_v49 = vadd.f32 %v18814_v35, %v6357_v22  ;;  %v6352_v50 = vadd.f32 %v6351_v41, %v18639_v19  ;;  %14399 = vmatprep.mubr.msk.f32.mxu1 %vm584_vm3, %v7621_v42  ;;  %v18971_v32 = vpop.f32.mrf.mxu0  ;;  %v21003_v42 = vld [vmem:[#allocation260_spill] sm:$0xff] }
 0x440   :  { %14509 = vmatmul.mubr.msk.f32.gmra.mxu0 %vm584_vm3, %v8330_v47  ;;  %v14221_v38 = vpop.f32.mrf.mxu1 }
 0x441   :  { %7495 = vst.msk [vmem:[#allocation3 + $0x98] sm:$0xff] %vm584_vm3, %v7431_v10  ;;  %v7430_v55 = vmax.f32 %v7366_v62, 0.0  ;;  %v7369_v20 = vadd.f32 %v18828_v56, %v7299_v49  ;;  %v7298_v8 = vadd.f32 %v18820_v54, %v6352_v50  ;;  %v6367_v36 = vadd.f32 %v14221_v38, %v18641_v11  ;;  %v18977_v30 = vpop.f32.mrf.mxu0 }
 0x442   :  { %v6361_v15 = vpop.f32.mrf.mxu1  ;;  %v7623_v35 = vld [vmem:[#allocation3 + $0x71] ss:$2 sm:$0xff]  ;;  %v8332_v12 = vld [vmem:[#allocation3 + $0x62] ss:$2 sm:$0xff] }
 0x443   :  { %7494 = vst.msk [vmem:[#allocation3 + $0x90] sm:$0xff] %vm584_vm3, %v7430_v55  ;;  %v7433_v19 = vmax.f32 %v7369_v20, 0.0  ;;  %v7368_v6 = vadd.f32 %v18828_v56, %v7298_v8  ;;  %v7301_v23 = vadd.f32 %v18823_v9, %v6367_v36  ;;  %v6362_v51 = vadd.f32 %v6361_v15, %v18645_v25  ;;  %14400 = vmatmul.mubr.msk.f32.gmra.mxu1 %vm584_vm3, %v7623_v35  ;;  %v18989_v58 = vpop.f32.mrf.mxu0  ;;  %v21004_v55 = vld [vmem:[#allocation295_spill] sm:$0xff] }
 0x444   :  { %14511 = vmatprep.mubr.msk.f32.mxu0 %vm584_vm3, %v8332_v12  ;;  %v14224_v54 = vpop.f32.mrf.mxu1  ;;  %v21005_v12 = vld [vmem:[#allocation261_spill] sm:$0xff] }
 0x445   :  { %7497 = vst.msk [vmem:[#allocation3 + $0xa8] sm:$0xff] %vm584_vm3, %v7433_v19  ;;  %v7432_v11 = vmax.f32 %v7368_v6, 0.0  ;;  %v7371_v21 = vadd.f32 %v18828_v56, %v7301_v23  ;;  %v7300_v28 = vadd.f32 %v18835_v63, %v6362_v51  ;;  %v6377_v24 = vadd.f32 %v14224_v54, %v18649_v2 }
 0x446   :  { %v6371_v9 = vpop.f32.mrf.mxu1  ;;  %v7625_v25 = vld [vmem:[#allocation3 + $0x81] ss:$2 sm:$0xff]  ;;  %v8334_v43 = vld [vmem:[#allocation3 + $0x72] ss:$2 sm:$0xff] }
 0x447   :  { %7496 = vst.msk [vmem:[#allocation3 + $0xa0] sm:$0xff] %vm584_vm3, %v7432_v11  ;;  %v7435_v31 = vmax.f32 %v7371_v21, 0.0  ;;  %v7370_v44 = vadd.f32 %v18828_v56, %v7300_v28  ;;  %v7303_v46 = vadd.f32 %v18840_v3, %v6377_v24  ;;  %v6372_v7 = vadd.f32 %v6371_v9, %v18653_v27  ;;  %14402 = vmatprep.mubr.msk.f32.mxu1 %vm584_vm3, %v7625_v25  ;;  %v21006_v28 = vld [vmem:[#allocation298_spill] sm:$0xff] }
 0x448   :  { %14512 = vmatmul.mubr.msk.f32.gmra.mxu0 %vm584_vm3, %v8334_v43  ;;  %v14227_v63 = vpop.f32.mrf.mxu1 }
 0x449   :  { %7499 = vst.msk [vmem:[#allocation3 + $0xb8] sm:$0xff] %vm584_vm3, %v7435_v31  ;;  %v7434_v2 = vmax.f32 %v7370_v44, 0.0  ;;  %v7373_v57 = vadd.f32 %v18828_v56, %v7303_v46  ;;  %v7302_v48 = vadd.f32 %v18850_v0, %v6372_v7  ;;  %v6387_v60 = vadd.f32 %v14227_v63, %v21001_v61  ;;  %v18997_v0 = vpop.f32.mrf.mxu0  ;;  %v21007_v31 = vld [vmem:[#allocation262_spill] sm:$0xff]  ;;  %v21008_v61 = vld [vmem:[#allocation301_spill] sm:$0xff] }
 0x44a   :  { %v6381_v16 = vpop.f32.mrf.mxu1  ;;  %v7627_v3 = vld [vmem:[#allocation3 + $0x91] ss:$2 sm:$0xff]  ;;  %v8336_v29 = vld [vmem:[#allocation3 + $0x82] ss:$2 sm:$0xff] }
 0x44b   :  { %7498 = vst.msk [vmem:[#allocation3 + $0xb0] sm:$0xff] %vm584_vm3, %v7434_v2  ;;  %v7437_v27 = vmax.f32 %v7373_v57, 0.0  ;;  %v7372_v18 = vadd.f32 %v18828_v56, %v7302_v48  ;;  %v7305_v34 = vadd.f32 %v18856_v52, %v6387_v60  ;;  %v6382_v5 = vadd.f32 %v6381_v16, %v21002_v59  ;;  %14403 = vmatmul.mubr.msk.f32.gmra.mxu1 %vm584_vm3, %v7627_v3  ;;  %v19009_v8 = vpop.f32.mrf.mxu0 }
 0x44c   :  { %14514 = vmatprep.mubr.msk.f32.mxu0 %vm584_vm3, %v8336_v29  ;;  %v14230_v45 = vpop.f32.mrf.mxu1 }
 0x44d   :  { %7501 = vst.msk [vmem:[#allocation3 + $0xc8] sm:$0xff] %vm584_vm3, %v7437_v27  ;;  %v7436_v14 = vmax.f32 %v7372_v18, 0.0  ;;  %v7375_v22 = vadd.f32 %v18828_v56, %v7305_v34  ;;  %v7304_v41 = vadd.f32 %v18866_v1, %v6382_v5  ;;  %v6397_v47 = vadd.f32 %v14230_v45, %v21003_v42  ;;  %v19015_v6 = vpop.f32.mrf.mxu0  ;;  %v21009_v18 = vld [vmem:[#allocation263_spill] sm:$0xff] }
 0x44e   :  { %v6391_v10 = vpop.f32.mrf.mxu1  ;;  %v7629_v52 = vld [vmem:[#allocation3 + $0xa1] ss:$2 sm:$0xff]  ;;  %v8338_v62 = vld [vmem:[#allocation3 + $0x92] ss:$2 sm:$0xff] }
 0x44f   :  { %7500 = vst.msk [vmem:[#allocation3 + $0xc0] sm:$0xff] %vm584_vm3, %v7436_v14  ;;  %v7439_v49 = vmax.f32 %v7375_v22, 0.0  ;;  %v7374_v50 = vadd.f32 %v18828_v56, %v7304_v41  ;;  %v7307_v38 = vadd.f32 %v18873_v33, %v6397_v47  ;;  %v6392_v20 = vadd.f32 %v6391_v10, %v21004_v55  ;;  %14405 = vmatprep.mubr.msk.f32.mxu1 %vm584_vm3, %v7629_v52  ;;  %v19027_v46 = vpop.f32.mrf.mxu0  ;;  %v21010_v41 = vld [vmem:[#allocation304_spill] sm:$0xff] }
 0x450   :  { %14515 = vmatmul.mubr.msk.f32.gmra.mxu0 %vm584_vm3, %v8338_v62  ;;  %v14233_v1 = vpop.f32.mrf.mxu1 }
 0x451   :  { %7503 = vst.msk [vmem:[#allocation3 + $0xd8] sm:$0xff] %vm584_vm3, %v7439_v49  ;;  %v7438_v36 = vmax.f32 %v7374_v50, 0.0  ;;  %v7377_v15 = vadd.f32 %v18828_v56, %v7307_v38  ;;  %v7306_v35 = vadd.f32 %v18888_v39, %v6392_v20  ;;  %v6407_v19 = vadd.f32 %v14233_v1, %v21005_v12  ;;  %v21011_v49 = vld [vmem:[#allocation264_spill] sm:$0xff] }
 0x452   :  { %v6401_v33 = vpop.f32.mrf.mxu1  ;;  %v7631_v23 = vld [vmem:[#allocation3 + $0xb1] ss:$2 sm:$0xff]  ;;  %v8340_v51 = vld [vmem:[#allocation3 + $0xa2] ss:$2 sm:$0xff] }
 0x453   :  { %7502 = vst.msk [vmem:[#allocation3 + $0xd0] sm:$0xff] %vm584_vm3, %v7438_v36  ;;  %v7441_v54 = vmax.f32 %v7377_v15, 0.0  ;;  %v7376_v11 = vadd.f32 %v18828_v56, %v7306_v35  ;;  %v7309_v21 = vadd.f32 %v18898_v53, %v6407_v19  ;;  %v6402_v24 = vadd.f32 %v6401_v33, %v21006_v28  ;;  %14406 = vmatmul.mubr.msk.f32.gmra.mxu1 %vm584_vm3, %v7631_v23  ;;  %v21012_v35 = vld [vmem:[#allocation307_spill] sm:$0xff] }
 0x454   :  { %14517 = vmatprep.mubr.msk.f32.mxu0 %vm584_vm3, %v8340_v51  ;;  %v14236_v39 = vpop.f32.mrf.mxu1  ;;  %v21013_v51 = vld [vmem:[#allocation265_spill] sm:$0xff] }
 0x455   :  { %7505 = vst.msk [vmem:[#allocation3 + $0xe8] sm:$0xff] %vm584_vm3, %v7441_v54  ;;  %v7440_v9 = vmax.f32 %v7376_v11, 0.0  ;;  %v7379_v25 = vadd.f32 %v18828_v56, %v7309_v21  ;;  %v7308_v43 = vadd.f32 %v18913_v26, %v6402_v24  ;;  %v6417_v44 = vadd.f32 %v14236_v39, %v21007_v31  ;;  %v19035_v26 = vpop.f32.mrf.mxu0 }
 0x456   :  { %v6411_v7 = vpop.f32.mrf.mxu1  ;;  %v7633_v53 = vld [vmem:[#allocation3 + $0xc1] ss:$2 sm:$0xff]  ;;  %v8342_v63 = vld [vmem:[#allocation3 + $0xb2] ss:$2 sm:$0xff] }
 0x457   :  { %7504 = vst.msk [vmem:[#allocation3 + $0xe0] sm:$0xff] %vm584_vm3, %v7440_v9  ;;  %v7443_v2 = vmax.f32 %v7379_v25, 0.0  ;;  %v7378_v57 = vadd.f32 %v18828_v56, %v7308_v43  ;;  %v7311_v48 = vadd.f32 %v18921_v17, %v6417_v44  ;;  %v6412_v60 = vadd.f32 %v6411_v7, %v21008_v61  ;;  %14408 = vmatprep.mubr.msk.f32.mxu1 %vm584_vm3, %v7633_v53  ;;  %v19047_v47 = vpop.f32.mrf.mxu0  ;;  %v21014_v25 = vld [vmem:[#allocation310_spill] sm:$0xff] }
 0x458   :  { %14518 = vmatmul.mubr.msk.f32.gmra.mxu0 %vm584_vm3, %v8342_v63  ;;  %v14239_v16 = vpop.f32.mrf.mxu1  ;;  %v21015_v63 = vld [vmem:[#allocation266_spill] sm:$0xff] }
 0x459   :  { %7507 = vst.msk [vmem:[#allocation3 + $0xf8] sm:$0xff] %vm584_vm3, %v7443_v2  ;;  %v7442_v3 = vmax.f32 %v7378_v57, 0.0  ;;  %v7381_v29 = vadd.f32 %v18828_v56, %v7311_v48  ;;  %v7310_v27 = vadd.f32 %v18933_v4, %v6412_v60  ;;  %v6427_v34 = vadd.f32 %v14239_v16, %v21009_v18  ;;  %v19053_v38 = vpop.f32.mrf.mxu0 }
 0x45a   :  { %v6421_v59 = vpop.f32.mrf.mxu1  ;;  %v7635_v17 = vld [vmem:[#allocation3 + $0xd1] ss:$2 sm:$0xff]  ;;  %v8344_v5 = vld [vmem:[#allocation3 + $0xc2] ss:$2 sm:$0xff] }
 0x45b   :  { %7506 = vst.msk [vmem:[#allocation3 + $0xf0] sm:$0xff] %vm584_vm3, %v7442_v3  ;;  %v7445_v45 = vmax.f32 %v7381_v29, 0.0  ;;  %v7380_v14 = vadd.f32 %v18828_v56, %v7310_v27  ;;  %v7313_v22 = vadd.f32 %v18939_v37, %v6427_v34  ;;  %v6422_v42 = vadd.f32 %v6421_v59, %v21010_v41  ;;  %14409 = vmatmul.mubr.msk.f32.gmra.mxu1 %vm584_vm3, %v7635_v17  ;;  %v19065_v11 = vpop.f32.mrf.mxu0  ;;  %v21016_v3 = vld [vmem:[#allocation313_spill] sm:$0xff]  ;;  %v21017_v17 = vld [vmem:[#allocation267_spill] sm:$0xff] }
 0x45c   :  { %14520 = vmatprep.mubr.msk.f32.mxu0 %vm584_vm3, %v8344_v5  ;;  %v14242_v4 = vpop.f32.mrf.mxu1 }
 0x45d   :  { %7509 = vst.msk [vmem:[#allocation3 + $0x108] sm:$0xff] %vm584_vm3, %v7445_v45  ;;  %v7444_v10 = vmax.f32 %v7380_v14, 0.0  ;;  %v7383_v52 = vadd.f32 %v18828_v56, %v7313_v22  ;;  %v7312_v62 = vadd.f32 %v18951_v13, %v6422_v42  ;;  %v6437_v50 = vadd.f32 %v14242_v4, %v21011_v49 }
 0x45e   :  { %v6431_v37 = vpop.f32.mrf.mxu1  ;;  %v7637_v55 = vld [vmem:[#allocation3 + $0xe1] ss:$2 sm:$0xff]  ;;  %v8346_v20 = vld [vmem:[#allocation3 + $0xd2] ss:$2 sm:$0xff] }
 0x45f   :  { %7508 = vst.msk [vmem:[#allocation3 + $0x100] sm:$0xff] %vm584_vm3, %v7444_v10  ;;  %v7447_v1 = vmax.f32 %v7383_v52, 0.0  ;;  %v7382_v36 = vadd.f32 %v18828_v56, %v7312_v62  ;;  %v7315_v15 = vadd.f32 %v18959_v40, %v6437_v50  ;;  %v6432_v12 = vadd.f32 %v6431_v37, %v21012_v35  ;;  %14411 = vmatprep.mubr.msk.f32.mxu1 %vm584_vm3, %v7637_v55  ;;  %v21018_v10 = vld [vmem:[#allocation316_spill] sm:$0xff] }
 0x460   :  { %14521 = vmatmul.mubr.msk.f32.gmra.mxu0 %vm584_vm3, %v8346_v20  ;;  %v14245_v13 = vpop.f32.mrf.mxu1  ;;  %v21019_v37 = vld [vmem:[#allocation268_spill] sm:$0xff] }
 0x461   :  { %7511 = vst.msk [vmem:[#allocation3 + $0x118] sm:$0xff] %vm584_vm3, %v7447_v1  ;;  %v7446_v19 = vmax.f32 %v7382_v36, 0.0  ;;  %v7385_v33 = vadd.f32 %v18828_v56, %v7315_v15  ;;  %v7314_v23 = vadd.f32 %v18971_v32, %v6432_v12  ;;  %v6447_v54 = vadd.f32 %v14245_v13, %v21013_v51  ;;  %v19073_v32 = vpop.f32.mrf.mxu0  ;;  %v21020_v13 = vld [vmem:[#allocation319_spill] sm:$0xff] }
 0x462   :  { %v6441_v21 = vpop.f32.mrf.mxu1  ;;  %v7639_v40 = vld [vmem:[#allocation3 + $0xf1] ss:$2 sm:$0xff]  ;;  %v8348_v28 = vld [vmem:[#allocation3 + $0xe2] ss:$2 sm:$0xff] }
 0x463   :  { %7510 = vst.msk [vmem:[#allocation3 + $0x110] sm:$0xff] %vm584_vm3, %v7446_v19  ;;  %v7449_v24 = vmax.f32 %v7385_v33, 0.0  ;;  %v7384_v39 = vadd.f32 %v18828_v56, %v7314_v23  ;;  %v7317_v9 = vadd.f32 %v18977_v30, %v6447_v54  ;;  %v6442_v43 = vadd.f32 %v6441_v21, %v21014_v25  ;;  %14412 = vmatmul.mubr.msk.f32.gmra.mxu1 %vm584_vm3, %v7639_v40  ;;  %v19085_v27 = vpop.f32.mrf.mxu0  ;;  %v21021_v21 = vld [vmem:[#allocation269_spill] sm:$0xff] }
 0x464   :  { %14523 = vmatprep.mubr.msk.f32.mxu0 %vm584_vm3, %v8348_v28  ;;  %v14248_v31 = vpop.f32.mrf.mxu1 }
 0x465   :  { %7513 = vst.msk [vmem:[#allocation3 + $0x128] sm:$0xff] %vm584_vm3, %v7449_v24  ;;  %v7448_v44 = vmax.f32 %v7384_v39, 0.0  ;;  %v7387_v7 = vadd.f32 %v18828_v56, %v7317_v9  ;;  %v7316_v53 = vadd.f32 %v18989_v58, %v6442_v43  ;;  %v6457_v2 = vadd.f32 %v14248_v31, %v21015_v63  ;;  %v19091_v45 = vpop.f32.mrf.mxu0  ;;  %v21022_v43 = vld [vmem:[#allocation322_spill] sm:$0xff] }
 0x466   :  { %v6451_v57 = vpop.f32.mrf.mxu1  ;;  %v7641_v30 = vld [vmem:[#allocation3 + $0x101] ss:$2 sm:$0xff]  ;;  %v8350_v48 = vld [vmem:[#allocation3 + $0xf2] ss:$2 sm:$0xff] }
 0x467   :  { %7512 = vst.msk [vmem:[#allocation3 + $0x120] sm:$0xff] %vm584_vm3, %v7448_v44  ;;  %v7451_v61 = vmax.f32 %v7387_v7, 0.0  ;;  %v7386_v60 = vadd.f32 %v18828_v56, %v7316_v53  ;;  %v7319_v16 = vadd.f32 %v18997_v0, %v6457_v2  ;;  %v6452_v29 = vadd.f32 %v6451_v57, %v21016_v3  ;;  %14414 = vmatprep.mubr.msk.f32.mxu1 %vm584_vm3, %v7641_v30  ;;  %v19103_v20 = vpop.f32.mrf.mxu0  ;;  %v21023_v2 = vld [vmem:[#allocation270_spill] sm:$0xff] }
 0x468   :  { %14524 = vmatmul.mubr.msk.f32.gmra.mxu0 %vm584_vm3, %v8350_v48  ;;  %v14251_v58 = vpop.f32.mrf.mxu1 }
 0x469   :  { %7515 = vst.msk [vmem:[#allocation3 + $0x138] sm:$0xff] %vm584_vm3, %v7451_v61  ;;  %v7450_v18 = vmax.f32 %v7386_v60, 0.0  ;;  %v7389_v34 = vadd.f32 %v18828_v56, %v7319_v16  ;;  %v7318_v59 = vadd.f32 %v19009_v8, %v6452_v29  ;;  %v6467_v5 = vadd.f32 %v14251_v58, %v21017_v17  ;;  %v21024_v29 = vld [vmem:[#allocation325_spill] sm:$0xff]  ;;  %v21025_v17 = vld [vmem:[#allocation271_spill] sm:$0xff] }
 0x46a   :  { %v6461_v0 = vpop.f32.mrf.mxu1  ;;  %v7643_v14 = vld [vmem:[#allocation3 + $0x111] ss:$2 sm:$0xff]  ;;  %v8352_v22 = vld [vmem:[#allocation3 + $0x102] ss:$2 sm:$0xff] }
 0x46b   :  { %7514 = vst.msk [vmem:[#allocation3 + $0x130] sm:$0xff] %vm584_vm3, %v7450_v18  ;;  %v7453_v41 = vmax.f32 %v7389_v34, 0.0  ;;  %v7388_v42 = vadd.f32 %v18828_v56, %v7318_v59  ;;  %v7321_v4 = vadd.f32 %v19015_v6, %v6467_v5  ;;  %v6462_v52 = vadd.f32 %v6461_v0, %v21018_v10  ;;  %14415 = vmatmul.mubr.msk.f32.gmra.mxu1 %vm584_vm3, %v7643_v14  ;;  %v21026_v10 = vld [vmem:[#allocation328_spill] sm:$0xff] }
 0x46c   :  { %14526 = vmatprep.mubr.msk.f32.mxu0 %vm584_vm3, %v8352_v22  ;;  %v14254_v8 = vpop.f32.mrf.mxu1 }
 0x46d   :  { %7517 = vst.msk [vmem:[#allocation3 + $0x148] sm:$0xff] %vm584_vm3, %v7453_v41  ;;  %v7452_v62 = vmax.f32 %v7388_v42, 0.0  ;;  %v7391_v49 = vadd.f32 %v18828_v56, %v7321_v4  ;;  %v7320_v50 = vadd.f32 %v19027_v46, %v6462_v52  ;;  %v6477_v55 = vadd.f32 %v14254_v8, %v21019_v37  ;;  %v19111_v46 = vpop.f32.mrf.mxu0  ;;  %v21027_v37 = vld [vmem:[#allocation272_spill] sm:$0xff] }
 0x46e   :  { %v6471_v1 = vpop.f32.mrf.mxu1  ;;  %v7645_v6 = vld [vmem:[#allocation3 + $0x121] ss:$2 sm:$0xff]  ;;  %v8354_v36 = vld [vmem:[#allocation3 + $0x112] ss:$2 sm:$0xff] }
 0x46f   :  { %7516 = vst.msk [vmem:[#allocation3 + $0x140] sm:$0xff] %vm584_vm3, %v7452_v62  ;;  %v7455_v15 = vmax.f32 %v7391_v49, 0.0  ;;  %v7390_v35 = vadd.f32 %v18828_v56, %v7320_v50  ;;  %v7323_v12 = vadd.f32 %v19035_v26, %v6477_v55  ;;  %v6472_v19 = vadd.f32 %v6471_v1, %v21020_v13  ;;  %14417 = vmatprep.mubr.msk.f32.mxu1 %vm584_vm3, %v7645_v6  ;;  %v7219_v44 = vpop.f32.mrf.mxu0 }
 0x470   :  { %14527 = vmatmul.mubr.msk.f32.gmra.mxu0 %vm584_vm3, %v8354_v36  ;;  %v14257_v33 = vpop.f32.mrf.mxu1 }
 0x471   :  { %7519 = vst.msk [vmem:[#allocation3 + $0x158] sm:$0xff] %vm584_vm3, %v7455_v15  ;;  %v7454_v23 = vmax.f32 %v7390_v35, 0.0  ;;  %v7393_v51 = vadd.f32 %v18828_v56, %v7323_v12  ;;  %v7322_v54 = vadd.f32 %v19047_v47, %v6472_v19  ;;  %v6487_v40 = vadd.f32 %v14257_v33, %v21021_v21  ;;  %v14369_v30 = vpop.f32.mrf.mxu0  ;;  %v21028_v12 = vld [vmem:[#allocation331_spill] sm:$0xff] }
 0x472   :  { %v6481_v28 = vpop.f32.mrf.mxu1  ;;  %v7647_v26 = vld [vmem:[#allocation3 + $0x131] ss:$2 sm:$0xff]  ;;  %v8356_v24 = vld [vmem:[#allocation3 + $0x122] ss:$2 sm:$0xff] }
 0x473   :  { %7518 = vst.msk [vmem:[#allocation3 + $0x150] sm:$0xff] %vm584_vm3, %v7454_v23  ;;  %v7457_v39 = vmax.f32 %v7393_v51, 0.0  ;;  %v7392_v9 = vadd.f32 %v18828_v56, %v7322_v54  ;;  %v7325_v25 = vadd.f32 %v19053_v38, %v6487_v40  ;;  %v6482_v31 = vadd.f32 %v6481_v28, %v21022_v43  ;;  %14418 = vmatmul.mubr.msk.f32.gmra.mxu1 %vm584_vm3, %v7647_v26  ;;  %v7229_v0 = vpop.f32.mrf.mxu0  ;;  %v21029_v54 = vld [vmem:[#allocation273_spill] sm:$0xff] }
 0x474   :  { %14529 = vmatprep.mubr.msk.f32.mxu0 %vm584_vm3, %v8356_v24  ;;  %v14260_v47 = vpop.f32.mrf.mxu1 }
 0x475   :  { %7521 = vst.msk [vmem:[#allocation3 + $0x168] sm:$0xff] %vm584_vm3, %v7457_v39  ;;  %v7456_v7 = vmax.f32 %v7392_v9, 0.0  ;;  %v7395_v53 = vadd.f32 %v18828_v56, %v7325_v25  ;;  %v7324_v63 = vadd.f32 %v19065_v11, %v6482_v31  ;;  %v6497_v57 = vadd.f32 %v14260_v47, %v21023_v2  ;;  %v21030_v25 = vld [vmem:[#allocation334_spill] sm:$0xff] }
 0x476   :  { %v6491_v48 = vpop.f32.mrf.mxu1  ;;  %v7649_v38 = vld [vmem:[#allocation3 + $0x141] ss:$2 sm:$0xff]  ;;  %v8358_v61 = vld [vmem:[#allocation3 + $0x132] ss:$2 sm:$0xff] }
 0x477   :  { %7520 = vst.msk [vmem:[#allocation3 + $0x160] sm:$0xff] %vm584_vm3, %v7456_v7  ;;  %v7459_v60 = vmax.f32 %v7395_v53, 0.0  ;;  %v7394_v16 = vadd.f32 %v18828_v56, %v7324_v63  ;;  %v7327_v3 = vadd.f32 %v19073_v32, %v6497_v57  ;;  %v6492_v58 = vadd.f32 %v6491_v48, %v21024_v29  ;;  %14420 = vmatprep.mubr.msk.f32.mxu1 %vm584_vm3, %v7649_v38  ;;  %v21031_v53 = vld [vmem:[#allocation274_spill] sm:$0xff] }
 0x478   :  { %14530 = vmatmul.mubr.msk.f32.gmra.mxu0 %vm584_vm3, %v8358_v61  ;;  %v14263_v11 = vpop.f32.mrf.mxu1 }
 0x479   :  { %7523 = vst.msk [vmem:[#allocation3 + $0x178] sm:$0xff] %vm584_vm3, %v7459_v60  ;;  %v7458_v18 = vmax.f32 %v7394_v16, 0.0  ;;  %v7397_v34 = vadd.f32 %v18828_v56, %v7327_v3  ;;  %v7326_v59 = vadd.f32 %v19085_v27, %v6492_v58  ;;  %v6507_v5 = vadd.f32 %v14263_v11, %v21025_v17  ;;  %v14372_v27 = vpop.f32.mrf.mxu0  ;;  %v21032_v16 = vld [vmem:[#allocation337_spill] sm:$0xff] }
 0x47a   :  { %v6501_v14 = vpop.f32.mrf.mxu1  ;;  %v7651_v22 = vld [vmem:[#allocation3 + $0x151] ss:$2 sm:$0xff]  ;;  %v8360_v32 = vld [vmem:[#allocation3 + $0x142] ss:$2 sm:$0xff] }
 0x47b   :  { %7522 = vst.msk [vmem:[#allocation3 + $0x170] sm:$0xff] %vm584_vm3, %v7458_v18  ;;  %v7461_v41 = vmax.f32 %v7397_v34, 0.0  ;;  %v7396_v42 = vadd.f32 %v18828_v56, %v7326_v59  ;;  %v7329_v4 = vadd.f32 %v19091_v45, %v6507_v5  ;;  %v6502_v52 = vadd.f32 %v6501_v14, %v21026_v10  ;;  %14421 = vmatmul.mubr.msk.f32.gmra.mxu1 %vm584_vm3, %v7651_v22  ;;  %v7239_v19 = vpop.f32.mrf.mxu0  ;;  %v21033_v59 = vld [vmem:[#allocation275_spill] sm:$0xff] }
 0x47c   :  { %14532 = vmatprep.mubr.msk.f32.mxu0 %vm584_vm3, %v8360_v32  ;;  %v14266_v8 = vpop.f32.mrf.mxu1 }
 0x47d   :  { %7525 = vst.msk [vmem:[#allocation3 + $0x188] sm:$0xff] %vm584_vm3, %v7461_v41  ;;  %v7460_v62 = vmax.f32 %v7396_v42, 0.0  ;;  %v7399_v49 = vadd.f32 %v18828_v56, %v7329_v4  ;;  %v7328_v50 = vadd.f32 %v19103_v20, %v6502_v52  ;;  %v6517_v55 = vadd.f32 %v14266_v8, %v21027_v37  ;;  %v14375_v40 = vpop.f32.mrf.mxu0  ;;  %v21034_v42 = vld [vmem:[#allocation340_spill] sm:$0xff] }
 0x47e   :  { %v6511_v1 = vpop.f32.mrf.mxu1  ;;  %v7653_v6 = vld [vmem:[#allocation3 + $0x161] ss:$2 sm:$0xff]  ;;  %v8362_v45 = vld [vmem:[#allocation3 + $0x152] ss:$2 sm:$0xff] }
 0x47f   :  { %7524 = vst.msk [vmem:[#allocation3 + $0x180] sm:$0xff] %vm584_vm3, %v7460_v62  ;;  %v7463_v36 = vmax.f32 %v7399_v49, 0.0  ;;  %v7398_v15 = vadd.f32 %v18828_v56, %v7328_v50  ;;  %v7331_v35 = vadd.f32 %v19111_v46, %v6517_v55  ;;  %v6512_v13 = vadd.f32 %v6511_v1, %v21028_v12  ;;  %14423 = vmatprep.mubr.msk.f32.mxu1 %vm584_vm3, %v7653_v6  ;;  %v7249_v2 = vpop.f32.mrf.mxu0  ;;  %v21035_v49 = vld [vmem:[#allocation276_spill] sm:$0xff] }
 0x480   :  { %14533 = vmatmul.mubr.msk.f32.gmra.mxu0 %vm584_vm3, %v8362_v45  ;;  %v14269_v20 = vpop.f32.mrf.mxu1 }
 0x481   :  { %7527 = vst.msk [vmem:[#allocation3 + $0x198] sm:$0xff] %vm584_vm3, %v7463_v36  ;;  %v7462_v33 = vmax.f32 %v7398_v15, 0.0  ;;  %v7401_v23 = vadd.f32 %v18828_v56, %v7331_v35  ;;  %v7330_v51 = vadd.f32 %v7219_v44, %v6512_v13  ;;  %v6527_v21 = vadd.f32 %v14269_v20, %v21029_v54  ;;  %v14378_v29 = vpop.f32.mrf.mxu0  ;;  %v21036_v15 = vld [vmem:[#allocation343_spill] sm:$0xff]  ;;  %v14566_v20 = vld [vmem:[%s20203_s4] ss:$0 sm:$0xff] }
 0x482   :  { %v6521_v28 = vpop.f32.mrf.mxu1  ;;  %v7655_v26 = vld [vmem:[#allocation3 + $0x171] ss:$2 sm:$0xff]  ;;  %v8364_v46 = vld [vmem:[#allocation3 + $0x162] ss:$2 sm:$0xff] }
 0x483   :  { %7526 = vst.msk [vmem:[#allocation3 + $0x190] sm:$0xff] %vm584_vm3, %v7462_v33  ;;  %v7465_v24 = vmax.f32 %v7401_v23, 0.0  ;;  %v7400_v39 = vadd.f32 %v18828_v56, %v7330_v51  ;;  %v7333_v9 = vadd.f32 %v14369_v30, %v6527_v21  ;;  %v6522_v43 = vadd.f32 %v6521_v28, %v21030_v25  ;;  %14424 = vmatmul.mubr.msk.f32.gmra.mxu1 %vm584_vm3, %v7655_v26  ;;  %v7259_v10 = vpop.f32.mrf.mxu0  ;;  %v21037_v51 = vld [vmem:[#allocation277_spill] sm:$0xff] }
 0x484   :  { %14535 = vmatprep.mubr.msk.f32.mxu0 %vm584_vm3, %v8364_v46  ;;  %v14272_v31 = vpop.f32.mrf.mxu1 }
 0x485   :  { %7529 = vst.msk [vmem:[#allocation3 + $0x1a8] sm:$0xff] %vm584_vm3, %v7465_v24  ;;  %v7464_v44 = vmax.f32 %v7400_v39, 0.0  ;;  %v7403_v47 = vadd.f32 %v18828_v56, %v7333_v9  ;;  %v7332_v7 = vadd.f32 %v7229_v0, %v6522_v43  ;;  %v6537_v63 = vadd.f32 %v14272_v31, %v21031_v53  ;;  %v14381_v12 = vpop.f32.mrf.mxu0  ;;  %v21038_v24 = vld [vmem:[#allocation346_spill] sm:$0xff] }
 0x486   :  { %v6531_v57 = vpop.f32.mrf.mxu1  ;;  %v7657_v48 = vld [vmem:[#allocation3 + $0x181] ss:$2 sm:$0xff]  ;;  %v8366_v38 = vld [vmem:[#allocation3 + $0x172] ss:$2 sm:$0xff] }
 0x487   :  { %7528 = vst.msk [vmem:[#allocation3 + $0x1a0] sm:$0xff] %vm584_vm3, %v7464_v44  ;;  %v7467_v30 = vmax.f32 %v7403_v47, 0.0  ;;  %v7402_v61 = vadd.f32 %v18828_v56, %v7332_v7  ;;  %v7335_v60 = vadd.f32 %v14372_v27, %v6537_v63  ;;  %v6532_v3 = vadd.f32 %v6531_v57, %v21032_v16  ;;  %14426 = vmatprep.mubr.msk.f32.mxu1 %vm584_vm3, %v7657_v48  ;;  %v7269_v9 = vpop.f32.mrf.mxu0  ;;  %v7541_v16 = vld [vmem:[#allocation3] ss:$2 sm:$0xff] }
 0x488   :  { %14536 = vmatmul.mubr.msk.f32.gmra.mxu0 %vm584_vm3, %v8366_v38  ;;  %v14275_v58 = vpop.f32.mrf.mxu1 }
 0x489   :  { %7531 = vst.msk [vmem:[#allocation3 + $0x1b8] sm:$0xff] %vm584_vm3, %v7467_v30  ;;  %v7466_v11 = vmax.f32 %v7402_v61, 0.0  ;;  %v7405_v18 = vadd.f32 %v18828_v56, %v7335_v60  ;;  %v7334_v34 = vadd.f32 %v7239_v19, %v6532_v3  ;;  %v6547_v17 = vadd.f32 %v14275_v58, %v21033_v59  ;;  %v7543_v3 = vld [vmem:[#allocation3 + $0x10] ss:$2 sm:$0xff] }
 0x48a   :  { %v6541_v5 = vpop.f32.mrf.mxu1  ;;  %v7659_v0 = vld [vmem:[#allocation3 + $0x191] ss:$2 sm:$0xff]  ;;  %v8368_v14 = vld [vmem:[#allocation3 + $0x182] ss:$2 sm:$0xff] }
 0x48b   :  { %7530 = vst.msk [vmem:[#allocation3 + $0x1b0] sm:$0xff] %vm584_vm3, %v7466_v11  ;;  %v7469_v22 = vmax.f32 %v7405_v18, 0.0  ;;  %v7404_v32 = vadd.f32 %v18828_v56, %v7334_v34  ;;  %v7337_v41 = vadd.f32 %v14375_v40, %v6547_v17  ;;  %v6542_v4 = vadd.f32 %v6541_v5, %v21034_v42  ;;  %14427 = vmatmul.mubr.msk.f32.gmra.mxu1 %vm584_vm3, %v7659_v0  ;;  %v7547_v58 = vld [vmem:[#allocation3 + $0x30] ss:$2 sm:$0xff]  ;;  %v7549_v11 = vld [vmem:[#allocation3 + $0x40] ss:$2 sm:$0xff] }
 0x48c   :  { %14538 = vmatprep.mubr.msk.f32.mxu0 %vm584_vm3, %v8368_v14  ;;  %v14278_v52 = vpop.f32.mrf.mxu1  ;;  %v7551_v18 = vld [vmem:[#allocation3 + $0x50] ss:$2 sm:$0xff]  ;;  %v7553_v34 = vld [vmem:[#allocation3 + $0x60] ss:$2 sm:$0xff] }
 0x48d   :  { %7533 = vst.msk [vmem:[#allocation3 + $0x1c8] sm:$0xff] %vm584_vm3, %v7469_v22  ;;  %v7468_v27 = vmax.f32 %v7404_v32, 0.0  ;;  %v7407_v8 = vadd.f32 %v18828_v56, %v7337_v41  ;;  %v7336_v62 = vadd.f32 %v7249_v2, %v6542_v4  ;;  %v6557_v50 = vadd.f32 %v14278_v52, %v21035_v49  ;;  %v7555_v59 = vld [vmem:[#allocation3 + $0x70] ss:$2 sm:$0xff]  ;;  %v7557_v17 = vld [vmem:[#allocation3 + $0x80] ss:$2 sm:$0xff] }
 0x48e   :  { %v6551_v37 = vpop.f32.mrf.mxu1  ;;  %v7661_v55 = vld [vmem:[#allocation3 + $0x1a1] ss:$2 sm:$0xff]  ;;  %v8370_v1 = vld [vmem:[#allocation3 + $0x192] ss:$2 sm:$0xff] }
 0x48f   :  { %7532 = vst.msk [vmem:[#allocation3 + $0x1c0] sm:$0xff] %vm584_vm3, %v7468_v27  ;;  %v7471_v6 = vmax.f32 %v7407_v8, 0.0  ;;  %v7406_v45 = vadd.f32 %v18828_v56, %v7336_v62  ;;  %v7339_v36 = vadd.f32 %v14378_v29, %v6557_v50  ;;  %v6552_v35 = vadd.f32 %v6551_v37, %v21036_v15  ;;  %14429 = vmatprep.mubr.msk.f32.mxu1 %vm584_vm3, %v7661_v55  ;;  %v7545_v29 = vld [vmem:[#allocation3 + $0x20] ss:$2 sm:$0xff]  ;;  %v7559_v5 = vld [vmem:[#allocation3 + $0x90] ss:$2 sm:$0xff] }
 0x490   :  { %14539 = vmatmul.mubr.msk.f32.gmra.mxu0 %vm584_vm3, %v8370_v1  ;;  %v14281_v13 = vpop.f32.mrf.mxu1  ;;  %v7561_v0 = vld [vmem:[#allocation3 + $0xa0] ss:$2 sm:$0xff]  ;;  %v7563_v14 = vld [vmem:[#allocation3 + $0xb0] ss:$2 sm:$0xff] }
 0x491   :  { %7535 = vst.msk [vmem:[#allocation3 + $0x1d8] sm:$0xff] %vm584_vm3, %v7471_v6  ;;  %v7470_v19 = vmax.f32 %v7406_v45, 0.0  ;;  %v7409_v33 = vadd.f32 %v14566_v20, %v7339_v36  ;;  %v7338_v23 = vadd.f32 %v7259_v10, %v6552_v35  ;;  %v6567_v56 = vadd.f32 %v14281_v13, %v21037_v51  ;;  %v7565_v22 = vld [vmem:[#allocation3 + $0xc0] ss:$2 sm:$0xff]  ;;  %v7567_v32 = vld [vmem:[#allocation3 + $0xd0] ss:$2 sm:$0xff] }
 0x492   :  { %v6561_v54 = vpop.f32.mrf.mxu1  ;;  %v7663_v21 = vld [vmem:[#allocation3 + $0x1b1] ss:$2 sm:$0xff]  ;;  %v8372_v40 = vld [vmem:[#allocation3 + $0x1a2] ss:$2 sm:$0xff] }
 0x493   :  { %7534 = vst.msk [vmem:[#allocation3 + $0x1d0] sm:$0xff] %vm584_vm3, %v7470_v19  ;;  %v7473_v28 = vmax.f32 %v7409_v33, 0.0  ;;  %v7408_v26 = vadd.f32 %v14566_v20, %v7338_v23  ;;  %v7341_v46 = vadd.f32 %v14381_v12, %v6567_v56  ;;  %v6562_v39 = vadd.f32 %v6561_v54, %v21038_v24  ;;  %14430 = vmatmul.mubr.msk.f32.gmra.mxu1 %vm584_vm3, %v7663_v21  ;;  %v7569_v41 = vld [vmem:[#allocation3 + $0xe0] ss:$2 sm:$0xff]  ;;  %v7571_v42 = vld [vmem:[#allocation3 + $0xf0] ss:$2 sm:$0xff] }
 0x494   :  { %14541 = vmatprep.mubr.msk.f32.mxu0 %vm584_vm3, %v8372_v40  ;;  %v7573_v4 = vld [vmem:[#allocation3 + $0x100] ss:$2 sm:$0xff]  ;;  %v7575_v10 = vld [vmem:[#allocation3 + $0x110] ss:$2 sm:$0xff] }
 0x495   :  { %7537 = vst.msk [vmem:[#allocation3 + $0x1e8] sm:$0xff] %vm584_vm3, %v7473_v28  ;;  %v7472_v25 = vmax.f32 %v7408_v26, 0.0  ;;  %v7411_v43 = vadd.f32 %v14566_v20, %v7341_v46  ;;  %v7340_v31 = vadd.f32 %v7269_v9, %v6562_v39  ;;  %v7577_v52 = vld [vmem:[#allocation3 + $0x120] ss:$2 sm:$0xff]  ;;  %v7579_v27 = vld [vmem:[#allocation3 + $0x130] ss:$2 sm:$0xff] }
 0x496   :  { %v7665_v44 = vld [vmem:[#allocation3 + $0x1c1] ss:$2 sm:$0xff]  ;;  %v8374_v47 = vld [vmem:[#allocation3 + $0x1b2] ss:$2 sm:$0xff] }
 0x497   :  { %7536 = vst.msk [vmem:[#allocation3 + $0x1e0] sm:$0xff] %vm584_vm3, %v7472_v25  ;;  %v7475_v7 = vmax.f32 %v7411_v43, 0.0  ;;  %v7410_v53 = vadd.f32 %v14566_v20, %v7340_v31  ;;  %14432 = vmatprep.mubr.msk.f32.mxu1 %vm584_vm3, %v7665_v44  ;;  %14542 = vmatmul.mubr.msk.f32.gmra.mxu0 %vm584_vm3, %v8374_v47  ;;  %v7581_v8 = vld [vmem:[#allocation3 + $0x140] ss:$2 sm:$0xff]  ;;  %v7583_v62 = vld [vmem:[#allocation3 + $0x150] ss:$2 sm:$0xff] }
 0x498   :  { %v7585_v49 = vld [vmem:[#allocation3 + $0x160] ss:$2 sm:$0xff]  ;;  %v7587_v50 = vld [vmem:[#allocation3 + $0x170] ss:$2 sm:$0xff] }
 0x499   :  { %7539 = vst.msk [vmem:[#allocation3 + $0x1f8] sm:$0xff] %vm584_vm3, %v7475_v7  ;;  %v7474_v63 = vmax.f32 %v7410_v53, 0.0  ;;  %v7589_v37 = vld [vmem:[#allocation3 + $0x180] ss:$2 sm:$0xff]  ;;  %v7591_v55 = vld [vmem:[#allocation3 + $0x190] ss:$2 sm:$0xff] }
 0x49a   :  { %v7667_v2 = vld [vmem:[#allocation3 + $0x1d1] ss:$2 sm:$0xff]  ;;  %v8376_v57 = vld [vmem:[#allocation3 + $0x1c2] ss:$2 sm:$0xff] }
 0x49b   :  { %7538 = vst.msk [vmem:[#allocation3 + $0x1f0] sm:$0xff] %vm584_vm3, %v7474_v63  ;;  %14433 = vmatmul.mubr.msk.f32.gmra.mxu1 %vm584_vm3, %v7667_v2  ;;  %14544 = vmatprep.mubr.msk.f32.mxu0 %vm584_vm3, %v8376_v57  ;;  %v7593_v1 = vld [vmem:[#allocation3 + $0x1a0] ss:$2 sm:$0xff]  ;;  %v7595_v6 = vld [vmem:[#allocation3 + $0x1b0] ss:$2 sm:$0xff] }
 0x49c   :  { %v7597_v45 = vld [vmem:[#allocation3 + $0x1c0] ss:$2 sm:$0xff]  ;;  %v7599_v36 = vld [vmem:[#allocation3 + $0x1d0] ss:$2 sm:$0xff] }
 0x49e   :  { %v7669_v48 = vld [vmem:[#allocation3 + $0x1e1] ss:$2 sm:$0xff]  ;;  %v8378_v38 = vld [vmem:[#allocation3 + $0x1d2] ss:$2 sm:$0xff] }
 0x49f   :  { %14435 = vmatprep.mubr.msk.f32.mxu1 %vm584_vm3, %v7669_v48  ;;  %14545 = vmatmul.mubr.msk.f32.gmra.mxu0 %vm584_vm3, %v8378_v38  ;;  %v7601_v15 = vld [vmem:[#allocation3 + $0x1e0] ss:$2 sm:$0xff] }
 0x4a2   :  { %v7671_v30 = vld [vmem:[#allocation3 + $0x1f1] ss:$2 sm:$0xff]  ;;  %v8380_v61 = vld [vmem:[#allocation3 + $0x1e2] ss:$2 sm:$0xff]  ;;  %v8382_v60 = vld [vmem:[#allocation3 + $0x1f2] ss:$2 sm:$0xff] }
 0x4a3   :  { %14436 = vmatmul.mubr.msk.f32.gmra.mxu1 %vm584_vm3, %v7671_v30  ;;  %14547 = vmatprep.mubr.msk.f32.mxu0 %vm584_vm3, %v8380_v61  ;;  %v7603_v35 = vld [vmem:[#allocation3 + $0x1f0] ss:$2 sm:$0xff] }
 0x4a4   :  { %14446 = vmatprep.mubr.msk.f32.mxu1 %vm584_vm3, %v7541_v16  ;;  %14548 = vmatmul.mubr.msk.f32.gmra.mxu0 %vm584_vm3, %v8382_v60 }
 0x4a7   :  { %14447 = vmatmul.mubr.msk.f32.vlgmr.msra.gmra.mxu1 %vm584_vm3, %v7543_v3 }
 0x4a8   :  { %14449 = vmatprep.mubr.msk.f32.mxu1 %vm584_vm3, %v7545_v29 }
 0x4ab   :  { %14450 = vmatmul.mubr.msk.f32.gmra.mxu1 %vm584_vm3, %v7547_v58 }
 0x4ac   :  { %14452 = vmatprep.mubr.msk.f32.mxu1 %vm584_vm3, %v7549_v11 }
 0x4af   :  { %14453 = vmatmul.mubr.msk.f32.gmra.mxu1 %vm584_vm3, %v7551_v18 }
 0x4b0   :  { %14455 = vmatprep.mubr.msk.f32.mxu1 %vm584_vm3, %v7553_v34 }
 0x4b3   :  { %14456 = vmatmul.mubr.msk.f32.gmra.mxu1 %vm584_vm3, %v7555_v59 }
 0x4b4   :  { %14458 = vmatprep.mubr.msk.f32.mxu1 %vm584_vm3, %v7557_v17 }
 0x4b7   :  { %14459 = vmatmul.mubr.msk.f32.gmra.mxu1 %vm584_vm3, %v7559_v5 }
 0x4b8   :  { %14461 = vmatprep.mubr.msk.f32.mxu1 %vm584_vm3, %v7561_v0 }
 0x4bb   :  { %14462 = vmatmul.mubr.msk.f32.gmra.mxu1 %vm584_vm3, %v7563_v14 }
 0x4bc   :  { %14464 = vmatprep.mubr.msk.f32.mxu1 %vm584_vm3, %v7565_v22 }
 0x4bf   :  { %14465 = vmatmul.mubr.msk.f32.gmra.mxu1 %vm584_vm3, %v7567_v32 }
 0x4c0   :  { %14467 = vmatprep.mubr.msk.f32.mxu1 %vm584_vm3, %v7569_v41  ;;  %v19300_v41 = vld [vmem:[%s20205_s6] ss:$0 sm:$0xff]  ;;  %s14570_s6 = smov 64  }
 0x4c3   :  { %14468 = vmatmul.mubr.msk.f32.gmra.mxu1 %vm584_vm3, %v7571_v42 }
 0x4c4   :  { %14470 = vmatprep.mubr.msk.f32.mxu1 %vm584_vm3, %v7573_v4 }
 0x4c7   :  { %14471 = vmatmul.mubr.msk.f32.gmra.mxu1 %vm584_vm3, %v7575_v10 }
 0x4c8   :  { %14473 = vmatprep.mubr.msk.f32.mxu1 %vm584_vm3, %v7577_v52 }
 0x4cb   :  { %14474 = vmatmul.mubr.msk.f32.gmra.mxu1 %vm584_vm3, %v7579_v27 }
 0x4cc   :  { %14476 = vmatprep.mubr.msk.f32.mxu1 %vm584_vm3, %v7581_v8 }
 0x4cf   :  { %14477 = vmatmul.mubr.msk.f32.gmra.mxu1 %vm584_vm3, %v7583_v62 }
 0x4d0   :  { %14479 = vmatprep.mubr.msk.f32.mxu1 %vm584_vm3, %v7585_v49 }
 0x4d3   :  { %14480 = vmatmul.mubr.msk.f32.gmra.mxu1 %vm584_vm3, %v7587_v50 }
 0x4d4   :  { %14482 = vmatprep.mubr.msk.f32.mxu1 %vm584_vm3, %v7589_v37 }
 0x4d7   :  { %14483 = vmatmul.mubr.msk.f32.gmra.mxu1 %vm584_vm3, %v7591_v55 }
 0x4d8   :  { %14485 = vmatprep.mubr.msk.f32.mxu1 %vm584_vm3, %v7593_v1 }
 0x4db   :  { %14486 = vmatmul.mubr.msk.f32.gmra.mxu1 %vm584_vm3, %v7595_v6 }
 0x4dc   :  { %14488 = vmatprep.mubr.msk.f32.mxu1 %vm584_vm3, %v7597_v45 }
 0x4df   :  { %14489 = vmatmul.mubr.msk.f32.gmra.mxu1 %vm584_vm3, %v7599_v36 }
 0x4e0   :  { %14491 = vmatprep.mubr.msk.f32.mxu1 %vm584_vm3, %v7601_v15 }
 0x4e3   :  { %14492 = vmatmul.mubr.msk.f32.gmra.mxu1 %vm584_vm3, %v7603_v35 }
 0x4eb   :  { %v14392_v12 = vpop.f32.mrf.mxu1 }
 0x4ed   :  { %v7839_v13 = vpop.f32.mrf.mxu1 }
 0x4f0   :  { %v14504_v47 = vpop.f32.mrf.mxu0 }
 0x4f2   :  { %v8550_v53 = vpop.f32.mrf.mxu0 }
 0x4f3   :  { %v14395_v19 = vpop.f32.mrf.mxu1 }
 0x4f5   :  { %v7849_v20 = vpop.f32.mrf.mxu1 }
 0x4f8   :  { %v14507_v2 = vpop.f32.mrf.mxu0 }
 0x4fa   :  { %v8560_v48 = vpop.f32.mrf.mxu0 }
 0x4fb   :  { %v14398_v33 = vpop.f32.mrf.mxu1 }
 0x4fd   :  { %v19239_v23 = vpop.f32.mrf.mxu1 }
 0x500   :  { %v14510_v30 = vpop.f32.mrf.mxu0 }
 0x502   :  { %v8570_v60 = vpop.f32.mrf.mxu0 }
 0x503   :  { %v19241_v51 = vpop.f32.mrf.mxu1 }
 0x505   :  { %v19243_v56 = vpop.f32.mrf.mxu1 }
 0x508   :  { %v14513_v3 = vpop.f32.mrf.mxu0 }
 0x50a   :  { %v8580_v58 = vpop.f32.mrf.mxu0 }
 0x50b   :  { %v19245_v54 = vpop.f32.mrf.mxu1 }
 0x50d   :  { %v19247_v21 = vpop.f32.mrf.mxu1 }
 0x510   :  { %v14516_v18 = vpop.f32.mrf.mxu0 }
 0x512   :  { %v8590_v59 = vpop.f32.mrf.mxu0 }
 0x513   :  { %v19249_v40 = vpop.f32.mrf.mxu1 }
 0x515   :  { %v19251_v28 = vpop.f32.mrf.mxu1 }
 0x518   :  { %v19291_v5 = vpop.f32.mrf.mxu0 }
 0x51a   :  { %v19295_v32 = vpop.f32.mrf.mxu0 }
 0x51b   :  { %v19253_v26 = vpop.f32.mrf.mxu1 }
 0x51d   :  { %v19255_v46 = vpop.f32.mrf.mxu1 }
 0x520   :  { %v19302_v52 = vpop.f32.mrf.mxu0 }
 0x522   :  { %v8610_v6 = vpop.f32.mrf.mxu0 }
 0x523   :  { %v19257_v24 = vpop.f32.mrf.mxu1 }
 0x525   :  { %v19259_v39 = vpop.f32.mrf.mxu1 }
 0x52b   :  { %v19261_v9 = vpop.f32.mrf.mxu1 }
 0x52d   :  { %v19263_v25 = vpop.f32.mrf.mxu1 }
 0x533   :  { %v19265_v43 = vpop.f32.mrf.mxu1 }
 0x535   :  { %v19267_v31 = vpop.f32.mrf.mxu1 }
 0x53b   :  { %v19269_v44 = vpop.f32.mrf.mxu1 }
 0x53d   :  { %v19271_v7 = vpop.f32.mrf.mxu1 }
 0x543   :  { %v19273_v63 = vpop.f32.mrf.mxu1 }
 0x545   :  { %v19275_v57 = vpop.f32.mrf.mxu1 }
 0x54b   :  { %v19277_v38 = vpop.f32.mrf.mxu1 }
 0x54d   :  { %v19279_v61 = vpop.f32.mrf.mxu1 }
 0x553   :  { %v19281_v16 = vpop.f32.mrf.mxu1 }
 0x555   :  { %v19283_v29 = vpop.f32.mrf.mxu1 }
 0x55b   :  { %v19285_v11 = vpop.f32.mrf.mxu1 }
 0x55d   :  { %v19287_v34 = vpop.f32.mrf.mxu1 }
 0x563   :  { %v19289_v17 = vpop.f32.mrf.mxu1 }
 0x565   :  { %v19293_v0 = vpop.f32.mrf.mxu1 }
 0x567   :  { %v14448_v14 = vpop.f32.mrf.mxu1 }
 0x568   :  { %v8166_v22 = vadd.f32 %v14448_v14, %v14392_v12  ;;  %v14525_v12 = vpop.f32.mrf.mxu0 }
 0x569   :  { %v8160_v42 = vpop.f32.mrf.mxu1 }
 0x56a   :  { %v8710_v4 = vadd.f32 %v14504_v47, %v8166_v22  ;;  %v8161_v10 = vadd.f32 %v8160_v42, %v7839_v13  ;;  %v8620_v42 = vpop.f32.mrf.mxu0 }
 0x56b   :  { %v14451_v27 = vpop.f32.mrf.mxu1 }
 0x56c   :  { %v8748_v8 = vadd.f32 %v19300_v41, %v8710_v4  ;;  %v8709_v62 = vadd.f32 %v8550_v53, %v8161_v10  ;;  %v8176_v49 = vadd.f32 %v14451_v27, %v14395_v19 }
 0x56d   :  { %v8170_v50 = vpop.f32.mrf.mxu1 }
 0x56e   :  { %8781 = vst.msk [vmem:[#allocation4 + $0x8] sm:$0xff] %vm8779_vm4, %v8748_v8  ;;  %v8747_v37 = vadd.f32 %v19300_v41, %v8709_v62  ;;  %v8712_v55 = vadd.f32 %v14507_v2, %v8176_v49  ;;  %v8171_v1 = vadd.f32 %v8170_v50, %v7849_v20 }
 0x56f   :  { %v14454_v45 = vpop.f32.mrf.mxu1 }
 0x570   :  { %8780 = vst.msk [vmem:[#allocation4] sm:$0xff] %vm8779_vm4, %v8747_v37  ;;  %v8750_v36 = vadd.f32 %v19300_v41, %v8712_v55  ;;  %v8711_v15 = vadd.f32 %v8560_v48, %v8171_v1  ;;  %v8186_v35 = vadd.f32 %v14454_v45, %v14398_v33 }
 0x571   :  { %v8180_v13 = vpop.f32.mrf.mxu1 }
 0x572   :  { %8783 = vst.msk [vmem:[#allocation4 + $0x18] sm:$0xff] %vm8779_vm4, %v8750_v36  ;;  %v8749_v19 = vadd.f32 %v19300_v41, %v8711_v15  ;;  %v8714_v47 = vadd.f32 %v14510_v30, %v8186_v35  ;;  %v8181_v53 = vadd.f32 %v8180_v13, %v19239_v23  ;;  %v14528_v30 = vpop.f32.mrf.mxu0 }
 0x573   :  { %v14457_v14 = vpop.f32.mrf.mxu1 }
 0x574   :  { %8782 = vst.msk [vmem:[#allocation4 + $0x10] sm:$0xff] %vm8779_vm4, %v8749_v19  ;;  %v8752_v20 = vadd.f32 %v19300_v41, %v8714_v47  ;;  %v8713_v2 = vadd.f32 %v8570_v60, %v8181_v53  ;;  %v8196_v22 = vadd.f32 %v14457_v14, %v19241_v51 }
 0x575   :  { %v8190_v48 = vpop.f32.mrf.mxu1 }
 0x576   :  { %8785 = vst.msk [vmem:[#allocation4 + $0x28] sm:$0xff] %vm8779_vm4, %v8752_v20  ;;  %v8751_v33 = vadd.f32 %v19300_v41, %v8713_v2  ;;  %v8716_v4 = vadd.f32 %v14513_v3, %v8196_v22  ;;  %v8191_v10 = vadd.f32 %v8190_v48, %v19243_v56  ;;  %v8630_v3 = vpop.f32.mrf.mxu0 }
 0x577   :  { %v14460_v27 = vpop.f32.mrf.mxu1 }
 0x578   :  { %8784 = vst.msk [vmem:[#allocation4 + $0x20] sm:$0xff] %vm8779_vm4, %v8751_v33  ;;  %v8754_v23 = vadd.f32 %v19300_v41, %v8716_v4  ;;  %v8715_v8 = vadd.f32 %v8580_v58, %v8191_v10  ;;  %v8206_v60 = vadd.f32 %v14460_v27, %v19245_v54  ;;  %v14531_v58 = vpop.f32.mrf.mxu0 }
 0x579   :  { %v8200_v62 = vpop.f32.mrf.mxu1 }
 0x57a   :  { %8787 = vst.msk [vmem:[#allocation4 + $0x38] sm:$0xff] %vm8779_vm4, %v8754_v23  ;;  %v8753_v51 = vadd.f32 %v19300_v41, %v8715_v8  ;;  %v8718_v49 = vadd.f32 %v14516_v18, %v8206_v60  ;;  %v8201_v50 = vadd.f32 %v8200_v62, %v19247_v21 }
 0x57b   :  { %v14463_v37 = vpop.f32.mrf.mxu1 }
 0x57c   :  { %8786 = vst.msk [vmem:[#allocation4 + $0x30] sm:$0xff] %vm8779_vm4, %v8753_v51  ;;  %v8756_v56 = vadd.f32 %v19300_v41, %v8718_v49  ;;  %v8717_v55 = vadd.f32 %v8590_v59, %v8201_v50  ;;  %v8216_v1 = vadd.f32 %v14463_v37, %v19249_v40  ;;  %v8640_v40 = vpop.f32.mrf.mxu0 }
 0x57d   :  { %v8210_v45 = vpop.f32.mrf.mxu1 }
 0x57e   :  { %8789 = vst.msk [vmem:[#allocation4 + $0x48] sm:$0xff] %vm8779_vm4, %v8756_v56  ;;  %v8755_v54 = vadd.f32 %v19300_v41, %v8717_v55  ;;  %v8720_v36 = vadd.f32 %v19291_v5, %v8216_v1  ;;  %v8211_v18 = vadd.f32 %v8210_v45, %v19251_v28  ;;  %v14534_v28 = vpop.f32.mrf.mxu0 }
 0x57f   :  { %v14466_v21 = vpop.f32.mrf.mxu1 }
 0x580   :  { %8788 = vst.msk [vmem:[#allocation4 + $0x40] sm:$0xff] %vm8779_vm4, %v8755_v54  ;;  %v8758_v15 = vadd.f32 %v19300_v41, %v8720_v36  ;;  %v8719_v35 = vadd.f32 %v19295_v32, %v8211_v18  ;;  %v8226_v59 = vadd.f32 %v14466_v21, %v19253_v26 }
 0x581   :  { %v8220_v13 = vpop.f32.mrf.mxu1 }
 0x582   :  { %8791 = vst.msk [vmem:[#allocation4 + $0x58] sm:$0xff] %vm8779_vm4, %v8758_v15  ;;  %v8757_v19 = vadd.f32 %v19300_v41, %v8719_v35  ;;  %v8722_v47 = vadd.f32 %v19302_v52, %v8226_v59  ;;  %v8221_v5 = vadd.f32 %v8220_v13, %v19255_v46  ;;  %v8650_v52 = vpop.f32.mrf.mxu0 }
 0x583   :  { %v14469_v53 = vpop.f32.mrf.mxu1 }
 0x584   :  { %8790 = vst.msk [vmem:[#allocation4 + $0x50] sm:$0xff] %vm8779_vm4, %v8757_v19  ;;  %v8760_v14 = vadd.f32 %v19300_v41, %v8722_v47  ;;  %v8721_v20 = vadd.f32 %v8610_v6, %v8221_v5  ;;  %v8236_v32 = vadd.f32 %v14469_v53, %v19257_v24  ;;  %v14537_v6 = vpop.f32.mrf.mxu0 }
 0x585   :  { %v8230_v26 = vpop.f32.mrf.mxu1 }
 0x586   :  { %8793 = vst.msk [vmem:[#allocation4 + $0x68] sm:$0xff] %vm8779_vm4, %v8760_v14  ;;  %v8759_v2 = vadd.f32 %v19300_v41, %v8721_v20  ;;  %v8724_v22 = vadd.f32 %v14525_v12, %v8236_v32  ;;  %v8231_v48 = vadd.f32 %v8230_v26, %v19259_v39 }
 0x587   :  { %v14472_v33 = vpop.f32.mrf.mxu1 }
 0x588   :  { %8792 = vst.msk [vmem:[#allocation4 + $0x60] sm:$0xff] %vm8779_vm4, %v8759_v2  ;;  %v8762_v46 = vadd.f32 %v19300_v41, %v8724_v22  ;;  %v8723_v4 = vadd.f32 %v8620_v42, %v8231_v48  ;;  %v8246_v10 = vadd.f32 %v14472_v33, %v19261_v9  ;;  %v8660_v42 = vpop.f32.mrf.mxu0  ;;  %v19380_v22 = vld [vmem:[#allocation4 + $0xf] ss:$32 sm:$0x2] }
 0x589   :  { %v8240_v27 = vpop.f32.mrf.mxu1  ;;  %v19382_v33 = vld [vmem:[#allocation4 + $0xd] ss:$32 sm:$0x2] }
 0x58a   :  { %8795 = vst.msk [vmem:[#allocation4 + $0x78] sm:$0xff] %vm8779_vm4, %v8762_v46  ;;  %v8761_v24 = vadd.f32 %v19300_v41, %v8723_v4  ;;  %v8726_v23 = vadd.f32 %v14528_v30, %v8246_v10  ;;  %v8241_v12 = vadd.f32 %v8240_v27, %v19263_v25  ;;  %v14540_v30 = vpop.f32.mrf.mxu0  ;;  %v19384_v46 = vld [vmem:[#allocation4 + $0x5] ss:$32 sm:$0x2] }
 0x58b   :  { %v14475_v8 = vpop.f32.mrf.mxu1  ;;  %v19389_v27 = vld [vmem:[#allocation4 + $0xf] ss:$32 sm:$0x1] }
 0x58c   :  { %8794 = vst.msk [vmem:[#allocation4 + $0x70] sm:$0xff] %vm8779_vm4, %v8761_v24  ;;  %v8764_v39 = vadd.f32 %v19300_v41, %v8726_v23  ;;  %v8725_v60 = vadd.f32 %v8630_v3, %v8241_v12  ;;  %v8256_v62 = vadd.f32 %v14475_v8, %v19265_v43  ;;  %v19393_v24 = vld [vmem:[#allocation4 + $0x5] ss:$32 sm:$0x1] }
 0x58d   :  { %v8250_v51 = vpop.f32.mrf.mxu1  ;;  %v19395_v23 = vld [vmem:[#allocation4 + $0x1] ss:$32 sm:$0x2]  ;;  %v19397_v12 = vld [vmem:[#allocation4 + $0x7] ss:$32 sm:$0x2] }
 0x58e   :  { %8797 = vst.msk [vmem:[#allocation4 + $0x88] sm:$0xff] %vm8779_vm4, %v8764_v39  ;;  %v8763_v9 = vadd.f32 %v19300_v41, %v8725_v60  ;;  %v8728_v49 = vadd.f32 %v14531_v58, %v8256_v62  ;;  %v8251_v50 = vadd.f32 %v8250_v51, %v19267_v31  ;;  %v8670_v58 = vpop.f32.mrf.mxu0  ;;  %v19399_v39 = vld [vmem:[#allocation4 + $0x1e] ss:$32 sm:$0x2] }
 0x58f   :  { %v14478_v37 = vpop.f32.mrf.mxu1  ;;  %v19401_v62 = vld [vmem:[#allocation4 + $0x1] ss:$32 sm:$0x1] }
 0x590   :  { %8796 = vst.msk [vmem:[#allocation4 + $0x80] sm:$0xff] %vm8779_vm4, %v8763_v9  ;;  %v8766_v25 = vadd.f32 %v19300_v41, %v8728_v49  ;;  %v8727_v56 = vadd.f32 %v8640_v40, %v8251_v50  ;;  %v8266_v3 = vadd.f32 %v14478_v37, %v19269_v44  ;;  %v14543_v21 = vpop.f32.mrf.mxu0  ;;  %v19410_v37 = vld [vmem:[#allocation4 + $0x7] ss:$32 sm:$0x1] }
 0x591   :  { %v8260_v55 = vpop.f32.mrf.mxu1 }
 0x592   :  { %8799 = vst.msk [vmem:[#allocation4 + $0x98] sm:$0xff] %vm8779_vm4, %v8766_v25  ;;  %v8765_v43 = vadd.f32 %v19300_v41, %v8727_v56  ;;  %v8730_v1 = vadd.f32 %v14534_v28, %v8266_v3  ;;  %v8261_v45 = vadd.f32 %v8260_v55, %v19271_v7  ;;  %v8680_v47 = vpop.f32.mrf.mxu0  ;;  %v19412_v25 = vld [vmem:[#allocation4 + $0x3] ss:$32 sm:$0x1] }
 0x593   :  { %v14481_v54 = vpop.f32.mrf.mxu1  ;;  %v19414_v56 = vld [vmem:[#allocation4 + $0x19] ss:$32 sm:$0x2]  ;;  %v19416_v3 = vld [vmem:[#allocation4 + $0x1b] ss:$32 sm:$0x2] }
 0x594   :  { %8798 = vst.msk [vmem:[#allocation4 + $0x90] sm:$0xff] %vm8779_vm4, %v8765_v43  ;;  %v8768_v31 = vadd.f32 %v19300_v41, %v8730_v1  ;;  %v8729_v36 = vadd.f32 %v8650_v52, %v8261_v45  ;;  %v8276_v18 = vadd.f32 %v14481_v54, %v19273_v63  ;;  %v14546_v14 = vpop.f32.mrf.mxu0  ;;  %v9020_v52 = vld [vmem:[#allocation4 + $0xb] ss:$32 sm:$0x1]  ;;  %v9098_v45 = vor.u32 %v19380_v22, %v19389_v27 }
 0x595   :  { %v8270_v15 = vpop.f32.mrf.mxu1  ;;  %v8985_v1 = vld [vmem:[#allocation4 + $0x9] ss:$32 sm:$0x4]  ;;  %v19425_v54 = vld [vmem:[#allocation4 + $0x1d] ss:$32 sm:$0x2] }
 0x596   :  { %8801 = vst.msk [vmem:[#allocation4 + $0xa8] sm:$0xff] %vm8779_vm4, %v8768_v31  ;;  %v8767_v44 = vadd.f32 %v19300_v41, %v8729_v36  ;;  %v8732_v35 = vadd.f32 %v14537_v6, %v8276_v18  ;;  %v8271_v59 = vadd.f32 %v8270_v15, %v19275_v57  ;;  %v9021_v57 = vld [vmem:[#allocation4 + $0xb] ss:$32 sm:$0x2]  ;;  %v8690_v8 = vpop.f32.mrf.mxu0 }
 0x597   :  { %v14484_v40 = vpop.f32.mrf.mxu1  ;;  %v8982_v6 = vld [vmem:[#allocation4 + $0x9] ss:$32 sm:$0x1]  ;;  %v9022_v50 = vor.u32 %v9021_v57, %v9020_v52  ;;  %v9099_v15 = vld [vmem:[#allocation4 + $0xf] ss:$32 sm:$0x4] }
 0x598   :  { %8800 = vst.msk [vmem:[#allocation4 + $0xa0] sm:$0xff] %vm8779_vm4, %v8767_v44  ;;  %v8770_v7 = vadd.f32 %v19300_v41, %v8732_v35  ;;  %v8731_v13 = vadd.f32 %v8660_v42, %v8271_v59  ;;  %v8286_v19 = vadd.f32 %v14484_v40, %v19277_v38  ;;  %v19378_v38 = vld [vmem:[#allocation4 + $0x9] ss:$32 sm:$0x2]  ;;  %v8831_v35 = vor.u32 %v19395_v23, %v19401_v62 }
 0x599   :  { %v8280_v5 = vpop.f32.mrf.mxu1  ;;  %v19403_v42 = vld [vmem:[#allocation4 + $0x3] ss:$32 sm:$0x2]  ;;  %v8984_v43 = vor.u32 %v19378_v38, %v8982_v6  ;;  %v9061_v44 = vld [vmem:[#allocation4 + $0xd] ss:$32 sm:$0x4] }
 0x59a   :  { %8803 = vst.msk [vmem:[#allocation4 + $0xb8] sm:$0xff] %vm8779_vm4, %v8770_v7  ;;  %v8769_v63 = vadd.f32 %v19300_v41, %v8731_v13  ;;  %v8734_v28 = vadd.f32 %v14540_v30, %v8286_v19  ;;  %v8281_v53 = vadd.f32 %v8280_v5, %v19279_v61  ;;  %v9023_v30 = vld [vmem:[#allocation4 + $0xb] ss:$32 sm:$0x4]  ;;  %v14549_v19 = vpop.f32.mrf.mxu0 }
 0x59b   :  { %v14487_v20 = vpop.f32.mrf.mxu1  ;;  %v19432_v59 = vld [vmem:[#allocation4 + $0x19] ss:$32 sm:$0x1]  ;;  %v19434_v40 = vld [vmem:[#allocation4 + $0x13] ss:$32 sm:$0x2] }
 0x59c   :  { %8802 = vst.msk [vmem:[#allocation4 + $0xb0] sm:$0xff] %vm8779_vm4, %v8769_v63  ;;  %v8772_v32 = vadd.f32 %v19300_v41, %v8734_v28  ;;  %v8733_v26 = vadd.f32 %v8670_v58, %v8281_v53  ;;  %v8296_v2 = vadd.f32 %v14487_v20, %v19281_v16  ;;  %v19391_v16 = vld [vmem:[#allocation4 + $0xd] ss:$32 sm:$0x1]  ;;  %v8908_v58 = vor.u32 %v19384_v46, %v19393_v24 }
 0x59d   :  { %v8290_v48 = vpop.f32.mrf.mxu1  ;;  %v19436_v7 = vld [vmem:[#allocation4 + $0x1b] ss:$32 sm:$0x1]  ;;  %v19438_v13 = vld [vmem:[#allocation4 + $0x1d] ss:$32 sm:$0x1]  ;;  %v9024_v63 = vor.u32 %v9023_v30, %v9022_v50  ;;  %v8946_v53 = vor.u32 %v19397_v12, %v19410_v37  ;;  %v9288_v6 = vor.u32 %v19414_v56, %v19432_v59 }
 0x59e   :  { %8805 = vst.msk [vmem:[#allocation4 + $0xc8] sm:$0xff] %vm8779_vm4, %v8772_v32  ;;  %v8771_v61 = vadd.f32 %v19300_v41, %v8733_v26  ;;  %v8736_v4 = vadd.f32 %v14543_v21, %v8296_v2  ;;  %v8291_v10 = vadd.f32 %v8290_v48, %v19283_v29  ;;  %v19405_v29 = vld [vmem:[#allocation4 + $0x1e] ss:$32 sm:$0x1]  ;;  %v8986_v26 = vor.u32 %v8985_v1, %v8984_v43  ;;  %v8700_v43 = vpop.f32.mrf.mxu0 }
 0x59f   :  { %v14490_v60 = vpop.f32.mrf.mxu1  ;;  %v9025_v21 = vld [vmem:[#allocation4 + $0xb] ss:$32 sm:$0x8]  ;;  %v9386_v5 = vld [vmem:[#allocation4 + $0x1e] ss:$32 sm:$0x4] }
 0x5a0   :  { %8804 = vst.msk [vmem:[#allocation4 + $0xc0] sm:$0xff] %vm8779_vm4, %v8771_v61  ;;  %v8774_v51 = vadd.f32 %v19300_v41, %v8736_v4  ;;  %v8735_v9 = vadd.f32 %v8680_v47, %v8291_v10  ;;  %v8306_v49 = vadd.f32 %v14490_v60, %v19285_v11  ;;  %v9060_v11 = vor.u32 %v19382_v33, %v19391_v16  ;;  %v8987_v28 = vld [vmem:[#allocation4 + $0x9] ss:$32 sm:$0x8] }
 0x5a1   :  { %v8300_v55 = vpop.f32.mrf.mxu1  ;;  %v9385_v47 = vor.u32 %v19399_v39, %v19405_v29  ;;  %v9101_v2 = vld [vmem:[#allocation4 + $0xf] ss:$32 sm:$0x8]  ;;  %v19449_v38 = vld [vmem:[#allocation4 + $0xd] ss:$32 sm:$0x8]  ;;  %v9026_v61 = vor.u32 %v9025_v21, %v9024_v63  ;;  %v8988_v29 = vor.u32 %v8987_v28, %v8986_v26 }
 0x5a2   :  { %8807 = vst.msk [vmem:[#allocation4 + $0xd8] sm:$0xff] %vm8779_vm4, %v8774_v51  ;;  %v8773_v31 = vadd.f32 %v19300_v41, %v8735_v9  ;;  %v8738_v36 = vadd.f32 %v14546_v14, %v8306_v49  ;;  %v8301_v18 = vadd.f32 %v8300_v55, %v19287_v34  ;;  %v8870_v14 = vor.u32 %v19403_v42, %v19412_v25  ;;  %v19451_v22 = vld [vmem:[#allocation4 + $0x13] ss:$32 sm:$0x1] }
 0x5a3   :  { %v14493_v34 = vpop.f32.mrf.mxu1  ;;  %v19453_v48 = vld [vmem:[#allocation4 + $0x17] ss:$32 sm:$0x2]  ;;  %v19455_v52 = vld [vmem:[#allocation4 + $0x11] ss:$32 sm:$0x2]  ;;  %v9387_v1 = vor.u32 %v9386_v5, %v9385_v47  ;;  %v9062_v21 = vor.u32 %v9061_v44, %v9060_v11 }
 0x5a4   :  { %8806 = vst.msk [vmem:[#allocation4 + $0xd0] sm:$0xff] %vm8779_vm4, %v8773_v31  ;;  %v8776_v20 = vadd.f32 %v19300_v41, %v8738_v36  ;;  %v8737_v57 = vadd.f32 %v8690_v8, %v8301_v18  ;;  %v8316_v32 = vadd.f32 %v14493_v34, %v19289_v17  ;;  %v9027_v4 = vld [vmem:[#allocation4 + $0xb] ss:$32 sm:$0x10]  ;;  %v9326_v17 = vor.u32 %v19416_v3, %v19436_v7 }
 0x5a5   :  { %v8310_v33 = vpop.f32.mrf.mxu1  ;;  %v8989_v10 = vld [vmem:[#allocation4 + $0x9] ss:$32 sm:$0x10]  ;;  %v9388_v16 = vld [vmem:[#allocation4 + $0x1e] ss:$32 sm:$0x8]  ;;  %v9100_v18 = vor.u32 %v9099_v15, %v9098_v45  ;;  %v9028_v28 = vor.u32 %v9027_v4, %v9026_v61  ;;  %v9064_v15 = vor.u32 %v19449_v38, %v9062_v21 }
 0x5a6   :  { %8809 = vst.msk [vmem:[#allocation4 + $0xe8] sm:$0xff] %vm8779_vm4, %v8776_v20  ;;  %v8775_v8 = vadd.f32 %v19300_v41, %v8737_v57  ;;  %v8740_v39 = vadd.f32 %v14549_v19, %v8316_v32  ;;  %v8311_v60 = vadd.f32 %v8310_v33, %v19293_v0  ;;  %v9103_v51 = vld [vmem:[#allocation4 + $0xf] ss:$32 sm:$0x10]  ;;  %v8990_v20 = vor.u32 %v8989_v10, %v8988_v29 }
 0x5a7   :  { %v8909_v9 = vld [vmem:[#allocation4 + $0x5] ss:$32 sm:$0x4]  ;;  %v8832_v49 = vld [vmem:[#allocation4 + $0x1] ss:$32 sm:$0x4]  ;;  %v9102_v11 = vor.u32 %v9101_v2, %v9100_v18 }
 0x5a8   :  { %v19466_v50 = vld [vmem:[#allocation4 + $0x17] ss:$32 sm:$0x1]  ;;  %v19468_v30 = vld [vmem:[#allocation4 + $0x11] ss:$32 sm:$0x1]  ;;  %v8778_v34 = vadd.f32 %v19300_v41, %v8740_v39  ;;  %v8739_v63 = vadd.f32 %v8700_v43, %v8311_v60  ;;  %v9389_v39 = vor.u32 %v9388_v16, %v9387_v1  ;;  %v8833_v16 = vor.u32 %v8832_v49, %v8831_v35 }
 0x5a9   :  { %v19470_v55 = vld [vmem:[#allocation4 + $0x15] ss:$32 sm:$0x2]  ;;  %v9029_v31 = vld [vmem:[#allocation4 + $0xb] ss:$32 sm:$0x20]  ;;  %v9104_v21 = vor.u32 %v9103_v51, %v9102_v11  ;;  %v21040_v7 = vor.u32 %v19453_v48, %v19466_v50 }
 0x5aa   :  { %v8991_v36 = vld [vmem:[#allocation4 + $0x9] ss:$32 sm:$0x20]  ;;  %v9390_v0 = vld [vmem:[#allocation4 + $0x1e] ss:$32 sm:$0x10]  ;;  %v8777_v61 = vadd.f32 %v19300_v41, %v8739_v63  ;;  %v9030_v4 = vor.u32 %v9029_v31, %v9028_v28 }
 0x5ab   :  { %8808 = vst.msk [vmem:[#allocation4 + $0xe0] sm:$0xff] %vm8779_vm4, %v8775_v8  ;;  %v9065_v57 = vld [vmem:[#allocation4 + $0xd] ss:$32 sm:$0x10]  ;;  %8811 = vst.msk [vmem:[#allocation4 + $0xf8] sm:$0xff] %vm8779_vm4, %v8778_v34  ;;  %v8992_v10 = vor.u32 %v8991_v36, %v8990_v20  ;;  %v8910_v8 = vor.u32 %v8909_v9, %v8908_v58  ;;  %v9391_v1 = vor.u32 %v9390_v0, %v9389_v39 }
 0x5ac   :  { %v8911_v32 = vld [vmem:[#allocation4 + $0x5] ss:$32 sm:$0x8]  ;;  %v8834_v26 = vld [vmem:[#allocation4 + $0x1] ss:$32 sm:$0x8]  ;;  %v9066_v63 = vor.u32 %v9065_v57, %v9064_v15 }
 0x5ad   :  { %v8947_v33 = vld [vmem:[#allocation4 + $0x7] ss:$32 sm:$0x4]  ;;  %v19476_v47 = vld [vmem:[#allocation4 + $0x15] ss:$32 sm:$0x1]  ;;  %v8912_v23 = vor.u32 %v8911_v32, %v8910_v8  ;;  %v8835_v62 = vor.u32 %v8834_v26, %v8833_v16 }
 0x5ae   :  { %v9031_v5 = vld [vmem:[#allocation4 + $0xb] ss:$32 sm:$0x40]  ;;  %v8993_v45 = vld [vmem:[#allocation4 + $0x9] ss:$32 sm:$0x40]  ;;  %v8948_v35 = vor.u32 %v8947_v33, %v8946_v53 }
 0x5af   :  { %v9105_v60 = vld [vmem:[#allocation4 + $0xf] ss:$32 sm:$0x20]  ;;  %v9067_v29 = vld [vmem:[#allocation4 + $0xd] ss:$32 sm:$0x20]  ;;  %v9032_v36 = vor.u32 %v9031_v5, %v9030_v4  ;;  %v8994_v34 = vor.u32 %v8993_v45, %v8992_v10 }
 0x5b0   :  { %v8913_v43 = vld [vmem:[#allocation4 + $0x5] ss:$32 sm:$0x10]  ;;  %v8836_v27 = vld [vmem:[#allocation4 + $0x1] ss:$32 sm:$0x10]  ;;  %v9106_v9 = vor.u32 %v9105_v60, %v9104_v21  ;;  %v9068_v5 = vor.u32 %v9067_v29, %v9066_v63 }
 0x5b1   :  { %v8871_v2 = vld [vmem:[#allocation4 + $0x3] ss:$32 sm:$0x4]  ;;  %v9289_v18 = vld [vmem:[#allocation4 + $0x19] ss:$32 sm:$0x4]  ;;  %v8914_v44 = vor.u32 %v8913_v43, %v8912_v23  ;;  %v8837_v60 = vor.u32 %v8836_v27, %v8835_v62 }
 0x5b2   :  { %v9392_v38 = vld [vmem:[#allocation4 + $0x1e] ss:$32 sm:$0x20]  ;;  %v9107_v19 = vld [vmem:[#allocation4 + $0xf] ss:$32 sm:$0x40]  ;;  %v8872_v32 = vor.u32 %v8871_v2, %v8870_v14  ;;  %v19505_v12 = vor.u32 %v9289_v18, %v9288_v6 }
 0x5b3   :  { %v9394_v31 = vld [vmem:[#allocation4 + $0x1e] ss:$32 sm:$0x40]  ;;  %8810 = vst.msk [vmem:[#allocation4 + $0xf0] sm:$0xff] %vm8779_vm4, %v8777_v61  ;;  %v9393_v49 = vor.u32 %v9392_v38, %v9391_v1  ;;  %v9108_v53 = vor.u32 %v9107_v19, %v9106_v9 }
 0x5b4   :  { %v9069_v51 = vld [vmem:[#allocation4 + $0xd] ss:$32 sm:$0x40]  ;;  %v8949_v28 = vld [vmem:[#allocation4 + $0x7] ss:$32 sm:$0x8] }
 0x5b5   :  { %v19494_v20 = vld [vmem:[#allocation4 + $0x3] ss:$32 sm:$0x8]  ;;  %v9327_v46 = vld [vmem:[#allocation4 + $0x1b] ss:$32 sm:$0x4]  ;;  %v9395_v37 = vor.u32 %v9394_v31, %v9393_v49  ;;  %v9070_v26 = vor.u32 %v9069_v51, %v9068_v5  ;;  %v8950_v2 = vor.u32 %v8949_v28, %v8948_v35  ;;  %v21039_v28 = vor.u32 %v19434_v40, %v19451_v22 }
 0x5b6   :  { %v9033_v24 = vld [vmem:[#allocation4 + $0xb] ss:$32 sm:$0x80]  ;;  %v8995_v58 = vld [vmem:[#allocation4 + $0x9] ss:$32 sm:$0x80]  ;;  %v8874_v56 = vor.u32 %v19494_v20, %v8872_v32  ;;  %v19513_v59 = vor.u32 %v9327_v46, %v9326_v17  ;;  %v21042_v35 = vor.u32 %v19455_v52, %v19468_v30  ;;  %v21043_v30 = vor.u32 %v19470_v55, %v19476_v47 }
 0x5b7   :  { %v9034_v0 = vor.u32 %v9033_v24, %v9032_v36  ;;  %v8996_v11 = vor.u32 %v8995_v58, %v8994_v34  ;;  %v8915_v45 = vld [vmem:[#allocation4 + $0x5] ss:$32 sm:$0x20]  ;;  %v8838_v57 = vld [vmem:[#allocation4 + $0x1] ss:$32 sm:$0x20] }
 0x5b8   :  { %v8951_v15 = vld [vmem:[#allocation4 + $0x7] ss:$32 sm:$0x10]  ;;  %v9175_v39 = vld [vmem:[#allocation4 + $0x13] ss:$32 sm:$0x4]  ;;  %v8916_v25 = vor.u32 %v8915_v45, %v8914_v44  ;;  %v8839_v38 = vor.u32 %v8838_v57, %v8837_v60 }
 0x5b9   :  { %v9251_v61 = vld [vmem:[#allocation4 + $0x17] ss:$32 sm:$0x4]  ;;  %v9365_v4 = vld [vmem:[#allocation4 + $0x1d] ss:$32 sm:$0x4]  ;;  %9036 = vrot.lane.b32.xlu1 %v9034_v0, %s14570_s6  ;;  %8998 = vrot.lane.b32.xlu0 %v8996_v11, %s14570_s6  ;;  %v8952_v51 = vor.u32 %v8951_v15, %v8950_v2  ;;  %v9176_v3 = vor.u32 %v9175_v39, %v21039_v28 }
 0x5ba   :  { %v9109_v10 = vld [vmem:[#allocation4 + $0xf] ss:$32 sm:$0x80]  ;;  %v9071_v41 = vld [vmem:[#allocation4 + $0xd] ss:$32 sm:$0x80]  ;;  %v19523_v17 = vor.u32 %v9251_v61, %v21040_v7 }
 0x5bb   :  { %v8917_v33 = vld [vmem:[#allocation4 + $0x5] ss:$32 sm:$0x40]  ;;  %v8875_v8 = vld [vmem:[#allocation4 + $0x3] ss:$32 sm:$0x10]  ;;  %v9110_v18 = vor.u32 %v9109_v10, %v9108_v53  ;;  %v9072_v19 = vor.u32 %v9071_v41, %v9070_v26  ;;  %v21041_v41 = vor.u32 %v19425_v54, %v19438_v13 }
 0x5bc   :  { %v9291_v27 = vld [vmem:[#allocation4 + $0x19] ss:$32 sm:$0x8]  ;;  %v9177_v29 = vld [vmem:[#allocation4 + $0x13] ss:$32 sm:$0x8]  ;;  %v8918_v46 = vor.u32 %v8917_v33, %v8916_v25  ;;  %v8876_v22 = vor.u32 %v8875_v8, %v8874_v56 }
 0x5bd   :  { %v9137_v43 = vld [vmem:[#allocation4 + $0x11] ss:$32 sm:$0x4]  ;;  %v9396_v42 = vld [vmem:[#allocation4 + $0x1e] ss:$32 sm:$0x80]  ;;  %v19528_v20 = vor.u32 %v9365_v4, %v21041_v41  ;;  %9112 = vrot.lane.b32.xlu1 %v9110_v18, %s14570_s6  ;;  %9074 = vrot.lane.b32.xlu0 %v9072_v19, %s14570_s6  ;;  %v9292_v54 = vor.u32 %v9291_v27, %v19505_v12  ;;  %v9178_v13 = vor.u32 %v9177_v29, %v9176_v3 }
 0x5be   :  { %v8840_v14 = vld [vmem:[#allocation4 + $0x1] ss:$32 sm:$0x40]  ;;  %v9397_v6 = vor.u32 %v9396_v42, %v9395_v37  ;;  %v8953_v21 = vld [vmem:[#allocation4 + $0x7] ss:$32 sm:$0x20]  ;;  %v9138_v49 = vor.u32 %v9137_v43, %v21042_v35 }
 0x5bf   :  { %v8877_v16 = vld [vmem:[#allocation4 + $0x3] ss:$32 sm:$0x20]  ;;  %v9293_v1 = vld [vmem:[#allocation4 + $0x19] ss:$32 sm:$0x10]  ;;  %v8841_v24 = vor.u32 %v8840_v14, %v8839_v38  ;;  %v8954_v62 = vor.u32 %v8953_v21, %v8952_v51 }
 0x5c0   :  { %v9179_v31 = vld [vmem:[#allocation4 + $0x13] ss:$32 sm:$0x10]  ;;  %v19515_v36 = vld [vmem:[#allocation4 + $0x1b] ss:$32 sm:$0x8]  ;;  %v8878_v15 = vor.u32 %v8877_v16, %v8876_v22  ;;  %v9294_v12 = vor.u32 %v9293_v1, %v9292_v54 }
 0x5c1   :  { %v9213_v44 = vld [vmem:[#allocation4 + $0x15] ss:$32 sm:$0x4]  ;;  %v8919_v34 = vld [vmem:[#allocation4 + $0x5] ss:$32 sm:$0x80]  ;;  %v9180_v53 = vor.u32 %v9179_v31, %v9178_v13  ;;  %v9330_v52 = vor.u32 %v19515_v36, %v19513_v59 }
 0x5c2   :  { %v8842_v63 = vld [vmem:[#allocation4 + $0x1] ss:$32 sm:$0x80]  ;;  %9398 = vst.msk [vmem:[#allocation5 + $0x78] sm:$0xff] %vm8779_vm4, %v9397_v6  ;;  %v8920_v5 = vor.u32 %v8919_v34, %v8918_v46  ;;  %v19544_v33 = vor.u32 %v9213_v44, %v21043_v30 }
 0x5c3   :  { %v8955_v40 = vld [vmem:[#allocation4 + $0x7] ss:$32 sm:$0x40]  ;;  %v8879_v58 = vld [vmem:[#allocation4 + $0x3] ss:$32 sm:$0x40]  ;;  %v8843_v45 = vor.u32 %v8842_v63, %v8841_v24 }
 0x5c4   :  { %v9295_v9 = vld [vmem:[#allocation4 + $0x19] ss:$32 sm:$0x20]  ;;  %v9181_v48 = vld [vmem:[#allocation4 + $0x13] ss:$32 sm:$0x20]  ;;  %8922 = vrot.lane.b32.xlu1 %v8920_v5, %s14570_s6  ;;  %v8956_v27 = vor.u32 %v8955_v40, %v8954_v62  ;;  %v8880_v29 = vor.u32 %v8879_v58, %v8878_v15 }
 0x5c5   :  { %v9253_v50 = vld [vmem:[#allocation4 + $0x17] ss:$32 sm:$0x8]  ;;  %v9139_v23 = vld [vmem:[#allocation4 + $0x11] ss:$32 sm:$0x8]  ;;  %8845 = vrot.lane.b32.xlu0 %v8843_v45, %s14570_s6  ;;  %v9296_v6 = vor.u32 %v9295_v9, %v9294_v12  ;;  %v9182_v18 = vor.u32 %v9181_v48, %v9180_v53 }
 0x5c6   :  { %v9003_v0 = vld [vmem:[#allocation4 + $0xa] ss:$32 sm:$0x1]  ;;  %v8957_v57 = vld [vmem:[#allocation4 + $0x7] ss:$32 sm:$0x80]  ;;  %v9254_v19 = vor.u32 %v9253_v50, %v19523_v17  ;;  %v9140_v55 = vor.u32 %v9139_v23, %v9138_v49 }
 0x5c7   :  { %v9004_v11 = vld [vmem:[#allocation4 + $0xa] ss:$32 sm:$0x2]  ;;  %v9297_v39 = vld [vmem:[#allocation4 + $0x19] ss:$32 sm:$0x40]  ;;  %v8958_v21 = vor.u32 %v8957_v57, %v8956_v27 }
 0x5c8   :  { %v9255_v61 = vld [vmem:[#allocation4 + $0x17] ss:$32 sm:$0x10]  ;;  %v9141_v4 = vld [vmem:[#allocation4 + $0x11] ss:$32 sm:$0x10]  ;;  %v9005_v60 = vor.u32 %v9004_v11, %v9003_v0  ;;  %v9298_v7 = vor.u32 %v9297_v39, %v9296_v6 }
 0x5c9   :  { %v19537_v10 = vld [vmem:[#allocation4 + $0x1d] ss:$32 sm:$0x8]  ;;  %v9006_v32 = vld [vmem:[#allocation4 + $0xa] ss:$32 sm:$0x4]  ;;  %v9256_v41 = vor.u32 %v9255_v61, %v9254_v19  ;;  %v9142_v46 = vor.u32 %v9141_v4, %v9140_v55  ;;  %8960 = vrot.lane.b32.xlu1 %v8958_v21, %s14570_s6 }
 0x5ca   :  { %v8881_v37 = vld [vmem:[#allocation4 + $0x3] ss:$32 sm:$0x80]  ;;  %v9183_v26 = vld [vmem:[#allocation4 + $0x13] ss:$32 sm:$0x40]  ;;  %v9007_v2 = vor.u32 %v9006_v32, %v9005_v60  ;;  %v9368_v24 = vor.u32 %v19537_v10, %v19528_v20 }
 0x5cb   :  { %v9008_v8 = vld [vmem:[#allocation4 + $0xa] ss:$32 sm:$0x8]  ;;  %v9299_v43 = vld [vmem:[#allocation4 + $0x19] ss:$32 sm:$0x80]  ;;  %v8882_v16 = vor.u32 %v8881_v37, %v8880_v29  ;;  %v9184_v22 = vor.u32 %v9183_v26, %v9182_v18 }
 0x5cc   :  { %v9257_v42 = vld [vmem:[#allocation4 + $0x17] ss:$32 sm:$0x20]  ;;  %v9143_v25 = vld [vmem:[#allocation4 + $0x11] ss:$32 sm:$0x20]  ;;  %v9009_v51 = vor.u32 %v9008_v8, %v9007_v2  ;;  %v9300_v35 = vor.u32 %v9299_v43, %v9298_v7 }
 0x5cd   :  { %v9215_v14 = vld [vmem:[#allocation4 + $0x15] ss:$32 sm:$0x8]  ;;  %v9010_v56 = vld [vmem:[#allocation4 + $0xa] ss:$32 sm:$0x10]  ;;  %8884 = vrot.lane.b32.xlu0 %v8882_v16, %s14570_s6  ;;  %v9258_v49 = vor.u32 %v9257_v42, %v9256_v41  ;;  %v9144_v0 = vor.u32 %v9143_v25, %v9142_v46 }
 0x5ce   :  { %v8965_v47 = vld [vmem:[#allocation4 + $0x8] ss:$32 sm:$0x1]  ;;  %v9185_v1 = vld [vmem:[#allocation4 + $0x13] ss:$32 sm:$0x80]  ;;  %v9011_v23 = vor.u32 %v9010_v56, %v9009_v51  ;;  %v9216_v20 = vor.u32 %v9215_v14, %v19544_v33 }
 0x5cf   :  { %v8966_v38 = vld [vmem:[#allocation4 + $0x8] ss:$32 sm:$0x2]  ;;  %v9259_v31 = vld [vmem:[#allocation4 + $0x17] ss:$32 sm:$0x40]  ;;  %v9186_v45 = vor.u32 %v9185_v1, %v9184_v22 }
 0x5d0   :  { %v9145_v44 = vld [vmem:[#allocation4 + $0x11] ss:$32 sm:$0x40]  ;;  %v9331_v34 = vld [vmem:[#allocation4 + $0x1b] ss:$32 sm:$0x10]  ;;  %v8967_v28 = vor.u32 %v8966_v38, %v8965_v47  ;;  %v9260_v37 = vor.u32 %v9259_v31, %v9258_v49 }
 0x5d1   :  { %v9217_v63 = vld [vmem:[#allocation4 + $0x15] ss:$32 sm:$0x10]  ;;  %v8968_v3 = vld [vmem:[#allocation4 + $0x8] ss:$32 sm:$0x4]  ;;  %v9146_v12 = vor.u32 %v9145_v44, %v9144_v0  ;;  %v9332_v53 = vor.u32 %v9331_v34, %v9330_v52  ;;  %9302 = vrot.lane.b32.xlu0 %v9300_v35, %s14570_s6  ;;  %9188 = vrot.lane.b32.xlu1 %v9186_v45, %s14570_s6 }
 0x5d2   :  { %v9012_v17 = vld [vmem:[#allocation4 + $0xa] ss:$32 sm:$0x20]  ;;  %v8970_v40 = vld [vmem:[#allocation4 + $0x8] ss:$32 sm:$0x8]  ;;  %v8969_v54 = vor.u32 %v8968_v3, %v8967_v28  ;;  %v9218_v26 = vor.u32 %v9217_v63, %v9216_v20 }
 0x5d3   :  { %v9261_v58 = vld [vmem:[#allocation4 + $0x17] ss:$32 sm:$0x80]  ;;  %v9147_v9 = vld [vmem:[#allocation4 + $0x11] ss:$32 sm:$0x80]  ;;  %v9013_v61 = vor.u32 %v9012_v17, %v9011_v23 }
 0x5d4   :  { %v9333_v48 = vld [vmem:[#allocation4 + $0x1b] ss:$32 sm:$0x20]  ;;  %v9219_v50 = vld [vmem:[#allocation4 + $0x15] ss:$32 sm:$0x20]  ;;  %v8971_v10 = vor.u32 %v8970_v40, %v8969_v54  ;;  %v9262_v2 = vor.u32 %v9261_v58, %v9260_v37  ;;  %v9148_v56 = vor.u32 %v9147_v9, %v9146_v12 }
 0x5d5   :  { %v9014_v62 = vld [vmem:[#allocation4 + $0xa] ss:$32 sm:$0x40]  ;;  %v8972_v13 = vld [vmem:[#allocation4 + $0x8] ss:$32 sm:$0x10]  ;;  %v9334_v6 = vor.u32 %v9333_v48, %v9332_v53  ;;  %v9220_v18 = vor.u32 %v9219_v50, %v9218_v26 }
 0x5d6   :  { %v9079_v11 = vld [vmem:[#allocation4 + $0xe] ss:$32 sm:$0x1]  ;;  %v9335_v57 = vld [vmem:[#allocation4 + $0x1b] ss:$32 sm:$0x40]  ;;  %v9015_v29 = vor.u32 %v9014_v62, %v9013_v61  ;;  %v8973_v43 = vor.u32 %v8972_v13, %v8971_v10  ;;  %9264 = vrot.lane.b32.xlu1 %v9262_v2, %s14570_s6  ;;  %9150 = vrot.lane.b32.xlu0 %v9148_v56, %s14570_s6 }
 0x5d7   :  { %v9080_v5 = vld [vmem:[#allocation4 + $0xe] ss:$32 sm:$0x2]  ;;  %v9221_v15 = vld [vmem:[#allocation4 + $0x15] ss:$32 sm:$0x40]  ;;  %v9336_v1 = vor.u32 %v9335_v57, %v9334_v6 }
 0x5d8   :  { %v9369_v39 = vld [vmem:[#allocation4 + $0x1d] ss:$32 sm:$0x10]  ;;  %v9016_v4 = vld [vmem:[#allocation4 + $0xa] ss:$32 sm:$0x80]  ;;  %v9081_v60 = vor.u32 %v9080_v5, %v9079_v11  ;;  %v9222_v31 = vor.u32 %v9221_v15, %v9220_v18 }
 0x5d9   :  { %v9082_v32 = vld [vmem:[#allocation4 + $0xe] ss:$32 sm:$0x4]  ;;  %v8974_v30 = vld [vmem:[#allocation4 + $0x8] ss:$32 sm:$0x20]  ;;  %v9017_v19 = vor.u32 %v9016_v4, %v9015_v29  ;;  %v9370_v44 = vor.u32 %v9369_v39, %v9368_v24 }
 0x5da   :  { %v9084_v33 = vld [vmem:[#allocation4 + $0xe] ss:$32 sm:$0x8]  ;;  %v9337_v8 = vld [vmem:[#allocation4 + $0x1b] ss:$32 sm:$0x80]  ;;  %v9083_v25 = vor.u32 %v9082_v32, %v9081_v60  ;;  %v8975_v55 = vor.u32 %v8974_v30, %v8973_v43 }
 0x5db   :  { %v9371_v27 = vld [vmem:[#allocation4 + $0x1d] ss:$32 sm:$0x20]  ;;  %v8976_v42 = vld [vmem:[#allocation4 + $0x8] ss:$32 sm:$0x40]  ;;  %v9338_v41 = vor.u32 %v9337_v8, %v9336_v1 }
 0x5dc   :  { %v9086_v14 = vld [vmem:[#allocation4 + $0xe] ss:$32 sm:$0x10]  ;;  %v9223_v59 = vld [vmem:[#allocation4 + $0x15] ss:$32 sm:$0x80]  ;;  %v9085_v38 = vor.u32 %v9084_v33, %v9083_v25  ;;  %v8977_v28 = vor.u32 %v8976_v42, %v8975_v55  ;;  %v9372_v46 = vor.u32 %v9371_v27, %v9370_v44 }
 0x5dd   :  { %v9041_v36 = vld [vmem:[#allocation4 + $0xc] ss:$32 sm:$0x1]  ;;  %v8978_v47 = vld [vmem:[#allocation4 + $0x8] ss:$32 sm:$0x80]  ;;  %v9224_v22 = vor.u32 %v9223_v59, %v9222_v31  ;;  %9340 = vrot.lane.b32.xlu1 %v9338_v41, %s14570_s6 }
 0x5de   :  { %v9042_v52 = vld [vmem:[#allocation4 + $0xc] ss:$32 sm:$0x2]  ;;  %v9088_v34 = vld [vmem:[#allocation4 + $0xe] ss:$32 sm:$0x20]  ;;  %v9087_v3 = vor.u32 %v9086_v14, %v9085_v38  ;;  %v8979_v9 = vor.u32 %v8978_v47, %v8977_v28 }
 0x5df   :  { %v9043_v21 = vor.u32 %v9042_v52, %v9041_v36  ;;  %v9044_v16 = vld [vmem:[#allocation4 + $0xc] ss:$32 sm:$0x4]  ;;  %v9373_v51 = vld [vmem:[#allocation4 + $0x1d] ss:$32 sm:$0x40]  ;;  %9226 = vrot.lane.b32.xlu0 %v9224_v22, %s14570_s6 }
 0x5e0   :  { %v9046_v63 = vld [vmem:[#allocation4 + $0xc] ss:$32 sm:$0x8]  ;;  %9018 = vst.msk [vmem:[#allocation5 + $0x28] sm:$0xff] %vm8779_vm4, %v9017_v19  ;;  %v9089_v24 = vor.u32 %v9088_v34, %v9087_v3  ;;  %v9374_v54 = vor.u32 %v9373_v51, %v9372_v46  ;;  %8980 = vst.msk [vmem:[#allocation5 + $0x20] sm:$0xff] %vm8779_vm4, %v8979_v9 }
 0x5e1   :  { %v9045_v7 = vor.u32 %v9044_v16, %v9043_v21  ;;  %v9090_v17 = vld [vmem:[#allocation4 + $0xe] ss:$32 sm:$0x40]  ;;  %v9048_v40 = vld [vmem:[#allocation4 + $0xc] ss:$32 sm:$0x10] }
 0x5e2   :  { %v9375_v58 = vld [vmem:[#allocation4 + $0x1d] ss:$32 sm:$0x80]  ;;  %v8890_v50 = vld [vmem:[#allocation4 + $0x4] ss:$32 sm:$0x2]  ;;  %v9091_v13 = vor.u32 %v9090_v17, %v9089_v24 }
 0x5e3   :  { %v9047_v48 = vor.u32 %v9046_v63, %v9045_v7  ;;  %v9092_v23 = vld [vmem:[#allocation4 + $0xe] ss:$32 sm:$0x80]  ;;  %v9050_v62 = vld [vmem:[#allocation4 + $0xc] ss:$32 sm:$0x20]  ;;  %v9376_v5 = vor.u32 %v9375_v58, %v9374_v54 }
 0x5e4   :  { %v8892_v49 = vld [vmem:[#allocation4 + $0x4] ss:$32 sm:$0x4]  ;;  %v9052_v20 = vld [vmem:[#allocation4 + $0xc] ss:$32 sm:$0x40]  ;;  %v9093_v45 = vor.u32 %v9092_v23, %v9091_v13 }
 0x5e5   :  { %v9049_v35 = vor.u32 %v9048_v40, %v9047_v48  ;;  %v8889_v0 = vld [vmem:[#allocation4 + $0x4] ss:$32 sm:$0x1]  ;;  %v8813_v39 = vld [vmem:[#allocation4] ss:$32 sm:$0x2]  ;;  %9378 = vrot.lane.b32.xlu0 %v9376_v5, %s14570_s6 }
 0x5e6   :  { %v8891_v11 = vor.u32 %v8890_v50, %v8889_v0  ;;  %v8894_v15 = vld [vmem:[#allocation4 + $0x4] ss:$32 sm:$0x8]  ;;  %v9054_v61 = vld [vmem:[#allocation4 + $0xc] ss:$32 sm:$0x80] }
 0x5e7   :  { %v9051_v57 = vor.u32 %v9050_v62, %v9049_v35  ;;  %v8896_v4 = vld [vmem:[#allocation4 + $0x4] ss:$32 sm:$0x10]  ;;  %9094 = vst.msk [vmem:[#allocation5 + $0x38] sm:$0xff] %vm8779_vm4, %v9093_v45 }
 0x5e8   :  { %v8893_v10 = vor.u32 %v8892_v49, %v8891_v11  ;;  %v8898_v32 = vld [vmem:[#allocation4 + $0x4] ss:$32 sm:$0x20]  ;;  %v8815_v37 = vld [vmem:[#allocation4] ss:$32 sm:$0x4] }
 0x5e9   :  { %v9053_v60 = vor.u32 %v9052_v20, %v9051_v57  ;;  %v8812_v12 = vld [vmem:[#allocation4] ss:$32 sm:$0x1]  ;;  %v8927_v30 = vld [vmem:[#allocation4 + $0x6] ss:$32 sm:$0x1] }
 0x5ea   :  { %v8895_v53 = vor.u32 %v8894_v15, %v8893_v10  ;;  %v8814_v26 = vor.u32 %v8813_v39, %v8812_v12  ;;  %v8928_v33 = vld [vmem:[#allocation4 + $0x6] ss:$32 sm:$0x2]  ;;  %v8900_v27 = vld [vmem:[#allocation4 + $0x4] ss:$32 sm:$0x40] }
 0x5eb   :  { %v9055_v8 = vor.u32 %v9054_v61, %v9053_v60  ;;  %v8817_v29 = vld [vmem:[#allocation4] ss:$32 sm:$0x8]  ;;  %v8929_v43 = vor.u32 %v8928_v33, %v8927_v30  ;;  %v8930_v42 = vld [vmem:[#allocation4 + $0x6] ss:$32 sm:$0x4] }
 0x5ec   :  { %v8897_v25 = vor.u32 %v8896_v4, %v8895_v53  ;;  %v8819_v14 = vld [vmem:[#allocation4] ss:$32 sm:$0x10]  ;;  %v8816_v2 = vor.u32 %v8815_v37, %v8814_v26  ;;  %v8932_v56 = vld [vmem:[#allocation4 + $0x6] ss:$32 sm:$0x8] }
 0x5ed   :  { %9056 = vst.msk [vmem:[#allocation5 + $0x30] sm:$0xff] %vm8779_vm4, %v9055_v8  ;;  %v8902_v6 = vld [vmem:[#allocation4 + $0x4] ss:$32 sm:$0x80]  ;;  %v8931_v59 = vor.u32 %v8930_v42, %v8929_v43 }
 0x5ee   :  { %v8821_v18 = vld [vmem:[#allocation4] ss:$32 sm:$0x20]  ;;  %v8934_v36 = vld [vmem:[#allocation4 + $0x6] ss:$32 sm:$0x10]  ;;  %v8899_v52 = vor.u32 %v8898_v32, %v8897_v25  ;;  %v8818_v19 = vor.u32 %v8817_v29, %v8816_v2 }
 0x5ef   :  { %v8851_v55 = vld [vmem:[#allocation4 + $0x2] ss:$32 sm:$0x1]  ;;  %v8823_v38 = vld [vmem:[#allocation4] ss:$32 sm:$0x40]  ;;  %v8933_v21 = vor.u32 %v8932_v56, %v8931_v59 }
 0x5f0   :  { %v8852_v47 = vld [vmem:[#allocation4 + $0x2] ss:$32 sm:$0x2]  ;;  %v8901_v31 = vor.u32 %v8900_v27, %v8899_v52  ;;  %v8820_v44 = vor.u32 %v8819_v14, %v8818_v19  ;;  %v8936_v34 = vld [vmem:[#allocation4 + $0x6] ss:$32 sm:$0x20] }
 0x5f1   :  { %v8853_v16 = vor.u32 %v8852_v47, %v8851_v55  ;;  %v8854_v1 = vld [vmem:[#allocation4 + $0x2] ss:$32 sm:$0x4]  ;;  %v8825_v51 = vld [vmem:[#allocation4] ss:$32 sm:$0x80]  ;;  %v8935_v28 = vor.u32 %v8934_v36, %v8933_v21 }
 0x5f2   :  { %v8856_v63 = vld [vmem:[#allocation4 + $0x2] ss:$32 sm:$0x8]  ;;  %v8938_v3 = vld [vmem:[#allocation4 + $0x6] ss:$32 sm:$0x40]  ;;  %v8903_v46 = vor.u32 %v8902_v6, %v8901_v31  ;;  %v8822_v17 = vor.u32 %v8821_v18, %v8820_v44 }
 0x5f3   :  { %v8855_v7 = vor.u32 %v8854_v1, %v8853_v16  ;;  %v8858_v41 = vld [vmem:[#allocation4 + $0x2] ss:$32 sm:$0x10]  ;;  %v9269_v40 = vld [vmem:[#allocation4 + $0x18] ss:$32 sm:$0x1]  ;;  %v8937_v58 = vor.u32 %v8936_v34, %v8935_v28 }
 0x5f4   :  { %v9270_v22 = vld [vmem:[#allocation4 + $0x18] ss:$32 sm:$0x2]  ;;  %v8940_v9 = vld [vmem:[#allocation4 + $0x6] ss:$32 sm:$0x80]  ;;  %v8824_v23 = vor.u32 %v8823_v38, %v8822_v17 }
 0x5f5   :  { %v8857_v24 = vor.u32 %v8856_v63, %v8855_v7  ;;  %v9271_v48 = vor.u32 %v9270_v22, %v9269_v40  ;;  %v9272_v50 = vld [vmem:[#allocation4 + $0x18] ss:$32 sm:$0x4]  ;;  %8904 = vst.msk [vmem:[#allocation5 + $0x10] sm:$0xff] %vm8779_vm4, %v8903_v46  ;;  %v8939_v13 = vor.u32 %v8938_v3, %v8937_v58 }
 0x5f6   :  { %v8860_v62 = vld [vmem:[#allocation4 + $0x2] ss:$32 sm:$0x20]  ;;  %v9274_v54 = vld [vmem:[#allocation4 + $0x18] ss:$32 sm:$0x8]  ;;  %v8826_v11 = vor.u32 %v8825_v51, %v8824_v23 }
 0x5f7   :  { %v8859_v35 = vor.u32 %v8858_v41, %v8857_v24  ;;  %v8862_v49 = vld [vmem:[#allocation4 + $0x2] ss:$32 sm:$0x40]  ;;  %v9273_v0 = vor.u32 %v9272_v50, %v9271_v48  ;;  %v9276_v20 = vld [vmem:[#allocation4 + $0x18] ss:$32 sm:$0x10]  ;;  %v8941_v57 = vor.u32 %v8940_v9, %v8939_v13 }
 0x5f8   :  { %v9155_v5 = vld [vmem:[#allocation4 + $0x12] ss:$32 sm:$0x1]  ;;  %v8864_v39 = vld [vmem:[#allocation4 + $0x2] ss:$32 sm:$0x80] }
 0x5f9   :  { %v9156_v45 = vld [vmem:[#allocation4 + $0x12] ss:$32 sm:$0x2]  ;;  %v8861_v15 = vor.u32 %v8860_v62, %v8859_v35  ;;  %v9275_v61 = vor.u32 %v9274_v54, %v9273_v0  ;;  %8827 = vst.msk [vmem:[#allocation5] sm:$0xff] %vm8779_vm4, %v8826_v11  ;;  %8942 = vst.msk [vmem:[#allocation5 + $0x18] sm:$0xff] %vm8779_vm4, %v8941_v57 }
 0x5fa   :  { %v9157_v4 = vor.u32 %v9156_v45, %v9155_v5  ;;  %v9158_v10 = vld [vmem:[#allocation4 + $0x12] ss:$32 sm:$0x4]  ;;  %v9278_v60 = vld [vmem:[#allocation4 + $0x18] ss:$32 sm:$0x20] }
 0x5fb   :  { %v9160_v32 = vld [vmem:[#allocation4 + $0x12] ss:$32 sm:$0x8]  ;;  %v8863_v37 = vor.u32 %v8862_v49, %v8861_v15  ;;  %v9277_v12 = vor.u32 %v9276_v20, %v9275_v61  ;;  %v9280_v53 = vld [vmem:[#allocation4 + $0x18] ss:$32 sm:$0x40] }
 0x5fc   :  { %v9159_v26 = vor.u32 %v9158_v10, %v9157_v4  ;;  %v9162_v30 = vld [vmem:[#allocation4 + $0x12] ss:$32 sm:$0x10]  ;;  %v9231_v33 = vld [vmem:[#allocation4 + $0x16] ss:$32 sm:$0x1] }
 0x5fd   :  { %v9232_v8 = vld [vmem:[#allocation4 + $0x16] ss:$32 sm:$0x2]  ;;  %v8865_v27 = vor.u32 %v8864_v39, %v8863_v37  ;;  %v9279_v29 = vor.u32 %v9278_v60, %v9277_v12  ;;  %v9282_v43 = vld [vmem:[#allocation4 + $0x18] ss:$32 sm:$0x80] }
 0x5fe   :  { %v9161_v42 = vor.u32 %v9160_v32, %v9159_v26  ;;  %v9233_v25 = vor.u32 %v9232_v8, %v9231_v33  ;;  %v9234_v14 = vld [vmem:[#allocation4 + $0x16] ss:$32 sm:$0x4]  ;;  %v9164_v2 = vld [vmem:[#allocation4 + $0x12] ss:$32 sm:$0x20] }
 0x5ff   :  { %v9236_v56 = vld [vmem:[#allocation4 + $0x16] ss:$32 sm:$0x8]  ;;  %8866 = vst.msk [vmem:[#allocation5 + $0x8] sm:$0xff] %vm8779_vm4, %v8865_v27  ;;  %v9281_v6 = vor.u32 %v9280_v53, %v9279_v29 }
 0x600   :  { %v9163_v18 = vor.u32 %v9162_v30, %v9161_v42  ;;  %v9166_v59 = vld [vmem:[#allocation4 + $0x12] ss:$32 sm:$0x40]  ;;  %v9235_v36 = vor.u32 %v9234_v14, %v9233_v25  ;;  %v9238_v52 = vld [vmem:[#allocation4 + $0x16] ss:$32 sm:$0x10] }
 0x601   :  { %v9117_v19 = vld [vmem:[#allocation4 + $0x10] ss:$32 sm:$0x1]  ;;  %v9283_v47 = vor.u32 %v9282_v43, %v9281_v6  ;;  %v9168_v21 = vld [vmem:[#allocation4 + $0x12] ss:$32 sm:$0x80] }
 0x602   :  { %v9118_v55 = vld [vmem:[#allocation4 + $0x10] ss:$32 sm:$0x2]  ;;  %v9165_v38 = vor.u32 %v9164_v2, %v9163_v18  ;;  %v9237_v16 = vor.u32 %v9236_v56, %v9235_v36  ;;  %v9240_v44 = vld [vmem:[#allocation4 + $0x16] ss:$32 sm:$0x20] }
 0x603   :  { %v9119_v1 = vor.u32 %v9118_v55, %v9117_v19  ;;  %v9120_v31 = vld [vmem:[#allocation4 + $0x10] ss:$32 sm:$0x4]  ;;  %9284 = vst.msk [vmem:[#allocation5 + $0x60] sm:$0xff] %vm8779_vm4, %v9283_v47 }
 0x604   :  { %v9122_v34 = vld [vmem:[#allocation4 + $0x10] ss:$32 sm:$0x8]  ;;  %v9167_v63 = vor.u32 %v9166_v59, %v9165_v38  ;;  %v9239_v51 = vor.u32 %v9238_v52, %v9237_v16  ;;  %v9242_v28 = vld [vmem:[#allocation4 + $0x16] ss:$32 sm:$0x40] }
 0x605   :  { %v9121_v3 = vor.u32 %v9120_v31, %v9119_v1  ;;  %v9124_v7 = vld [vmem:[#allocation4 + $0x10] ss:$32 sm:$0x10]  ;;  %v9307_v41 = vld [vmem:[#allocation4 + $0x1a] ss:$32 sm:$0x1] }
 0x606   :  { %v9308_v46 = vld [vmem:[#allocation4 + $0x1a] ss:$32 sm:$0x2]  ;;  %v9169_v17 = vor.u32 %v9168_v21, %v9167_v63  ;;  %v9241_v40 = vor.u32 %v9240_v44, %v9239_v51  ;;  %v9244_v22 = vld [vmem:[#allocation4 + $0x16] ss:$32 sm:$0x80] }
 0x607   :  { %v9123_v58 = vor.u32 %v9122_v34, %v9121_v3  ;;  %v9309_v9 = vor.u32 %v9308_v46, %v9307_v41  ;;  %v9310_v24 = vld [vmem:[#allocation4 + $0x1a] ss:$32 sm:$0x4]  ;;  %v9126_v48 = vld [vmem:[#allocation4 + $0x10] ss:$32 sm:$0x20] }
 0x608   :  { %v9312_v50 = vld [vmem:[#allocation4 + $0x1a] ss:$32 sm:$0x8]  ;;  %9170 = vst.msk [vmem:[#allocation5 + $0x48] sm:$0xff] %vm8779_vm4, %v9169_v17  ;;  %v9243_v23 = vor.u32 %v9242_v28, %v9241_v40 }
 0x609   :  { %v9125_v62 = vor.u32 %v9124_v7, %v9123_v58  ;;  %v9128_v54 = vld [vmem:[#allocation4 + $0x10] ss:$32 sm:$0x40]  ;;  %v9311_v13 = vor.u32 %v9310_v24, %v9309_v9  ;;  %v9314_v35 = vld [vmem:[#allocation4 + $0x1a] ss:$32 sm:$0x10] }
 0x60a   :  { %v9193_v49 = vld [vmem:[#allocation4 + $0x14] ss:$32 sm:$0x1]  ;;  %v9245_v20 = vor.u32 %v9244_v22, %v9243_v23  ;;  %v9130_v5 = vld [vmem:[#allocation4 + $0x10] ss:$32 sm:$0x80] }
 0x60b   :  { %v9194_v0 = vld [vmem:[#allocation4 + $0x14] ss:$32 sm:$0x2]  ;;  %v9127_v11 = vor.u32 %v9126_v48, %v9125_v62  ;;  %v9313_v45 = vor.u32 %v9312_v50, %v9311_v13  ;;  %v9316_v39 = vld [vmem:[#allocation4 + $0x1a] ss:$32 sm:$0x20] }
 0x60c   :  { %v9195_v57 = vor.u32 %v9194_v0, %v9193_v49  ;;  %v9196_v15 = vld [vmem:[#allocation4 + $0x14] ss:$32 sm:$0x4]  ;;  %9246 = vst.msk [vmem:[#allocation5 + $0x58] sm:$0xff] %vm8779_vm4, %v9245_v20  ;;  %v21044_v50 = vld [vmem:[#allocation26_spill] sm:$0xff] }
 0x60d   :  { %v9198_v61 = vld [vmem:[#allocation4 + $0x14] ss:$32 sm:$0x8]  ;;  %v9129_v4 = vor.u32 %v9128_v54, %v9127_v11  ;;  %v9315_v10 = vor.u32 %v9314_v35, %v9313_v45  ;;  %v9318_v60 = vld [vmem:[#allocation4 + $0x1a] ss:$32 sm:$0x40] }
 0x60e   :  { %v9197_v32 = vor.u32 %v9196_v15, %v9195_v57  ;;  %v9200_v37 = vld [vmem:[#allocation4 + $0x14] ss:$32 sm:$0x10]  ;;  %v9345_v12 = vld [vmem:[#allocation4 + $0x1c] ss:$32 sm:$0x1] }
 0x60f   :  { %v9346_v53 = vld [vmem:[#allocation4 + $0x1c] ss:$32 sm:$0x2]  ;;  %v9131_v26 = vor.u32 %v9130_v5, %v9129_v4  ;;  %v9317_v30 = vor.u32 %v9316_v39, %v9315_v10  ;;  %v9320_v33 = vld [vmem:[#allocation4 + $0x1a] ss:$32 sm:$0x80] }
 0x610   :  { %v9199_v8 = vor.u32 %v9198_v61, %v9197_v32  ;;  %v9347_v27 = vor.u32 %v9346_v53, %v9345_v12  ;;  %v9348_v29 = vld [vmem:[#allocation4 + $0x1c] ss:$32 sm:$0x4]  ;;  %v9202_v43 = vld [vmem:[#allocation4 + $0x14] ss:$32 sm:$0x20] }
 0x611   :  { %v9350_v42 = vld [vmem:[#allocation4 + $0x1c] ss:$32 sm:$0x8]  ;;  %9132 = vst.msk [vmem:[#allocation5 + $0x40] sm:$0xff] %vm8779_vm4, %v9131_v26  ;;  %v9319_v25 = vor.u32 %v9318_v60, %v9317_v30  ;;  %v21045_v23 = vld [vmem:[#allocation25_spill] sm:$0xff] }
 0x612   :  { %v9201_v14 = vor.u32 %v9200_v37, %v9199_v8  ;;  %v9349_v2 = vor.u32 %v9348_v29, %v9347_v27  ;;  %v9204_v56 = vld [vmem:[#allocation4 + $0x14] ss:$32 sm:$0x40]  ;;  %v9352_v6 = vld [vmem:[#allocation4 + $0x1c] ss:$32 sm:$0x10]  ;;  %v12563_v62 = vcombine.high %v21045_v23, %v21044_v50  ;;  %v12562_v54 = vcombine.low %v21045_v23, %v21044_v50 }
 0x613   :  { %v9321_v18 = vor.u32 %v9320_v33, %v9319_v25  ;;  %v9206_v52 = vld [vmem:[#allocation4 + $0x14] ss:$32 sm:$0x80]  ;;  %v9354_v19 = vld [vmem:[#allocation4 + $0x1c] ss:$32 sm:$0x20] }
 0x614   :  { %v9203_v59 = vor.u32 %v9202_v43, %v9201_v14  ;;  %v9351_v36 = vor.u32 %v9350_v42, %v9349_v2  ;;  %v9356_v38 = vld [vmem:[#allocation4 + $0x1c] ss:$32 sm:$0x40]  ;;  %v21047_v35 = vld [vmem:[#allocation57_spill] sm:$0xff] }
 0x615   :  { %9322 = vst.msk [vmem:[#allocation5 + $0x68] sm:$0xff] %vm8779_vm4, %v9321_v18  ;;  %v9358_v1 = vld [vmem:[#allocation4 + $0x1c] ss:$32 sm:$0x80] }
 0x616   :  { %v9205_v55 = vor.u32 %v9204_v56, %v9203_v59  ;;  %v9353_v47 = vor.u32 %v9352_v6, %v9351_v36  ;;  %v21046_v13 = vld [vmem:[#allocation58_spill] sm:$0xff] }
 0x617   :  { %v12595_v49 = vcombine.high %v21047_v35, %v21046_v13  ;;  %v12594_v0 = vcombine.low %v21047_v35, %v21046_v13 }
 0x618   :  { %v9207_v21 = vor.u32 %v9206_v52, %v9205_v55  ;;  %v9355_v16 = vor.u32 %v9354_v19, %v9353_v47 }
 0x61a   :  { %9208 = vst.msk [vmem:[#allocation5 + $0x50] sm:$0xff] %vm8779_vm4, %v9207_v21  ;;  %v9357_v31 = vor.u32 %v9356_v38, %v9355_v16 }
 0x61c   :  { %v9359_v44 = vor.u32 %v9358_v1, %v9357_v31 }
 0x61e   :  { %9360 = vst.msk [vmem:[#allocation5 + $0x70] sm:$0xff] %vm8779_vm4, %v9359_v44 }
 0x62b   :  { %v9037_v34 = vpop.permute.xlu1 %9036  ;;  %v8999_v63 = vpop.permute.xlu0 %8998 }
 0x62c   :  { %9039 = vst.msk [vmem:[#allocation5 + $0x28] sm:$0xff] %vm8848_vm5, %v9037_v34  ;;  %9001 = vst.msk [vmem:[#allocation5 + $0x20] sm:$0xff] %vm8848_vm5, %v8999_v63 }
 0x62f   :  { %v9113_v51 = vpop.permute.xlu1 %9112  ;;  %v9075_v28 = vpop.permute.xlu0 %9074 }
 0x630   :  { %9115 = vst.msk [vmem:[#allocation5 + $0x38] sm:$0xff] %vm8848_vm5, %v9113_v51  ;;  %9077 = vst.msk [vmem:[#allocation5 + $0x30] sm:$0xff] %vm8848_vm5, %v9075_v28 }
 0x636   :  { %v8923_v3 = vpop.permute.xlu1 %8922 }
 0x637   :  { %v8846_v7 = vpop.permute.xlu0 %8845  ;;  %8925 = vst.msk [vmem:[#allocation5 + $0x10] sm:$0xff] %vm8848_vm5, %v8923_v3 }
 0x638   :  { %8849 = vst.msk [vmem:[#allocation5] sm:$0xff] %vm8848_vm5, %v8846_v7 }
 0x63b   :  { %v8961_v41 = vpop.permute.xlu1 %8960 }
 0x63c   :  { %8963 = vst.msk [vmem:[#allocation5 + $0x18] sm:$0xff] %vm8848_vm5, %v8961_v41 }
 0x63f   :  { %v8885_v46 = vpop.permute.xlu0 %8884 }
 0x640   :  { %8887 = vst.msk [vmem:[#allocation5 + $0x8] sm:$0xff] %vm8848_vm5, %v8885_v46 }
 0x643   :  { %v9303_v17 = vpop.permute.xlu0 %9302  ;;  %v9189_v40 = vpop.permute.xlu1 %9188 }
 0x644   :  { %9305 = vst.msk [vmem:[#allocation5 + $0x60] sm:$0xff] %vm8848_vm5, %v9303_v17  ;;  %9191 = vst.msk [vmem:[#allocation5 + $0x48] sm:$0xff] %vm8848_vm5, %v9189_v40 }
 0x648   :  { %v9265_v22 = vpop.permute.xlu1 %9264  ;;  %v9151_v58 = vpop.permute.xlu0 %9150 }
 0x649   :  { %9267 = vst.msk [vmem:[#allocation5 + $0x58] sm:$0xff] %vm8848_vm5, %v9265_v22  ;;  %9153 = vst.msk [vmem:[#allocation5 + $0x40] sm:$0xff] %vm8848_vm5, %v9151_v58 }
 0x64f   :  { %v9341_v9 = vpop.permute.xlu1 %9340 }
 0x650   :  { %9343 = vst.msk [vmem:[#allocation5 + $0x68] sm:$0xff] %vm8848_vm5, %v9341_v9 }
 0x651   :  { %v9227_v24 = vpop.permute.xlu0 %9226 }
 0x652   :  { %9229 = vst.msk [vmem:[#allocation5 + $0x50] sm:$0xff] %vm8848_vm5, %v9227_v24 }
 0x657   :  { %v9379_v48 = vpop.permute.xlu0 %9378 }
 0x658   :  { %9381 = vst.msk [vmem:[#allocation5 + $0x70] sm:$0xff] %vm8848_vm5, %v9379_v48 }
 0x659   :  { %14567 = dma.done.wait [#allocation7], 31744 }
 0x65a   :  { %14568 = vsyncadd [#allocation7], 4294935552  ;;  %v21048_v20 = vld [vmem:[#allocation24_spill] sm:$0xff]  ;;  %v21049_v11 = vld [vmem:[#allocation23_spill] sm:$0xff]  ;;  %10938 = vmatprep.subr.bf16.mxu1 %v12563_v62  ;;  %10979 = vmatprep.subr.bf16.mxu0 %v12595_v49  ;;  %vm14571_vm6 = vmmov 0   ;;  %vm11453_vm7 = vcmask 7168  }
 0x65b   :  { %v12561_v5 = vcombine.high %v21049_v11, %v21048_v20  ;;  %v21050_v45 = vld [vmem:[#allocation56_spill] sm:$0xff]  ;;  %v21051_v57 = vld [vmem:[#allocation55_spill] sm:$0xff]  ;;  %10939 = vmatpush1.bf16.msra.mxu1 %v12562_v54  ;;  %10980 = vmatpush1.bf16.msra.mxu0 %v12594_v0  ;;  %v12560_v39 = vcombine.low %v21049_v11, %v21048_v20  ;;  %v21052_v4 = vld [vmem:[#allocation22_spill] sm:$0xff] }
 0x65c   :  { %v12593_v15 = vcombine.high %v21051_v57, %v21050_v45  ;;  %v12592_v61 = vcombine.low %v21051_v57, %v21050_v45  ;;  %v21053_v10 = vld [vmem:[#allocation21_spill] sm:$0xff]  ;;  %v21054_v32 = vld [vmem:[#allocation54_spill] sm:$0xff]  ;;  %v21056_v30 = vld [vmem:[#allocation20_spill] sm:$0xff] }
 0x65d   :  { %10940 = vmatprep.subr.bf16.mxu1 %v12561_v5  ;;  %v12559_v60 = vcombine.high %v21053_v10, %v21052_v4  ;;  %v21055_v37 = vld [vmem:[#allocation53_spill] sm:$0xff]  ;;  %v12558_v53 = vcombine.low %v21053_v10, %v21052_v4  ;;  %v21057_v33 = vld [vmem:[#allocation19_spill] sm:$0xff]  ;;  %v21058_v27 = vld [vmem:[#allocation52_spill] sm:$0xff] }
 0x65e   :  { %10981 = vmatprep.subr.bf16.mxu0 %v12593_v15  ;;  %v12591_v12 = vcombine.high %v21055_v37, %v21054_v32  ;;  %v12590_v26 = vcombine.low %v21055_v37, %v21054_v32  ;;  %v12557_v8 = vcombine.high %v21057_v33, %v21056_v30  ;;  %v21059_v29 = vld [vmem:[#allocation51_spill] sm:$0xff]  ;;  %v12556_v42 = vcombine.low %v21057_v33, %v21056_v30  ;;  %v21060_v14 = vld [vmem:[#allocation18_spill] sm:$0xff]  ;;  %v21061_v2 = vld [vmem:[#allocation17_spill] sm:$0xff] }
 0x65f   :  { %10941 = vmatpush1.bf16.msra.mxu1 %v12560_v39  ;;  %10982 = vmatpush1.bf16.msra.mxu0 %v12592_v61  ;;  %v12589_v43 = vcombine.high %v21059_v29, %v21058_v27  ;;  %v12588_v25 = vcombine.low %v21059_v29, %v21058_v27  ;;  %v12555_v56 = vcombine.high %v21061_v2, %v21060_v14  ;;  %v21062_v6 = vld [vmem:[#allocation50_spill] sm:$0xff]  ;;  %v21063_v18 = vld [vmem:[#allocation49_spill] sm:$0xff]  ;;  %v9404_v19 = vld [vmem:[#allocation5 + $0x8] sm:$0xff] }
 0x660   :  { %10942 = vmatprep.subr.bf16.mxu1 %v12559_v60  ;;  %10983 = vmatprep.subr.bf16.mxu0 %v12591_v12  ;;  %v12587_v59 = vcombine.high %v21063_v18, %v21062_v6  ;;  %v12554_v36 = vcombine.low %v21061_v2, %v21060_v14  ;;  %v12586_v52 = vcombine.low %v21063_v18, %v21062_v6  ;;  %v21064_v55 = vld [vmem:[#allocation16_spill] sm:$0xff]  ;;  %v21065_v47 = vld [vmem:[#allocation15_spill] sm:$0xff]  ;;  %v9406_v31 = vld [vmem:[#allocation5 + $0x18] sm:$0xff] }
 0x661   :  { %v12553_v38 = vcombine.high %v21065_v47, %v21064_v55  ;;  %v21066_v21 = vld [vmem:[#allocation48_spill] sm:$0xff]  ;;  %v21067_v16 = vld [vmem:[#allocation47_spill] sm:$0xff]  ;;  %v9420_v44 = vpack.c.bf16 %v9404_v19, %v9404_v19  ;;  %v12552_v34 = vcombine.low %v21065_v47, %v21064_v55  ;;  %v9422_v51 = vpack.c.bf16 %v9406_v31, %v9406_v31  ;;  %v21068_v28 = vld [vmem:[#allocation14_spill] sm:$0xff] }
 0x662   :  { %v12585_v1 = vcombine.high %v21067_v16, %v21066_v21  ;;  %v12584_v63 = vcombine.low %v21067_v16, %v21066_v21  ;;  %v21069_v3 = vld [vmem:[#allocation13_spill] sm:$0xff]  ;;  %v21070_v41 = vld [vmem:[#allocation46_spill] sm:$0xff]  ;;  %v21072_v58 = vld [vmem:[#allocation12_spill] sm:$0xff] }
 0x663   :  { %10943 = vmatpush1.bf16.msra.mxu1 %v12558_v53  ;;  %10984 = vmatpush1.bf16.msra.mxu0 %v12590_v26  ;;  %v12551_v7 = vcombine.high %v21069_v3, %v21068_v28  ;;  %v21071_v46 = vld [vmem:[#allocation45_spill] sm:$0xff]  ;;  %v12550_v40 = vcombine.low %v21069_v3, %v21068_v28  ;;  %v21073_v9 = vld [vmem:[#allocation11_spill] sm:$0xff]  ;;  %v21074_v48 = vld [vmem:[#allocation44_spill] sm:$0xff] }
 0x664   :  { %10944 = vmatprep.subr.bf16.mxu1 %v12557_v8  ;;  %10985 = vmatprep.subr.bf16.mxu0 %v12589_v43  ;;  %v12583_v17 = vcombine.high %v21071_v46, %v21070_v41  ;;  %v12582_v22 = vcombine.low %v21071_v46, %v21070_v41  ;;  %v12549_v24 = vcombine.high %v21073_v9, %v21072_v58  ;;  %v21075_v50 = vld [vmem:[#allocation43_spill] sm:$0xff]  ;;  %v21076_v13 = vld [vmem:[#allocation42_spill] sm:$0xff]  ;;  %v21077_v35 = vld [vmem:[#allocation41_spill] sm:$0xff] }
 0x665   :  { %10970 = vmatprep.mubr.bf16.mxu1 %v9420_v44  ;;  %11011 = vmatprep.mubr.bf16.mxu0 %v9422_v51  ;;  %v12581_v23 = vcombine.high %v21075_v50, %v21074_v48  ;;  %v12548_v62 = vcombine.low %v21073_v9, %v21072_v58  ;;  %v12580_v54 = vcombine.low %v21075_v50, %v21074_v48  ;;  %v21078_v0 = vld [vmem:[#allocation74_spill] sm:$0xff]  ;;  %v21079_v20 = vld [vmem:[#allocation73_spill] sm:$0xff]  ;;  %v21080_v57 = vld [vmem:[#allocation40_spill] sm:$0xff] }
 0x666   :  { %v12579_v49 = vcombine.high %v21077_v35, %v21076_v13  ;;  %v12611_v11 = vcombine.high %v21079_v20, %v21078_v0  ;;  %v12578_v5 = vcombine.low %v21077_v35, %v21076_v13  ;;  %v12610_v45 = vcombine.low %v21079_v20, %v21078_v0  ;;  %v21081_v15 = vld [vmem:[#allocation39_spill] sm:$0xff]  ;;  %v21082_v61 = vld [vmem:[#allocation72_spill] sm:$0xff]  ;;  %v21084_v37 = vld [vmem:[#allocation38_spill] sm:$0xff] }
 0x667   :  { %10945 = vmatpush1.bf16.msra.mxu1 %v12556_v42  ;;  %10986 = vmatpush1.bf16.msra.mxu0 %v12588_v25  ;;  %v12577_v39 = vcombine.high %v21081_v15, %v21080_v57  ;;  %v21083_v4 = vld [vmem:[#allocation71_spill] sm:$0xff]  ;;  %v12576_v60 = vcombine.low %v21081_v15, %v21080_v57  ;;  %v21085_v12 = vld [vmem:[#allocation37_spill] sm:$0xff]  ;;  %v21086_v26 = vld [vmem:[#allocation70_spill] sm:$0xff] }
 0x668   :  { %10946 = vmatprep.subr.bf16.mxu1 %v12555_v56  ;;  %10987 = vmatprep.subr.bf16.mxu0 %v12587_v59  ;;  %v12609_v10 = vcombine.high %v21083_v4, %v21082_v61  ;;  %v12608_v32 = vcombine.low %v21083_v4, %v21082_v61  ;;  %v12575_v53 = vcombine.high %v21085_v12, %v21084_v37  ;;  %v21087_v30 = vld [vmem:[#allocation69_spill] sm:$0xff]  ;;  %v21088_v29 = vld [vmem:[#allocation36_spill] sm:$0xff]  ;;  %v21089_v43 = vld [vmem:[#allocation35_spill] sm:$0xff] }
 0x669   :  { %v12607_v33 = vcombine.high %v21087_v30, %v21086_v26  ;;  %v12574_v8 = vcombine.low %v21085_v12, %v21084_v37  ;;  %v12606_v27 = vcombine.low %v21087_v30, %v21086_v26  ;;  %v12573_v42 = vcombine.high %v21089_v43, %v21088_v29  ;;  %v21090_v25 = vld [vmem:[#allocation68_spill] sm:$0xff]  ;;  %v21091_v14 = vld [vmem:[#allocation67_spill] sm:$0xff]  ;;  %v21092_v18 = vld [vmem:[#allocation34_spill] sm:$0xff] }
 0x66a   :  { %v12605_v2 = vcombine.high %v21091_v14, %v21090_v25  ;;  %v12572_v56 = vcombine.low %v21089_v43, %v21088_v29  ;;  %v12604_v6 = vcombine.low %v21091_v14, %v21090_v25  ;;  %v21093_v59 = vld [vmem:[#allocation33_spill] sm:$0xff]  ;;  %v21096_v21 = vld [vmem:[#allocation32_spill] sm:$0xff]  ;;  %v21097_v16 = vld [vmem:[#allocation31_spill] sm:$0xff] }
 0x66b   :  { %10947 = vmatpush1.bf16.msra.mxu1 %v12554_v36  ;;  %10988 = vmatpush1.bf16.msra.mxu0 %v12586_v52  ;;  %v12571_v36 = vcombine.high %v21093_v59, %v21092_v18  ;;  %v21094_v52 = vld [vmem:[#allocation66_spill] sm:$0xff]  ;;  %v21095_v19 = vld [vmem:[#allocation65_spill] sm:$0xff]  ;;  %v12570_v47 = vcombine.low %v21093_v59, %v21092_v18  ;;  %v21098_v31 = vld [vmem:[#allocation64_spill] sm:$0xff] }
 0x66c   :  { %10948 = vmatprep.subr.bf16.mxu1 %v12553_v38  ;;  %10989 = vmatprep.subr.bf16.mxu0 %v12585_v1  ;;  %v12603_v55 = vcombine.high %v21095_v19, %v21094_v52  ;;  %v12602_v38 = vcombine.low %v21095_v19, %v21094_v52  ;;  %v12569_v1 = vcombine.high %v21097_v16, %v21096_v21  ;;  %v21099_v44 = vld [vmem:[#allocation63_spill] sm:$0xff]  ;;  %v21100_v28 = vld [vmem:[#allocation30_spill] sm:$0xff]  ;;  %v21101_v3 = vld [vmem:[#allocation29_spill] sm:$0xff] }
 0x66d   :  { %v12600_v51 = vcombine.low %v21099_v44, %v21098_v31  ;;  %v21102_v41 = vld [vmem:[#allocation62_spill] sm:$0xff]  ;;  %v21103_v46 = vld [vmem:[#allocation61_spill] sm:$0xff]  ;;  %v21104_v58 = vld [vmem:[#allocation28_spill] sm:$0xff] }
 0x66e   :  { %v21105_v9 = vld [vmem:[#allocation27_spill] sm:$0xff]  ;;  %v21106_v48 = vld [vmem:[#allocation60_spill] sm:$0xff]  ;;  %v21109_v0 = vld [vmem:[#allocation89_spill] sm:$0xff] }
 0x66f   :  { %10949 = vmatpush1.bf16.msra.mxu1 %v12552_v34  ;;  %10990 = vmatpush1.bf16.msra.mxu0 %v12584_v63  ;;  %v12601_v34 = vcombine.high %v21099_v44, %v21098_v31  ;;  %v12568_v63 = vcombine.low %v21097_v16, %v21096_v21  ;;  %v21107_v50 = vld [vmem:[#allocation59_spill] sm:$0xff]  ;;  %v9405_v35 = vld [vmem:[#allocation5 + $0x10] sm:$0xff]  ;;  %v9410_v61 = vld [vmem:[#allocation5 + $0x38] sm:$0xff] }
 0x670   :  { %10950 = vmatprep.subr.bf16.mxu1 %v12551_v7  ;;  %10991 = vmatprep.subr.bf16.mxu0 %v12583_v17  ;;  %v12567_v7 = vcombine.high %v21101_v3, %v21100_v28  ;;  %v12599_v17 = vcombine.high %v21103_v46, %v21102_v41  ;;  %v9403_v13 = vld [vmem:[#allocation5] sm:$0xff]  ;;  %v9421_v15 = vpack.c.bf16 %v9405_v35, %v9405_v35  ;;  %v21114_v12 = vld [vmem:[#allocation120_spill] sm:$0xff]  ;;  %v21117_v43 = vld [vmem:[#allocation85_spill] sm:$0xff] }
 0x671   :  { %v9419_v57 = vpack.c.bf16 %v9403_v13, %v9403_v13  ;;  %v21116_v29 = vld [vmem:[#allocation86_spill] sm:$0xff]  ;;  %v21119_v14 = vld [vmem:[#allocation117_spill] sm:$0xff]  ;;  %v21120_v18 = vld [vmem:[#allocation84_spill] sm:$0xff] }
 0x672   :  { %v21118_v25 = vld [vmem:[#allocation118_spill] sm:$0xff]  ;;  %v21121_v59 = vld [vmem:[#allocation83_spill] sm:$0xff]  ;;  %v21122_v52 = vld [vmem:[#allocation116_spill] sm:$0xff] }
 0x673   :  { %10951 = vmatpush1.bf16.msra.mxu1 %v12550_v40  ;;  %10992 = vmatpush1.bf16.msra.mxu0 %v12582_v22  ;;  %v12566_v40 = vcombine.low %v21101_v3, %v21100_v28  ;;  %v12598_v22 = vcombine.low %v21103_v46, %v21102_v41  ;;  %v21123_v19 = vld [vmem:[#allocation115_spill] sm:$0xff]  ;;  %v21124_v21 = vld [vmem:[#allocation82_spill] sm:$0xff]  ;;  %v21125_v16 = vld [vmem:[#allocation81_spill] sm:$0xff] }
 0x674   :  { %10952 = vmatprep.subr.bf16.mxu1 %v12549_v24  ;;  %10993 = vmatprep.subr.bf16.mxu0 %v12581_v23  ;;  %v12565_v24 = vcombine.high %v21105_v9, %v21104_v58  ;;  %v12597_v23 = vcombine.high %v21107_v50, %v21106_v48  ;;  %v21126_v31 = vld [vmem:[#allocation114_spill] sm:$0xff]  ;;  %v21127_v44 = vld [vmem:[#allocation113_spill] sm:$0xff]  ;;  %v21128_v28 = vld [vmem:[#allocation80_spill] sm:$0xff] }
 0x675   :  { %v21129_v3 = vld [vmem:[#allocation79_spill] sm:$0xff]  ;;  %v21130_v41 = vld [vmem:[#allocation112_spill] sm:$0xff] }
 0x676   :  { %v21131_v46 = vld [vmem:[#allocation111_spill] sm:$0xff]  ;;  %v21136_v13 = vld [vmem:[#allocation76_spill] sm:$0xff] }
 0x677   :  { %10953 = vmatpush1.bf16.msra.mxu1 %v12548_v62  ;;  %10994 = vmatpush1.bf16.msra.mxu0 %v12580_v54  ;;  %v12564_v62 = vcombine.low %v21105_v9, %v21104_v58  ;;  %v12596_v54 = vcombine.low %v21107_v50, %v21106_v48  ;;  %v21132_v58 = vld [vmem:[#allocation78_spill] sm:$0xff]  ;;  %v21133_v9 = vld [vmem:[#allocation77_spill] sm:$0xff]  ;;  %v21137_v35 = vld [vmem:[#allocation75_spill] sm:$0xff] }
 0x678   :  { %10954 = vmatprep.subr.bf16.mxu1 %v12579_v49  ;;  %10995 = vmatprep.subr.bf16.mxu0 %v12611_v11  ;;  %v21108_v49 = vld [vmem:[#allocation90_spill] sm:$0xff]  ;;  %v21135_v50 = vld [vmem:[#allocation109_spill] sm:$0xff] }
 0x679   :  { %v12627_v20 = vcombine.high %v21109_v0, %v21108_v49  ;;  %v21110_v11 = vld [vmem:[#allocation122_spill] sm:$0xff]  ;;  %v12626_v4 = vcombine.low %v21109_v0, %v21108_v49  ;;  %v12613_v49 = vcombine.high %v21137_v35, %v21136_v13  ;;  %v21138_v0 = vld [vmem:[#allocation108_spill] sm:$0xff] }
 0x67a   :  { %v21134_v48 = vld [vmem:[#allocation110_spill] sm:$0xff] }
 0x67b   :  { %10955 = vmatpush2.bf16.msra.mxu1 %v12578_v5  ;;  %10996 = vmatpush2.bf16.msra.mxu0 %v12610_v45  ;;  %v21111_v5 = vld [vmem:[#allocation121_spill] sm:$0xff] }
 0x67c   :  { %10956 = vmatprep.subr.bf16.mxu1 %v12577_v39  ;;  %10997 = vmatprep.subr.bf16.mxu0 %v12609_v10  ;;  %v12659_v45 = vcombine.high %v21111_v5, %v21110_v11  ;;  %v9408_v39 = vld [vmem:[#allocation5 + $0x28] sm:$0xff]  ;;  %v12658_v10 = vcombine.low %v21111_v5, %v21110_v11  ;;  %v12612_v5 = vcombine.low %v21137_v35, %v21136_v13 }
 0x67d   :  { %v9424_v30 = vpack.c.bf16 %v9408_v39, %v9408_v39  ;;  %v21168_v13 = vld [vmem:[#allocation92_spill] sm:$0xff]  ;;  %v21169_v35 = vld [vmem:[#allocation91_spill] sm:$0xff] }
 0x67f   :  { %10957 = vmatpush2.bf16.msra.mxu1 %v12576_v60  ;;  %10998 = vmatpush2.bf16.msra.mxu0 %v12608_v32  ;;  %v21112_v60 = vld [vmem:[#allocation88_spill] sm:$0xff]  ;;  %v21113_v32 = vld [vmem:[#allocation87_spill] sm:$0xff] }
 0x680   :  { %10958 = vmatprep.subr.bf16.mxu1 %v12575_v53  ;;  %10999 = vmatprep.subr.bf16.mxu0 %v12607_v33  ;;  %v12625_v37 = vcombine.high %v21113_v32, %v21112_v60  ;;  %v21115_v53 = vld [vmem:[#allocation119_spill] sm:$0xff]  ;;  %v9426_v33 = vpack.c.bf16 %v9410_v61, %v9410_v61  ;;  %v21142_v61 = vld [vmem:[#allocation138_spill] sm:$0xff] }
 0x681   :  { %v12657_v26 = vcombine.high %v21115_v53, %v21114_v12 }
 0x683   :  { %10959 = vmatpush2.bf16.msra.mxu1 %v12574_v8  ;;  %11000 = vmatpush2.bf16.msra.mxu0 %v12606_v27  ;;  %v12624_v8 = vcombine.low %v21113_v32, %v21112_v60  ;;  %v12656_v27 = vcombine.low %v21115_v53, %v21114_v12  ;;  %v21145_v12 = vld [vmem:[#allocation103_spill] sm:$0xff] }
 0x684   :  { %10960 = vmatprep.subr.bf16.mxu1 %v12573_v42  ;;  %11001 = vmatprep.subr.bf16.mxu0 %v12605_v2  ;;  %v12623_v42 = vcombine.high %v21117_v43, %v21116_v29  ;;  %v12655_v2 = vcombine.high %v21119_v14, %v21118_v25 }
 0x687   :  { %10961 = vmatpush2.bf16.msra.mxu1 %v12572_v56  ;;  %11002 = vmatpush2.bf16.msra.mxu0 %v12604_v6  ;;  %v12622_v56 = vcombine.low %v21117_v43, %v21116_v29  ;;  %v12654_v6 = vcombine.low %v21119_v14, %v21118_v25  ;;  %v21148_v29 = vld [vmem:[#allocation102_spill] sm:$0xff]  ;;  %v21149_v43 = vld [vmem:[#allocation101_spill] sm:$0xff] }
 0x688   :  { %10962 = vmatprep.subr.bf16.mxu1 %v12571_v36  ;;  %11003 = vmatprep.subr.bf16.mxu0 %v12603_v55  ;;  %v12621_v36 = vcombine.high %v21121_v59, %v21120_v18  ;;  %v12653_v55 = vcombine.high %v21123_v19, %v21122_v52  ;;  %v21150_v25 = vld [vmem:[#allocation134_spill] sm:$0xff]  ;;  %v21151_v14 = vld [vmem:[#allocation133_spill] sm:$0xff] }
 0x68b   :  { %10963 = vmatpush2.bf16.msra.mxu1 %v12570_v47  ;;  %11004 = vmatpush2.bf16.msra.mxu0 %v12602_v38  ;;  %v12620_v47 = vcombine.low %v21121_v59, %v21120_v18  ;;  %v12652_v38 = vcombine.low %v21123_v19, %v21122_v52  ;;  %v21152_v18 = vld [vmem:[#allocation100_spill] sm:$0xff]  ;;  %v21153_v59 = vld [vmem:[#allocation99_spill] sm:$0xff] }
 0x68c   :  { %10964 = vmatprep.subr.bf16.mxu1 %v12569_v1  ;;  %11005 = vmatprep.subr.bf16.mxu0 %v12601_v34  ;;  %v12619_v1 = vcombine.high %v21125_v16, %v21124_v21  ;;  %v12651_v34 = vcombine.high %v21127_v44, %v21126_v31  ;;  %v21154_v52 = vld [vmem:[#allocation132_spill] sm:$0xff]  ;;  %v21155_v19 = vld [vmem:[#allocation131_spill] sm:$0xff] }
 0x68f   :  { %10965 = vmatpush2.bf16.msra.mxu1 %v12568_v63  ;;  %11006 = vmatpush2.bf16.msra.mxu0 %v12600_v51  ;;  %v12618_v63 = vcombine.low %v21125_v16, %v21124_v21  ;;  %v12650_v51 = vcombine.low %v21127_v44, %v21126_v31  ;;  %v21156_v21 = vld [vmem:[#allocation98_spill] sm:$0xff]  ;;  %v21157_v16 = vld [vmem:[#allocation97_spill] sm:$0xff] }
 0x690   :  { %10966 = vmatprep.subr.bf16.mxu1 %v12567_v7  ;;  %11007 = vmatprep.subr.bf16.mxu0 %v12599_v17  ;;  %v12617_v7 = vcombine.high %v21129_v3, %v21128_v28  ;;  %v12649_v17 = vcombine.high %v21131_v46, %v21130_v41  ;;  %v21158_v31 = vld [vmem:[#allocation130_spill] sm:$0xff]  ;;  %v21159_v44 = vld [vmem:[#allocation129_spill] sm:$0xff] }
 0x693   :  { %10967 = vmatpush2.bf16.msra.mxu1 %v12566_v40  ;;  %11008 = vmatpush2.bf16.msra.mxu0 %v12598_v22  ;;  %v12616_v40 = vcombine.low %v21129_v3, %v21128_v28  ;;  %v12648_v22 = vcombine.low %v21131_v46, %v21130_v41  ;;  %v21160_v28 = vld [vmem:[#allocation96_spill] sm:$0xff]  ;;  %v21161_v3 = vld [vmem:[#allocation95_spill] sm:$0xff] }
 0x694   :  { %10968 = vmatprep.subr.bf16.mxu1 %v12565_v24  ;;  %11009 = vmatprep.subr.bf16.mxu0 %v12597_v23  ;;  %v12615_v24 = vcombine.high %v21133_v9, %v21132_v58  ;;  %v12647_v23 = vcombine.high %v21135_v50, %v21134_v48  ;;  %v21162_v41 = vld [vmem:[#allocation128_spill] sm:$0xff]  ;;  %v21163_v46 = vld [vmem:[#allocation127_spill] sm:$0xff] }
 0x697   :  { %10969 = vmatpush2.bf16.msra.mxu1 %v12564_v62  ;;  %11010 = vmatpush2.bf16.msra.mxu0 %v12596_v54  ;;  %v12614_v62 = vcombine.low %v21133_v9, %v21132_v58  ;;  %v12646_v54 = vcombine.low %v21135_v50, %v21134_v48  ;;  %v21164_v58 = vld [vmem:[#allocation94_spill] sm:$0xff]  ;;  %v21165_v9 = vld [vmem:[#allocation93_spill] sm:$0xff] }
 0x698   :  { %11020 = vmatprep.subr.bf16.mxu1 %v12627_v20  ;;  %11061 = vmatprep.subr.bf16.mxu0 %v12659_v45  ;;  %v21139_v20 = vld [vmem:[#allocation107_spill] sm:$0xff]  ;;  %v21166_v48 = vld [vmem:[#allocation126_spill] sm:$0xff]  ;;  %v21167_v50 = vld [vmem:[#allocation125_spill] sm:$0xff] }
 0x699   :  { %v12645_v11 = vcombine.high %v21139_v20, %v21138_v0  ;;  %v12644_v45 = vcombine.low %v21139_v20, %v21138_v0  ;;  %v21170_v0 = vld [vmem:[#allocation124_spill] sm:$0xff]  ;;  %v21171_v20 = vld [vmem:[#allocation123_spill] sm:$0xff] }
 0x69a   :  { %10971 = vmatmul.mubr.bf16.vlgmr.msra.gmra.mxu1 %v9419_v57  ;;  %11012 = vmatmul.mubr.bf16.vlgmr.msra.gmra.mxu0 %v9421_v15  ;;  %v21140_v57 = vld [vmem:[#allocation106_spill] sm:$0xff]  ;;  %v21141_v15 = vld [vmem:[#allocation105_spill] sm:$0xff] }
 0x69b   :  { %11021 = vmatpush1.bf16.msra.mxu1 %v12626_v4  ;;  %11062 = vmatpush1.bf16.msra.mxu0 %v12658_v10  ;;  %v12643_v39 = vcombine.high %v21141_v15, %v21140_v57  ;;  %v21143_v4 = vld [vmem:[#allocation137_spill] sm:$0xff]  ;;  %v12642_v60 = vcombine.low %v21141_v15, %v21140_v57  ;;  %v9407_v57 = vld [vmem:[#allocation5 + $0x20] sm:$0xff] }
 0x69c   :  { %11022 = vmatprep.subr.bf16.mxu1 %v12625_v37  ;;  %11063 = vmatprep.subr.bf16.mxu0 %v12657_v26  ;;  %v12675_v10 = vcombine.high %v21143_v4, %v21142_v61  ;;  %v12674_v32 = vcombine.low %v21143_v4, %v21142_v61  ;;  %v21144_v37 = vld [vmem:[#allocation104_spill] sm:$0xff]  ;;  %v21173_v61 = vld [vmem:[#allocation153_spill] sm:$0xff] }
 0x69d   :  { %11052 = vmatprep.mubr.bf16.mxu1 %v9424_v30  ;;  %11093 = vmatprep.mubr.bf16.mxu0 %v9426_v33  ;;  %v12641_v53 = vcombine.high %v21145_v12, %v21144_v37  ;;  %v21146_v26 = vld [vmem:[#allocation136_spill] sm:$0xff]  ;;  %v21147_v30 = vld [vmem:[#allocation135_spill] sm:$0xff] }
 0x69e   :  { %v12673_v33 = vcombine.high %v21147_v30, %v21146_v26  ;;  %v9409_v15 = vld [vmem:[#allocation5 + $0x30] sm:$0xff] }
 0x69f   :  { %11023 = vmatpush1.bf16.msra.mxu1 %v12624_v8  ;;  %11064 = vmatpush1.bf16.msra.mxu0 %v12656_v27  ;;  %v12640_v8 = vcombine.low %v21145_v12, %v21144_v37  ;;  %v12672_v27 = vcombine.low %v21147_v30, %v21146_v26  ;;  %v9423_v37 = vpack.c.bf16 %v9407_v57, %v9407_v57  ;;  %v9414_v26 = vld [vmem:[#allocation5 + $0x58] sm:$0xff]  ;;  %v21200_v57 = vld [vmem:[#allocation140_spill] sm:$0xff] }
 0x6a0   :  { %11024 = vmatprep.subr.bf16.mxu1 %v12623_v42  ;;  %11065 = vmatprep.subr.bf16.mxu0 %v12655_v2  ;;  %v12639_v42 = vcombine.high %v21149_v43, %v21148_v29  ;;  %v12671_v2 = vcombine.high %v21151_v14, %v21150_v25  ;;  %v9425_v12 = vpack.c.bf16 %v9409_v15, %v9409_v15  ;;  %v21201_v15 = vld [vmem:[#allocation139_spill] sm:$0xff] }
 0x6a3   :  { %11025 = vmatpush1.bf16.msra.mxu1 %v12622_v56  ;;  %11066 = vmatpush1.bf16.msra.mxu0 %v12654_v6  ;;  %v12638_v56 = vcombine.low %v21149_v43, %v21148_v29  ;;  %v12670_v6 = vcombine.low %v21151_v14, %v21150_v25  ;;  %v21178_v43 = vld [vmem:[#allocation184_spill] sm:$0xff] }
 0x6a4   :  { %11026 = vmatprep.subr.bf16.mxu1 %v12621_v36  ;;  %11067 = vmatprep.subr.bf16.mxu0 %v12653_v55  ;;  %v12637_v36 = vcombine.high %v21153_v59, %v21152_v18  ;;  %v12669_v55 = vcombine.high %v21155_v19, %v21154_v52 }
 0x6a7   :  { %11027 = vmatpush1.bf16.msra.mxu1 %v12620_v47  ;;  %11068 = vmatpush1.bf16.msra.mxu0 %v12652_v38  ;;  %v12636_v47 = vcombine.low %v21153_v59, %v21152_v18  ;;  %v12668_v38 = vcombine.low %v21155_v19, %v21154_v52  ;;  %v21180_v18 = vld [vmem:[#allocation150_spill] sm:$0xff]  ;;  %v21181_v59 = vld [vmem:[#allocation149_spill] sm:$0xff] }
 0x6a8   :  { %11028 = vmatprep.subr.bf16.mxu1 %v12619_v1  ;;  %11069 = vmatprep.subr.bf16.mxu0 %v12651_v34  ;;  %v12635_v1 = vcombine.high %v21157_v16, %v21156_v21  ;;  %v12667_v34 = vcombine.high %v21159_v44, %v21158_v31  ;;  %v21182_v52 = vld [vmem:[#allocation182_spill] sm:$0xff]  ;;  %v21183_v19 = vld [vmem:[#allocation181_spill] sm:$0xff] }
 0x6ab   :  { %11029 = vmatpush1.bf16.msra.mxu1 %v12618_v63  ;;  %11070 = vmatpush1.bf16.msra.mxu0 %v12650_v51  ;;  %v12634_v63 = vcombine.low %v21157_v16, %v21156_v21  ;;  %v12666_v51 = vcombine.low %v21159_v44, %v21158_v31  ;;  %v21184_v21 = vld [vmem:[#allocation148_spill] sm:$0xff]  ;;  %v21185_v16 = vld [vmem:[#allocation147_spill] sm:$0xff] }
 0x6ac   :  { %11030 = vmatprep.subr.bf16.mxu1 %v12617_v7  ;;  %11071 = vmatprep.subr.bf16.mxu0 %v12649_v17  ;;  %v12633_v7 = vcombine.high %v21161_v3, %v21160_v28  ;;  %v12665_v17 = vcombine.high %v21163_v46, %v21162_v41  ;;  %v21186_v31 = vld [vmem:[#allocation180_spill] sm:$0xff]  ;;  %v21187_v44 = vld [vmem:[#allocation179_spill] sm:$0xff] }
 0x6af   :  { %11031 = vmatpush1.bf16.msra.mxu1 %v12616_v40  ;;  %11072 = vmatpush1.bf16.msra.mxu0 %v12648_v22  ;;  %v12632_v40 = vcombine.low %v21161_v3, %v21160_v28  ;;  %v12664_v22 = vcombine.low %v21163_v46, %v21162_v41  ;;  %v21188_v28 = vld [vmem:[#allocation146_spill] sm:$0xff]  ;;  %v21189_v3 = vld [vmem:[#allocation145_spill] sm:$0xff] }
 0x6b0   :  { %11032 = vmatprep.subr.bf16.mxu1 %v12615_v24  ;;  %11073 = vmatprep.subr.bf16.mxu0 %v12647_v23  ;;  %v12631_v24 = vcombine.high %v21165_v9, %v21164_v58  ;;  %v12663_v23 = vcombine.high %v21167_v50, %v21166_v48  ;;  %v21190_v41 = vld [vmem:[#allocation178_spill] sm:$0xff]  ;;  %v21191_v46 = vld [vmem:[#allocation177_spill] sm:$0xff] }
 0x6b3   :  { %11033 = vmatpush1.bf16.msra.mxu1 %v12614_v62  ;;  %11074 = vmatpush1.bf16.msra.mxu0 %v12646_v54  ;;  %v12630_v62 = vcombine.low %v21165_v9, %v21164_v58  ;;  %v12662_v54 = vcombine.low %v21167_v50, %v21166_v48  ;;  %v21192_v58 = vld [vmem:[#allocation144_spill] sm:$0xff]  ;;  %v21193_v9 = vld [vmem:[#allocation143_spill] sm:$0xff] }
 0x6b4   :  { %11034 = vmatprep.subr.bf16.mxu1 %v12613_v49  ;;  %11075 = vmatprep.subr.bf16.mxu0 %v12645_v11  ;;  %v12629_v49 = vcombine.high %v21169_v35, %v21168_v13  ;;  %v12661_v11 = vcombine.high %v21171_v20, %v21170_v0  ;;  %v21194_v48 = vld [vmem:[#allocation176_spill] sm:$0xff]  ;;  %v21195_v50 = vld [vmem:[#allocation175_spill] sm:$0xff] }
 0x6b7   :  { %11035 = vmatpush1.bf16.msra.mxu1 %v12612_v5  ;;  %11076 = vmatpush1.bf16.msra.mxu0 %v12644_v45  ;;  %v12628_v5 = vcombine.low %v21169_v35, %v21168_v13  ;;  %v12660_v45 = vcombine.low %v21171_v20, %v21170_v0  ;;  %v21196_v13 = vld [vmem:[#allocation142_spill] sm:$0xff]  ;;  %v21197_v35 = vld [vmem:[#allocation141_spill] sm:$0xff] }
 0x6b8   :  { %11036 = vmatprep.subr.bf16.mxu1 %v12643_v39  ;;  %11077 = vmatprep.subr.bf16.mxu0 %v12675_v10  ;;  %v21172_v39 = vld [vmem:[#allocation154_spill] sm:$0xff]  ;;  %v21199_v20 = vld [vmem:[#allocation173_spill] sm:$0xff] }
 0x6b9   :  { %v12691_v4 = vcombine.high %v21173_v61, %v21172_v39  ;;  %v21174_v10 = vld [vmem:[#allocation186_spill] sm:$0xff]  ;;  %v12690_v30 = vcombine.low %v21173_v61, %v21172_v39  ;;  %v12677_v39 = vcombine.high %v21201_v15, %v21200_v57  ;;  %v21202_v61 = vld [vmem:[#allocation172_spill] sm:$0xff] }
 0x6ba   :  { %v21198_v0 = vld [vmem:[#allocation174_spill] sm:$0xff] }
 0x6bb   :  { %11037 = vmatpush2.bf16.msra.mxu1 %v12642_v60  ;;  %11078 = vmatpush2.bf16.msra.mxu0 %v12674_v32  ;;  %v21175_v60 = vld [vmem:[#allocation185_spill] sm:$0xff] }
 0x6bc   :  { %11038 = vmatprep.subr.bf16.mxu1 %v12641_v53  ;;  %11079 = vmatprep.subr.bf16.mxu0 %v12673_v33  ;;  %v12723_v32 = vcombine.high %v21175_v60, %v21174_v10  ;;  %v9412_v53 = vld [vmem:[#allocation5 + $0x48] sm:$0xff]  ;;  %v12722_v33 = vcombine.low %v21175_v60, %v21174_v10  ;;  %v12676_v60 = vcombine.low %v21201_v15, %v21200_v57 }
 0x6bd   :  { %v9428_v14 = vpack.c.bf16 %v9412_v53, %v9412_v53  ;;  %v21232_v57 = vld [vmem:[#allocation156_spill] sm:$0xff]  ;;  %v21233_v15 = vld [vmem:[#allocation155_spill] sm:$0xff] }
 0x6bf   :  { %11039 = vmatpush2.bf16.msra.mxu1 %v12640_v8  ;;  %11080 = vmatpush2.bf16.msra.mxu0 %v12672_v27  ;;  %v21176_v8 = vld [vmem:[#allocation152_spill] sm:$0xff]  ;;  %v21177_v27 = vld [vmem:[#allocation151_spill] sm:$0xff] }
 0x6c0   :  { %11040 = vmatprep.subr.bf16.mxu1 %v12639_v42  ;;  %11081 = vmatprep.subr.bf16.mxu0 %v12671_v2  ;;  %v12689_v29 = vcombine.high %v21177_v27, %v21176_v8  ;;  %v21179_v42 = vld [vmem:[#allocation183_spill] sm:$0xff]  ;;  %v9430_v2 = vpack.c.bf16 %v9414_v26, %v9414_v26  ;;  %v21206_v26 = vld [vmem:[#allocation202_spill] sm:$0xff] }
 0x6c1   :  { %v12721_v25 = vcombine.high %v21179_v42, %v21178_v43 }
 0x6c3   :  { %11041 = vmatpush2.bf16.msra.mxu1 %v12638_v56  ;;  %11082 = vmatpush2.bf16.msra.mxu0 %v12670_v6  ;;  %v12688_v56 = vcombine.low %v21177_v27, %v21176_v8  ;;  %v12720_v6 = vcombine.low %v21179_v42, %v21178_v43  ;;  %v21209_v43 = vld [vmem:[#allocation167_spill] sm:$0xff] }
 0x6c4   :  { %11042 = vmatprep.subr.bf16.mxu1 %v12637_v36  ;;  %11083 = vmatprep.subr.bf16.mxu0 %v12669_v55  ;;  %v12687_v36 = vcombine.high %v21181_v59, %v21180_v18  ;;  %v12719_v55 = vcombine.high %v21183_v19, %v21182_v52 }
 0x6c7   :  { %11043 = vmatpush2.bf16.msra.mxu1 %v12636_v47  ;;  %11084 = vmatpush2.bf16.msra.mxu0 %v12668_v38  ;;  %v12686_v47 = vcombine.low %v21181_v59, %v21180_v18  ;;  %v12718_v38 = vcombine.low %v21183_v19, %v21182_v52  ;;  %v21212_v18 = vld [vmem:[#allocation166_spill] sm:$0xff]  ;;  %v21213_v59 = vld [vmem:[#allocation165_spill] sm:$0xff] }
 0x6c8   :  { %11044 = vmatprep.subr.bf16.mxu1 %v12635_v1  ;;  %11085 = vmatprep.subr.bf16.mxu0 %v12667_v34  ;;  %v12685_v1 = vcombine.high %v21185_v16, %v21184_v21  ;;  %v12717_v34 = vcombine.high %v21187_v44, %v21186_v31  ;;  %v21214_v52 = vld [vmem:[#allocation198_spill] sm:$0xff]  ;;  %v21215_v19 = vld [vmem:[#allocation197_spill] sm:$0xff] }
 0x6cb   :  { %11045 = vmatpush2.bf16.msra.mxu1 %v12634_v63  ;;  %11086 = vmatpush2.bf16.msra.mxu0 %v12666_v51  ;;  %v12684_v63 = vcombine.low %v21185_v16, %v21184_v21  ;;  %v12716_v51 = vcombine.low %v21187_v44, %v21186_v31  ;;  %v21216_v21 = vld [vmem:[#allocation164_spill] sm:$0xff]  ;;  %v21217_v16 = vld [vmem:[#allocation163_spill] sm:$0xff] }
 0x6cc   :  { %11046 = vmatprep.subr.bf16.mxu1 %v12633_v7  ;;  %11087 = vmatprep.subr.bf16.mxu0 %v12665_v17  ;;  %v12683_v7 = vcombine.high %v21189_v3, %v21188_v28  ;;  %v12715_v17 = vcombine.high %v21191_v46, %v21190_v41  ;;  %v21218_v31 = vld [vmem:[#allocation196_spill] sm:$0xff]  ;;  %v21219_v44 = vld [vmem:[#allocation195_spill] sm:$0xff] }
 0x6cf   :  { %11047 = vmatpush2.bf16.msra.mxu1 %v12632_v40  ;;  %11088 = vmatpush2.bf16.msra.mxu0 %v12664_v22  ;;  %v12682_v40 = vcombine.low %v21189_v3, %v21188_v28  ;;  %v12714_v22 = vcombine.low %v21191_v46, %v21190_v41  ;;  %v21220_v28 = vld [vmem:[#allocation162_spill] sm:$0xff]  ;;  %v21221_v3 = vld [vmem:[#allocation161_spill] sm:$0xff] }
 0x6d0   :  { %11048 = vmatprep.subr.bf16.mxu1 %v12631_v24  ;;  %11089 = vmatprep.subr.bf16.mxu0 %v12663_v23  ;;  %v12681_v24 = vcombine.high %v21193_v9, %v21192_v58  ;;  %v12713_v23 = vcombine.high %v21195_v50, %v21194_v48  ;;  %v21222_v41 = vld [vmem:[#allocation194_spill] sm:$0xff]  ;;  %v21223_v46 = vld [vmem:[#allocation193_spill] sm:$0xff] }
 0x6d3   :  { %11049 = vmatpush2.bf16.msra.mxu1 %v12630_v62  ;;  %11090 = vmatpush2.bf16.msra.mxu0 %v12662_v54  ;;  %v12680_v62 = vcombine.low %v21193_v9, %v21192_v58  ;;  %v12712_v54 = vcombine.low %v21195_v50, %v21194_v48  ;;  %v21224_v58 = vld [vmem:[#allocation160_spill] sm:$0xff]  ;;  %v21225_v9 = vld [vmem:[#allocation159_spill] sm:$0xff] }
 0x6d4   :  { %11050 = vmatprep.subr.bf16.mxu1 %v12629_v49  ;;  %11091 = vmatprep.subr.bf16.mxu0 %v12661_v11  ;;  %v12679_v49 = vcombine.high %v21197_v35, %v21196_v13  ;;  %v12711_v11 = vcombine.high %v21199_v20, %v21198_v0  ;;  %v21226_v48 = vld [vmem:[#allocation192_spill] sm:$0xff]  ;;  %v21227_v50 = vld [vmem:[#allocation191_spill] sm:$0xff] }
 0x6d7   :  { %11051 = vmatpush2.bf16.msra.mxu1 %v12628_v5  ;;  %11092 = vmatpush2.bf16.msra.mxu0 %v12660_v45  ;;  %v12678_v5 = vcombine.low %v21197_v35, %v21196_v13  ;;  %v12710_v45 = vcombine.low %v21199_v20, %v21198_v0  ;;  %v21228_v13 = vld [vmem:[#allocation158_spill] sm:$0xff]  ;;  %v21229_v35 = vld [vmem:[#allocation157_spill] sm:$0xff] }
 0x6d8   :  { %11102 = vmatprep.subr.bf16.mxu1 %v12691_v4  ;;  %11143 = vmatprep.subr.bf16.mxu0 %v12723_v32  ;;  %v21203_v4 = vld [vmem:[#allocation171_spill] sm:$0xff]  ;;  %v21230_v0 = vld [vmem:[#allocation190_spill] sm:$0xff]  ;;  %v21231_v20 = vld [vmem:[#allocation189_spill] sm:$0xff] }
 0x6d9   :  { %v12709_v10 = vcombine.high %v21203_v4, %v21202_v61  ;;  %v12708_v32 = vcombine.low %v21203_v4, %v21202_v61  ;;  %v21234_v61 = vld [vmem:[#allocation188_spill] sm:$0xff]  ;;  %v21235_v4 = vld [vmem:[#allocation187_spill] sm:$0xff] }
 0x6da   :  { %11053 = vmatmul.mubr.bf16.vlgmr.msra.gmra.mxu1 %v9423_v37  ;;  %11094 = vmatmul.mubr.bf16.vlgmr.msra.gmra.mxu0 %v9425_v12  ;;  %v21204_v37 = vld [vmem:[#allocation170_spill] sm:$0xff]  ;;  %v21205_v12 = vld [vmem:[#allocation169_spill] sm:$0xff] }
 0x6db   :  { %11103 = vmatpush1.bf16.msra.mxu1 %v12690_v30  ;;  %11144 = vmatpush1.bf16.msra.mxu0 %v12722_v33  ;;  %v12707_v53 = vcombine.high %v21205_v12, %v21204_v37  ;;  %v21207_v30 = vld [vmem:[#allocation201_spill] sm:$0xff]  ;;  %v12706_v8 = vcombine.low %v21205_v12, %v21204_v37  ;;  %v9411_v37 = vld [vmem:[#allocation5 + $0x40] sm:$0xff] }
 0x6dc   :  { %11104 = vmatprep.subr.bf16.mxu1 %v12689_v29  ;;  %11145 = vmatprep.subr.bf16.mxu0 %v12721_v25  ;;  %v12739_v33 = vcombine.high %v21207_v30, %v21206_v26  ;;  %v12738_v27 = vcombine.low %v21207_v30, %v21206_v26  ;;  %v21208_v29 = vld [vmem:[#allocation168_spill] sm:$0xff]  ;;  %v21237_v26 = vld [vmem:[#allocation217_spill] sm:$0xff] }
 0x6dd   :  { %11134 = vmatprep.mubr.bf16.mxu1 %v9428_v14  ;;  %11175 = vmatprep.mubr.bf16.mxu0 %v9430_v2  ;;  %v12705_v42 = vcombine.high %v21209_v43, %v21208_v29  ;;  %v21210_v25 = vld [vmem:[#allocation200_spill] sm:$0xff]  ;;  %v21211_v14 = vld [vmem:[#allocation199_spill] sm:$0xff] }
 0x6de   :  { %v12737_v2 = vcombine.high %v21211_v14, %v21210_v25  ;;  %v9413_v12 = vld [vmem:[#allocation5 + $0x50] sm:$0xff] }
 0x6df   :  { %11105 = vmatpush1.bf16.msra.mxu1 %v12688_v56  ;;  %11146 = vmatpush1.bf16.msra.mxu0 %v12720_v6  ;;  %v12704_v56 = vcombine.low %v21209_v43, %v21208_v29  ;;  %v12736_v6 = vcombine.low %v21211_v14, %v21210_v25  ;;  %v9427_v29 = vpack.c.bf16 %v9411_v37, %v9411_v37  ;;  %v9416_v25 = vld [vmem:[#allocation5 + $0x68] sm:$0xff] }
 0x6e0   :  { %11106 = vmatprep.subr.bf16.mxu1 %v12687_v36  ;;  %11147 = vmatprep.subr.bf16.mxu0 %v12719_v55  ;;  %v12703_v36 = vcombine.high %v21213_v59, %v21212_v18  ;;  %v12735_v55 = vcombine.high %v21215_v19, %v21214_v52  ;;  %v9429_v43 = vpack.c.bf16 %v9413_v12, %v9413_v12  ;;  %v21264_v37 = vld [vmem:[#allocation204_spill] sm:$0xff]  ;;  %v21265_v12 = vld [vmem:[#allocation203_spill] sm:$0xff] }
 0x6e3   :  { %11107 = vmatpush1.bf16.msra.mxu1 %v12686_v47  ;;  %11148 = vmatpush1.bf16.msra.mxu0 %v12718_v38  ;;  %v12702_v47 = vcombine.low %v21213_v59, %v21212_v18  ;;  %v12734_v38 = vcombine.low %v21215_v19, %v21214_v52  ;;  %v21242_v59 = vld [vmem:[#allocation248_spill] sm:$0xff] }
 0x6e4   :  { %11108 = vmatprep.subr.bf16.mxu1 %v12685_v1  ;;  %11149 = vmatprep.subr.bf16.mxu0 %v12717_v34  ;;  %v12701_v1 = vcombine.high %v21217_v16, %v21216_v21  ;;  %v12733_v34 = vcombine.high %v21219_v44, %v21218_v31 }
 0x6e7   :  { %11109 = vmatpush1.bf16.msra.mxu1 %v12684_v63  ;;  %11150 = vmatpush1.bf16.msra.mxu0 %v12716_v51  ;;  %v12700_v63 = vcombine.low %v21217_v16, %v21216_v21  ;;  %v12732_v51 = vcombine.low %v21219_v44, %v21218_v31  ;;  %v21244_v21 = vld [vmem:[#allocation214_spill] sm:$0xff]  ;;  %v21245_v16 = vld [vmem:[#allocation213_spill] sm:$0xff] }
 0x6e8   :  { %11110 = vmatprep.subr.bf16.mxu1 %v12683_v7  ;;  %11151 = vmatprep.subr.bf16.mxu0 %v12715_v17  ;;  %v12699_v7 = vcombine.high %v21221_v3, %v21220_v28  ;;  %v12731_v17 = vcombine.high %v21223_v46, %v21222_v41  ;;  %v21246_v31 = vld [vmem:[#allocation246_spill] sm:$0xff]  ;;  %v21247_v44 = vld [vmem:[#allocation245_spill] sm:$0xff] }
 0x6eb   :  { %11111 = vmatpush1.bf16.msra.mxu1 %v12682_v40  ;;  %11152 = vmatpush1.bf16.msra.mxu0 %v12714_v22  ;;  %v12698_v40 = vcombine.low %v21221_v3, %v21220_v28  ;;  %v12730_v22 = vcombine.low %v21223_v46, %v21222_v41  ;;  %v21248_v28 = vld [vmem:[#allocation212_spill] sm:$0xff]  ;;  %v21249_v3 = vld [vmem:[#allocation211_spill] sm:$0xff] }
 0x6ec   :  { %11112 = vmatprep.subr.bf16.mxu1 %v12681_v24  ;;  %11153 = vmatprep.subr.bf16.mxu0 %v12713_v23  ;;  %v12697_v24 = vcombine.high %v21225_v9, %v21224_v58  ;;  %v12729_v23 = vcombine.high %v21227_v50, %v21226_v48  ;;  %v21250_v41 = vld [vmem:[#allocation244_spill] sm:$0xff]  ;;  %v21251_v46 = vld [vmem:[#allocation243_spill] sm:$0xff] }
 0x6ef   :  { %11113 = vmatpush1.bf16.msra.mxu1 %v12680_v62  ;;  %11154 = vmatpush1.bf16.msra.mxu0 %v12712_v54  ;;  %v12696_v62 = vcombine.low %v21225_v9, %v21224_v58  ;;  %v12728_v54 = vcombine.low %v21227_v50, %v21226_v48  ;;  %v21252_v58 = vld [vmem:[#allocation210_spill] sm:$0xff]  ;;  %v21253_v9 = vld [vmem:[#allocation209_spill] sm:$0xff] }
 0x6f0   :  { %11114 = vmatprep.subr.bf16.mxu1 %v12679_v49  ;;  %11155 = vmatprep.subr.bf16.mxu0 %v12711_v11  ;;  %v12695_v49 = vcombine.high %v21229_v35, %v21228_v13  ;;  %v12727_v11 = vcombine.high %v21231_v20, %v21230_v0  ;;  %v21254_v48 = vld [vmem:[#allocation242_spill] sm:$0xff]  ;;  %v21255_v50 = vld [vmem:[#allocation241_spill] sm:$0xff] }
 0x6f3   :  { %11115 = vmatpush1.bf16.msra.mxu1 %v12678_v5  ;;  %11156 = vmatpush1.bf16.msra.mxu0 %v12710_v45  ;;  %v12694_v5 = vcombine.low %v21229_v35, %v21228_v13  ;;  %v12726_v45 = vcombine.low %v21231_v20, %v21230_v0  ;;  %v21256_v13 = vld [vmem:[#allocation208_spill] sm:$0xff]  ;;  %v21257_v35 = vld [vmem:[#allocation207_spill] sm:$0xff] }
 0x6f4   :  { %11116 = vmatprep.subr.bf16.mxu1 %v12677_v39  ;;  %11157 = vmatprep.subr.bf16.mxu0 %v12709_v10  ;;  %v12693_v39 = vcombine.high %v21233_v15, %v21232_v57  ;;  %v12725_v10 = vcombine.high %v21235_v4, %v21234_v61  ;;  %v21258_v0 = vld [vmem:[#allocation240_spill] sm:$0xff]  ;;  %v21259_v20 = vld [vmem:[#allocation239_spill] sm:$0xff] }
 0x6f7   :  { %11117 = vmatpush1.bf16.msra.mxu1 %v12676_v60  ;;  %11158 = vmatpush1.bf16.msra.mxu0 %v12708_v32  ;;  %v12692_v60 = vcombine.low %v21233_v15, %v21232_v57  ;;  %v12724_v32 = vcombine.low %v21235_v4, %v21234_v61  ;;  %v21260_v57 = vld [vmem:[#allocation206_spill] sm:$0xff]  ;;  %v21261_v15 = vld [vmem:[#allocation205_spill] sm:$0xff] }
 0x6f8   :  { %11118 = vmatprep.subr.bf16.mxu1 %v12707_v53  ;;  %11159 = vmatprep.subr.bf16.mxu0 %v12739_v33  ;;  %v21236_v53 = vld [vmem:[#allocation218_spill] sm:$0xff]  ;;  %v21263_v4 = vld [vmem:[#allocation237_spill] sm:$0xff] }
 0x6f9   :  { %v12755_v30 = vcombine.high %v21237_v26, %v21236_v53  ;;  %v21238_v33 = vld [vmem:[#allocation250_spill] sm:$0xff]  ;;  %v12754_v14 = vcombine.low %v21237_v26, %v21236_v53  ;;  %v12741_v53 = vcombine.high %v21265_v12, %v21264_v37  ;;  %v21266_v26 = vld [vmem:[#allocation236_spill] sm:$0xff] }
 0x6fa   :  { %v21262_v61 = vld [vmem:[#allocation238_spill] sm:$0xff] }
 0x6fb   :  { %11119 = vmatpush2.bf16.msra.mxu1 %v12706_v8  ;;  %11160 = vmatpush2.bf16.msra.mxu0 %v12738_v27  ;;  %v21239_v8 = vld [vmem:[#allocation249_spill] sm:$0xff] }
 0x6fc   :  { %11120 = vmatprep.subr.bf16.mxu1 %v12705_v42  ;;  %11161 = vmatprep.subr.bf16.mxu0 %v12737_v2  ;;  %v12787_v27 = vcombine.high %v21239_v8, %v21238_v33  ;;  %v9418_v42 = vld [vmem:[#allocation5 + $0x78] sm:$0xff]  ;;  %v12786_v2 = vcombine.low %v21239_v8, %v21238_v33  ;;  %v12740_v8 = vcombine.low %v21265_v12, %v21264_v37 }
 0x6fd   :  { %v9434_v19 = vpack.c.bf16 %v9418_v42, %v9418_v42 }
 0x6ff   :  { %11121 = vmatpush2.bf16.msra.mxu1 %v12704_v56  ;;  %11162 = vmatpush2.bf16.msra.mxu0 %v12736_v6  ;;  %v21240_v56 = vld [vmem:[#allocation216_spill] sm:$0xff]  ;;  %v21241_v6 = vld [vmem:[#allocation215_spill] sm:$0xff] }
 0x700   :  { %11122 = vmatprep.subr.bf16.mxu1 %v12703_v36  ;;  %11163 = vmatprep.subr.bf16.mxu0 %v12735_v55  ;;  %v12753_v18 = vcombine.high %v21241_v6, %v21240_v56  ;;  %v21243_v36 = vld [vmem:[#allocation247_spill] sm:$0xff]  ;;  %v9432_v55 = vpack.c.bf16 %v9416_v25, %v9416_v25  ;;  %v21270_v25 = vld [vmem:[#allocation258_spill] sm:$0xff] }
 0x701   :  { %v12785_v52 = vcombine.high %v21243_v36, %v21242_v59 }
 0x703   :  { %11123 = vmatpush2.bf16.msra.mxu1 %v12702_v47  ;;  %11164 = vmatpush2.bf16.msra.mxu0 %v12734_v38  ;;  %v12752_v47 = vcombine.low %v21241_v6, %v21240_v56  ;;  %v12784_v38 = vcombine.low %v21243_v36, %v21242_v59  ;;  %v21273_v59 = vld [vmem:[#allocation231_spill] sm:$0xff] }
 0x704   :  { %11124 = vmatprep.subr.bf16.mxu1 %v12701_v1  ;;  %11165 = vmatprep.subr.bf16.mxu0 %v12733_v34  ;;  %v12751_v1 = vcombine.high %v21245_v16, %v21244_v21  ;;  %v12783_v34 = vcombine.high %v21247_v44, %v21246_v31 }
 0x707   :  { %11125 = vmatpush2.bf16.msra.mxu1 %v12700_v63  ;;  %11166 = vmatpush2.bf16.msra.mxu0 %v12732_v51  ;;  %v12750_v63 = vcombine.low %v21245_v16, %v21244_v21  ;;  %v12782_v51 = vcombine.low %v21247_v44, %v21246_v31  ;;  %v21276_v21 = vld [vmem:[#allocation230_spill] sm:$0xff]  ;;  %v21277_v16 = vld [vmem:[#allocation229_spill] sm:$0xff] }
 0x708   :  { %11126 = vmatprep.subr.bf16.mxu1 %v12699_v7  ;;  %11167 = vmatprep.subr.bf16.mxu0 %v12731_v17  ;;  %v12749_v7 = vcombine.high %v21249_v3, %v21248_v28  ;;  %v12781_v17 = vcombine.high %v21251_v46, %v21250_v41  ;;  %v21278_v31 = vld [vmem:[#allocation254_spill] sm:$0xff]  ;;  %v21279_v44 = vld [vmem:[#allocation253_spill] sm:$0xff] }
 0x70b   :  { %11127 = vmatpush2.bf16.msra.mxu1 %v12698_v40  ;;  %11168 = vmatpush2.bf16.msra.mxu0 %v12730_v22  ;;  %v12748_v40 = vcombine.low %v21249_v3, %v21248_v28  ;;  %v12780_v22 = vcombine.low %v21251_v46, %v21250_v41  ;;  %v21280_v28 = vld [vmem:[#allocation228_spill] sm:$0xff]  ;;  %v21281_v3 = vld [vmem:[#allocation227_spill] sm:$0xff] }
 0x70c   :  { %11128 = vmatprep.subr.bf16.mxu1 %v12697_v24  ;;  %11169 = vmatprep.subr.bf16.mxu0 %v12729_v23  ;;  %v12747_v24 = vcombine.high %v21253_v9, %v21252_v58  ;;  %v12779_v23 = vcombine.high %v21255_v50, %v21254_v48  ;;  %v21282_v41 = vld [vmem:[#allocation252_spill] sm:$0xff]  ;;  %v21283_v46 = vld [vmem:[#allocation251_spill] sm:$0xff] }
 0x70f   :  { %11129 = vmatpush2.bf16.msra.mxu1 %v12696_v62  ;;  %11170 = vmatpush2.bf16.msra.mxu0 %v12728_v54  ;;  %v12746_v62 = vcombine.low %v21253_v9, %v21252_v58  ;;  %v12778_v54 = vcombine.low %v21255_v50, %v21254_v48  ;;  %v9417_v58 = vld [vmem:[#allocation5 + $0x70] sm:$0xff]  ;;  %v21284_v9 = vld [vmem:[#allocation226_spill] sm:$0xff] }
 0x710   :  { %11130 = vmatprep.subr.bf16.mxu1 %v12695_v49  ;;  %11171 = vmatprep.subr.bf16.mxu0 %v12727_v11  ;;  %v12745_v49 = vcombine.high %v21257_v35, %v21256_v13  ;;  %v12777_v11 = vcombine.high %v21259_v20, %v21258_v0  ;;  %v9433_v50 = vpack.c.bf16 %v9417_v58, %v9417_v58 }
 0x713   :  { %11131 = vmatpush2.bf16.msra.mxu1 %v12694_v5  ;;  %11172 = vmatpush2.bf16.msra.mxu0 %v12726_v45  ;;  %v12744_v5 = vcombine.low %v21257_v35, %v21256_v13  ;;  %v12776_v45 = vcombine.low %v21259_v20, %v21258_v0  ;;  %v21288_v0 = vld [vmem:[#allocation222_spill] sm:$0xff]  ;;  %v21289_v20 = vld [vmem:[#allocation221_spill] sm:$0xff] }
 0x714   :  { %11132 = vmatprep.subr.bf16.mxu1 %v12693_v39  ;;  %11173 = vmatprep.subr.bf16.mxu0 %v12725_v10  ;;  %v12743_v39 = vcombine.high %v21261_v15, %v21260_v57  ;;  %v12775_v10 = vcombine.high %v21263_v4, %v21262_v61 }
 0x717   :  { %11133 = vmatpush2.bf16.msra.mxu1 %v12692_v60  ;;  %11174 = vmatpush2.bf16.msra.mxu0 %v12724_v32  ;;  %v12742_v60 = vcombine.low %v21261_v15, %v21260_v57  ;;  %v12774_v32 = vcombine.low %v21263_v4, %v21262_v61  ;;  %v21290_v57 = vld [vmem:[#allocation220_spill] sm:$0xff]  ;;  %v21291_v15 = vld [vmem:[#allocation219_spill] sm:$0xff] }
 0x718   :  { %11184 = vmatprep.subr.bf16.mxu1 %v12755_v30  ;;  %11225 = vmatprep.subr.bf16.mxu0 %v12787_v27  ;;  %v21267_v30 = vld [vmem:[#allocation235_spill] sm:$0xff]  ;;  %v12756_v61 = vcombine.low %v21291_v15, %v21290_v57 }
 0x719   :  { %v12773_v33 = vcombine.high %v21267_v30, %v21266_v26  ;;  %v12772_v27 = vcombine.low %v21267_v30, %v21266_v26 }
 0x71a   :  { %11135 = vmatmul.mubr.bf16.vlgmr.msra.gmra.mxu1 %v9427_v29  ;;  %11176 = vmatmul.mubr.bf16.vlgmr.msra.gmra.mxu0 %v9429_v43  ;;  %v21268_v29 = vld [vmem:[#allocation234_spill] sm:$0xff]  ;;  %v21269_v43 = vld [vmem:[#allocation233_spill] sm:$0xff] }
 0x71b   :  { %11185 = vmatpush1.bf16.msra.mxu1 %v12754_v14  ;;  %11226 = vmatpush1.bf16.msra.mxu0 %v12786_v2  ;;  %v12771_v42 = vcombine.high %v21269_v43, %v21268_v29  ;;  %v21271_v14 = vld [vmem:[#allocation257_spill] sm:$0xff]  ;;  %v12770_v56 = vcombine.low %v21269_v43, %v21268_v29 }
 0x71c   :  { %11186 = vmatprep.subr.bf16.mxu1 %v12753_v18  ;;  %11227 = vmatprep.subr.bf16.mxu0 %v12785_v52  ;;  %v12795_v2 = vcombine.high %v21271_v14, %v21270_v25  ;;  %v12794_v6 = vcombine.low %v21271_v14, %v21270_v25  ;;  %v21272_v18 = vld [vmem:[#allocation232_spill] sm:$0xff] }
 0x71d   :  { %12796 = vmatprep.mubr.msk.bf16.mxu0 %vm8779_vm4, %v9434_v19  ;;  %11216 = vmatprep.mubr.bf16.mxu1 %v9432_v55  ;;  %v12769_v36 = vcombine.high %v21273_v59, %v21272_v18  ;;  %v21274_v52 = vld [vmem:[#allocation256_spill] sm:$0xff]  ;;  %v21275_v19 = vld [vmem:[#allocation255_spill] sm:$0xff] }
 0x71e   :  { %v12793_v55 = vcombine.high %v21275_v19, %v21274_v52 }
 0x71f   :  { %11187 = vmatpush1.bf16.msra.mxu1 %v12752_v47  ;;  %11228 = vmatpush1.bf16.msra.mxu0 %v12784_v38  ;;  %v12768_v47 = vcombine.low %v21273_v59, %v21272_v18  ;;  %v12792_v38 = vcombine.low %v21275_v19, %v21274_v52  ;;  %v11283_v18 = vld [vmem:[%s20208_s9 + $0x78] sm:$0xff]  ;;  %v11282_v59 = vld [vmem:[%s20208_s9 + $0x70] sm:$0xff]  ;;  %v11280_v52 = vld [vmem:[%s20208_s9 + $0x60] sm:$0xff] }
 0x720   :  { %11188 = vmatprep.subr.bf16.mxu1 %v12751_v1  ;;  %11229 = vmatprep.subr.bf16.mxu0 %v12783_v34  ;;  %v12767_v1 = vcombine.high %v21277_v16, %v21276_v21  ;;  %v12791_v34 = vcombine.high %v21279_v44, %v21278_v31  ;;  %v11279_v19 = vld [vmem:[%s20208_s9 + $0x58] sm:$0xff] }
 0x723   :  { %11189 = vmatpush1.bf16.msra.mxu1 %v12750_v63  ;;  %11230 = vmatpush1.bf16.msra.mxu0 %v12782_v51  ;;  %v12766_v63 = vcombine.low %v21277_v16, %v21276_v21  ;;  %v12790_v51 = vcombine.low %v21279_v44, %v21278_v31  ;;  %v11275_v21 = vld [vmem:[%s20208_s9 + $0x38] sm:$0xff]  ;;  %v11274_v16 = vld [vmem:[%s20208_s9 + $0x30] sm:$0xff]  ;;  %v11272_v31 = vld [vmem:[%s20208_s9 + $0x20] sm:$0xff] }
 0x724   :  { %11190 = vmatprep.subr.bf16.mxu1 %v12749_v7  ;;  %11231 = vmatprep.subr.bf16.mxu0 %v12781_v17  ;;  %v12765_v7 = vcombine.high %v21281_v3, %v21280_v28  ;;  %v12789_v17 = vcombine.high %v21283_v46, %v21282_v41  ;;  %v11271_v44 = vld [vmem:[%s20208_s9 + $0x18] sm:$0xff] }
 0x727   :  { %11191 = vmatpush1.bf16.msra.mxu1 %v12748_v40  ;;  %11232 = vmatpush1.bf16.msra.mxu0 %v12780_v22  ;;  %v12764_v40 = vcombine.low %v21281_v3, %v21280_v28  ;;  %v12788_v22 = vcombine.low %v21283_v46, %v21282_v41  ;;  %v11268_v3 = vld [vmem:[%s20208_s9] sm:$0xff] }
 0x728   :  { %11192 = vmatprep.subr.bf16.mxu1 %v12747_v24  ;;  %11233 = vmatprep.subr.bf16.mxu0 %v12779_v23  ;;  %v21285_v24 = vld [vmem:[#allocation225_spill] sm:$0xff] }
 0x729   :  { %v12763_v48 = vcombine.high %v21285_v24, %v21284_v9  ;;  %v12762_v23 = vcombine.low %v21285_v24, %v21284_v9  ;;  %v11286_v24 = vld [vmem:[%s20208_s9 + $0x90] sm:$0xff] }
 0x72b   :  { %11193 = vmatpush1.bf16.msra.mxu1 %v12746_v62  ;;  %11234 = vmatpush1.bf16.msra.mxu0 %v12778_v54  ;;  %v21286_v62 = vld [vmem:[#allocation224_spill] sm:$0xff]  ;;  %v21287_v54 = vld [vmem:[#allocation223_spill] sm:$0xff] }
 0x72c   :  { %11194 = vmatprep.subr.bf16.mxu1 %v12745_v49  ;;  %11235 = vmatprep.subr.bf16.mxu0 %v12777_v11  ;;  %v12761_v13 = vcombine.high %v21287_v54, %v21286_v62  ;;  %v12760_v35 = vcombine.low %v21287_v54, %v21286_v62  ;;  %v9685_v49 = vlaneseq  ;;  %v12759_v11 = vcombine.high %v21289_v20, %v21288_v0  ;;  %v11285_v62 = vld [vmem:[%s20208_s9 + $0x88] sm:$0xff]  ;;  %v11284_v54 = vld [vmem:[%s20208_s9 + $0x80] sm:$0xff] }
 0x72f   :  { %11195 = vmatpush1.bf16.msra.mxu1 %v12744_v5  ;;  %11236 = vmatpush1.bf16.msra.mxu0 %v12776_v45  ;;  %v12758_v5 = vcombine.low %v21289_v20, %v21288_v0  ;;  %v9686_v45 = vshrl.u32 %v9685_v49, 7 }
 0x730   :  { %11196 = vmatprep.subr.bf16.mxu1 %v12743_v39  ;;  %11237 = vmatprep.subr.bf16.mxu0 %v12775_v10  ;;  %v12757_v39 = vcombine.high %v21291_v15, %v21290_v57  ;;  %v9415_v10 = vld [vmem:[#allocation5 + $0x60] sm:$0xff] }
 0x731   :  { %v9687_v4 = vsub.s32 0, %v9686_v45  ;;  %v9431_v37 = vpack.c.bf16 %v9415_v10, %v9415_v10 }
 0x733   :  { %11197 = vmatpush1.bf16.msra.mxu1 %v12742_v60  ;;  %11238 = vmatpush1.bf16.msra.mxu0 %v12774_v32  ;;  %v9683_v60 = vld [vmem:[%s20207_s8] sm:$0x3]  ;;  %v9691_v32 = vsub.s32 1, %v9686_v45 }
 0x734   :  { %11198 = vmatprep.subr.bf16.mxu1 %v12741_v53  ;;  %11239 = vmatprep.subr.bf16.mxu0 %v12773_v33  ;;  %v9688_v12 = vrot.slane %v9683_v60, %v9687_v4  ;;  %v21292_v53 = vmov 0.0  }
 0x735   :  { %v9692_v26 = vrot.slane %v9683_v60, %v9691_v32 }
 0x737   :  { %11199 = vmatpush1.bf16.msra.mxu1 %v12740_v8  ;;  %11240 = vmatpush1.bf16.msra.mxu0 %v12772_v27 }
 0x738   :  { %11200 = vmatprep.subr.bf16.mxu1 %v12771_v42  ;;  %11249 = vmatprep.subr.bf16.mxu0 %v12795_v2 }
 0x73b   :  { %11201 = vmatpush2.bf16.msra.mxu1 %v12770_v56  ;;  %11250 = vmatpush2.bf16.msra.mxu0 %v12794_v6 }
 0x73c   :  { %11202 = vmatprep.subr.bf16.mxu1 %v12769_v36  ;;  %11251 = vmatprep.subr.bf16.mxu0 %v12793_v55  ;;  %v11281_v36 = vld [vmem:[%s20208_s9 + $0x68] sm:$0xff]  ;;  %v11278_v55 = vld [vmem:[%s20208_s9 + $0x50] sm:$0xff] }
 0x73f   :  { %11203 = vmatpush2.bf16.msra.mxu1 %v12768_v47  ;;  %11252 = vmatpush2.bf16.msra.mxu0 %v12792_v38  ;;  %v11277_v47 = vld [vmem:[%s20208_s9 + $0x48] sm:$0xff]  ;;  %v11276_v38 = vld [vmem:[%s20208_s9 + $0x40] sm:$0xff] }
 0x740   :  { %11204 = vmatprep.subr.bf16.mxu1 %v12767_v1  ;;  %11253 = vmatprep.subr.bf16.mxu0 %v12791_v34  ;;  %v11273_v1 = vld [vmem:[%s20208_s9 + $0x28] sm:$0xff]  ;;  %v11270_v34 = vld [vmem:[%s20208_s9 + $0x10] sm:$0xff] }
 0x743   :  { %11205 = vmatpush2.bf16.msra.mxu1 %v12766_v63  ;;  %11254 = vmatpush2.bf16.msra.mxu0 %v12790_v51  ;;  %v11269_v63 = vld [vmem:[%s20208_s9 + $0x8] sm:$0xff] }
 0x744   :  { %11206 = vmatprep.subr.bf16.mxu1 %v12765_v7  ;;  %11255 = vmatprep.subr.bf16.mxu0 %v12789_v17  ;;  %v11287_v17 = vld [vmem:[%s20208_s9 + $0x98] sm:$0xff] }
 0x747   :  { %11207 = vmatpush2.bf16.msra.mxu1 %v12764_v40  ;;  %11256 = vmatpush2.bf16.msra.mxu0 %v12788_v22 }
 0x748   :  { %11208 = vmatprep.subr.bf16.mxu1 %v12763_v48 }
 0x74a   :  { %11258 = vmatmul.mubr.bf16.vlgmr.msra.gmra.mxu0 %v9433_v50 }
 0x74b   :  { %11209 = vmatpush2.bf16.msra.mxu1 %v12762_v23 }
 0x74c   :  { %11210 = vmatprep.subr.bf16.mxu1 %v12761_v13 }
 0x74f   :  { %11211 = vmatpush2.bf16.msra.mxu1 %v12760_v35 }
 0x750   :  { %11212 = vmatprep.subr.bf16.mxu1 %v12759_v11 }
 0x753   :  { %11213 = vmatpush2.bf16.msra.mxu1 %v12758_v5 }
 0x754   :  { %11214 = vmatprep.subr.bf16.mxu1 %v12757_v39 }
 0x757   :  { %11215 = vmatpush2.bf16.msra.mxu1 %v12756_v61 }
 0x758   :  { %11298 = vmatprep.subr.mxu1 %v21292_v53 }
 0x75a   :  { %v10972_v30 = vpop.f32.mrf.mxu1  ;;  %11217 = vmatmul.mubr.bf16.vlgmr.msra.gmra.mxu1 %v9431_v37  ;;  %v11013_v33 = vpop.f32.mrf.mxu0 }
 0x75b   :  { %v10973_v8 = vadd.f32 %v10972_v30, %v9688_v12  ;;  %11299 = vmatpush1.msra.mxu1 %v11283_v18 }
 0x75c   :  { %v10974_v27 = vpop.f32.mrf.mxu1  ;;  %v11015_v29 = vpop.f32.mrf.mxu0  ;;  %11300 = vmatprep.subr.mxu1 %v21292_v53 }
 0x75d   :  { %v10975_v43 = vadd.f32 %v10974_v27, %v9692_v26  ;;  %v11014_v42 = vadd.f32 %v11013_v33, %v10973_v8  ;;  %11301 = vmatpush1.msra.mxu1 %v11282_v59 }
 0x75e   :  { %v10976_v25 = vpop.f32.mrf.mxu1  ;;  %v11017_v14 = vpop.f32.mrf.mxu0  ;;  %11302 = vmatprep.subr.mxu1 %v21292_v53 }
 0x75f   :  { %v11016_v2 = vadd.f32 %v11015_v29, %v10975_v43  ;;  %11303 = vmatpush1.msra.mxu1 %v11281_v36  ;;  %v11372_v25 = vld [vmem:[%s20210_s11 + $0x18] sm:$0xff]  ;;  %v11371_v14 = vld [vmem:[%s20210_s11 + $0x10] sm:$0xff] }
 0x760   :  { %v10977_v56 = vpop.f32.mrf.mxu1  ;;  %v11018_v6 = vpop.f32.mrf.mxu0  ;;  %11304 = vmatprep.subr.mxu1 %v21292_v53 }
 0x761   :  { %11305 = vmatpush1.msra.mxu1 %v11280_v52  ;;  %v11369_v56 = vld [vmem:[%s20210_s11] sm:$0xff] }
 0x762   :  { %11306 = vmatprep.subr.mxu1 %v21292_v53  ;;  %v12797_v6 = vld [vmem:[%s20209_s10] ss:$0 sm:$0xff] }
 0x763   :  { %11307 = vmatpush1.msra.mxu1 %v11279_v19  ;;  %v12799_v19 = vld [vmem:[#allocation8] ss:$0 sm:$0xff] }
 0x764   :  { %11308 = vmatprep.subr.mxu1 %v21292_v53 }
 0x765   :  { %11309 = vmatpush1.msra.mxu1 %v11278_v55 }
 0x766   :  { %11310 = vmatprep.subr.mxu1 %v21292_v53 }
 0x767   :  { %11311 = vmatpush1.msra.mxu1 %v11277_v47 }
 0x768   :  { %11312 = vmatprep.subr.mxu1 %v21292_v53 }
 0x769   :  { %11313 = vmatpush1.msra.mxu1 %v11276_v38 }
 0x76a   :  { %11314 = vmatprep.subr.mxu1 %v21292_v53 }
 0x76b   :  { %11315 = vmatpush1.msra.mxu1 %v11275_v21 }
 0x76c   :  { %11316 = vmatprep.subr.mxu1 %v21292_v53 }
 0x76d   :  { %11317 = vmatpush1.msra.mxu1 %v11274_v16 }
 0x76e   :  { %11318 = vmatprep.subr.mxu1 %v21292_v53 }
 0x76f   :  { %11319 = vmatpush1.msra.mxu1 %v11273_v1 }
 0x770   :  { %11320 = vmatprep.subr.mxu1 %v21292_v53 }
 0x771   :  { %11321 = vmatpush1.msra.mxu1 %v11272_v31 }
 0x772   :  { %11322 = vmatprep.subr.mxu1 %v21292_v53 }
 0x773   :  { %11323 = vmatpush1.msra.mxu1 %v11271_v44 }
 0x774   :  { %11324 = vmatprep.subr.mxu1 %v21292_v53 }
 0x775   :  { %11325 = vmatpush1.msra.mxu1 %v11270_v34 }
 0x776   :  { %11326 = vmatprep.subr.mxu1 %v21292_v53 }
 0x777   :  { %11327 = vmatpush1.msra.mxu1 %v11269_v63 }
 0x778   :  { %11328 = vmatprep.subr.mxu1 %v21292_v53 }
 0x779   :  { %11329 = vmatpush1.msra.mxu1 %v11268_v3 }
 0x77a   :  { %11354 = vmatprep.subr.mxu1 %v21292_v53 }
 0x77b   :  { %11355 = vmatpush2.msra.mxu1 %v11287_v17 }
 0x77c   :  { %11356 = vmatprep.subr.mxu1 %v21292_v53 }
 0x77d   :  { %11357 = vmatpush2.msra.mxu1 %v11286_v24 }
 0x77e   :  { %11358 = vmatprep.subr.mxu1 %v21292_v53 }
 0x77f   :  { %11359 = vmatpush2.msra.mxu1 %v11285_v62 }
 0x780   :  { %11360 = vmatprep.subr.mxu1 %v21292_v53 }
 0x781   :  { %11361 = vmatpush2.msra.mxu1 %v11284_v54 }
 0x782   :  { %14550 = vmatprep.subr.mxu1 %v21292_v53 }
 0x79a   :  { %v11054_v51 = vpop.f32.mrf.mxu1  ;;  %v11095_v28 = vpop.f32.mrf.mxu0 }
 0x79b   :  { %v11055_v7 = vadd.f32 %v11054_v51, %v11014_v42 }
 0x79c   :  { %v11056_v41 = vpop.f32.mrf.mxu1  ;;  %v11097_v46 = vpop.f32.mrf.mxu0 }
 0x79d   :  { %v11057_v40 = vadd.f32 %v11056_v41, %v11016_v2  ;;  %v11096_v22 = vadd.f32 %v11095_v28, %v11055_v7  ;;  %v11370_v2 = vld [vmem:[%s20210_s11 + $0x8] sm:$0xff] }
 0x79e   :  { %v11058_v58 = vpop.f32.mrf.mxu1  ;;  %v11099_v9 = vpop.f32.mrf.mxu0 }
 0x79f   :  { %v11098_v48 = vadd.f32 %v11097_v46, %v11057_v40 }
 0x7a0   :  { %v11059_v50 = vpop.f32.mrf.mxu1  ;;  %v11100_v23 = vpop.f32.mrf.mxu0 }
 0x7da   :  { %v11136_v13 = vpop.f32.mrf.mxu1  ;;  %v11177_v35 = vpop.f32.mrf.mxu0 }
 0x7db   :  { %v11137_v49 = vadd.f32 %v11136_v13, %v11096_v22 }
 0x7dc   :  { %v11138_v0 = vpop.f32.mrf.mxu1  ;;  %v11179_v20 = vpop.f32.mrf.mxu0 }
 0x7dd   :  { %v11178_v11 = vadd.f32 %v11177_v35, %v11137_v49  ;;  %v11139_v60 = vadd.f32 %v11138_v0, %v11098_v48 }
 0x7de   :  { %v11140_v5 = vpop.f32.mrf.mxu1  ;;  %v11181_v45 = vpop.f32.mrf.mxu0 }
 0x7df   :  { %v11180_v37 = vadd.f32 %v11179_v20, %v11139_v60 }
 0x7e0   :  { %v11141_v57 = vpop.f32.mrf.mxu1  ;;  %v11182_v15 = vpop.f32.mrf.mxu0 }
 0x80a   :  { %v11259_v39 = vpop.f32.mrf.mxu0 }
 0x80c   :  { %v11261_v61 = vpop.f32.mrf.mxu0 }
 0x80e   :  { %v11263_v4 = vpop.f32.mrf.mxu0 }
 0x810   :  { %v11264_v10 = vpop.f32.mrf.mxu0 }
 0x81a   :  { %v11218_v32 = vpop.f32.mrf.mxu1 }
 0x81b   :  { %v11219_v12 = vadd.f32 %v11218_v32, %v11178_v11 }
 0x81c   :  { %v11220_v26 = vpop.f32.mrf.mxu1 }
 0x81d   :  { %v11221_v30 = vadd.f32 %v11220_v26, %v11180_v37  ;;  %v11260_v33 = vadd.f32 %v11259_v39, %v11219_v12 }
 0x81e   :  { %v11222_v8 = vpop.f32.mrf.mxu1 }
 0x81f   :  { %v11262_v27 = vadd.f32 %v11261_v61, %v11221_v30  ;;  %v11266_v42 = vmax.f32 %v11260_v33, 0.0 }
 0x820   :  { %v11223_v29 = vpop.f32.mrf.mxu1 }
 0x821   :  { %v11267_v43 = vmax.f32 %v11262_v27, 0.0 }
 0x823   :  { %12798 = vmatprep.mubr.msk.f32.mxu1 %vm584_vm3, %v11267_v43 }
 0x824   :  { %11363 = vmatmul.mubr.f32.vlgmr.msra.gmra.mxu1 %v11266_v42 }
 0x825   :  { %14551 = vmatpush3.msra.mxu1 %v11372_v25  ;;  %14558 = vmatprep.mubr.msk.f32.mxu1 %vm14571_vm6, %v21292_v53 }
 0x826   :  { %14552 = vmatprep.subr.mxu1 %v21292_v53 }
 0x827   :  { %14553 = vmatpush3.msra.mxu1 %v11371_v14 }
 0x828   :  { %14554 = vmatprep.subr.mxu1 %v21292_v53 }
 0x829   :  { %14555 = vmatpush3.msra.mxu1 %v11370_v2 }
 0x82a   :  { %14556 = vmatprep.subr.mxu1 %v21292_v53 }
 0x82b   :  { %14557 = vmatpush3.msra.mxu1 %v11369_v56 }
 0x8e4   :  { %v11364_v18 = vpop.f32.mrf.mxu1 }
 0x8e5   :  { %v11365_v59 = vadd.f32 %v12797_v6, %v11364_v18 }
 0x8e6   :  { %v11366_v36 = vpop.f32.mrf.mxu1 }
 0x8e7   :  { %v11368_v52 = vmax.f32 %v11365_v59, 0.0 }
 0x8e9   :  { %14559 = vmatmul.mubr.msk.f32.vlgmr.msra.gmra.mxu1 %vm584_vm3, %v11368_v52 }
 0x9a9   :  { %v11449_v55 = vpop.f32.mrf.mxu1 }
 0x9aa   :  { %v11450_v47 = vadd.f32 %v12799_v19, %v11449_v55 }
 0x9ab   :  { %v14560_v38 = vpop.f32.mrf.mxu1 }
 0x9ac   :  { %11454 = vst.msk [vmem:[%s20212_s13] sm:$0xff] %vm11453_vm7, %v11450_v47 }
 0x9ad   :  { %11459 = vsyncmov [#allocation7] }
 0x9b0   :  { %s11460_s14 = vpop.sfrf %11459 }
 0x9b1   :  { %p12801_p0 = scmp.ne.s32.totalorder %s11460_s14, 0 }
 0x9b3   :  { %11464 = shalt.err (%p12801_p0)  }

</bundles_post_ra>
